<compile_context>
chip_gen: v7x
topology: tpu7x:2x2x1
jax: 0.10.0
libtpu: 0.0.40
codegen_flags: <defaults>
</compile_context>

<pallas_src>
import functools

import jax
import jax.numpy as jnp
from jax.experimental import pallas as pl
from jax.experimental.pallas import tpu as pltpu

NEG_SLOPE = 0.2  # LeakyReLU negative slope used throughout the module


def _leaky(y):
    return jnp.where(y >= 0, y, NEG_SLOPE * y)


# ----------------------------------------------------------------------------
# Fused stage kernel:
#   KNN(x) -> top-k indices -> edge conv (project-then-gather) -> BN -> leaky
#   -> max over k neighbors -> (+ residual 1x1 conv)
# ----------------------------------------------------------------------------
def _stage_kernel(x_ref, wd_ref, wc_ref, s_ref, b_ref, *rest, k):
    if len(rest) == 2:            # residual stage: (wres_ref, o_ref)
        wres_ref, o_ref = rest
    else:                         # first stage: (o_ref,)
        (o_ref,) = rest
        wres_ref = None

    x = x_ref[...]                                           # (N, Cin) f32
    n = x.shape[0]
    xb = x.astype(jnp.bfloat16)

    # --- KNN score.  Reference: pd[i,j] = -||x_i - x_j||^2, top-k over j.
    # The -||x_i||^2 term is constant along j, so score = 2*x_i.x_j - ||x_j||^2
    # yields identical top-k indices.  Kept in f32 to preserve neighbor choice.
    inner = jax.lax.dot_general(
        x, x, (((1,), (1,)), ((), ())),
        preferred_element_type=jnp.float32)                  # (N, N)  x_i . x_j
    rows = jax.lax.broadcasted_iota(jnp.int32, (n, n), 0)
    cols = jax.lax.broadcasted_iota(jnp.int32, (n, n), 1)
    sq_j = jnp.sum(jnp.where(rows == cols, inner, 0.0),
                   axis=0, keepdims=True)                    # (1, N) = ||x_j||^2
    score = 2.0 * inner - sq_j                               # (N, N)

    # --- project once per stage (bf16 MXU, f32 accumulation)
    wd = wd_ref[...].astype(jnp.bfloat16)                    # (Cin, Cout)
    wc = wc_ref[...].astype(jnp.bfloat16)
    xwd = jnp.dot(xb, wd, preferred_element_type=jnp.float32)   # (N, Cout)
    xwc = jnp.dot(xb, wc, preferred_element_type=jnp.float32)   # (N, Cout)
    base = xwc - xwd                                         # per-center constant

    scale = s_ref[...]                                       # (1, Cout)
    bias = b_ref[...]                                        # (1, Cout)

    # --- iterative top-k + one-hot MXU gather + BN + LeakyReLU + max over k
    result = None
    s = score
    for j in range(k):                                       # k=4: static unroll
        m = jnp.max(s, axis=-1, keepdims=True)               # (N, 1)
        idx_j = jnp.min(jnp.where(s == m, cols, n),
                        axis=-1, keepdims=True)              # (N, 1) int32
        onehot = (cols == idx_j).astype(jnp.float32)         # (N, N) row-select
        gath = jnp.dot(onehot, xwd,
                       preferred_element_type=jnp.float32)   # (N, Cout) = xwd[idx_j]
        yj = _leaky((gath + base) * scale + bias)
        result = yj if result is None else jnp.maximum(result, yj)
        if j + 1 < k:
            s = jnp.where(cols == idx_j, -jnp.inf, s)        # drop chosen column

    # --- fused residual 1x1 conv (resconv1 / resconv2)
    if wres_ref is not None:
        wres = wres_ref[...].astype(jnp.bfloat16)            # (Cin, Cout)
        result = result + jnp.dot(xb, wres,
                                  preferred_element_type=jnp.float32)

    o_ref[...] = result


def fused_stage(x, wd, wc, scale, bias, wres=None, *, k):
    """x: (B, N, Cin) -> (B, N, Cout); fuses KNN + edge conv (+ residual)."""
    b, n, cin = x.shape
    cout = wd.shape[1]
    in_specs = [
        pl.BlockSpec((None, n, cin), lambda i: (i, 0, 0)),
        pl.BlockSpec((cin, cout), lambda i: (0, 0)),
        pl.BlockSpec((cin, cout), lambda i: (0, 0)),
        pl.BlockSpec((1, cout), lambda i: (0, 0)),
        pl.BlockSpec((1, cout), lambda i: (0, 0)),
    ]
    args = [x, wd, wc, scale, bias]
    if wres is not None:
        in_specs.append(pl.BlockSpec((cin, cout), lambda i: (0, 0)))
        args.append(wres)
    return pl.pallas_call(
        functools.partial(_stage_kernel, k=k),
        out_shape=jax.ShapeDtypeStruct((b, n, cout), jnp.float32),
        grid=(b,),
        in_specs=in_specs,
        out_specs=pl.BlockSpec((None, n, cout), lambda i: (i, 0, 0)),
        compiler_params=pltpu.CompilerParams(
            dimension_semantics=("parallel",)),
    )(*args)


# ----------------------------------------------------------------------------
# Head: conv5 on concat(h1,h2,h3) (weight pre-split -> no concatenate), BN5,
# LeakyReLU, global max-pool and avg-pool over points.
# ----------------------------------------------------------------------------
def _head_kernel(h1_ref, h2_ref, h3_ref, w5a_ref, w5b_ref, w5c_ref,
                 s_ref, b_ref, o_ref):
    y = (jnp.dot(h1_ref[...].astype(jnp.bfloat16),
                 w5a_ref[...].astype(jnp.bfloat16),
                 preferred_element_type=jnp.float32)
         + jnp.dot(h2_ref[...].astype(jnp.bfloat16),
                   w5b_ref[...].astype(jnp.bfloat16),
                   preferred_element_type=jnp.float32)
         + jnp.dot(h3_ref[...].astype(jnp.bfloat16),
                   w5c_ref[...].astype(jnp.bfloat16),
                   preferred_element_type=jnp.float32))          # (N, C5)
    y = _leaky(y * s_ref[...] + b_ref[...])
    c5 = y.shape[1]
    o_ref[:, :c5] = jnp.max(y, axis=0, keepdims=True)            # adaptive_max_pool1d
    o_ref[:, c5:] = jnp.mean(y, axis=0, keepdims=True)           # adaptive_avg_pool1d


def head(h1, h2, h3, w5, scale, bias):
    b, n, c1 = h1.shape
    c5 = w5.shape[1]
    w5a, w5b, w5c = w5[:c1], w5[c1:2 * c1], w5[2 * c1:]
    out = pl.pallas_call(
        _head_kernel,
        out_shape=jax.ShapeDtypeStruct((b, 1, 2 * c5), jnp.float32),
        grid=(b,),
        in_specs=[
            pl.BlockSpec((None, n, c1), lambda i: (i, 0, 0)),
            pl.BlockSpec((None, n, c1), lambda i: (i, 0, 0)),
            pl.BlockSpec((None, n, 2 * c1), lambda i: (i, 0, 0)),
            pl.BlockSpec((c1, c5), lambda i: (0, 0)),
            pl.BlockSpec((c1, c5), lambda i: (0, 0)),
            pl.BlockSpec((2 * c1, c5), lambda i: (0, 0)),
            pl.BlockSpec((1, c5), lambda i: (0, 0)),
            pl.BlockSpec((1, c5), lambda i: (0, 0)),
        ],
        out_specs=pl.BlockSpec((None, 1, 2 * c5), lambda i: (i, 0, 0)),
        compiler_params=pltpu.CompilerParams(
            dimension_semantics=("parallel",)),
    )(h1, h2, h3, w5a, w5b, w5c, scale, bias)
    return out.reshape(b, 2 * c5)


# ----------------------------------------------------------------------------
# Full forward pass (use_SElayer=False branch of EdgeConvResFeat)
# ----------------------------------------------------------------------------
def edgeconv_res_feat(x, params, *, k=4):
    """x: (B, num_dims=133, N)  ->  (B, output_size)."""
    xt = jnp.transpose(x, (0, 2, 1))                             # (B, N, 133)

    # stage 1: edge conv on the raw points (no residual)
    h1 = fused_stage(xt, params["wd1"], params["wc1"],
                     params["s1"], params["b1"], k=k)            # (B, N, C1)
    # stage 2: edge conv on h1 + resconv1(h1)
    h2 = fused_stage(h1, params["wd2"], params["wc2"],
                     params["s2"], params["b2"],
                     wres=params["wres1"], k=k)                  # (B, N, C1)
    # stage 3: edge conv on h2 + resconv2(h2)
    h3 = fused_stage(h2, params["wd3"], params["wc3"],
                     params["s3"], params["b3"],
                     wres=params["wres2"], k=k)                  # (B, N, 2*C1)

    # conv5 on implicit concat(h1,h2,h3) + bn5 + leaky + max/avg pool
    return head(h1, h2, h3, params["w5"], params["s5"], params["b5"])


# ----------------------------------------------------------------------------
# Deterministic parameter init (synthetic; matches the module's shapes)
# ----------------------------------------------------------------------------
def _conv_w(key, cin, cout):
    return (jax.random.normal(key, (cin, cout), jnp.float32) /
            jnp.sqrt(jnp.float32(cin)))


def _folded_bn(key, c, eps=1e-5):
    k1, k2, k3, k4 = jax.random.split(key, 4)
    gamma = 1.0 + 0.1 * jax.random.normal(k1, (c,), jnp.float32)
    beta = 0.1 * jax.random.normal(k2, (c,), jnp.float32)
    mean = 0.1 * jax.random.normal(k3, (c,), jnp.float32)
    var = jnp.abs(1.0 + 0.1 * jax.random.normal(k4, (c,), jnp.float32))
    scale = gamma / jnp.sqrt(var + eps)
    bias = beta - mean * scale
    return scale.reshape(1, c), bias.reshape(1, c)


def init_params(key, num_dims, hide_size, output_size):
    c1 = hide_size // 16
    c5 = output_size // 2
    keys = jax.random.split(key, 12)
    p = {}
    # conv1: Conv2d(2*num_dims -> C1); split into diff / center halves
    p["wd1"] = _conv_w(keys[0], num_dims, c1)
    p["wc1"] = _conv_w(keys[1], num_dims, c1)
    p["s1"], p["b1"] = _folded_bn(keys[2], c1)
    # conv2: Conv2d(2*C1 -> C1)
    p["wd2"] = _conv_w(keys[3], c1, c1)
    p["wc2"] = _conv_w(keys[4], c1, c1)
    p["s2"], p["b2"] = _folded_bn(keys[5], c1)
    # conv3: Conv2d(2*C1 -> 2*C1)
    p["wd3"] = _conv_w(keys[6], c1, 2 * c1)
    p["wc3"] = _conv_w(keys[7], c1, 2 * c1)
    p["s3"], p["b3"] = _folded_bn(keys[8], 2 * c1)
    # residual 1x1 convs
    p["wres1"] = _conv_w(keys[9], c1, c1)
    p["wres2"] = _conv_w(keys[10], c1, 2 * c1)
    # conv5: Conv1d(4*C1 -> output_size//2) + bn5
    k5a, k5b = jax.random.split(keys[11])
    p["w5"] = _conv_w(k5a, 4 * c1, c5)
    p["s5"], p["b5"] = _folded_bn(k5b, c5)
    return p


if __name__ == "__main__":
    # Small shapes consistent with the module: num_dims is fixed to 133 by
    # conv1 (133 * 2 input channels); modest num_point / hide_size.
    B, NUM_DIMS, N = 2, 133, 64
    K = 4
    HIDE_SIZE, OUTPUT_SIZE = 512, 256

    key = jax.random.PRNGKey(0)
    kx, kp = jax.random.split(key)
    x = 0.5 * jax.random.normal(kx, (B, NUM_DIMS, N), jnp.float32)
    params = init_params(kp, NUM_DIMS, HIDE_SIZE, OUTPUT_SIZE)

    fwd = jax.jit(functools.partial(edgeconv_res_feat, k=K))
    out = fwd(x, params)
    out = jax.block_until_ready(out)

    assert out.shape == (B, OUTPUT_SIZE), out.shape
    assert out.dtype == jnp.float32
    assert bool(jnp.all(jnp.isfinite(out)))
    print("KERNEL_OK")
</pallas_src>

<mosaic_0001>
module attributes {stable_mosaic.version = 11 : i64} {
  func.func @_stage_kernel(%arg0: i32, %arg1: memref<1x64x32xf32, #tpu.memory_space<vmem>>, %arg2: memref<32x64xf32, #tpu.memory_space<vmem>>, %arg3: memref<32x64xf32, #tpu.memory_space<vmem>>, %arg4: memref<1x64xf32, #tpu.memory_space<vmem>>, %arg5: memref<1x64xf32, #tpu.memory_space<vmem>>, %arg6: memref<32x64xf32, #tpu.memory_space<vmem>>, %arg7: memref<1x64x64xf32, #tpu.memory_space<vmem>>) attributes {dimension_semantics = [#tpu.dimension_semantics<parallel>], iteration_bounds = array<i64: 2>, scalar_prefetch = 0 : i64, scratch_operands = 0 : i64, tpu.core_type = #tpu.core_type<tc>, window_params = [{transform_indices = @transform_0, window_bounds = array<i64: 1, 64, 32>}, {pipeline_mode = #tpu.pipeline_mode<synchronous>, transform_indices = @transform_1, window_bounds = array<i64: 32, 64>}, {pipeline_mode = #tpu.pipeline_mode<synchronous>, transform_indices = @transform_2, window_bounds = array<i64: 32, 64>}, {pipeline_mode = #tpu.pipeline_mode<synchronous>, transform_indices = @transform_3, window_bounds = array<i64: 1, 64>}, {pipeline_mode = #tpu.pipeline_mode<synchronous>, transform_indices = @transform_4, window_bounds = array<i64: 1, 64>}, {pipeline_mode = #tpu.pipeline_mode<synchronous>, transform_indices = @transform_5, window_bounds = array<i64: 32, 64>}, {transform_indices = @transform_6, window_bounds = array<i64: 1, 64, 64>}]} {
    %c0 = arith.constant 0 : index
    %c0_0 = arith.constant 0 : index
    %c0_1 = arith.constant 0 : index
    %0 = vector.load %arg1[%c0, %c0_0, %c0_1] : memref<1x64x32xf32, #tpu.memory_space<vmem>>, vector<1x64x32xf32>
    %1 = vector.shape_cast %0 : vector<1x64x32xf32> to vector<64x32xf32>
    %2 = arith.truncf %1 : vector<64x32xf32> to vector<64x32xbf16>
    %cst = arith.constant dense<0.000000e+00> : vector<64x64xf32>
    %3 = tpu.matmul %1, %1, %cst {dimension_numbers = #tpu.dot_dimension_numbers<[1], [1], [0], [0], [0, 0, 1, 0], [], []>} : vector<64x32xf32>, vector<64x32xf32>, vector<64x64xf32> -> vector<64x64xf32>
    %4 = tpu.iota {dimensions = array<i32: 0>} : vector<64x64xi32>
    %5 = tpu.iota {dimensions = array<i32: 1>} : vector<64x64xi32>
    %6 = arith.cmpi eq, %4, %5 : vector<64x64xi32>
    %cst_2 = arith.constant 0.000000e+00 : f32
    %7 = vector.broadcast %cst_2 : f32 to vector<64x64xf32>
    %8 = arith.select %6, %3, %7 : vector<64x64xi1>, vector<64x64xf32>
    %cst_3 = arith.constant dense<0.000000e+00> : vector<64xf32>
    %9 = vector.multi_reduction <add>, %8, %cst_3 [0] : vector<64x64xf32> to vector<64xf32>
    %10 = vector.shape_cast %9 : vector<64xf32> to vector<1x64xf32>
    %cst_4 = arith.constant 2.000000e+00 : f32
    %11 = vector.broadcast %cst_4 : f32 to vector<64x64xf32>
    %12 = arith.mulf %11, %3 : vector<64x64xf32>
    %13 = vector.broadcast %10 : vector<1x64xf32> to vector<64x64xf32>
    %14 = arith.subf %12, %13 : vector<64x64xf32>
    %c0_5 = arith.constant 0 : index
    %c0_6 = arith.constant 0 : index
    %15 = vector.load %arg2[%c0_5, %c0_6] : memref<32x64xf32, #tpu.memory_space<vmem>>, vector<32x64xf32>
    %16 = arith.truncf %15 : vector<32x64xf32> to vector<32x64xbf16>
    %c0_7 = arith.constant 0 : index
    %c0_8 = arith.constant 0 : index
    %17 = vector.load %arg3[%c0_7, %c0_8] : memref<32x64xf32, #tpu.memory_space<vmem>>, vector<32x64xf32>
    %18 = arith.truncf %17 : vector<32x64xf32> to vector<32x64xbf16>
    %cst_9 = arith.constant dense<0.000000e+00> : vector<64x64xf32>
    %19 = tpu.matmul %2, %16, %cst_9 {dimension_numbers = #tpu.dot_dimension_numbers<[1], [0], [0], [1], [0, 0, 1, 1], [], []>} : vector<64x32xbf16>, vector<32x64xbf16>, vector<64x64xf32> -> vector<64x64xf32>
    %cst_10 = arith.constant dense<0.000000e+00> : vector<64x64xf32>
    %20 = tpu.matmul %2, %18, %cst_10 {dimension_numbers = #tpu.dot_dimension_numbers<[1], [0], [0], [1], [0, 0, 1, 1], [], []>} : vector<64x32xbf16>, vector<32x64xbf16>, vector<64x64xf32> -> vector<64x64xf32>
    %21 = arith.subf %20, %19 : vector<64x64xf32>
    %c0_11 = arith.constant 0 : index
    %c0_12 = arith.constant 0 : index
    %22 = vector.load %arg4[%c0_11, %c0_12] : memref<1x64xf32, #tpu.memory_space<vmem>>, vector<1x64xf32>
    %c0_13 = arith.constant 0 : index
    %c0_14 = arith.constant 0 : index
    %23 = vector.load %arg5[%c0_13, %c0_14] : memref<1x64xf32, #tpu.memory_space<vmem>>, vector<1x64xf32>
    %cst_15 = arith.constant dense<0xFF800000> : vector<64xf32>
    %24 = vector.multi_reduction <maximumf>, %14, %cst_15 [1] : vector<64x64xf32> to vector<64xf32>
    %25 = vector.shape_cast %24 : vector<64xf32> to vector<64x1xf32>
    %26 = vector.broadcast %25 : vector<64x1xf32> to vector<64x64xf32>
    %27 = arith.cmpf oeq, %14, %26 : vector<64x64xf32>
    %c64_i32 = arith.constant 64 : i32
    %28 = vector.broadcast %c64_i32 : i32 to vector<64x64xi32>
    %29 = arith.select %27, %5, %28 : vector<64x64xi1>, vector<64x64xi32>
    %cst_16 = arith.constant dense<2147483647> : vector<64xi32>
    %30 = vector.multi_reduction <minsi>, %29, %cst_16 [1] : vector<64x64xi32> to vector<64xi32>
    %31 = vector.shape_cast %30 : vector<64xi32> to vector<64x1xi32>
    %32 = vector.broadcast %31 : vector<64x1xi32> to vector<64x64xi32>
    %33 = arith.cmpi eq, %5, %32 : vector<64x64xi32>
    %34 = arith.extui %33 : vector<64x64xi1> to vector<64x64xi32>
    %35 = arith.sitofp %34 : vector<64x64xi32> to vector<64x64xf32>
    %cst_17 = arith.constant dense<0.000000e+00> : vector<64x64xf32>
    %36 = tpu.matmul %35, %19, %cst_17 {dimension_numbers = #tpu.dot_dimension_numbers<[1], [0], [0], [1], [0, 0, 1, 1], [], []>} : vector<64x64xf32>, vector<64x64xf32>, vector<64x64xf32> -> vector<64x64xf32>
    %37 = arith.addf %36, %21 : vector<64x64xf32>
    %38 = vector.broadcast %22 : vector<1x64xf32> to vector<64x64xf32>
    %39 = arith.mulf %37, %38 : vector<64x64xf32>
    %40 = vector.broadcast %23 : vector<1x64xf32> to vector<64x64xf32>
    %41 = arith.addf %39, %40 : vector<64x64xf32>
    %cst_18 = arith.constant 0.000000e+00 : f32
    %42 = vector.broadcast %cst_18 : f32 to vector<64x64xf32>
    %43 = arith.cmpf oge, %41, %42 : vector<64x64xf32>
    %cst_19 = arith.constant 2.000000e-01 : f32
    %44 = vector.broadcast %cst_19 : f32 to vector<64x64xf32>
    %45 = arith.mulf %44, %41 : vector<64x64xf32>
    %46 = arith.select %43, %41, %45 : vector<64x64xi1>, vector<64x64xf32>
    %47 = vector.broadcast %31 : vector<64x1xi32> to vector<64x64xi32>
    %48 = arith.cmpi eq, %5, %47 : vector<64x64xi32>
    %cst_20 = arith.constant 0xFF800000 : f32
    %49 = vector.broadcast %cst_20 : f32 to vector<64x64xf32>
    %50 = arith.select %48, %49, %14 : vector<64x64xi1>, vector<64x64xf32>
    %cst_21 = arith.constant dense<0xFF800000> : vector<64xf32>
    %51 = vector.multi_reduction <maximumf>, %50, %cst_21 [1] : vector<64x64xf32> to vector<64xf32>
    %52 = vector.shape_cast %51 : vector<64xf32> to vector<64x1xf32>
    %53 = vector.broadcast %52 : vector<64x1xf32> to vector<64x64xf32>
    %54 = arith.cmpf oeq, %50, %53 : vector<64x64xf32>
    %c64_i32_22 = arith.constant 64 : i32
    %55 = vector.broadcast %c64_i32_22 : i32 to vector<64x64xi32>
    %56 = arith.select %54, %5, %55 : vector<64x64xi1>, vector<64x64xi32>
    %cst_23 = arith.constant dense<2147483647> : vector<64xi32>
    %57 = vector.multi_reduction <minsi>, %56, %cst_23 [1] : vector<64x64xi32> to vector<64xi32>
    %58 = vector.shape_cast %57 : vector<64xi32> to vector<64x1xi32>
    %59 = vector.broadcast %58 : vector<64x1xi32> to vector<64x64xi32>
    %60 = arith.cmpi eq, %5, %59 : vector<64x64xi32>
    %61 = arith.extui %60 : vector<64x64xi1> to vector<64x64xi32>
    %62 = arith.sitofp %61 : vector<64x64xi32> to vector<64x64xf32>
    %cst_24 = arith.constant dense<0.000000e+00> : vector<64x64xf32>
    %63 = tpu.matmul %62, %19, %cst_24 {dimension_numbers = #tpu.dot_dimension_numbers<[1], [0], [0], [1], [0, 0, 1, 1], [], []>} : vector<64x64xf32>, vector<64x64xf32>, vector<64x64xf32> -> vector<64x64xf32>
    %64 = arith.addf %63, %21 : vector<64x64xf32>
    %65 = vector.broadcast %22 : vector<1x64xf32> to vector<64x64xf32>
    %66 = arith.mulf %64, %65 : vector<64x64xf32>
    %67 = vector.broadcast %23 : vector<1x64xf32> to vector<64x64xf32>
    %68 = arith.addf %66, %67 : vector<64x64xf32>
    %cst_25 = arith.constant 0.000000e+00 : f32
    %69 = vector.broadcast %cst_25 : f32 to vector<64x64xf32>
    %70 = arith.cmpf oge, %68, %69 : vector<64x64xf32>
    %cst_26 = arith.constant 2.000000e-01 : f32
    %71 = vector.broadcast %cst_26 : f32 to vector<64x64xf32>
    %72 = arith.mulf %71, %68 : vector<64x64xf32>
    %73 = arith.select %70, %68, %72 : vector<64x64xi1>, vector<64x64xf32>
    %74 = arith.maximumf %46, %73 : vector<64x64xf32>
    %75 = vector.broadcast %58 : vector<64x1xi32> to vector<64x64xi32>
    %76 = arith.cmpi eq, %5, %75 : vector<64x64xi32>
    %cst_27 = arith.constant 0xFF800000 : f32
    %77 = vector.broadcast %cst_27 : f32 to vector<64x64xf32>
    %78 = arith.select %76, %77, %50 : vector<64x64xi1>, vector<64x64xf32>
    %cst_28 = arith.constant dense<0xFF800000> : vector<64xf32>
    %79 = vector.multi_reduction <maximumf>, %78, %cst_28 [1] : vector<64x64xf32> to vector<64xf32>
    %80 = vector.shape_cast %79 : vector<64xf32> to vector<64x1xf32>
    %81 = vector.broadcast %80 : vector<64x1xf32> to vector<64x64xf32>
    %82 = arith.cmpf oeq, %78, %81 : vector<64x64xf32>
    %c64_i32_29 = arith.constant 64 : i32
    %83 = vector.broadcast %c64_i32_29 : i32 to vector<64x64xi32>
    %84 = arith.select %82, %5, %83 : vector<64x64xi1>, vector<64x64xi32>
    %cst_30 = arith.constant dense<2147483647> : vector<64xi32>
    %85 = vector.multi_reduction <minsi>, %84, %cst_30 [1] : vector<64x64xi32> to vector<64xi32>
    %86 = vector.shape_cast %85 : vector<64xi32> to vector<64x1xi32>
    %87 = vector.broadcast %86 : vector<64x1xi32> to vector<64x64xi32>
    %88 = arith.cmpi eq, %5, %87 : vector<64x64xi32>
    %89 = arith.extui %88 : vector<64x64xi1> to vector<64x64xi32>
    %90 = arith.sitofp %89 : vector<64x64xi32> to vector<64x64xf32>
    %cst_31 = arith.constant dense<0.000000e+00> : vector<64x64xf32>
    %91 = tpu.matmul %90, %19, %cst_31 {dimension_numbers = #tpu.dot_dimension_numbers<[1], [0], [0], [1], [0, 0, 1, 1], [], []>} : vector<64x64xf32>, vector<64x64xf32>, vector<64x64xf32> -> vector<64x64xf32>
    %92 = arith.addf %91, %21 : vector<64x64xf32>
    %93 = vector.broadcast %22 : vector<1x64xf32> to vector<64x64xf32>
    %94 = arith.mulf %92, %93 : vector<64x64xf32>
    %95 = vector.broadcast %23 : vector<1x64xf32> to vector<64x64xf32>
    %96 = arith.addf %94, %95 : vector<64x64xf32>
    %cst_32 = arith.constant 0.000000e+00 : f32
    %97 = vector.broadcast %cst_32 : f32 to vector<64x64xf32>
    %98 = arith.cmpf oge, %96, %97 : vector<64x64xf32>
    %cst_33 = arith.constant 2.000000e-01 : f32
    %99 = vector.broadcast %cst_33 : f32 to vector<64x64xf32>
    %100 = arith.mulf %99, %96 : vector<64x64xf32>
    %101 = arith.select %98, %96, %100 : vector<64x64xi1>, vector<64x64xf32>
    %102 = arith.maximumf %74, %101 : vector<64x64xf32>
    %103 = vector.broadcast %86 : vector<64x1xi32> to vector<64x64xi32>
    %104 = arith.cmpi eq, %5, %103 : vector<64x64xi32>
    %cst_34 = arith.constant 0xFF800000 : f32
    %105 = vector.broadcast %cst_34 : f32 to vector<64x64xf32>
    %106 = arith.select %104, %105, %78 : vector<64x64xi1>, vector<64x64xf32>
    %cst_35 = arith.constant dense<0xFF800000> : vector<64xf32>
    %107 = vector.multi_reduction <maximumf>, %106, %cst_35 [1] : vector<64x64xf32> to vector<64xf32>
    %108 = vector.shape_cast %107 : vector<64xf32> to vector<64x1xf32>
    %109 = vector.broadcast %108 : vector<64x1xf32> to vector<64x64xf32>
    %110 = arith.cmpf oeq, %106, %109 : vector<64x64xf32>
    %c64_i32_36 = arith.constant 64 : i32
    %111 = vector.broadcast %c64_i32_36 : i32 to vector<64x64xi32>
    %112 = arith.select %110, %5, %111 : vector<64x64xi1>, vector<64x64xi32>
    %cst_37 = arith.constant dense<2147483647> : vector<64xi32>
    %113 = vector.multi_reduction <minsi>, %112, %cst_37 [1] : vector<64x64xi32> to vector<64xi32>
    %114 = vector.shape_cast %113 : vector<64xi32> to vector<64x1xi32>
    %115 = vector.broadcast %114 : vector<64x1xi32> to vector<64x64xi32>
    %116 = arith.cmpi eq, %5, %115 : vector<64x64xi32>
    %117 = arith.extui %116 : vector<64x64xi1> to vector<64x64xi32>
    %118 = arith.sitofp %117 : vector<64x64xi32> to vector<64x64xf32>
    %cst_38 = arith.constant dense<0.000000e+00> : vector<64x64xf32>
    %119 = tpu.matmul %118, %19, %cst_38 {dimension_numbers = #tpu.dot_dimension_numbers<[1], [0], [0], [1], [0, 0, 1, 1], [], []>} : vector<64x64xf32>, vector<64x64xf32>, vector<64x64xf32> -> vector<64x64xf32>
    %120 = arith.addf %119, %21 : vector<64x64xf32>
    %121 = vector.broadcast %22 : vector<1x64xf32> to vector<64x64xf32>
    %122 = arith.mulf %120, %121 : vector<64x64xf32>
    %123 = vector.broadcast %23 : vector<1x64xf32> to vector<64x64xf32>
    %124 = arith.addf %122, %123 : vector<64x64xf32>
    %cst_39 = arith.constant 0.000000e+00 : f32
    %125 = vector.broadcast %cst_39 : f32 to vector<64x64xf32>
    %126 = arith.cmpf oge, %124, %125 : vector<64x64xf32>
    %cst_40 = arith.constant 2.000000e-01 : f32
    %127 = vector.broadcast %cst_40 : f32 to vector<64x64xf32>
    %128 = arith.mulf %127, %124 : vector<64x64xf32>
    %129 = arith.select %126, %124, %128 : vector<64x64xi1>, vector<64x64xf32>
    %130 = arith.maximumf %102, %129 : vector<64x64xf32>
    %c0_41 = arith.constant 0 : index
    %c0_42 = arith.constant 0 : index
    %131 = vector.load %arg6[%c0_41, %c0_42] : memref<32x64xf32, #tpu.memory_space<vmem>>, vector<32x64xf32>
    %132 = arith.truncf %131 : vector<32x64xf32> to vector<32x64xbf16>
    %cst_43 = arith.constant dense<0.000000e+00> : vector<64x64xf32>
    %133 = tpu.matmul %2, %132, %cst_43 {dimension_numbers = #tpu.dot_dimension_numbers<[1], [0], [0], [1], [0, 0, 1, 1], [], []>} : vector<64x32xbf16>, vector<32x64xbf16>, vector<64x64xf32> -> vector<64x64xf32>
    %134 = arith.addf %130, %133 : vector<64x64xf32>
    %c0_44 = arith.constant 0 : index
    %c0_45 = arith.constant 0 : index
    %c0_46 = arith.constant 0 : index
    %135 = vector.load %arg7[%c0_44, %c0_45, %c0_46] : memref<1x64x64xf32, #tpu.memory_space<vmem>>, vector<1x64x64xf32>
    %136 = vector.shape_cast %135 : vector<1x64x64xf32> to vector<64x64xf32>
    %137 = vector.shape_cast %134 : vector<64x64xf32> to vector<1x64x64xf32>
    tpu.vector_store %arg7[%c0_44, %c0_45, %c0_46], %137 {strides = array<i32>} : memref<1x64x64xf32, #tpu.memory_space<vmem>>, vector<1x64x64xf32>,
    return
  }
  func.func @transform_0(%arg0: i32) -> (i32, i32, i32) {
    %c0_i32 = arith.constant 0 : i32
    %c0_i32_0 = arith.constant 0 : i32
    %c0_i32_1 = arith.constant 0 : i32
    return %arg0, %c0_i32, %c0_i32_0 : i32, i32, i32
  }
  func.func @transform_1(%arg0: i32) -> (i32, i32) {
    %c0_i32 = arith.constant 0 : i32
    %c0_i32_0 = arith.constant 0 : i32
    %c0_i32_1 = arith.constant 0 : i32
    return %c0_i32, %c0_i32_0 : i32, i32
  }
  func.func @transform_2(%arg0: i32) -> (i32, i32) {
    %c0_i32 = arith.constant 0 : i32
    %c0_i32_0 = arith.constant 0 : i32
    %c0_i32_1 = arith.constant 0 : i32
    return %c0_i32, %c0_i32_0 : i32, i32
  }
  func.func @transform_3(%arg0: i32) -> (i32, i32) {
    %c0_i32 = arith.constant 0 : i32
    %c0_i32_0 = arith.constant 0 : i32
    %c0_i32_1 = arith.constant 0 : i32
    return %c0_i32, %c0_i32_0 : i32, i32
  }
  func.func @transform_4(%arg0: i32) -> (i32, i32) {
    %c0_i32 = arith.constant 0 : i32
    %c0_i32_0 = arith.constant 0 : i32
    %c0_i32_1 = arith.constant 0 : i32
    return %c0_i32, %c0_i32_0 : i32, i32
  }
  func.func @transform_5(%arg0: i32) -> (i32, i32) {
    %c0_i32 = arith.constant 0 : i32
    %c0_i32_0 = arith.constant 0 : i32
    %c0_i32_1 = arith.constant 0 : i32
    return %c0_i32, %c0_i32_0 : i32, i32
  }
  func.func @transform_6(%arg0: i32) -> (i32, i32, i32) {
    %c0_i32 = arith.constant 0 : i32
    %c0_i32_0 = arith.constant 0 : i32
    %c0_i32_1 = arith.constant 0 : i32
    return %arg0, %c0_i32, %c0_i32_0 : i32, i32, i32
  }
}

module attributes {stable_mosaic.version = 11 : i64} {
  func.func @_stage_kernel(%arg0: i32, %arg1: memref<1x64x133xf32, #tpu.memory_space<vmem>>, %arg2: memref<133x32xf32, #tpu.memory_space<vmem>>, %arg3: memref<133x32xf32, #tpu.memory_space<vmem>>, %arg4: memref<1x32xf32, #tpu.memory_space<vmem>>, %arg5: memref<1x32xf32, #tpu.memory_space<vmem>>, %arg6: memref<1x64x32xf32, #tpu.memory_space<vmem>>) attributes {dimension_semantics = [#tpu.dimension_semantics<parallel>], iteration_bounds = array<i64: 2>, scalar_prefetch = 0 : i64, scratch_operands = 0 : i64, tpu.core_type = #tpu.core_type<tc>, window_params = [{transform_indices = @transform_0, window_bounds = array<i64: 1, 64, 133>}, {pipeline_mode = #tpu.pipeline_mode<synchronous>, transform_indices = @transform_1, window_bounds = array<i64: 133, 32>}, {pipeline_mode = #tpu.pipeline_mode<synchronous>, transform_indices = @transform_2, window_bounds = array<i64: 133, 32>}, {pipeline_mode = #tpu.pipeline_mode<synchronous>, transform_indices = @transform_3, window_bounds = array<i64: 1, 32>}, {pipeline_mode = #tpu.pipeline_mode<synchronous>, transform_indices = @transform_4, window_bounds = array<i64: 1, 32>}, {transform_indices = @transform_5, window_bounds = array<i64: 1, 64, 32>}]} {
    %c0 = arith.constant 0 : index
    %c0_0 = arith.constant 0 : index
    %c0_1 = arith.constant 0 : index
    %0 = vector.load %arg1[%c0, %c0_0, %c0_1] : memref<1x64x133xf32, #tpu.memory_space<vmem>>, vector<1x64x133xf32>
    %1 = vector.shape_cast %0 : vector<1x64x133xf32> to vector<64x133xf32>
    %2 = arith.truncf %1 : vector<64x133xf32> to vector<64x133xbf16>
    %cst = arith.constant dense<0.000000e+00> : vector<64x64xf32>
    %3 = tpu.matmul %1, %1, %cst {dimension_numbers = #tpu.dot_dimension_numbers<[1], [1], [0], [0], [0, 0, 1, 0], [], []>} : vector<64x133xf32>, vector<64x133xf32>, vector<64x64xf32> -> vector<64x64xf32>
    %4 = tpu.iota {dimensions = array<i32: 0>} : vector<64x64xi32>
    %5 = tpu.iota {dimensions = array<i32: 1>} : vector<64x64xi32>
    %6 = arith.cmpi eq, %4, %5 : vector<64x64xi32>
    %cst_2 = arith.constant 0.000000e+00 : f32
    %7 = vector.broadcast %cst_2 : f32 to vector<64x64xf32>
    %8 = arith.select %6, %3, %7 : vector<64x64xi1>, vector<64x64xf32>
    %cst_3 = arith.constant dense<0.000000e+00> : vector<64xf32>
    %9 = vector.multi_reduction <add>, %8, %cst_3 [0] : vector<64x64xf32> to vector<64xf32>
    %10 = vector.shape_cast %9 : vector<64xf32> to vector<1x64xf32>
    %cst_4 = arith.constant 2.000000e+00 : f32
    %11 = vector.broadcast %cst_4 : f32 to vector<64x64xf32>
    %12 = arith.mulf %11, %3 : vector<64x64xf32>
    %13 = vector.broadcast %10 : vector<1x64xf32> to vector<64x64xf32>
    %14 = arith.subf %12, %13 : vector<64x64xf32>
    %c0_5 = arith.constant 0 : index
    %c0_6 = arith.constant 0 : index
    %15 = vector.load %arg2[%c0_5, %c0_6] : memref<133x32xf32, #tpu.memory_space<vmem>>, vector<133x32xf32>
    %16 = arith.truncf %15 : vector<133x32xf32> to vector<133x32xbf16>
    %c0_7 = arith.constant 0 : index
    %c0_8 = arith.constant 0 : index
    %17 = vector.load %arg3[%c0_7, %c0_8] : memref<133x32xf32, #tpu.memory_space<vmem>>, vector<133x32xf32>
    %18 = arith.truncf %17 : vector<133x32xf32> to vector<133x32xbf16>
    %cst_9 = arith.constant dense<0.000000e+00> : vector<64x32xf32>
    %19 = tpu.matmul %2, %16, %cst_9 {dimension_numbers = #tpu.dot_dimension_numbers<[1], [0], [0], [1], [0, 0, 1, 1], [], []>} : vector<64x133xbf16>, vector<133x32xbf16>, vector<64x32xf32> -> vector<64x32xf32>
    %cst_10 = arith.constant dense<0.000000e+00> : vector<64x32xf32>
    %20 = tpu.matmul %2, %18, %cst_10 {dimension_numbers = #tpu.dot_dimension_numbers<[1], [0], [0], [1], [0, 0, 1, 1], [], []>} : vector<64x133xbf16>, vector<133x32xbf16>, vector<64x32xf32> -> vector<64x32xf32>
    %21 = arith.subf %20, %19 : vector<64x32xf32>
    %c0_11 = arith.constant 0 : index
    %c0_12 = arith.constant 0 : index
    %22 = vector.load %arg4[%c0_11, %c0_12] : memref<1x32xf32, #tpu.memory_space<vmem>>, vector<1x32xf32>
    %c0_13 = arith.constant 0 : index
    %c0_14 = arith.constant 0 : index
    %23 = vector.load %arg5[%c0_13, %c0_14] : memref<1x32xf32, #tpu.memory_space<vmem>>, vector<1x32xf32>
    %cst_15 = arith.constant dense<0xFF800000> : vector<64xf32>
    %24 = vector.multi_reduction <maximumf>, %14, %cst_15 [1] : vector<64x64xf32> to vector<64xf32>
    %25 = vector.shape_cast %24 : vector<64xf32> to vector<64x1xf32>
    %26 = vector.broadcast %25 : vector<64x1xf32> to vector<64x64xf32>
    %27 = arith.cmpf oeq, %14, %26 : vector<64x64xf32>
    %c64_i32 = arith.constant 64 : i32
    %28 = vector.broadcast %c64_i32 : i32 to vector<64x64xi32>
    %29 = arith.select %27, %5, %28 : vector<64x64xi1>, vector<64x64xi32>
    %cst_16 = arith.constant dense<2147483647> : vector<64xi32>
    %30 = vector.multi_reduction <minsi>, %29, %cst_16 [1] : vector<64x64xi32> to vector<64xi32>
    %31 = vector.shape_cast %30 : vector<64xi32> to vector<64x1xi32>
    %32 = vector.broadcast %31 : vector<64x1xi32> to vector<64x64xi32>
    %33 = arith.cmpi eq, %5, %32 : vector<64x64xi32>
    %34 = arith.extui %33 : vector<64x64xi1> to vector<64x64xi32>
    %35 = arith.sitofp %34 : vector<64x64xi32> to vector<64x64xf32>
    %cst_17 = arith.constant dense<0.000000e+00> : vector<64x32xf32>
    %36 = tpu.matmul %35, %19, %cst_17 {dimension_numbers = #tpu.dot_dimension_numbers<[1], [0], [0], [1], [0, 0, 1, 1], [], []>} : vector<64x64xf32>, vector<64x32xf32>, vector<64x32xf32> -> vector<64x32xf32>
    %37 = arith.addf %36, %21 : vector<64x32xf32>
    %38 = vector.broadcast %22 : vector<1x32xf32> to vector<64x32xf32>
    %39 = arith.mulf %37, %38 : vector<64x32xf32>
    %40 = vector.broadcast %23 : vector<1x32xf32> to vector<64x32xf32>
    %41 = arith.addf %39, %40 : vector<64x32xf32>
    %cst_18 = arith.constant 0.000000e+00 : f32
    %42 = vector.broadcast %cst_18 : f32 to vector<64x32xf32>
    %43 = arith.cmpf oge, %41, %42 : vector<64x32xf32>
    %cst_19 = arith.constant 2.000000e-01 : f32
    %44 = vector.broadcast %cst_19 : f32 to vector<64x32xf32>
    %45 = arith.mulf %44, %41 : vector<64x32xf32>
    %46 = arith.select %43, %41, %45 : vector<64x32xi1>, vector<64x32xf32>
    %47 = vector.broadcast %31 : vector<64x1xi32> to vector<64x64xi32>
    %48 = arith.cmpi eq, %5, %47 : vector<64x64xi32>
    %cst_20 = arith.constant 0xFF800000 : f32
    %49 = vector.broadcast %cst_20 : f32 to vector<64x64xf32>
    %50 = arith.select %48, %49, %14 : vector<64x64xi1>, vector<64x64xf32>
    %cst_21 = arith.constant dense<0xFF800000> : vector<64xf32>
    %51 = vector.multi_reduction <maximumf>, %50, %cst_21 [1] : vector<64x64xf32> to vector<64xf32>
    %52 = vector.shape_cast %51 : vector<64xf32> to vector<64x1xf32>
    %53 = vector.broadcast %52 : vector<64x1xf32> to vector<64x64xf32>
    %54 = arith.cmpf oeq, %50, %53 : vector<64x64xf32>
    %c64_i32_22 = arith.constant 64 : i32
    %55 = vector.broadcast %c64_i32_22 : i32 to vector<64x64xi32>
    %56 = arith.select %54, %5, %55 : vector<64x64xi1>, vector<64x64xi32>
    %cst_23 = arith.constant dense<2147483647> : vector<64xi32>
    %57 = vector.multi_reduction <minsi>, %56, %cst_23 [1] : vector<64x64xi32> to vector<64xi32>
    %58 = vector.shape_cast %57 : vector<64xi32> to vector<64x1xi32>
    %59 = vector.broadcast %58 : vector<64x1xi32> to vector<64x64xi32>
    %60 = arith.cmpi eq, %5, %59 : vector<64x64xi32>
    %61 = arith.extui %60 : vector<64x64xi1> to vector<64x64xi32>
    %62 = arith.sitofp %61 : vector<64x64xi32> to vector<64x64xf32>
    %cst_24 = arith.constant dense<0.000000e+00> : vector<64x32xf32>
    %63 = tpu.matmul %62, %19, %cst_24 {dimension_numbers = #tpu.dot_dimension_numbers<[1], [0], [0], [1], [0, 0, 1, 1], [], []>} : vector<64x64xf32>, vector<64x32xf32>, vector<64x32xf32> -> vector<64x32xf32>
    %64 = arith.addf %63, %21 : vector<64x32xf32>
    %65 = vector.broadcast %22 : vector<1x32xf32> to vector<64x32xf32>
    %66 = arith.mulf %64, %65 : vector<64x32xf32>
    %67 = vector.broadcast %23 : vector<1x32xf32> to vector<64x32xf32>
    %68 = arith.addf %66, %67 : vector<64x32xf32>
    %cst_25 = arith.constant 0.000000e+00 : f32
    %69 = vector.broadcast %cst_25 : f32 to vector<64x32xf32>
    %70 = arith.cmpf oge, %68, %69 : vector<64x32xf32>
    %cst_26 = arith.constant 2.000000e-01 : f32
    %71 = vector.broadcast %cst_26 : f32 to vector<64x32xf32>
    %72 = arith.mulf %71, %68 : vector<64x32xf32>
    %73 = arith.select %70, %68, %72 : vector<64x32xi1>, vector<64x32xf32>
    %74 = arith.maximumf %46, %73 : vector<64x32xf32>
    %75 = vector.broadcast %58 : vector<64x1xi32> to vector<64x64xi32>
    %76 = arith.cmpi eq, %5, %75 : vector<64x64xi32>
    %cst_27 = arith.constant 0xFF800000 : f32
    %77 = vector.broadcast %cst_27 : f32 to vector<64x64xf32>
    %78 = arith.select %76, %77, %50 : vector<64x64xi1>, vector<64x64xf32>
    %cst_28 = arith.constant dense<0xFF800000> : vector<64xf32>
    %79 = vector.multi_reduction <maximumf>, %78, %cst_28 [1] : vector<64x64xf32> to vector<64xf32>
    %80 = vector.shape_cast %79 : vector<64xf32> to vector<64x1xf32>
    %81 = vector.broadcast %80 : vector<64x1xf32> to vector<64x64xf32>
    %82 = arith.cmpf oeq, %78, %81 : vector<64x64xf32>
    %c64_i32_29 = arith.constant 64 : i32
    %83 = vector.broadcast %c64_i32_29 : i32 to vector<64x64xi32>
    %84 = arith.select %82, %5, %83 : vector<64x64xi1>, vector<64x64xi32>
    %cst_30 = arith.constant dense<2147483647> : vector<64xi32>
    %85 = vector.multi_reduction <minsi>, %84, %cst_30 [1] : vector<64x64xi32> to vector<64xi32>
    %86 = vector.shape_cast %85 : vector<64xi32> to vector<64x1xi32>
    %87 = vector.broadcast %86 : vector<64x1xi32> to vector<64x64xi32>
    %88 = arith.cmpi eq, %5, %87 : vector<64x64xi32>
    %89 = arith.extui %88 : vector<64x64xi1> to vector<64x64xi32>
    %90 = arith.sitofp %89 : vector<64x64xi32> to vector<64x64xf32>
    %cst_31 = arith.constant dense<0.000000e+00> : vector<64x32xf32>
    %91 = tpu.matmul %90, %19, %cst_31 {dimension_numbers = #tpu.dot_dimension_numbers<[1], [0], [0], [1], [0, 0, 1, 1], [], []>} : vector<64x64xf32>, vector<64x32xf32>, vector<64x32xf32> -> vector<64x32xf32>
    %92 = arith.addf %91, %21 : vector<64x32xf32>
    %93 = vector.broadcast %22 : vector<1x32xf32> to vector<64x32xf32>
    %94 = arith.mulf %92, %93 : vector<64x32xf32>
    %95 = vector.broadcast %23 : vector<1x32xf32> to vector<64x32xf32>
    %96 = arith.addf %94, %95 : vector<64x32xf32>
    %cst_32 = arith.constant 0.000000e+00 : f32
    %97 = vector.broadcast %cst_32 : f32 to vector<64x32xf32>
    %98 = arith.cmpf oge, %96, %97 : vector<64x32xf32>
    %cst_33 = arith.constant 2.000000e-01 : f32
    %99 = vector.broadcast %cst_33 : f32 to vector<64x32xf32>
    %100 = arith.mulf %99, %96 : vector<64x32xf32>
    %101 = arith.select %98, %96, %100 : vector<64x32xi1>, vector<64x32xf32>
    %102 = arith.maximumf %74, %101 : vector<64x32xf32>
    %103 = vector.broadcast %86 : vector<64x1xi32> to vector<64x64xi32>
    %104 = arith.cmpi eq, %5, %103 : vector<64x64xi32>
    %cst_34 = arith.constant 0xFF800000 : f32
    %105 = vector.broadcast %cst_34 : f32 to vector<64x64xf32>
    %106 = arith.select %104, %105, %78 : vector<64x64xi1>, vector<64x64xf32>
    %cst_35 = arith.constant dense<0xFF800000> : vector<64xf32>
    %107 = vector.multi_reduction <maximumf>, %106, %cst_35 [1] : vector<64x64xf32> to vector<64xf32>
    %108 = vector.shape_cast %107 : vector<64xf32> to vector<64x1xf32>
    %109 = vector.broadcast %108 : vector<64x1xf32> to vector<64x64xf32>
    %110 = arith.cmpf oeq, %106, %109 : vector<64x64xf32>
    %c64_i32_36 = arith.constant 64 : i32
    %111 = vector.broadcast %c64_i32_36 : i32 to vector<64x64xi32>
    %112 = arith.select %110, %5, %111 : vector<64x64xi1>, vector<64x64xi32>
    %cst_37 = arith.constant dense<2147483647> : vector<64xi32>
    %113 = vector.multi_reduction <minsi>, %112, %cst_37 [1] : vector<64x64xi32> to vector<64xi32>
    %114 = vector.shape_cast %113 : vector<64xi32> to vector<64x1xi32>
    %115 = vector.broadcast %114 : vector<64x1xi32> to vector<64x64xi32>
    %116 = arith.cmpi eq, %5, %115 : vector<64x64xi32>
    %117 = arith.extui %116 : vector<64x64xi1> to vector<64x64xi32>
    %118 = arith.sitofp %117 : vector<64x64xi32> to vector<64x64xf32>
    %cst_38 = arith.constant dense<0.000000e+00> : vector<64x32xf32>
    %119 = tpu.matmul %118, %19, %cst_38 {dimension_numbers = #tpu.dot_dimension_numbers<[1], [0], [0], [1], [0, 0, 1, 1], [], []>} : vector<64x64xf32>, vector<64x32xf32>, vector<64x32xf32> -> vector<64x32xf32>
    %120 = arith.addf %119, %21 : vector<64x32xf32>
    %121 = vector.broadcast %22 : vector<1x32xf32> to vector<64x32xf32>
    %122 = arith.mulf %120, %121 : vector<64x32xf32>
    %123 = vector.broadcast %23 : vector<1x32xf32> to vector<64x32xf32>
    %124 = arith.addf %122, %123 : vector<64x32xf32>
    %cst_39 = arith.constant 0.000000e+00 : f32
    %125 = vector.broadcast %cst_39 : f32 to vector<64x32xf32>
    %126 = arith.cmpf oge, %124, %125 : vector<64x32xf32>
    %cst_40 = arith.constant 2.000000e-01 : f32
    %127 = vector.broadcast %cst_40 : f32 to vector<64x32xf32>
    %128 = arith.mulf %127, %124 : vector<64x32xf32>
    %129 = arith.select %126, %124, %128 : vector<64x32xi1>, vector<64x32xf32>
    %130 = arith.maximumf %102, %129 : vector<64x32xf32>
    %c0_41 = arith.constant 0 : index
    %c0_42 = arith.constant 0 : index
    %c0_43 = arith.constant 0 : index
    %131 = vector.load %arg6[%c0_41, %c0_42, %c0_43] : memref<1x64x32xf32, #tpu.memory_space<vmem>>, vector<1x64x32xf32>
    %132 = vector.shape_cast %131 : vector<1x64x32xf32> to vector<64x32xf32>
    %133 = vector.shape_cast %130 : vector<64x32xf32> to vector<1x64x32xf32>
    tpu.vector_store %arg6[%c0_41, %c0_42, %c0_43], %133 {strides = array<i32>} : memref<1x64x32xf32, #tpu.memory_space<vmem>>, vector<1x64x32xf32>,
    return
  }
  func.func @transform_0(%arg0: i32) -> (i32, i32, i32) {
    %c0_i32 = arith.constant 0 : i32
    %c0_i32_0 = arith.constant 0 : i32
    %c0_i32_1 = arith.constant 0 : i32
    return %arg0, %c0_i32, %c0_i32_0 : i32, i32, i32
  }
  func.func @transform_1(%arg0: i32) -> (i32, i32) {
    %c0_i32 = arith.constant 0 : i32
    %c0_i32_0 = arith.constant 0 : i32
    %c0_i32_1 = arith.constant 0 : i32
    return %c0_i32, %c0_i32_0 : i32, i32
  }
  func.func @transform_2(%arg0: i32) -> (i32, i32) {
    %c0_i32 = arith.constant 0 : i32
    %c0_i32_0 = arith.constant 0 : i32
    %c0_i32_1 = arith.constant 0 : i32
    return %c0_i32, %c0_i32_0 : i32, i32
  }
  func.func @transform_3(%arg0: i32) -> (i32, i32) {
    %c0_i32 = arith.constant 0 : i32
    %c0_i32_0 = arith.constant 0 : i32
    %c0_i32_1 = arith.constant 0 : i32
    return %c0_i32, %c0_i32_0 : i32, i32
  }
  func.func @transform_4(%arg0: i32) -> (i32, i32) {
    %c0_i32 = arith.constant 0 : i32
    %c0_i32_0 = arith.constant 0 : i32
    %c0_i32_1 = arith.constant 0 : i32
    return %c0_i32, %c0_i32_0 : i32, i32
  }
  func.func @transform_5(%arg0: i32) -> (i32, i32, i32) {
    %c0_i32 = arith.constant 0 : i32
    %c0_i32_0 = arith.constant 0 : i32
    %c0_i32_1 = arith.constant 0 : i32
    return %arg0, %c0_i32, %c0_i32_0 : i32, i32, i32
  }
}

module attributes {stable_mosaic.version = 11 : i64} {
  func.func @_stage_kernel(%arg0: i32, %arg1: memref<1x64x32xf32, #tpu.memory_space<vmem>>, %arg2: memref<32x32xf32, #tpu.memory_space<vmem>>, %arg3: memref<32x32xf32, #tpu.memory_space<vmem>>, %arg4: memref<1x32xf32, #tpu.memory_space<vmem>>, %arg5: memref<1x32xf32, #tpu.memory_space<vmem>>, %arg6: memref<32x32xf32, #tpu.memory_space<vmem>>, %arg7: memref<1x64x32xf32, #tpu.memory_space<vmem>>) attributes {dimension_semantics = [#tpu.dimension_semantics<parallel>], iteration_bounds = array<i64: 2>, scalar_prefetch = 0 : i64, scratch_operands = 0 : i64, tpu.core_type = #tpu.core_type<tc>, window_params = [{transform_indices = @transform_0, window_bounds = array<i64: 1, 64, 32>}, {pipeline_mode = #tpu.pipeline_mode<synchronous>, transform_indices = @transform_1, window_bounds = array<i64: 32, 32>}, {pipeline_mode = #tpu.pipeline_mode<synchronous>, transform_indices = @transform_2, window_bounds = array<i64: 32, 32>}, {pipeline_mode = #tpu.pipeline_mode<synchronous>, transform_indices = @transform_3, window_bounds = array<i64: 1, 32>}, {pipeline_mode = #tpu.pipeline_mode<synchronous>, transform_indices = @transform_4, window_bounds = array<i64: 1, 32>}, {pipeline_mode = #tpu.pipeline_mode<synchronous>, transform_indices = @transform_5, window_bounds = array<i64: 32, 32>}, {transform_indices = @transform_6, window_bounds = array<i64: 1, 64, 32>}]} {
    %c0 = arith.constant 0 : index
    %c0_0 = arith.constant 0 : index
    %c0_1 = arith.constant 0 : index
    %0 = vector.load %arg1[%c0, %c0_0, %c0_1] : memref<1x64x32xf32, #tpu.memory_space<vmem>>, vector<1x64x32xf32>
    %1 = vector.shape_cast %0 : vector<1x64x32xf32> to vector<64x32xf32>
    %2 = arith.truncf %1 : vector<64x32xf32> to vector<64x32xbf16>
    %cst = arith.constant dense<0.000000e+00> : vector<64x64xf32>
    %3 = tpu.matmul %1, %1, %cst {dimension_numbers = #tpu.dot_dimension_numbers<[1], [1], [0], [0], [0, 0, 1, 0], [], []>} : vector<64x32xf32>, vector<64x32xf32>, vector<64x64xf32> -> vector<64x64xf32>
    %4 = tpu.iota {dimensions = array<i32: 0>} : vector<64x64xi32>
    %5 = tpu.iota {dimensions = array<i32: 1>} : vector<64x64xi32>
    %6 = arith.cmpi eq, %4, %5 : vector<64x64xi32>
    %cst_2 = arith.constant 0.000000e+00 : f32
    %7 = vector.broadcast %cst_2 : f32 to vector<64x64xf32>
    %8 = arith.select %6, %3, %7 : vector<64x64xi1>, vector<64x64xf32>
    %cst_3 = arith.constant dense<0.000000e+00> : vector<64xf32>
    %9 = vector.multi_reduction <add>, %8, %cst_3 [0] : vector<64x64xf32> to vector<64xf32>
    %10 = vector.shape_cast %9 : vector<64xf32> to vector<1x64xf32>
    %cst_4 = arith.constant 2.000000e+00 : f32
    %11 = vector.broadcast %cst_4 : f32 to vector<64x64xf32>
    %12 = arith.mulf %11, %3 : vector<64x64xf32>
    %13 = vector.broadcast %10 : vector<1x64xf32> to vector<64x64xf32>
    %14 = arith.subf %12, %13 : vector<64x64xf32>
    %c0_5 = arith.constant 0 : index
    %c0_6 = arith.constant 0 : index
    %15 = vector.load %arg2[%c0_5, %c0_6] : memref<32x32xf32, #tpu.memory_space<vmem>>, vector<32x32xf32>
    %16 = arith.truncf %15 : vector<32x32xf32> to vector<32x32xbf16>
    %c0_7 = arith.constant 0 : index
    %c0_8 = arith.constant 0 : index
    %17 = vector.load %arg3[%c0_7, %c0_8] : memref<32x32xf32, #tpu.memory_space<vmem>>, vector<32x32xf32>
    %18 = arith.truncf %17 : vector<32x32xf32> to vector<32x32xbf16>
    %cst_9 = arith.constant dense<0.000000e+00> : vector<64x32xf32>
    %19 = tpu.matmul %2, %16, %cst_9 {dimension_numbers = #tpu.dot_dimension_numbers<[1], [0], [0], [1], [0, 0, 1, 1], [], []>} : vector<64x32xbf16>, vector<32x32xbf16>, vector<64x32xf32> -> vector<64x32xf32>
    %cst_10 = arith.constant dense<0.000000e+00> : vector<64x32xf32>
    %20 = tpu.matmul %2, %18, %cst_10 {dimension_numbers = #tpu.dot_dimension_numbers<[1], [0], [0], [1], [0, 0, 1, 1], [], []>} : vector<64x32xbf16>, vector<32x32xbf16>, vector<64x32xf32> -> vector<64x32xf32>
    %21 = arith.subf %20, %19 : vector<64x32xf32>
    %c0_11 = arith.constant 0 : index
    %c0_12 = arith.constant 0 : index
    %22 = vector.load %arg4[%c0_11, %c0_12] : memref<1x32xf32, #tpu.memory_space<vmem>>, vector<1x32xf32>
    %c0_13 = arith.constant 0 : index
    %c0_14 = arith.constant 0 : index
    %23 = vector.load %arg5[%c0_13, %c0_14] : memref<1x32xf32, #tpu.memory_space<vmem>>, vector<1x32xf32>
    %cst_15 = arith.constant dense<0xFF800000> : vector<64xf32>
    %24 = vector.multi_reduction <maximumf>, %14, %cst_15 [1] : vector<64x64xf32> to vector<64xf32>
    %25 = vector.shape_cast %24 : vector<64xf32> to vector<64x1xf32>
    %26 = vector.broadcast %25 : vector<64x1xf32> to vector<64x64xf32>
    %27 = arith.cmpf oeq, %14, %26 : vector<64x64xf32>
    %c64_i32 = arith.constant 64 : i32
    %28 = vector.broadcast %c64_i32 : i32 to vector<64x64xi32>
    %29 = arith.select %27, %5, %28 : vector<64x64xi1>, vector<64x64xi32>
    %cst_16 = arith.constant dense<2147483647> : vector<64xi32>
    %30 = vector.multi_reduction <minsi>, %29, %cst_16 [1] : vector<64x64xi32> to vector<64xi32>
    %31 = vector.shape_cast %30 : vector<64xi32> to vector<64x1xi32>
    %32 = vector.broadcast %31 : vector<64x1xi32> to vector<64x64xi32>
    %33 = arith.cmpi eq, %5, %32 : vector<64x64xi32>
    %34 = arith.extui %33 : vector<64x64xi1> to vector<64x64xi32>
    %35 = arith.sitofp %34 : vector<64x64xi32> to vector<64x64xf32>
    %cst_17 = arith.constant dense<0.000000e+00> : vector<64x32xf32>
    %36 = tpu.matmul %35, %19, %cst_17 {dimension_numbers = #tpu.dot_dimension_numbers<[1], [0], [0], [1], [0, 0, 1, 1], [], []>} : vector<64x64xf32>, vector<64x32xf32>, vector<64x32xf32> -> vector<64x32xf32>
    %37 = arith.addf %36, %21 : vector<64x32xf32>
    %38 = vector.broadcast %22 : vector<1x32xf32> to vector<64x32xf32>
    %39 = arith.mulf %37, %38 : vector<64x32xf32>
    %40 = vector.broadcast %23 : vector<1x32xf32> to vector<64x32xf32>
    %41 = arith.addf %39, %40 : vector<64x32xf32>
    %cst_18 = arith.constant 0.000000e+00 : f32
    %42 = vector.broadcast %cst_18 : f32 to vector<64x32xf32>
    %43 = arith.cmpf oge, %41, %42 : vector<64x32xf32>
    %cst_19 = arith.constant 2.000000e-01 : f32
    %44 = vector.broadcast %cst_19 : f32 to vector<64x32xf32>
    %45 = arith.mulf %44, %41 : vector<64x32xf32>
    %46 = arith.select %43, %41, %45 : vector<64x32xi1>, vector<64x32xf32>
    %47 = vector.broadcast %31 : vector<64x1xi32> to vector<64x64xi32>
    %48 = arith.cmpi eq, %5, %47 : vector<64x64xi32>
    %cst_20 = arith.constant 0xFF800000 : f32
    %49 = vector.broadcast %cst_20 : f32 to vector<64x64xf32>
    %50 = arith.select %48, %49, %14 : vector<64x64xi1>, vector<64x64xf32>
    %cst_21 = arith.constant dense<0xFF800000> : vector<64xf32>
    %51 = vector.multi_reduction <maximumf>, %50, %cst_21 [1] : vector<64x64xf32> to vector<64xf32>
    %52 = vector.shape_cast %51 : vector<64xf32> to vector<64x1xf32>
    %53 = vector.broadcast %52 : vector<64x1xf32> to vector<64x64xf32>
    %54 = arith.cmpf oeq, %50, %53 : vector<64x64xf32>
    %c64_i32_22 = arith.constant 64 : i32
    %55 = vector.broadcast %c64_i32_22 : i32 to vector<64x64xi32>
    %56 = arith.select %54, %5, %55 : vector<64x64xi1>, vector<64x64xi32>
    %cst_23 = arith.constant dense<2147483647> : vector<64xi32>
    %57 = vector.multi_reduction <minsi>, %56, %cst_23 [1] : vector<64x64xi32> to vector<64xi32>
    %58 = vector.shape_cast %57 : vector<64xi32> to vector<64x1xi32>
    %59 = vector.broadcast %58 : vector<64x1xi32> to vector<64x64xi32>
    %60 = arith.cmpi eq, %5, %59 : vector<64x64xi32>
    %61 = arith.extui %60 : vector<64x64xi1> to vector<64x64xi32>
    %62 = arith.sitofp %61 : vector<64x64xi32> to vector<64x64xf32>
    %cst_24 = arith.constant dense<0.000000e+00> : vector<64x32xf32>
    %63 = tpu.matmul %62, %19, %cst_24 {dimension_numbers = #tpu.dot_dimension_numbers<[1], [0], [0], [1], [0, 0, 1, 1], [], []>} : vector<64x64xf32>, vector<64x32xf32>, vector<64x32xf32> -> vector<64x32xf32>
    %64 = arith.addf %63, %21 : vector<64x32xf32>
    %65 = vector.broadcast %22 : vector<1x32xf32> to vector<64x32xf32>
    %66 = arith.mulf %64, %65 : vector<64x32xf32>
    %67 = vector.broadcast %23 : vector<1x32xf32> to vector<64x32xf32>
    %68 = arith.addf %66, %67 : vector<64x32xf32>
    %cst_25 = arith.constant 0.000000e+00 : f32
    %69 = vector.broadcast %cst_25 : f32 to vector<64x32xf32>
    %70 = arith.cmpf oge, %68, %69 : vector<64x32xf32>
    %cst_26 = arith.constant 2.000000e-01 : f32
    %71 = vector.broadcast %cst_26 : f32 to vector<64x32xf32>
    %72 = arith.mulf %71, %68 : vector<64x32xf32>
    %73 = arith.select %70, %68, %72 : vector<64x32xi1>, vector<64x32xf32>
    %74 = arith.maximumf %46, %73 : vector<64x32xf32>
    %75 = vector.broadcast %58 : vector<64x1xi32> to vector<64x64xi32>
    %76 = arith.cmpi eq, %5, %75 : vector<64x64xi32>
    %cst_27 = arith.constant 0xFF800000 : f32
    %77 = vector.broadcast %cst_27 : f32 to vector<64x64xf32>
    %78 = arith.select %76, %77, %50 : vector<64x64xi1>, vector<64x64xf32>
    %cst_28 = arith.constant dense<0xFF800000> : vector<64xf32>
    %79 = vector.multi_reduction <maximumf>, %78, %cst_28 [1] : vector<64x64xf32> to vector<64xf32>
    %80 = vector.shape_cast %79 : vector<64xf32> to vector<64x1xf32>
    %81 = vector.broadcast %80 : vector<64x1xf32> to vector<64x64xf32>
    %82 = arith.cmpf oeq, %78, %81 : vector<64x64xf32>
    %c64_i32_29 = arith.constant 64 : i32
    %83 = vector.broadcast %c64_i32_29 : i32 to vector<64x64xi32>
    %84 = arith.select %82, %5, %83 : vector<64x64xi1>, vector<64x64xi32>
    %cst_30 = arith.constant dense<2147483647> : vector<64xi32>
    %85 = vector.multi_reduction <minsi>, %84, %cst_30 [1] : vector<64x64xi32> to vector<64xi32>
    %86 = vector.shape_cast %85 : vector<64xi32> to vector<64x1xi32>
    %87 = vector.broadcast %86 : vector<64x1xi32> to vector<64x64xi32>
    %88 = arith.cmpi eq, %5, %87 : vector<64x64xi32>
    %89 = arith.extui %88 : vector<64x64xi1> to vector<64x64xi32>
    %90 = arith.sitofp %89 : vector<64x64xi32> to vector<64x64xf32>
    %cst_31 = arith.constant dense<0.000000e+00> : vector<64x32xf32>
    %91 = tpu.matmul %90, %19, %cst_31 {dimension_numbers = #tpu.dot_dimension_numbers<[1], [0], [0], [1], [0, 0, 1, 1], [], []>} : vector<64x64xf32>, vector<64x32xf32>, vector<64x32xf32> -> vector<64x32xf32>
    %92 = arith.addf %91, %21 : vector<64x32xf32>
    %93 = vector.broadcast %22 : vector<1x32xf32> to vector<64x32xf32>
    %94 = arith.mulf %92, %93 : vector<64x32xf32>
    %95 = vector.broadcast %23 : vector<1x32xf32> to vector<64x32xf32>
    %96 = arith.addf %94, %95 : vector<64x32xf32>
    %cst_32 = arith.constant 0.000000e+00 : f32
    %97 = vector.broadcast %cst_32 : f32 to vector<64x32xf32>
    %98 = arith.cmpf oge, %96, %97 : vector<64x32xf32>
    %cst_33 = arith.constant 2.000000e-01 : f32
    %99 = vector.broadcast %cst_33 : f32 to vector<64x32xf32>
    %100 = arith.mulf %99, %96 : vector<64x32xf32>
    %101 = arith.select %98, %96, %100 : vector<64x32xi1>, vector<64x32xf32>
    %102 = arith.maximumf %74, %101 : vector<64x32xf32>
    %103 = vector.broadcast %86 : vector<64x1xi32> to vector<64x64xi32>
    %104 = arith.cmpi eq, %5, %103 : vector<64x64xi32>
    %cst_34 = arith.constant 0xFF800000 : f32
    %105 = vector.broadcast %cst_34 : f32 to vector<64x64xf32>
    %106 = arith.select %104, %105, %78 : vector<64x64xi1>, vector<64x64xf32>
    %cst_35 = arith.constant dense<0xFF800000> : vector<64xf32>
    %107 = vector.multi_reduction <maximumf>, %106, %cst_35 [1] : vector<64x64xf32> to vector<64xf32>
    %108 = vector.shape_cast %107 : vector<64xf32> to vector<64x1xf32>
    %109 = vector.broadcast %108 : vector<64x1xf32> to vector<64x64xf32>
    %110 = arith.cmpf oeq, %106, %109 : vector<64x64xf32>
    %c64_i32_36 = arith.constant 64 : i32
    %111 = vector.broadcast %c64_i32_36 : i32 to vector<64x64xi32>
    %112 = arith.select %110, %5, %111 : vector<64x64xi1>, vector<64x64xi32>
    %cst_37 = arith.constant dense<2147483647> : vector<64xi32>
    %113 = vector.multi_reduction <minsi>, %112, %cst_37 [1] : vector<64x64xi32> to vector<64xi32>
    %114 = vector.shape_cast %113 : vector<64xi32> to vector<64x1xi32>
    %115 = vector.broadcast %114 : vector<64x1xi32> to vector<64x64xi32>
    %116 = arith.cmpi eq, %5, %115 : vector<64x64xi32>
    %117 = arith.extui %116 : vector<64x64xi1> to vector<64x64xi32>
    %118 = arith.sitofp %117 : vector<64x64xi32> to vector<64x64xf32>
    %cst_38 = arith.constant dense<0.000000e+00> : vector<64x32xf32>
    %119 = tpu.matmul %118, %19, %cst_38 {dimension_numbers = #tpu.dot_dimension_numbers<[1], [0], [0], [1], [0, 0, 1, 1], [], []>} : vector<64x64xf32>, vector<64x32xf32>, vector<64x32xf32> -> vector<64x32xf32>
    %120 = arith.addf %119, %21 : vector<64x32xf32>
    %121 = vector.broadcast %22 : vector<1x32xf32> to vector<64x32xf32>
    %122 = arith.mulf %120, %121 : vector<64x32xf32>
    %123 = vector.broadcast %23 : vector<1x32xf32> to vector<64x32xf32>
    %124 = arith.addf %122, %123 : vector<64x32xf32>
    %cst_39 = arith.constant 0.000000e+00 : f32
    %125 = vector.broadcast %cst_39 : f32 to vector<64x32xf32>
    %126 = arith.cmpf oge, %124, %125 : vector<64x32xf32>
    %cst_40 = arith.constant 2.000000e-01 : f32
    %127 = vector.broadcast %cst_40 : f32 to vector<64x32xf32>
    %128 = arith.mulf %127, %124 : vector<64x32xf32>
    %129 = arith.select %126, %124, %128 : vector<64x32xi1>, vector<64x32xf32>
    %130 = arith.maximumf %102, %129 : vector<64x32xf32>
    %c0_41 = arith.constant 0 : index
    %c0_42 = arith.constant 0 : index
    %131 = vector.load %arg6[%c0_41, %c0_42] : memref<32x32xf32, #tpu.memory_space<vmem>>, vector<32x32xf32>
    %132 = arith.truncf %131 : vector<32x32xf32> to vector<32x32xbf16>
    %cst_43 = arith.constant dense<0.000000e+00> : vector<64x32xf32>
    %133 = tpu.matmul %2, %132, %cst_43 {dimension_numbers = #tpu.dot_dimension_numbers<[1], [0], [0], [1], [0, 0, 1, 1], [], []>} : vector<64x32xbf16>, vector<32x32xbf16>, vector<64x32xf32> -> vector<64x32xf32>
    %134 = arith.addf %130, %133 : vector<64x32xf32>
    %c0_44 = arith.constant 0 : index
    %c0_45 = arith.constant 0 : index
    %c0_46 = arith.constant 0 : index
    %135 = vector.load %arg7[%c0_44, %c0_45, %c0_46] : memref<1x64x32xf32, #tpu.memory_space<vmem>>, vector<1x64x32xf32>
    %136 = vector.shape_cast %135 : vector<1x64x32xf32> to vector<64x32xf32>
    %137 = vector.shape_cast %134 : vector<64x32xf32> to vector<1x64x32xf32>
    tpu.vector_store %arg7[%c0_44, %c0_45, %c0_46], %137 {strides = array<i32>} : memref<1x64x32xf32, #tpu.memory_space<vmem>>, vector<1x64x32xf32>,
    return
  }
  func.func @transform_0(%arg0: i32) -> (i32, i32, i32) {
    %c0_i32 = arith.constant 0 : i32
    %c0_i32_0 = arith.constant 0 : i32
    %c0_i32_1 = arith.constant 0 : i32
    return %arg0, %c0_i32, %c0_i32_0 : i32, i32, i32
  }
  func.func @transform_1(%arg0: i32) -> (i32, i32) {
    %c0_i32 = arith.constant 0 : i32
    %c0_i32_0 = arith.constant 0 : i32
    %c0_i32_1 = arith.constant 0 : i32
    return %c0_i32, %c0_i32_0 : i32, i32
  }
  func.func @transform_2(%arg0: i32) -> (i32, i32) {
    %c0_i32 = arith.constant 0 : i32
    %c0_i32_0 = arith.constant 0 : i32
    %c0_i32_1 = arith.constant 0 : i32
    return %c0_i32, %c0_i32_0 : i32, i32
  }
  func.func @transform_3(%arg0: i32) -> (i32, i32) {
    %c0_i32 = arith.constant 0 : i32
    %c0_i32_0 = arith.constant 0 : i32
    %c0_i32_1 = arith.constant 0 : i32
    return %c0_i32, %c0_i32_0 : i32, i32
  }
  func.func @transform_4(%arg0: i32) -> (i32, i32) {
    %c0_i32 = arith.constant 0 : i32
    %c0_i32_0 = arith.constant 0 : i32
    %c0_i32_1 = arith.constant 0 : i32
    return %c0_i32, %c0_i32_0 : i32, i32
  }
  func.func @transform_5(%arg0: i32) -> (i32, i32) {
    %c0_i32 = arith.constant 0 : i32
    %c0_i32_0 = arith.constant 0 : i32
    %c0_i32_1 = arith.constant 0 : i32
    return %c0_i32, %c0_i32_0 : i32, i32
  }
  func.func @transform_6(%arg0: i32) -> (i32, i32, i32) {
    %c0_i32 = arith.constant 0 : i32
    %c0_i32_0 = arith.constant 0 : i32
    %c0_i32_1 = arith.constant 0 : i32
    return %arg0, %c0_i32, %c0_i32_0 : i32, i32, i32
  }
}

module attributes {stable_mosaic.version = 11 : i64} {
  func.func @_head_kernel(%arg0: i32, %arg1: memref<1x64x32xf32, #tpu.memory_space<vmem>>, %arg2: memref<1x64x32xf32, #tpu.memory_space<vmem>>, %arg3: memref<1x64x64xf32, #tpu.memory_space<vmem>>, %arg4: memref<32x128xf32, #tpu.memory_space<vmem>>, %arg5: memref<32x128xf32, #tpu.memory_space<vmem>>, %arg6: memref<64x128xf32, #tpu.memory_space<vmem>>, %arg7: memref<1x128xf32, #tpu.memory_space<vmem>>, %arg8: memref<1x128xf32, #tpu.memory_space<vmem>>, %arg9: memref<1x1x256xf32, #tpu.memory_space<vmem>>) attributes {dimension_semantics = [#tpu.dimension_semantics<parallel>], iteration_bounds = array<i64: 2>, scalar_prefetch = 0 : i64, scratch_operands = 0 : i64, tpu.core_type = #tpu.core_type<tc>, window_params = [{transform_indices = @transform_0, window_bounds = array<i64: 1, 64, 32>}, {transform_indices = @transform_1, window_bounds = array<i64: 1, 64, 32>}, {transform_indices = @transform_2, window_bounds = array<i64: 1, 64, 64>}, {pipeline_mode = #tpu.pipeline_mode<synchronous>, transform_indices = @transform_3, window_bounds = array<i64: 32, 128>}, {pipeline_mode = #tpu.pipeline_mode<synchronous>, transform_indices = @transform_4, window_bounds = array<i64: 32, 128>}, {pipeline_mode = #tpu.pipeline_mode<synchronous>, transform_indices = @transform_5, window_bounds = array<i64: 64, 128>}, {pipeline_mode = #tpu.pipeline_mode<synchronous>, transform_indices = @transform_6, window_bounds = array<i64: 1, 128>}, {pipeline_mode = #tpu.pipeline_mode<synchronous>, transform_indices = @transform_7, window_bounds = array<i64: 1, 128>}, {transform_indices = @transform_8, window_bounds = array<i64: 1, 1, 256>}]} {
    %c0 = arith.constant 0 : index
    %c0_0 = arith.constant 0 : index
    %c0_1 = arith.constant 0 : index
    %0 = vector.load %arg1[%c0, %c0_0, %c0_1] : memref<1x64x32xf32, #tpu.memory_space<vmem>>, vector<1x64x32xf32>
    %1 = vector.shape_cast %0 : vector<1x64x32xf32> to vector<64x32xf32>
    %2 = arith.truncf %1 : vector<64x32xf32> to vector<64x32xbf16>
    %c0_2 = arith.constant 0 : index
    %c0_3 = arith.constant 0 : index
    %3 = vector.load %arg4[%c0_2, %c0_3] : memref<32x128xf32, #tpu.memory_space<vmem>>, vector<32x128xf32>
    %4 = arith.truncf %3 : vector<32x128xf32> to vector<32x128xbf16>
    %cst = arith.constant dense<0.000000e+00> : vector<64x128xf32>
    %5 = tpu.matmul %2, %4, %cst {dimension_numbers = #tpu.dot_dimension_numbers<[1], [0], [0], [1], [0, 0, 1, 1], [], []>} : vector<64x32xbf16>, vector<32x128xbf16>, vector<64x128xf32> -> vector<64x128xf32>
    %c0_4 = arith.constant 0 : index
    %c0_5 = arith.constant 0 : index
    %c0_6 = arith.constant 0 : index
    %6 = vector.load %arg2[%c0_4, %c0_5, %c0_6] : memref<1x64x32xf32, #tpu.memory_space<vmem>>, vector<1x64x32xf32>
    %7 = vector.shape_cast %6 : vector<1x64x32xf32> to vector<64x32xf32>
    %8 = arith.truncf %7 : vector<64x32xf32> to vector<64x32xbf16>
    %c0_7 = arith.constant 0 : index
    %c0_8 = arith.constant 0 : index
    %9 = vector.load %arg5[%c0_7, %c0_8] : memref<32x128xf32, #tpu.memory_space<vmem>>, vector<32x128xf32>
    %10 = arith.truncf %9 : vector<32x128xf32> to vector<32x128xbf16>
    %cst_9 = arith.constant dense<0.000000e+00> : vector<64x128xf32>
    %11 = tpu.matmul %8, %10, %cst_9 {dimension_numbers = #tpu.dot_dimension_numbers<[1], [0], [0], [1], [0, 0, 1, 1], [], []>} : vector<64x32xbf16>, vector<32x128xbf16>, vector<64x128xf32> -> vector<64x128xf32>
    %12 = arith.addf %5, %11 : vector<64x128xf32>
    %c0_10 = arith.constant 0 : index
    %c0_11 = arith.constant 0 : index
    %c0_12 = arith.constant 0 : index
    %13 = vector.load %arg3[%c0_10, %c0_11, %c0_12] : memref<1x64x64xf32, #tpu.memory_space<vmem>>, vector<1x64x64xf32>
    %14 = vector.shape_cast %13 : vector<1x64x64xf32> to vector<64x64xf32>
    %15 = arith.truncf %14 : vector<64x64xf32> to vector<64x64xbf16>
    %c0_13 = arith.constant 0 : index
    %c0_14 = arith.constant 0 : index
    %16 = vector.load %arg6[%c0_13, %c0_14] : memref<64x128xf32, #tpu.memory_space<vmem>>, vector<64x128xf32>
    %17 = arith.truncf %16 : vector<64x128xf32> to vector<64x128xbf16>
    %cst_15 = arith.constant dense<0.000000e+00> : vector<64x128xf32>
    %18 = tpu.matmul %15, %17, %cst_15 {dimension_numbers = #tpu.dot_dimension_numbers<[1], [0], [0], [1], [0, 0, 1, 1], [], []>} : vector<64x64xbf16>, vector<64x128xbf16>, vector<64x128xf32> -> vector<64x128xf32>
    %19 = arith.addf %12, %18 : vector<64x128xf32>
    %c0_16 = arith.constant 0 : index
    %c0_17 = arith.constant 0 : index
    %20 = vector.load %arg7[%c0_16, %c0_17] : memref<1x128xf32, #tpu.memory_space<vmem>>, vector<1x128xf32>
    %21 = vector.broadcast %20 : vector<1x128xf32> to vector<64x128xf32>
    %22 = arith.mulf %19, %21 : vector<64x128xf32>
    %c0_18 = arith.constant 0 : index
    %c0_19 = arith.constant 0 : index
    %23 = vector.load %arg8[%c0_18, %c0_19] : memref<1x128xf32, #tpu.memory_space<vmem>>, vector<1x128xf32>
    %24 = vector.broadcast %23 : vector<1x128xf32> to vector<64x128xf32>
    %25 = arith.addf %22, %24 : vector<64x128xf32>
    %cst_20 = arith.constant 0.000000e+00 : f32
    %26 = vector.broadcast %cst_20 : f32 to vector<64x128xf32>
    %27 = arith.cmpf oge, %25, %26 : vector<64x128xf32>
    %cst_21 = arith.constant 2.000000e-01 : f32
    %28 = vector.broadcast %cst_21 : f32 to vector<64x128xf32>
    %29 = arith.mulf %28, %25 : vector<64x128xf32>
    %30 = arith.select %27, %25, %29 : vector<64x128xi1>, vector<64x128xf32>
    %cst_22 = arith.constant dense<0xFF800000> : vector<128xf32>
    %31 = vector.multi_reduction <maximumf>, %30, %cst_22 [0] : vector<64x128xf32> to vector<128xf32>
    %32 = vector.shape_cast %31 : vector<128xf32> to vector<1x128xf32>
    %c0_23 = arith.constant 0 : index
    %c0_24 = arith.constant 0 : index
    %c0_25 = arith.constant 0 : index
    %33 = vector.load %arg9[%c0_23, %c0_24, %c0_25] : memref<1x1x256xf32, #tpu.memory_space<vmem>>, vector<1x1x128xf32>
    %34 = vector.shape_cast %33 : vector<1x1x128xf32> to vector<1x128xf32>
    %35 = vector.shape_cast %32 : vector<1x128xf32> to vector<1x1x128xf32>
    tpu.vector_store %arg9[%c0_23, %c0_24, %c0_25], %35 {strides = array<i32>} : memref<1x1x256xf32, #tpu.memory_space<vmem>>, vector<1x1x128xf32>,
    %cst_26 = arith.constant dense<0.000000e+00> : vector<128xf32>
    %36 = vector.multi_reduction <add>, %30, %cst_26 [0] : vector<64x128xf32> to vector<128xf32>
    %37 = vector.shape_cast %36 : vector<128xf32> to vector<1x128xf32>
    %cst_27 = arith.constant 6.400000e+01 : f32
    %38 = vector.broadcast %cst_27 : f32 to vector<1x128xf32>
    %39 = arith.divf %37, %38 : vector<1x128xf32>
    %c0_28 = arith.constant 0 : index
    %c0_29 = arith.constant 0 : index
    %c128 = arith.constant 128 : index
    %40 = vector.load %arg9[%c0_28, %c0_29, %c128] : memref<1x1x256xf32, #tpu.memory_space<vmem>>, vector<1x1x128xf32>
    %41 = vector.shape_cast %40 : vector<1x1x128xf32> to vector<1x128xf32>
    %42 = vector.shape_cast %39 : vector<1x128xf32> to vector<1x1x128xf32>
    tpu.vector_store %arg9[%c0_28, %c0_29, %c128], %42 {strides = array<i32>} : memref<1x1x256xf32, #tpu.memory_space<vmem>>, vector<1x1x128xf32>,
    return
  }
  func.func @transform_0(%arg0: i32) -> (i32, i32, i32) {
    %c0_i32 = arith.constant 0 : i32
    %c0_i32_0 = arith.constant 0 : i32
    %c0_i32_1 = arith.constant 0 : i32
    return %arg0, %c0_i32, %c0_i32_0 : i32, i32, i32
  }
  func.func @transform_1(%arg0: i32) -> (i32, i32, i32) {
    %c0_i32 = arith.constant 0 : i32
    %c0_i32_0 = arith.constant 0 : i32
    %c0_i32_1 = arith.constant 0 : i32
    return %arg0, %c0_i32, %c0_i32_0 : i32, i32, i32
  }
  func.func @transform_2(%arg0: i32) -> (i32, i32, i32) {
    %c0_i32 = arith.constant 0 : i32
    %c0_i32_0 = arith.constant 0 : i32
    %c0_i32_1 = arith.constant 0 : i32
    return %arg0, %c0_i32, %c0_i32_0 : i32, i32, i32
  }
  func.func @transform_3(%arg0: i32) -> (i32, i32) {
    %c0_i32 = arith.constant 0 : i32
    %c0_i32_0 = arith.constant 0 : i32
    %c0_i32_1 = arith.constant 0 : i32
    return %c0_i32, %c0_i32_0 : i32, i32
  }
  func.func @transform_4(%arg0: i32) -> (i32, i32) {
    %c0_i32 = arith.constant 0 : i32
    %c0_i32_0 = arith.constant 0 : i32
    %c0_i32_1 = arith.constant 0 : i32
    return %c0_i32, %c0_i32_0 : i32, i32
  }
  func.func @transform_5(%arg0: i32) -> (i32, i32) {
    %c0_i32 = arith.constant 0 : i32
    %c0_i32_0 = arith.constant 0 : i32
    %c0_i32_1 = arith.constant 0 : i32
    return %c0_i32, %c0_i32_0 : i32, i32
  }
  func.func @transform_6(%arg0: i32) -> (i32, i32) {
    %c0_i32 = arith.constant 0 : i32
    %c0_i32_0 = arith.constant 0 : i32
    %c0_i32_1 = arith.constant 0 : i32
    return %c0_i32, %c0_i32_0 : i32, i32
  }
  func.func @transform_7(%arg0: i32) -> (i32, i32) {
    %c0_i32 = arith.constant 0 : i32
    %c0_i32_0 = arith.constant 0 : i32
    %c0_i32_1 = arith.constant 0 : i32
    return %c0_i32, %c0_i32_0 : i32, i32
  }
  func.func @transform_8(%arg0: i32) -> (i32, i32, i32) {
    %c0_i32 = arith.constant 0 : i32
    %c0_i32_0 = arith.constant 0 : i32
    %c0_i32_1 = arith.constant 0 : i32
    return %arg0, %c0_i32, %c0_i32_0 : i32, i32, i32
  }
}

</mosaic_0001>

<bundles_post_ra>
// kernel: edgeconv_res_feat.4
= control target key start
LH: loop header
LB: loop body
LE: loop exit
PB: predicated region body
PF: predicated region fallthrough
CT: control target
= control target key end

     0   :  { %s2612_s18 = smov 0   ;;  %s3812_s0 = inlined_call_operand.vmem [shape: f32[2,64,133], index: 0, kind: input, shape index: {}]   ;;  %s3813_s1 = inlined_call_operand.vmem [shape: f32[133,32], index: 1, kind: input, shape index: {}]   ;;  %s3814_s2 = inlined_call_operand.vmem [shape: f32[133,32], index: 2, kind: input, shape index: {}]   ;;  %s3815_s3 = inlined_call_operand.vmem [shape: f32[1,32], index: 3, kind: input, shape index: {}]   ;;  %s3816_s4 = inlined_call_operand.vmem [shape: f32[1,32], index: 4, kind: input, shape index: {}]   ;;  %s3817_s5 = inlined_call_operand.vmem [shape: f32[2,64,32], index: 5, kind: output, shape index: {}]  }
   0x1 LB: > { %s2195_s19 = sadd.s32 4294967295, %s2577_s18   ;;  %p2199_p0 = scmp.ge.s32.totalorder %s2577_s18, 1  ;;  %s2577_s18 = sphi %s2612_s18, %s15_s18  }
   0x2   : > { %p187_p1 = scmp.lt.s32.totalorder %s2577_s18, 3 }
   0x4   : > { %p188_p2 = pnand %p2199_p0, %p187_p1 }
   0x6   : > { %191 = sbr.rel (%p188_p2) target bundleno = 2320 (0x910), region = 40 }
   0xd   : > { %p215_p3 = scmp.lt.s32.totalorder %s2195_s19, 1  ;;  %vm250_vm0 = vcmask 39936   ;;  %v380_v25 = vlaneseq  ;;  %vm407_vm4 = vcmask 523264   ;;  %vm509_vm11 = vcmask 1041408  }
   0xe   : > { %vm2630_vm1 = vmpackc.low %vm250_vm0, %vm250_vm0  ;;  %vm510_vm12 = vcmask 1042432  }
   0xf   : > { %s3833_s19 = smov (!%p215_p3, %s2195_s19), 1  ;;  %v381_v26 = vshrl.u32 %v380_v25, 7  ;;  %v2689_v27 = vand.u32 127, %v380_v25 }
  0x10   : > { %s2296_s20 = sshll.u32 %s3833_s19, 7  ;;  %s2297_s27 = sshll.u32 %s3833_s19, 6 }
  0x11   : > { %s2626_s23 = scalar_lea.vmem %s3812_s0, %s2296_s20  ;;  %v382_v28 = vadd.s32 8, %v381_v26  ;;  %vm391_vm2 = vcmp.eq.s32.totalorder %v381_v26, %v2689_v27  ;;  %v383_v31 = vadd.s32 16, %v381_v26  ;;  %v384_v38 = vadd.s32 24, %v381_v26  ;;  %s3769_s30 = scalar_lea.vmem %s3817_s5, %s2297_s27 }
  0x12   : > { %v227_v1 = vld [vmem:[%s2626_s23 + $0x8] sm:$0xff]  ;;  %v229_v2 = vld [vmem:[%s2626_s23 + $0x18] sm:$0xff]  ;;  %v226_v3 = vld [vmem:[%s2626_s23] sm:$0xff]  ;;  %v385_v44 = vadd.s32 32, %v381_v26  ;;  %v386_v50 = vadd.s32 40, %v381_v26  ;;  %v387_v56 = vadd.s32 48, %v381_v26 }
  0x13   : > { %v243_v4 = vpack.c.bf16 %v229_v2, %v227_v1  ;;  %v228_v5 = vld [vmem:[%s2626_s23 + $0x10] sm:$0xff]  ;;  %v231_v6 = vld [vmem:[%s2626_s23 + $0x28] sm:$0xff]  ;;  %v233_v7 = vld [vmem:[%s2626_s23 + $0x38] sm:$0xff]  ;;  %2212 = vmatprep.mubr.msk.f32.mxu0 %vm250_vm0, %v227_v1  ;;  %vm392_vm3 = vcmp.eq.s32.totalorder %v382_v28, %v2689_v27  ;;  %vm393_vm5 = vcmp.eq.s32.totalorder %v383_v31, %v2689_v27  ;;  %vm394_vm6 = vcmp.eq.s32.totalorder %v384_v38, %v2689_v27 }
  0x14   : > { %v2641_v8 = vpack.c.bf16 %v228_v5, %v226_v3  ;;  %v2643_v9 = vpack.c.bf16 %v233_v7, %v231_v6  ;;  %v230_v10 = vld [vmem:[%s2626_s23 + $0x20] sm:$0xff]  ;;  %v232_v11 = vld [vmem:[%s2626_s23 + $0x30] sm:$0xff]  ;;  %v235_v12 = vld [vmem:[%s2626_s23 + $0x48] sm:$0xff]  ;;  %vm395_vm7 = vcmp.eq.s32.totalorder %v385_v44, %v2689_v27  ;;  %vm396_vm8 = vcmp.eq.s32.totalorder %v386_v50, %v2689_v27 }
  0x15   : > { %2476 = vmatprep.subr.msk.bf16.mxu0 %vm2630_vm1, %v243_v4  ;;  %2220 = vmatprep.mubr.msk.bf16.mxu1 %vm250_vm0, %v243_v4  ;;  %v237_v13 = vld [vmem:[%s2626_s23 + $0x58] sm:$0xff]  ;;  %v2656_v14 = vpack.c.bf16 %v232_v11, %v230_v10  ;;  %v234_v16 = vld [vmem:[%s2626_s23 + $0x40] sm:$0xff]  ;;  %v236_v17 = vld [vmem:[%s2626_s23 + $0x50] sm:$0xff]  ;;  %vm397_vm9 = vcmp.eq.s32.totalorder %v387_v56, %v2689_v27  ;;  %v388_v62 = vadd.s32 56, %v381_v26 }
  0x16   : > { %2478 = vmatpush1.bf16.xpose.msra.mxu0 %v2641_v8  ;;  %v2658_v15 = vpack.c.bf16 %v237_v13, %v235_v12  ;;  %v239_v18 = vld [vmem:[%s2626_s23 + $0x68] sm:$0xff]  ;;  %v241_v19 = vld [vmem:[%s2626_s23 + $0x78] sm:$0xff]  ;;  %v2668_v20 = vpack.c.bf16 %v236_v17, %v234_v16  ;;  %v238_v22 = vld [vmem:[%s2626_s23 + $0x60] sm:$0xff] }
  0x17   : > { %2481 = vmatprep.subr.msk.bf16.mxu0 %vm2630_vm1, %v2643_v9  ;;  %v2670_v21 = vpack.c.bf16 %v241_v19, %v239_v18  ;;  %v240_v23 = vld [vmem:[%s2626_s23 + $0x70] sm:$0xff]  ;;  %vm398_vm10 = vcmp.eq.s32.totalorder %v388_v62, %v2689_v27  ;;  %v446_v50 = vld [vmem:[%s3813_s1 + $0x8] sm:$0xff] }
  0x18   : > { %v2678_v24 = vpack.c.bf16 %v240_v23, %v238_v22  ;;  %v450_v56 = vld [vmem:[%s3813_s1 + $0x28] sm:$0xff] }
  0x19   : > { %v454_v62 = vld [vmem:[%s3813_s1 + $0x48] sm:$0xff] }
  0x1e   : > { %2483 = vmatpush1.bf16.xpose.msra.mxu0 %v2656_v14 }
  0x1f   : > { %2486 = vmatprep.subr.msk.bf16.mxu0 %vm2630_vm1, %v2658_v15 }
  0x26   : > { %2488 = vmatpush1.bf16.xpose.msra.mxu0 %v2668_v20 }
  0x27   : > { %2491 = vmatprep.subr.msk.bf16.mxu0 %vm2630_vm1, %v2670_v21 }
  0x2e   : > { %2493 = vmatpush1.bf16.xpose.msra.mxu0 %v2678_v24 }
  0x35   : > { %340 = vmatmul.mubr.f32.vlgmr.msra.gmra.mrb[0].mxu0 %v226_v3 }
  0x36   : > { %2213 = vmatprep.mubr.msk.f32.mxu0 %vm250_vm0, %v229_v2 }
  0x39   : > { %345 = vmatmul.mubr.f32.gmra.mrb[2].mxu0 %v228_v5 }
  0x3a   : > { %2214 = vmatprep.mubr.msk.f32.mxu0 %vm250_vm0, %v231_v6 }
  0x3d   : > { %350 = vmatmul.mubr.f32.gmra.mrb[4].mxu0 %v230_v10 }
  0x3e   : > { %2215 = vmatprep.mubr.msk.f32.mxu0 %vm250_vm0, %v233_v7 }
  0x41   : > { %355 = vmatmul.mubr.f32.gmra.mrb[6].mxu0 %v232_v11 }
  0x42   : > { %2216 = vmatprep.mubr.msk.f32.mxu0 %vm250_vm0, %v235_v12 }
  0x45   : > { %360 = vmatmul.mubr.f32.gmra.mrb[8].mxu0 %v234_v16 }
  0x46   : > { %2217 = vmatprep.mubr.msk.f32.mxu0 %vm250_vm0, %v237_v13 }
  0x49   : > { %365 = vmatmul.mubr.f32.gmra.mrb[10].mxu0 %v236_v17 }
  0x4a   : > { %2218 = vmatprep.mubr.msk.f32.mxu0 %vm250_vm0, %v239_v18 }
  0x4d   : > { %370 = vmatmul.mubr.f32.gmra.mrb[12].mxu0 %v238_v22 }
  0x4e   : > { %2219 = vmatprep.mubr.msk.f32.mxu0 %vm250_vm0, %v241_v19 }
  0x51   : > { %375 = vmatmul.mubr.f32.gmra.mrb[14].mxu0 %v240_v23 }
  0x52   : > { %2224 = vmatprep.mubr.msk.bf16.mxu0 %vm250_vm0, %v243_v4 }
 0x108   : > { %v341_v29 = vpop.f32.mrb[0].mxu0 }
 0x109   : > { %v343_v30 = vpop.f32.mrb[1].mxu0  ;;  %v399_v32 = vsel %vm391_vm2, %v341_v29, 0.0  ;;  %v429_v19 = vmul.f32 2.0, %v341_v29 }
 0x10a   : > { %v408_v36 = vsel %vm407_vm4, %v399_v32, 0.0 }
 0x10c   : > { %v346_v33 = vpop.f32.mrb[2].mxu0 }
 0x10d   : > { %v400_v34 = vsel %vm392_vm3, %v346_v33, 0.0  ;;  %v348_v35 = vpop.f32.mrb[3].mxu0  ;;  %v430_v28 = vmul.f32 2.0, %v346_v33 }
 0x10e   : > { %v409_v37 = vsel %vm407_vm4, %v400_v34, 0.0 }
 0x10f   : > { %v410_v39 = vadd.f32 %v409_v37, %v408_v36 }
 0x110   : > { %v351_v40 = vpop.f32.mrb[4].mxu0 }
 0x111   : > { %v401_v41 = vsel %vm393_vm5, %v351_v40, 0.0  ;;  %v353_v42 = vpop.f32.mrb[5].mxu0  ;;  %v431_v22 = vmul.f32 2.0, %v351_v40 }
 0x112   : > { %v411_v43 = vsel %vm407_vm4, %v401_v41, 0.0 }
 0x113   : > { %v412_v45 = vadd.f32 %v411_v43, %v410_v39 }
 0x114   : > { %v356_v46 = vpop.f32.mrb[6].mxu0 }
 0x115   : > { %v402_v47 = vsel %vm394_vm6, %v356_v46, 0.0  ;;  %v358_v48 = vpop.f32.mrb[7].mxu0  ;;  %v432_v23 = vmul.f32 2.0, %v356_v46 }
 0x116   : > { %v413_v49 = vsel %vm407_vm4, %v402_v47, 0.0  ;;  %v2579_v48 = vmov 0  }
 0x117   : > { %v414_v51 = vadd.f32 %v413_v49, %v412_v45  ;;  %516 = vmatprep.subr.bf16.mxu1 %v2579_v48  ;;  %584 = vmatprep.subr.bf16.mxu0 %v2579_v48  ;;  %v445_v49 = vld [vmem:[%s3813_s1] sm:$0xff] }
 0x118   : > { %v361_v52 = vpop.f32.mrb[8].mxu0 }
 0x119   : > { %v403_v53 = vsel %vm395_vm7, %v361_v52, 0.0  ;;  %v363_v54 = vpop.f32.mrb[9].mxu0  ;;  %v433_v30 = vmul.f32 2.0, %v361_v52  ;;  %v447_v52 = vld [vmem:[%s3813_s1 + $0x10] sm:$0xff] }
 0x11a   : > { %v415_v55 = vsel %vm407_vm4, %v403_v53, 0.0  ;;  %v448_v53 = vld [vmem:[%s3813_s1 + $0x18] sm:$0xff] }
 0x11b   : > { %v416_v57 = vadd.f32 %v415_v55, %v414_v51  ;;  %v462_v51 = vpack.c.bf16 %v446_v50, %v445_v49  ;;  %v463_v54 = vpack.c.bf16 %v448_v53, %v447_v52  ;;  %v449_v55 = vld [vmem:[%s3813_s1 + $0x20] sm:$0xff] }
 0x11c   : > { %v366_v58 = vpop.f32.mrb[10].mxu0 }
 0x11d   : > { %v404_v59 = vsel %vm396_vm8, %v366_v58, 0.0  ;;  %v368_v60 = vpop.f32.mrb[11].mxu0  ;;  %v434_v31 = vmul.f32 2.0, %v366_v58  ;;  %517 = vmatpush1.bf16.msra.mxu1 %v462_v51  ;;  %v451_v58 = vld [vmem:[%s3813_s1 + $0x30] sm:$0xff] }
 0x11e   : > { %v417_v61 = vsel %vm407_vm4, %v404_v59, 0.0  ;;  %518 = vmatprep.subr.bf16.mxu1 %v2579_v48  ;;  %v452_v59 = vld [vmem:[%s3813_s1 + $0x38] sm:$0xff] }
 0x11f   : > { %v418_v63 = vadd.f32 %v417_v61, %v416_v57  ;;  %v464_v57 = vpack.c.bf16 %v450_v56, %v449_v55  ;;  %v465_v60 = vpack.c.bf16 %v452_v59, %v451_v58  ;;  %v453_v61 = vld [vmem:[%s3813_s1 + $0x40] sm:$0xff] }
 0x120   : > { %v371_v0 = vpop.f32.mrb[12].mxu0 }
 0x121   : > { %v405_v1 = vsel %vm397_vm9, %v371_v0, 0.0  ;;  %v373_v2 = vpop.f32.mrb[13].mxu0  ;;  %v435_v32 = vmul.f32 2.0, %v371_v0  ;;  %519 = vmatpush1.bf16.msra.mxu1 %v463_v54  ;;  %v455_v0 = vld [vmem:[%s3813_s1 + $0x50] sm:$0xff] }
 0x122   : > { %v419_v3 = vsel %vm407_vm4, %v405_v1, 0.0  ;;  %520 = vmatprep.subr.bf16.mxu1 %v2579_v48  ;;  %v456_v1 = vld [vmem:[%s3813_s1 + $0x58] sm:$0xff] }
 0x123   : > { %v420_v4 = vadd.f32 %v419_v3, %v418_v63  ;;  %v466_v63 = vpack.c.bf16 %v454_v62, %v453_v61  ;;  %v467_v2 = vpack.c.bf16 %v456_v1, %v455_v0  ;;  %v457_v3 = vld [vmem:[%s3813_s1 + $0x60] sm:$0xff] }
 0x124   : > { %v376_v5 = vpop.f32.mrb[14].mxu0 }
 0x125   : > { %v406_v6 = vsel %vm398_vm10, %v376_v5, 0.0  ;;  %v378_v7 = vpop.f32.mrb[15].mxu0  ;;  %v436_v26 = vmul.f32 2.0, %v376_v5  ;;  %521 = vmatpush1.bf16.msra.mxu1 %v464_v57 }
 0x126   : > { %v421_v10 = vsel %vm407_vm4, %v406_v6, 0.0  ;;  %522 = vmatprep.subr.bf16.mxu1 %v2579_v48  ;;  %v459_v6 = vld [vmem:[%s3813_s1 + $0x70] sm:$0xff]  ;;  %v460_v7 = vld [vmem:[%s3813_s1 + $0x78] sm:$0xff] }
 0x127   : > { %v422_v11 = vadd.f32 %v421_v10, %v420_v4  ;;  %v458_v4 = vld [vmem:[%s3813_s1 + $0x68] sm:$0xff]  ;;  %v461_v10 = vld [vmem:[%s3813_s1 + $0x80] sm:$0x1f] }
 0x128   : > { %v468_v5 = vpack.c.bf16 %v458_v4, %v457_v3 }
 0x129   : > { %v423_v12 = vrot.slane %v422_v11, 4  ;;  %523 = vmatpush1.bf16.msra.mxu1 %v465_v60 }
 0x12a   : > { %524 = vmatprep.subr.bf16.mxu1 %v2579_v48 }
 0x12b   : > { %v424_v13 = vadd.f32 %v423_v12, %v422_v11  ;;  %v2580_v11 = vmov 65535  }
 0x12c   : > { %v511_v12 = vsel %vm509_vm11, 4294967295, %v2580_v11  ;;  %v472_v11 = vld [vmem:[%s3814_s2 + $0x8] sm:$0xff] }
 0x12d   : > { %v425_v16 = vrot.slane %v424_v13, 2  ;;  %525 = vmatpush1.bf16.msra.mxu1 %v466_v63 }
 0x12e   : > { %526 = vmatprep.subr.bf16.mxu1 %v2579_v48 }
 0x12f   : > { %v426_v17 = vadd.f32 %v425_v16, %v424_v13  ;;  %v469_v13 = vpack.c.bf16 %v460_v7, %v459_v6  ;;  %v470_v16 = vpack.c.bf16 %v461_v10, %v461_v10  ;;  %v471_v10 = vld [vmem:[%s3814_s2] sm:$0xff] }
 0x131   : > { %v427_v18 = vrot.slane %v426_v17, 1  ;;  %527 = vmatpush1.bf16.msra.mxu1 %v467_v2 }
 0x132   : > { %528 = vmatprep.subr.bf16.mxu1 %v2579_v48 }
 0x133   : > { %v428_v25 = vadd.f32 %v427_v18, %v426_v17  ;;  %v2799_v17 = vsel %vm510_vm12, %v511_v12, 0  ;;  %v473_v12 = vld [vmem:[%s3814_s2 + $0x10] sm:$0xff] }
 0x134   : > { %v514_v18 = vand.u32 %v2799_v17, %v470_v16  ;;  %v474_v16 = vld [vmem:[%s3814_s2 + $0x18] sm:$0xff] }
 0x135   : > { %v2707_v34 = vsub.f32 %v436_v26, %v428_v25  ;;  %v2709_v35 = vsub.f32 %v431_v22, %v428_v25  ;;  %v2711_v36 = vsub.f32 %v429_v19, %v428_v25  ;;  %v2713_v37 = vsub.f32 %v432_v23, %v428_v25  ;;  %529 = vmatpush1.bf16.msra.mxu1 %v468_v5 }
 0x136   : > { %v2715_v38 = vsub.f32 %v430_v28, %v428_v25  ;;  %v2717_v39 = vsub.f32 %v434_v31, %v428_v25  ;;  %v2719_v29 = vsub.f32 %v433_v30, %v428_v25  ;;  %v2721_v40 = vsub.f32 %v435_v32, %v428_v25  ;;  %530 = vmatprep.subr.bf16.mxu1 %v2579_v48 }
 0x137   : > { %v665_v33 = vsel %vm407_vm4, %v2709_v35, -inf  ;;  %v659_v41 = vsel %vm407_vm4, %v2711_v36, -inf  ;;  %v668_v42 = vsel %vm407_vm4, %v2713_v37, -inf  ;;  %v680_v46 = vsel %vm407_vm4, %v2707_v34, -inf }
 0x138   : > { %666 = vmax.xlane.f32.xlu1 %v665_v33  ;;  %660 = vmax.xlane.f32.xlu0 %v659_v41  ;;  %v662_v43 = vsel %vm407_vm4, %v2715_v38, -inf  ;;  %v674_v44 = vsel %vm407_vm4, %v2717_v39, -inf  ;;  %v671_v45 = vsel %vm407_vm4, %v2719_v29, -inf  ;;  %v677_v47 = vsel %vm407_vm4, %v2721_v40, -inf }
 0x139   : > { %531 = vmatpush1.bf16.msra.mxu1 %v469_v13  ;;  %v488_v13 = vpack.c.bf16 %v472_v11, %v471_v10 }
 0x13a   : > { %532 = vmatprep.subr.bf16.mxu1 %v2579_v48 }
 0x13b   : > { %585 = vmatpush1.bf16.msra.mxu0 %v488_v13 }
 0x13c   : > { %669 = vmax.xlane.f32.xlu1 %v668_v42  ;;  %663 = vmax.xlane.f32.xlu0 %v662_v43 }
 0x13d   : > { %533 = vmatpush1.bf16.msra.mxu1 %v514_v18  ;;  %v489_v18 = vpack.c.bf16 %v474_v16, %v473_v12  ;;  %586 = vmatprep.subr.bf16.mxu0 %v2579_v48 }
 0x13f   : > { %587 = vmatpush1.bf16.msra.mxu0 %v489_v18 }
 0x140   : > { %675 = vmax.xlane.f32.xlu1 %v674_v44  ;;  %672 = vmax.xlane.f32.xlu0 %v671_v45 }
 0x141   : > { %549 = vmatmul.mubr.bf16.vlgmr.msra.gmra.mrb[0].mxu1 %v2641_v8  ;;  %588 = vmatprep.subr.bf16.mxu0 %v2579_v48 }
 0x142   : > { %2221 = vmatprep.mubr.msk.bf16.mxu1 %vm250_vm0, %v2643_v9 }
 0x144   : > { %681 = vmax.xlane.f32.xlu1 %v680_v46  ;;  %678 = vmax.xlane.f32.xlu0 %v677_v47 }
 0x149   : > { %557 = vmatmul.mubr.bf16.gmra.mrb[4].mxu1 %v2656_v14 }
 0x14a   : > { %2222 = vmatprep.mubr.msk.bf16.mxu1 %vm250_vm0, %v2658_v15 }
 0x151   : > { %565 = vmatmul.mubr.bf16.gmra.mrb[8].mxu1 %v2668_v20 }
 0x152   : > { %2223 = vmatprep.mubr.msk.bf16.mxu1 %vm250_vm0, %v2670_v21 }
 0x159   : > { %573 = vmatmul.mubr.bf16.gmra.mrb[12].mxu1 %v2678_v24 }
 0x1c5   : > { %v667_v19 = vpop.xlane.xlu1 %666  ;;  %v661_v22 = vpop.xlane.xlu0 %660 }
 0x1c6   : > { %vm685_vm13 = vcmp.eq.f32.partialorder %v2709_v35, %v667_v19  ;;  %vm683_vm14 = vcmp.eq.f32.partialorder %v2711_v36, %v661_v22  ;;  %v475_v19 = vld [vmem:[%s3814_s2 + $0x20] sm:$0xff]  ;;  %v476_v22 = vld [vmem:[%s3814_s2 + $0x28] sm:$0xff] }
 0x1c7   : > { %v693_v23 = vsel %vm685_vm13, %v2689_v27, 64  ;;  %v691_v25 = vsel %vm683_vm14, %v2689_v27, 64 }
 0x1c8   : > { %v2818_v26 = vsel %vm407_vm4, %v693_v23, 2147483647  ;;  %v2821_v28 = vsel %vm407_vm4, %v691_v25, 2147483647  ;;  %v490_v23 = vpack.c.bf16 %v476_v22, %v475_v19  ;;  %v477_v25 = vld [vmem:[%s3814_s2 + $0x30] sm:$0xff] }
 0x1c9   : > { %v670_v30 = vpop.xlane.xlu1 %669  ;;  %v664_v31 = vpop.xlane.xlu0 %663  ;;  %v701_v32 = vshra.s32 %v2821_v28, 16  ;;  %v731_v43 = vshra.s32 %v2818_v26, 16 }
 0x1ca   : > { %vm686_vm15 = vcmp.eq.f32.partialorder %v2713_v37, %v670_v30  ;;  %vm684_vm1 = vcmp.eq.f32.partialorder %v2715_v38, %v664_v31  ;;  %v478_v30 = vld [vmem:[%s3814_s2 + $0x38] sm:$0xff]  ;;  %589 = vmatpush1.bf16.msra.mxu0 %v490_v23 }
 0x1cb   : > { %v694_v33 = vsel %vm686_vm15, %v2689_v27, 64  ;;  %v692_v41 = vsel %vm684_vm1, %v2689_v27, 64  ;;  %v2828_v42 = vcvt.s32.f32 %v701_v32  ;;  %v2844_v53 = vcvt.s32.f32 %v731_v43  ;;  %590 = vmatprep.subr.bf16.mxu0 %v2579_v48  ;;  %v479_v32 = vld [vmem:[%s3814_s2 + $0x40] sm:$0xff]  ;;  %v481_v43 = vld [vmem:[%s3814_s2 + $0x50] sm:$0xff] }
 0x1cc   : > { %v2832_v44 = vsel %vm407_vm4, %v694_v33, 2147483647  ;;  %v2835_v45 = vsel %vm407_vm4, %v692_v41, 2147483647  ;;  %v491_v31 = vpack.c.bf16 %v478_v30, %v477_v25  ;;  %v480_v33 = vld [vmem:[%s3814_s2 + $0x48] sm:$0xff] }
 0x1cd   : > { %v676_v46 = vpop.xlane.xlu1 %675  ;;  %704 = vmin.xlane.f32.xlu0 %v2828_v42  ;;  %v673_v47 = vpop.xlane.xlu0 %672  ;;  %v716_v49 = vshra.s32 %v2835_v45, 16  ;;  %v746_v50 = vshra.s32 %v2832_v44, 16  ;;  %v492_v41 = vpack.c.bf16 %v480_v33, %v479_v32  ;;  %v745_v11 = vand.u32 65535, %v2832_v44 }
 0x1ce   : > { %vm688_vm2 = vcmp.eq.f32.partialorder %v2717_v39, %v676_v46  ;;  %vm687_vm3 = vcmp.eq.f32.partialorder %v2719_v29, %v673_v47  ;;  %591 = vmatpush1.bf16.msra.mxu0 %v491_v31  ;;  %v482_v46 = vld [vmem:[%s3814_s2 + $0x58] sm:$0xff] }
 0x1cf   : > { %v696_v51 = vsel %vm688_vm2, %v2689_v27, 64  ;;  %v695_v52 = vsel %vm687_vm3, %v2689_v27, 64  ;;  %v2846_v54 = vcvt.s32.f32 %v716_v49  ;;  %v2859_v60 = vcvt.s32.f32 %v746_v50  ;;  %592 = vmatprep.subr.bf16.mxu0 %v2579_v48  ;;  %v483_v49 = vld [vmem:[%s3814_s2 + $0x60] sm:$0xff]  ;;  %v484_v50 = vld [vmem:[%s3814_s2 + $0x68] sm:$0xff] }
 0x1d0   : > { %v2849_v55 = vsel %vm407_vm4, %v696_v51, 2147483647  ;;  %v2852_v56 = vsel %vm407_vm4, %v695_v52, 2147483647  ;;  %v493_v47 = vpack.c.bf16 %v482_v46, %v481_v43  ;;  %v494_v51 = vpack.c.bf16 %v484_v50, %v483_v49  ;;  %v487_v52 = vld [vmem:[%s3814_s2 + $0x80] sm:$0x1f] }
 0x1d1   : > { %v682_v57 = vpop.xlane.xlu1 %681  ;;  %734 = vmin.xlane.f32.xlu0 %v2844_v53  ;;  %719 = vmin.xlane.f32.xlu1 %v2846_v54  ;;  %v679_v58 = vpop.xlane.xlu0 %678  ;;  %v761_v59 = vshra.s32 %v2852_v56, 16  ;;  %v776_v0 = vshra.s32 %v2849_v55, 16  ;;  %v760_v12 = vand.u32 65535, %v2852_v56 }
 0x1d2   : > { %vm690_vm5 = vcmp.eq.f32.partialorder %v2707_v34, %v682_v57  ;;  %vm689_vm6 = vcmp.eq.f32.partialorder %v2721_v40, %v679_v58  ;;  %593 = vmatpush1.bf16.msra.mxu0 %v492_v41  ;;  %v485_v57 = vld [vmem:[%s3814_s2 + $0x70] sm:$0xff]  ;;  %v486_v58 = vld [vmem:[%s3814_s2 + $0x78] sm:$0xff] }
 0x1d3   : > { %v698_v61 = vsel %vm690_vm5, %v2689_v27, 64  ;;  %v697_v62 = vsel %vm689_vm6, %v2689_v27, 64  ;;  %v2863_v63 = vcvt.s32.f32 %v761_v59  ;;  %v2875_v4 = vcvt.s32.f32 %v776_v0  ;;  %594 = vmatprep.subr.bf16.mxu0 %v2579_v48 }
 0x1d4   : > { %v2867_v1 = vsel %vm407_vm4, %v698_v61, 2147483647  ;;  %v2870_v2 = vsel %vm407_vm4, %v697_v62, 2147483647  ;;  %v496_v59 = vpack.c.bf16 %v487_v52, %v487_v52  ;;  %v495_v61 = vpack.c.bf16 %v486_v58, %v485_v57 }
 0x1d5   : > { %749 = vmin.xlane.f32.xlu1 %v2859_v60  ;;  %764 = vmin.xlane.f32.xlu0 %v2863_v63  ;;  %v791_v3 = vshra.s32 %v2870_v2, 16  ;;  %v806_v6 = vshra.s32 %v2867_v1, 16  ;;  %v762_v23 = vcvt.s32.f32 %v760_v12  ;;  %v790_v25 = vand.u32 65535, %v2870_v2 }
 0x1d6   : > { %595 = vmatpush1.bf16.msra.mxu0 %v493_v47  ;;  %v582_v62 = vand.u32 %v2799_v17, %v496_v59  ;;  %v805_v33 = vand.u32 65535, %v2867_v1 }
 0x1d7   : > { %v2877_v5 = vcvt.s32.f32 %v791_v3  ;;  %v2882_v7 = vcvt.s32.f32 %v806_v6  ;;  %596 = vmatprep.subr.bf16.mxu0 %v2579_v48  ;;  %v715_v3 = vand.u32 65535, %v2835_v45 }
 0x1d8   : > { %v807_v1 = vcvt.s32.f32 %v805_v33 }
 0x1d9   : > { %779 = vmin.xlane.f32.xlu1 %v2875_v4  ;;  %794 = vmin.xlane.f32.xlu0 %v2877_v5 }
 0x1da   : > { %597 = vmatpush1.bf16.msra.mxu0 %v494_v51 }
 0x1db   : > { %598 = vmatprep.subr.bf16.mxu0 %v2579_v48 }
 0x1dd   : > { %809 = vmin.xlane.f32.xlu1 %v2882_v7 }
 0x1de   : > { %599 = vmatpush1.bf16.msra.mxu0 %v495_v61 }
 0x1df   : > { %600 = vmatprep.subr.bf16.mxu0 %v2579_v48  ;;  %v700_v48 = vand.u32 65535, %v2821_v28 }
 0x1e2   : > { %601 = vmatpush1.bf16.msra.mxu0 %v582_v62 }
 0x1e5   : > { %617 = vmatmul.mubr.bf16.vlgmr.msra.gmra.mrb[16].mxu0 %v2641_v8 }
 0x1e6   : > { %2225 = vmatprep.mubr.msk.bf16.mxu0 %vm250_vm0, %v2643_v9 }
 0x1ed   : > { %625 = vmatmul.mubr.bf16.gmra.mrb[20].mxu0 %v2656_v14 }
 0x1ee   : > { %2226 = vmatprep.mubr.msk.bf16.mxu0 %vm250_vm0, %v2658_v15 }
 0x1f5   : > { %633 = vmatmul.mubr.bf16.gmra.mrb[24].mxu0 %v2668_v20  ;;  %v702_v20 = vcvt.s32.f32 %v700_v48 }
 0x1f6   : > { %2227 = vmatprep.mubr.msk.bf16.mxu0 %vm250_vm0, %v2670_v21  ;;  %v730_v21 = vand.u32 65535, %v2818_v26  ;;  %v717_v26 = vcvt.s32.f32 %v715_v3 }
 0x1f8   : > { %v732_v10 = vcvt.s32.f32 %v730_v21 }
 0x1fd   : > { %641 = vmatmul.mubr.bf16.gmra.mrb[28].mxu0 %v2678_v24 }
 0x214   : > { %v2955_v17 = vpop.f32.mrb[0].mxu1 }
 0x215   : > { %v552_v8 = vpop.f32.mrb[1].mxu1 }
 0x216   : > { %v2958_v0 = vpop.f32.mrb[2].mxu1 }
 0x217   : > { %v2962_v9 = vpack.c.bf16 %v2958_v0, %v2955_v17  ;;  %v555_v14 = vpop.f32.mrb[3].mxu1 }
 0x219   : > { %2495 = vmatprep.subr.bf16.mxu1 %v2962_v9  ;;  %2527 = vmatprep.subr.bf16.mxu0 %v2962_v9 }
 0x21a   : > { %2497 = vmatpush3.bf16.msra.mxu1 %v2962_v9  ;;  %2529 = vmatpush3.bf16.msra.mxu0 %v2962_v9 }
 0x21c   : > { %v2974_v28 = vpop.f32.mrb[4].mxu1 }
 0x25a   : > { %v2964_v15 = vpop.xlane.xlu0 %704 }
 0x25b   : > { %vm706_vm0 = vcmp.eq.f32.partialorder %v2828_v42, %v2964_v15  ;;  %v560_v42 = vpop.f32.mrb[5].mxu1  ;;  %v711_v59 = vcvt.f32.s32 %v2964_v15  ;;  %v3818_v15 = vmov 0.0  }
 0x25c   : > { %v707_v24 = vsel %vm706_vm0, %v702_v20, inf  ;;  %v2986_v18 = vpop.f32.mrb[6].mxu1 }
 0x25d   : > { %708 = vmin.xlane.f32.xlu0 %v707_v24  ;;  %v2990_v19 = vpack.c.bf16 %v2986_v18, %v2974_v28  ;;  %v563_v44 = vpop.f32.mrb[7].mxu1  ;;  %v712_v48 = vshll.u32 %v711_v59, 16 }
 0x25e   : > { %v2976_v6 = vpop.xlane.xlu1 %719  ;;  %v2978_v45 = vpop.xlane.xlu0 %734 }
 0x25f   : > { %vm721_vm7 = vcmp.eq.f32.partialorder %v2846_v54, %v2976_v6  ;;  %vm736_vm8 = vcmp.eq.f32.partialorder %v2844_v53, %v2978_v45  ;;  %v747_v54 = vcvt.s32.f32 %v745_v11  ;;  %v775_v53 = vand.u32 65535, %v2849_v55  ;;  %2499 = vmatprep.subr.bf16.mxu1 %v2990_v19  ;;  %2531 = vmatprep.subr.bf16.mxu0 %v2990_v19  ;;  %v3006_v55 = vpop.f32.mrb[8].mxu1 }
 0x260   : > { %v722_v13 = vsel %vm721_vm7, %v717_v26, inf  ;;  %v737_v16 = vsel %vm736_vm8, %v732_v10, inf  ;;  %2501 = vmatpush3.bf16.msra.mxu1 %v2990_v19  ;;  %2533 = vmatpush3.bf16.msra.mxu0 %v2990_v19  ;;  %v568_v41 = vpop.f32.mrb[9].mxu1  ;;  %v726_v61 = vcvt.f32.s32 %v2976_v6  ;;  %v741_v8 = vcvt.f32.s32 %v2978_v45 }
 0x261   : > { %723 = vmin.xlane.f32.xlu1 %v722_v13  ;;  %738 = vmin.xlane.f32.xlu0 %v737_v16  ;;  %v777_v32 = vcvt.s32.f32 %v775_v53  ;;  %v3017_v47 = vpop.f32.mrb[10].mxu1 }
 0x262   : > { %v2992_v22 = vpop.xlane.xlu1 %749  ;;  %v2994_v56 = vpop.xlane.xlu0 %764  ;;  %v3021_v49 = vpack.c.bf16 %v3017_v47, %v3006_v55  ;;  %v727_v3 = vshll.u32 %v726_v61, 16  ;;  %v742_v11 = vshll.u32 %v741_v8, 16 }
 0x263   : > { %vm751_vm9 = vcmp.eq.f32.partialorder %v2859_v60, %v2992_v22  ;;  %vm766_vm10 = vcmp.eq.f32.partialorder %v2863_v63, %v2994_v56  ;;  %v792_v63 = vcvt.s32.f32 %v790_v25  ;;  %v571_v50 = vpop.f32.mrb[11].mxu1  ;;  %v756_v21 = vcvt.f32.s32 %v2992_v22 }
 0x264   : > { %v752_v30 = vsel %vm751_vm9, %v747_v54, inf  ;;  %v767_v31 = vsel %vm766_vm10, %v762_v23, inf  ;;  %2503 = vmatprep.subr.bf16.mxu1 %v3021_v49  ;;  %2535 = vmatprep.subr.bf16.mxu0 %v3021_v49  ;;  %v771_v24 = vcvt.f32.s32 %v2994_v56 }
 0x265   : > { %753 = vmin.xlane.f32.xlu1 %v752_v30  ;;  %768 = vmin.xlane.f32.xlu0 %v767_v31  ;;  %v757_v22 = vshll.u32 %v756_v21, 16 }
 0x266   : > { %v3008_v2 = vpop.xlane.xlu1 %779  ;;  %v3010_v60 = vpop.xlane.xlu0 %794  ;;  %2505 = vmatpush3.bf16.msra.mxu1 %v3021_v49  ;;  %2537 = vmatpush3.bf16.msra.mxu0 %v3021_v49  ;;  %v772_v56 = vshll.u32 %v771_v24, 16 }
 0x267   : > { %vm781_vm11 = vcmp.eq.f32.partialorder %v2875_v4, %v3008_v2  ;;  %vm796_vm12 = vcmp.eq.f32.partialorder %v2877_v5, %v3010_v60  ;;  %v3031_v5 = vpop.f32.mrb[12].mxu1  ;;  %v786_v54 = vcvt.f32.s32 %v3008_v2  ;;  %v801_v23 = vcvt.f32.s32 %v3010_v60 }
 0x268   : > { %v782_v43 = vsel %vm781_vm11, %v777_v32, inf  ;;  %v797_v46 = vsel %vm796_vm12, %v792_v63, inf  ;;  %v576_v52 = vpop.f32.mrb[13].mxu1 }
 0x269   : > { %783 = vmin.xlane.f32.xlu1 %v782_v43  ;;  %798 = vmin.xlane.f32.xlu0 %v797_v46  ;;  %v3033_v57 = vpop.f32.mrb[14].mxu1  ;;  %v787_v46 = vshll.u32 %v786_v54, 16  ;;  %v802_v50 = vshll.u32 %v801_v23, 16 }
 0x26a   : > { %v3023_v51 = vpop.xlane.xlu1 %809  ;;  %v3037_v58 = vpack.c.bf16 %v3033_v57, %v3031_v5 }
 0x26b   : > { %vm811_vm13 = vcmp.eq.f32.partialorder %v2882_v7, %v3023_v51  ;;  %v579_v7 = vpop.f32.mrb[15].mxu1 }
 0x26c   : > { %v812_v4 = vsel %vm811_vm13, %v807_v1, inf  ;;  %2507 = vmatprep.subr.bf16.mxu1 %v3037_v58  ;;  %2539 = vmatprep.subr.bf16.mxu0 %v3037_v58 }
 0x26d   : > { %813 = vmin.xlane.f32.xlu1 %v812_v4  ;;  %2509 = vmatpush3.bf16.msra.mxu1 %v3037_v58 }
 0x26e   : > { %2541 = vmatpush3.bf16.msra.mxu0 %v3037_v58  ;;  %2511 = vmatprep.subr.bf16.mxu1 %v2962_v9 }
 0x2ea   : > { %v709_v62 = vpop.xlane.xlu0 %708 }
 0x2eb   : > { %v710_v14 = vcvt.f32.s32 %v709_v62 }
 0x2ed   : > { %v713_v20 = vadd.s32 %v712_v48, %v710_v14 }
 0x2ee   : > { %v724_v26 = vpop.xlane.xlu1 %723  ;;  %v739_v10 = vpop.xlane.xlu0 %738 }
 0x2ef   : > { %v725_v12 = vcvt.f32.s32 %v724_v26  ;;  %v740_v42 = vcvt.f32.s32 %v739_v10  ;;  %vm819_vm14 = vcmp.eq.s32.totalorder %v2689_v27, %v713_v20 }
 0x2f0   : > { %v2228_v6 = vsel %vm819_vm14, 1.0, %v3818_v15  ;;  %v3052_v13 = vsel %vm819_vm14, -inf, %v2711_v36 }
 0x2f1   : > { %v728_v45 = vadd.s32 %v727_v3, %v725_v12  ;;  %v743_v16 = vadd.s32 %v742_v11, %v740_v42  ;;  %2378 = vmatprep.mubr.msk.f32.mxu1 %vm407_vm4, %v2228_v6  ;;  %v1032_v44 = vsel %vm407_vm4, %v3052_v13, -inf  ;;  %v618_v6 = vpop.f32.mrb[16].mxu0 }
 0x2f2   : > { %v754_v53 = vpop.xlane.xlu1 %753  ;;  %1033 = vmax.xlane.f32.xlu0 %v1032_v44  ;;  %v769_v25 = vpop.xlane.xlu0 %768 }
 0x2f3   : > { %vm820_vm15 = vcmp.eq.s32.totalorder %v2689_v27, %v728_v45  ;;  %v755_v36 = vcvt.f32.s32 %v754_v53  ;;  %v770_v30 = vcvt.f32.s32 %v769_v25  ;;  %vm821_vm1 = vcmp.eq.s32.totalorder %v2689_v27, %v743_v16  ;;  %v620_v16 = vpop.f32.mrb[17].mxu0 }
 0x2f4   : > { %v2229_v31 = vsel %vm820_vm15, 1.0, %v3818_v15  ;;  %v3063_v32 = vsel %vm820_vm15, -inf, %v2715_v38  ;;  %v3066_v63 = vsel %vm821_vm1, -inf, %v2709_v35  ;;  %v2230_v2 = vsel %vm821_vm1, 1.0, %v3818_v15  ;;  %v621_v44 = vpop.f32.mrb[18].mxu0 }
 0x2f5   : > { %v758_v60 = vadd.s32 %v757_v22, %v755_v36  ;;  %v773_v33 = vadd.s32 %v772_v56, %v770_v30  ;;  %2379 = vmatmul.mubr.msk.f32.vlgmr.msra.gmra.mrb[16].mxu1 %vm407_vm4, %v2229_v31  ;;  %v1035_v41 = vsel %vm407_vm4, %v3063_v32, -inf  ;;  %v1038_v43 = vsel %vm407_vm4, %v3066_v63, -inf  ;;  %v623_v22 = vpop.f32.mrb[19].mxu0 }
 0x2f6   : > { %v816_v38 = vcvt.f32.s32 %v3023_v51  ;;  %1036 = vmax.xlane.f32.xlu1 %v1035_v41  ;;  %v784_v1 = vpop.xlane.xlu1 %783  ;;  %1039 = vmax.xlane.f32.xlu0 %v1038_v43  ;;  %v799_v35 = vpop.xlane.xlu0 %798  ;;  %v3125_v45 = vsub.f32 %v618_v6, %v2955_v17 }
 0x2f7   : > { %v785_v4 = vcvt.f32.s32 %v784_v1  ;;  %2381 = vmatprep.mubr.msk.f32.mxu1 %vm407_vm4, %v2230_v2  ;;  %v800_v52 = vcvt.f32.s32 %v799_v35  ;;  %vm822_vm2 = vcmp.eq.s32.totalorder %v2689_v27, %v758_v60  ;;  %vm823_vm3 = vcmp.eq.s32.totalorder %v2689_v27, %v773_v33  ;;  %2513 = vmatpush3.bf16.msra.mxu1 %v2962_v9  ;;  %v626_v56 = vpop.f32.mrb[20].mxu0 }
 0x2f8   : > { %v2231_v7 = vsel %vm822_vm2, 1.0, %v3818_v15  ;;  %v3081_v59 = vsel %vm822_vm2, -inf, %v2713_v37  ;;  %v3084_v51 = vsel %vm823_vm3, -inf, %v2719_v29  ;;  %v2232_v61 = vsel %vm823_vm3, 1.0, %v3818_v15  ;;  %2515 = vmatprep.subr.bf16.mxu1 %v2990_v19  ;;  %v628_v23 = vpop.f32.mrb[21].mxu0 }
 0x2f9   : > { %v788_v62 = vadd.s32 %v787_v46, %v785_v4  ;;  %v803_v48 = vadd.s32 %v802_v50, %v800_v52  ;;  %2382 = vmatmul.mubr.msk.f32.gmra.mrb[18].mxu1 %vm407_vm4, %v2231_v7  ;;  %v1041_v8 = vsel %vm407_vm4, %v3081_v59, -inf  ;;  %v1044_v14 = vsel %vm407_vm4, %v3084_v51, -inf  ;;  %v629_v53 = vpop.f32.mrb[22].mxu0 }
 0x2fa   : > { %1042 = vmax.xlane.f32.xlu1 %v1041_v8  ;;  %v814_v37 = vpop.xlane.xlu1 %813  ;;  %1045 = vmax.xlane.f32.xlu0 %v1044_v14  ;;  %v817_v20 = vshll.u32 %v816_v38, 16  ;;  %v3131_v54 = vsub.f32 %v626_v56, %v2974_v28  ;;  %v3134_v25 = vsub.f32 %v629_v53, %v2986_v18  ;;  %v631_v36 = vpop.f32.mrb[23].mxu0 }
 0x2fb   : > { %v815_v29 = vcvt.f32.s32 %v814_v37  ;;  %2384 = vmatprep.mubr.msk.f32.mxu1 %vm407_vm4, %v2232_v61  ;;  %vm824_vm5 = vcmp.eq.s32.totalorder %v2689_v27, %v788_v62  ;;  %vm825_vm6 = vcmp.eq.s32.totalorder %v2689_v27, %v803_v48  ;;  %2517 = vmatpush3.bf16.msra.mxu1 %v2990_v19  ;;  %v634_v30 = vpop.f32.mrb[24].mxu0 }
 0x2fc   : > { %v2233_v3 = vsel %vm824_vm5, 1.0, %v3818_v15  ;;  %v3099_v21 = vsel %vm824_vm5, -inf, %v2717_v39  ;;  %v3102_v24 = vsel %vm825_vm6, -inf, %v2721_v40  ;;  %v2234_v26 = vsel %vm825_vm6, 1.0, %v3818_v15  ;;  %2519 = vmatprep.subr.bf16.mxu1 %v3021_v49  ;;  %v636_v31 = vpop.f32.mrb[25].mxu0 }
 0x2fd   : > { %v818_v10 = vadd.s32 %v817_v20, %v815_v29  ;;  %2385 = vmatmul.mubr.msk.f32.gmra.mrb[20].mxu1 %vm407_vm4, %v2233_v3  ;;  %v1047_v11 = vsel %vm407_vm4, %v3099_v21, -inf  ;;  %v1050_v12 = vsel %vm407_vm4, %v3102_v24, -inf  ;;  %v637_v17 = vpop.f32.mrb[26].mxu0 }
 0x2fe   : > { %1048 = vmax.xlane.f32.xlu1 %v1047_v11  ;;  %1051 = vmax.xlane.f32.xlu0 %v1050_v12  ;;  %v3137_v2 = vsub.f32 %v637_v17, %v3017_v47  ;;  %v639_v60 = vpop.f32.mrb[27].mxu0 }
 0x2ff   : > { %2387 = vmatprep.mubr.msk.f32.mxu1 %vm407_vm4, %v2234_v26  ;;  %vm826_vm0 = vcmp.eq.s32.totalorder %v2689_v27, %v818_v10  ;;  %2521 = vmatpush3.bf16.msra.mxu1 %v3021_v49  ;;  %v642_v33 = vpop.f32.mrb[28].mxu0 }
 0x300   : > { %v2235_v39 = vsel %vm826_vm0, 1.0, %v3818_v15  ;;  %v3116_v40 = vsel %vm826_vm0, -inf, %v2707_v34  ;;  %2523 = vmatprep.subr.bf16.mxu1 %v3037_v58  ;;  %v3128_v34 = vsub.f32 %v621_v44, %v2958_v0  ;;  %v3140_v0 = vsub.f32 %v634_v30, %v3006_v55  ;;  %v644_v41 = vpop.f32.mrb[29].mxu0 }
 0x301   : > { %2388 = vmatmul.mubr.msk.f32.gmra.mrb[22].mxu1 %vm407_vm4, %v2235_v39  ;;  %v1053_v42 = vsel %vm407_vm4, %v3116_v40, -inf  ;;  %v645_v28 = vpop.f32.mrb[30].mxu0  ;;  %v3146_v18 = vsub.f32 %v642_v33, %v3031_v5 }
 0x302   : > { %1054 = vmax.xlane.f32.xlu1 %v1053_v42  ;;  %v3143_v43 = vsub.f32 %v645_v28, %v3033_v57  ;;  %v647_v46 = vpop.f32.mrb[31].mxu0 }
 0x303   : > { %2525 = vmatpush3.bf16.msra.mxu1 %v3037_v58 }
 0x304   : > { %2543 = vmatprep.subr.bf16.mxu1 %v2962_v9 }
 0x37f   : > { %v1034_v50 = vpop.xlane.xlu0 %1033 }
 0x380   : > { %vm1056_vm7 = vcmp.eq.f32.partialorder %v3052_v13, %v1034_v50 }
 0x381   : > { %v1064_v47 = vsel %vm1056_vm7, %v2689_v27, 64 }
 0x382   : > { %v3151_v38 = vsel %vm407_vm4, %v1064_v47, 2147483647 }
 0x383   : > { %v1037_v55 = vpop.xlane.xlu1 %1036  ;;  %v1040_v1 = vpop.xlane.xlu0 %1039  ;;  %v1074_v35 = vshra.s32 %v3151_v38, 16 }
 0x384   : > { %vm1057_vm8 = vcmp.eq.f32.partialorder %v3063_v32, %v1037_v55  ;;  %vm1058_vm9 = vcmp.eq.f32.partialorder %v3066_v63, %v1040_v1 }
 0x385   : > { %v1065_v57 = vsel %vm1057_vm8, %v2689_v27, 64  ;;  %v1066_v5 = vsel %vm1058_vm9, %v2689_v27, 64  ;;  %v3158_v4 = vcvt.s32.f32 %v1074_v35 }
 0x386   : > { %v3161_v52 = vsel %vm407_vm4, %v1065_v57, 2147483647  ;;  %v3164_v7 = vsel %vm407_vm4, %v1066_v5, 2147483647 }
 0x387   : > { %v1043_v61 = vpop.xlane.xlu1 %1042  ;;  %1077 = vmin.xlane.f32.xlu0 %v3158_v4  ;;  %v1046_v62 = vpop.xlane.xlu0 %1045  ;;  %v1089_v48 = vshra.s32 %v3161_v52, 16  ;;  %v1104_v8 = vshra.s32 %v3164_v7, 16 }
 0x388   : > { %vm1059_vm10 = vcmp.eq.f32.partialorder %v3081_v59, %v1043_v61  ;;  %vm1060_vm11 = vcmp.eq.f32.partialorder %v3084_v51, %v1046_v62 }
 0x389   : > { %v1067_v14 = vsel %vm1059_vm10, %v2689_v27, 64  ;;  %v1068_v37 = vsel %vm1060_vm11, %v2689_v27, 64  ;;  %v3173_v20 = vcvt.s32.f32 %v1089_v48  ;;  %v3175_v29 = vcvt.s32.f32 %v1104_v8 }
 0x38a   : > { %v3178_v3 = vsel %vm407_vm4, %v1067_v14, 2147483647  ;;  %v3181_v26 = vsel %vm407_vm4, %v1068_v37, 2147483647 }
 0x38b   : > { %1092 = vmin.xlane.f32.xlu1 %v3173_v20  ;;  %v1049_v10 = vpop.xlane.xlu1 %1048  ;;  %1107 = vmin.xlane.f32.xlu0 %v3175_v29  ;;  %v1052_v11 = vpop.xlane.xlu0 %1051  ;;  %v1119_v12 = vshra.s32 %v3178_v3, 16  ;;  %v1134_v39 = vshra.s32 %v3181_v26, 16 }
 0x38c   : > { %vm1061_vm12 = vcmp.eq.f32.partialorder %v3099_v21, %v1049_v10  ;;  %vm1062_vm13 = vcmp.eq.f32.partialorder %v3102_v24, %v1052_v11  ;;  %v1073_v11 = vand.u32 65535, %v3151_v38 }
 0x38d   : > { %v1069_v42 = vsel %vm1061_vm12, %v2689_v27, 64  ;;  %v1070_v6 = vsel %vm1062_vm13, %v2689_v27, 64  ;;  %v3191_v16 = vcvt.s32.f32 %v1119_v12  ;;  %v3193_v44 = vcvt.s32.f32 %v1134_v39 }
 0x38e   : > { %v3196_v22 = vsel %vm407_vm4, %v1069_v42, 2147483647  ;;  %v3199_v56 = vsel %vm407_vm4, %v1070_v6, 2147483647  ;;  %v1075_v39 = vcvt.s32.f32 %v1073_v11  ;;  %v1088_v42 = vand.u32 65535, %v3161_v52 }
 0x38f   : > { %1122 = vmin.xlane.f32.xlu1 %v3191_v16  ;;  %v1055_v23 = vpop.xlane.xlu1 %1054  ;;  %1137 = vmin.xlane.f32.xlu0 %v3193_v44  ;;  %v1149_v53 = vshra.s32 %v3196_v22, 16  ;;  %v1164_v36 = vshra.s32 %v3199_v56, 16  ;;  %v1103_v6 = vand.u32 65535, %v3164_v7 }
 0x390   : > { %vm1063_vm14 = vcmp.eq.f32.partialorder %v3116_v40, %v1055_v23 }
 0x391   : > { %v1071_v30 = vsel %vm1063_vm14, %v2689_v27, 64  ;;  %v3207_v31 = vcvt.s32.f32 %v1149_v53  ;;  %v3209_v17 = vcvt.s32.f32 %v1164_v36 }
 0x392   : > { %v3212_v60 = vsel %vm407_vm4, %v1071_v30, 2147483647  ;;  %v1090_v30 = vcvt.s32.f32 %v1088_v42 }
 0x393   : > { %1152 = vmin.xlane.f32.xlu1 %v3207_v31  ;;  %1167 = vmin.xlane.f32.xlu0 %v3209_v17  ;;  %v1179_v33 = vshra.s32 %v3212_v60, 16  ;;  %v1178_v11 = vand.u32 65535, %v3212_v60 }
 0x395   : > { %v3217_v41 = vcvt.s32.f32 %v1179_v33  ;;  %v1105_v33 = vcvt.s32.f32 %v1103_v6 }
 0x397   : > { %1182 = vmin.xlane.f32.xlu1 %v3217_v41 }
 0x3c8   : > { %v2380_v28 = vpop.f32.mrb[16].mxu1 }
 0x3c9   : > { %v3221_v46 = vadd.f32 %v2380_v28, %v3128_v34  ;;  %v933_v50 = vpop.f32.mrb[17].mxu1  ;;  %v1118_v28 = vand.u32 65535, %v3178_v3 }
 0x3ca   : > { %v3224_v47 = vadd.f32 %v933_v50, %v3125_v45  ;;  %v1133_v50 = vand.u32 65535, %v3181_v26 }
 0x3cc   : > { %v2383_v55 = vpop.f32.mrb[18].mxu1 }
 0x3cd   : > { %v3227_v1 = vadd.f32 %v2383_v55, %v3134_v25  ;;  %v943_v35 = vpop.f32.mrb[19].mxu1  ;;  %v1120_v55 = vcvt.s32.f32 %v1118_v28 }
 0x3ce   : > { %v3230_v57 = vadd.f32 %v943_v35, %v3131_v54  ;;  %v1135_v35 = vcvt.s32.f32 %v1133_v50 }
 0x3d0   : > { %v2386_v5 = vpop.f32.mrb[20].mxu1 }
 0x3d1   : > { %v3233_v61 = vadd.f32 %v2386_v5, %v3137_v2  ;;  %v953_v62 = vpop.f32.mrb[21].mxu1  ;;  %v1148_v5 = vand.u32 65535, %v3196_v22 }
 0x3d2   : > { %v3236_v48 = vadd.f32 %v953_v62, %v3140_v0  ;;  %v1163_v62 = vand.u32 65535, %v3199_v56 }
 0x3d4   : > { %v2389_v8 = vpop.f32.mrb[22].mxu1 }
 0x3d5   : > { %v3239_v14 = vadd.f32 %v2389_v8, %v3143_v43  ;;  %v963_v37 = vpop.f32.mrb[23].mxu1  ;;  %v1150_v8 = vcvt.s32.f32 %v1148_v5 }
 0x3d6   : > { %v3242_v10 = vadd.f32 %v963_v37, %v3146_v18  ;;  %v1165_v37 = vcvt.s32.f32 %v1163_v62 }
 0x414   : > { %v1078_v12 = vpop.xlane.xlu0 %1077 }
 0x415   : > { %vm1079_vm15 = vcmp.eq.f32.partialorder %v3158_v4, %v1078_v12  ;;  %v1084_v42 = vcvt.f32.s32 %v1078_v12 }
 0x416   : > { %v1080_v23 = vsel %vm1079_vm15, %v1075_v39, inf }
 0x417   : > { %1081 = vmin.xlane.f32.xlu0 %v1080_v23  ;;  %v1085_v60 = vshll.u32 %v1084_v42, 16 }
 0x418   : > { %v1093_v53 = vpop.xlane.xlu1 %1092  ;;  %v1108_v36 = vpop.xlane.xlu0 %1107 }
 0x419   : > { %vm1094_vm1 = vcmp.eq.f32.partialorder %v3173_v20, %v1093_v53  ;;  %vm1109_vm2 = vcmp.eq.f32.partialorder %v3175_v29, %v1108_v36  ;;  %v1099_v6 = vcvt.f32.s32 %v1093_v53 }
 0x41a   : > { %v1095_v38 = vsel %vm1094_vm1, %v1090_v30, inf  ;;  %v1110_v52 = vsel %vm1109_vm2, %v1105_v33, inf  ;;  %v1114_v30 = vcvt.f32.s32 %v1108_v36 }
 0x41b   : > { %1096 = vmin.xlane.f32.xlu1 %v1095_v38  ;;  %1111 = vmin.xlane.f32.xlu0 %v1110_v52 }
 0x41c   : > { %v1123_v7 = vpop.xlane.xlu1 %1122  ;;  %v1138_v4 = vpop.xlane.xlu0 %1137 }
 0x41d   : > { %vm1124_vm3 = vcmp.eq.f32.partialorder %v3191_v16, %v1123_v7  ;;  %vm1139_vm5 = vcmp.eq.f32.partialorder %v3193_v44, %v1138_v4  ;;  %v1180_v44 = vcvt.s32.f32 %v1178_v11  ;;  %v1129_v28 = vcvt.f32.s32 %v1123_v7 }
 0x41e   : > { %v1125_v3 = vsel %vm1124_vm3, %v1120_v55, inf  ;;  %v1140_v20 = vsel %vm1139_vm5, %v1135_v35, inf  ;;  %v1144_v50 = vcvt.f32.s32 %v1138_v4  ;;  %v1115_v55 = vshll.u32 %v1114_v30, 16 }
 0x41f   : > { %1126 = vmin.xlane.f32.xlu1 %v1125_v3  ;;  %1141 = vmin.xlane.f32.xlu0 %v1140_v20  ;;  %v1130_v7 = vshll.u32 %v1129_v28, 16 }
 0x420   : > { %v1153_v29 = vpop.xlane.xlu1 %1152  ;;  %v1168_v26 = vpop.xlane.xlu0 %1167  ;;  %v1145_v4 = vshll.u32 %v1144_v50, 16 }
 0x421   : > { %vm1154_vm6 = vcmp.eq.f32.partialorder %v3207_v31, %v1153_v29  ;;  %vm1169_vm0 = vcmp.eq.f32.partialorder %v3209_v17, %v1168_v26  ;;  %v1100_v17 = vshll.u32 %v1099_v6, 16  ;;  %v1159_v3 = vcvt.f32.s32 %v1153_v29 }
 0x422   : > { %v1155_v22 = vsel %vm1154_vm6, %v1150_v8, inf  ;;  %v1170_v56 = vsel %vm1169_vm0, %v1165_v37, inf  ;;  %v1174_v20 = vcvt.f32.s32 %v1168_v26 }
 0x423   : > { %1156 = vmin.xlane.f32.xlu1 %v1155_v22  ;;  %1171 = vmin.xlane.f32.xlu0 %v1170_v56 }
 0x424   : > { %v3259_v16 = vpop.xlane.xlu1 %1182 }
 0x425   : > { %vm1184_vm7 = vcmp.eq.f32.partialorder %v3217_v41, %v3259_v16 }
 0x426   : > { %v1185_v39 = vsel %vm1184_vm7, %v1180_v44, inf }
 0x427   : > { %1186 = vmin.xlane.f32.xlu1 %v1185_v39 }
 0x4a4   : > { %v1082_v23 = vpop.xlane.xlu0 %1081 }
 0x4a5   : > { %v1083_v31 = vcvt.f32.s32 %v1082_v23  ;;  %v1160_v23 = vshll.u32 %v1159_v3, 16 }
 0x4a7   : > { %v1086_v33 = vadd.s32 %v1085_v60, %v1083_v31  ;;  %v1175_v60 = vshll.u32 %v1174_v20, 16 }
 0x4a8   : > { %v1097_v38 = vpop.xlane.xlu1 %1096  ;;  %v1112_v52 = vpop.xlane.xlu0 %1111 }
 0x4a9   : > { %v1098_v35 = vcvt.f32.s32 %v1097_v38  ;;  %v1113_v5 = vcvt.f32.s32 %v1112_v52  ;;  %vm1192_vm8 = vcmp.eq.s32.totalorder %v2689_v27, %v1086_v33 }
 0x4aa   : > { %v2246_v41 = vsel %vm1192_vm8, 1.0, %v3818_v15  ;;  %v3266_v12 = vsel %vm1192_vm8, -inf, %v3052_v13 }
 0x4ab   : > { %v1101_v53 = vadd.s32 %v1100_v17, %v1098_v35  ;;  %v1116_v62 = vadd.s32 %v1115_v55, %v1113_v5  ;;  %2406 = vmatprep.mubr.msk.f32.mxu1 %vm407_vm4, %v2246_v41  ;;  %v1401_v36 = vsel %vm407_vm4, %v3266_v12, -inf }
 0x4ac   : > { %v1127_v8 = vpop.xlane.xlu1 %1126  ;;  %1402 = vmax.xlane.f32.xlu0 %v1401_v36  ;;  %v1142_v37 = vpop.xlane.xlu0 %1141 }
 0x4ad   : > { %vm1193_vm9 = vcmp.eq.s32.totalorder %v2689_v27, %v1101_v53  ;;  %v1128_v11 = vcvt.f32.s32 %v1127_v8  ;;  %v1143_v22 = vcvt.f32.s32 %v1142_v37  ;;  %vm1194_vm10 = vcmp.eq.s32.totalorder %v2689_v27, %v1116_v62 }
 0x4ae   : > { %v2247_v13 = vsel %vm1193_vm9, 1.0, %v3818_v15  ;;  %v3275_v56 = vsel %vm1193_vm9, -inf, %v3063_v32  ;;  %v3278_v44 = vsel %vm1194_vm10, -inf, %v3066_v63  ;;  %v2248_v29 = vsel %vm1194_vm10, 1.0, %v3818_v15 }
 0x4af   : > { %v1131_v26 = vadd.s32 %v1130_v7, %v1128_v11  ;;  %v1146_v39 = vadd.s32 %v1145_v4, %v1143_v22  ;;  %2407 = vmatmul.mubr.msk.f32.vlgmr.msra.gmra.mrb[24].mxu1 %vm407_vm4, %v2247_v13  ;;  %v1404_v42 = vsel %vm407_vm4, %v3275_v56, -inf  ;;  %v1407_v6 = vsel %vm407_vm4, %v3278_v44, -inf }
 0x4b0   : > { %v1189_v32 = vcvt.f32.s32 %v3259_v16  ;;  %1405 = vmax.xlane.f32.xlu1 %v1404_v42  ;;  %v1157_v30 = vpop.xlane.xlu1 %1156  ;;  %1408 = vmax.xlane.f32.xlu0 %v1407_v6  ;;  %v1172_v63 = vpop.xlane.xlu0 %1171 }
 0x4b1   : > { %v1158_v31 = vcvt.f32.s32 %v1157_v30  ;;  %2409 = vmatprep.mubr.msk.f32.mxu1 %vm407_vm4, %v2248_v29  ;;  %v1173_v33 = vcvt.f32.s32 %v1172_v63  ;;  %vm1195_vm11 = vcmp.eq.s32.totalorder %v2689_v27, %v1131_v26  ;;  %vm1196_vm12 = vcmp.eq.s32.totalorder %v2689_v27, %v1146_v39  ;;  %2545 = vmatpush3.bf16.msra.mxu1 %v2962_v9 }
 0x4b2   : > { %v2249_v17 = vsel %vm1195_vm11, 1.0, %v3818_v15  ;;  %v3293_v28 = vsel %vm1195_vm11, -inf, %v3081_v59  ;;  %v3296_v16 = vsel %vm1196_vm12, -inf, %v3084_v51  ;;  %v2250_v50 = vsel %vm1196_vm12, 1.0, %v3818_v15  ;;  %2547 = vmatprep.subr.bf16.mxu1 %v2990_v19 }
 0x4b3   : > { %v1161_v38 = vadd.s32 %v1160_v23, %v1158_v31  ;;  %v1176_v52 = vadd.s32 %v1175_v60, %v1173_v33  ;;  %2410 = vmatmul.mubr.msk.f32.gmra.mrb[26].mxu1 %vm407_vm4, %v2249_v17  ;;  %v1410_v55 = vsel %vm407_vm4, %v3293_v28, -inf  ;;  %v1413_v9 = vsel %vm407_vm4, %v3296_v16, -inf }
 0x4b4   : > { %1411 = vmax.xlane.f32.xlu1 %v1410_v55  ;;  %v1187_v59 = vpop.xlane.xlu1 %1186  ;;  %1414 = vmax.xlane.f32.xlu0 %v1413_v9  ;;  %v1190_v35 = vshll.u32 %v1189_v32, 16 }
 0x4b5   : > { %v1188_v51 = vcvt.f32.s32 %v1187_v59  ;;  %2412 = vmatprep.mubr.msk.f32.mxu1 %vm407_vm4, %v2250_v50  ;;  %vm1197_vm13 = vcmp.eq.s32.totalorder %v2689_v27, %v1161_v38  ;;  %vm1198_vm14 = vcmp.eq.s32.totalorder %v2689_v27, %v1176_v52  ;;  %2549 = vmatpush3.bf16.msra.mxu1 %v2990_v19 }
 0x4b6   : > { %v2251_v5 = vsel %vm1197_vm13, 1.0, %v3818_v15  ;;  %v3311_v41 = vsel %vm1197_vm13, -inf, %v3099_v21  ;;  %v3314_v53 = vsel %vm1198_vm14, -inf, %v3102_v24  ;;  %v2252_v62 = vsel %vm1198_vm14, 1.0, %v3818_v15  ;;  %2551 = vmatprep.subr.bf16.mxu1 %v3021_v49 }
 0x4b7   : > { %v1191_v36 = vadd.s32 %v1190_v35, %v1188_v51  ;;  %2413 = vmatmul.mubr.msk.f32.gmra.mrb[28].mxu1 %vm407_vm4, %v2251_v5  ;;  %v1416_v7 = vsel %vm407_vm4, %v3311_v41, -inf  ;;  %v1419_v19 = vsel %vm407_vm4, %v3314_v53, -inf }
 0x4b8   : > { %1417 = vmax.xlane.f32.xlu1 %v1416_v7  ;;  %1420 = vmax.xlane.f32.xlu0 %v1419_v19 }
 0x4b9   : > { %2415 = vmatprep.mubr.msk.f32.mxu1 %vm407_vm4, %v2252_v62  ;;  %vm1199_vm15 = vcmp.eq.s32.totalorder %v2689_v27, %v1191_v36  ;;  %2553 = vmatpush3.bf16.msra.mxu1 %v3021_v49 }
 0x4ba   : > { %v2253_v21 = vsel %vm1199_vm15, 1.0, %v3818_v15  ;;  %v3328_v24 = vsel %vm1199_vm15, -inf, %v3116_v40  ;;  %2555 = vmatprep.subr.bf16.mxu1 %v3037_v58 }
 0x4bb   : > { %2416 = vmatmul.mubr.msk.f32.gmra.mrb[30].mxu1 %vm407_vm4, %v2253_v21  ;;  %v1422_v4 = vsel %vm407_vm4, %v3328_v24, -inf }
 0x4bc   : > { %1423 = vmax.xlane.f32.xlu1 %v1422_v4 }
 0x4bd   : > { %2557 = vmatpush3.bf16.msra.mxu1 %v3037_v58 }
 0x539   : > { %v1403_v3 = vpop.xlane.xlu0 %1402 }
 0x53a   : > { %vm1425_vm1 = vcmp.eq.f32.partialorder %v3266_v12, %v1403_v3 }
 0x53b   : > { %v1433_v49 = vsel %vm1425_vm1, %v2689_v27, 64 }
 0x53c   : > { %v3338_v20 = vsel %vm407_vm4, %v1433_v49, 2147483647 }
 0x53d   : > { %v1406_v40 = vpop.xlane.xlu1 %1405  ;;  %v1409_v8 = vpop.xlane.xlu0 %1408  ;;  %v1443_v37 = vshra.s32 %v3338_v20, 16 }
 0x53e   : > { %vm1426_vm2 = vcmp.eq.f32.partialorder %v3275_v56, %v1406_v40  ;;  %vm1427_vm3 = vcmp.eq.f32.partialorder %v3278_v44, %v1409_v8  ;;  %v3410_v40 = vld [vmem:[%s3815_s3] ss:$0 sm:$0xff] }
 0x53f   : > { %v1434_v11 = vsel %vm1426_vm2, %v2689_v27, 64  ;;  %v1435_v58 = vsel %vm1427_vm3, %v2689_v27, 64  ;;  %v3345_v22 = vcvt.s32.f32 %v1443_v37  ;;  %v979_v8 = vmul.f32 %v3410_v40, %v3221_v46 }
 0x540   : > { %v3348_v13 = vsel %vm407_vm4, %v1434_v11, 2147483647  ;;  %v3351_v29 = vsel %vm407_vm4, %v1435_v58, 2147483647  ;;  %v978_v37 = vmul.f32 %v3410_v40, %v3224_v47  ;;  %v3419_v11 = vld [vmem:[%s3816_s4] ss:$0 sm:$0xff]  ;;  %v981_v58 = vmul.f32 %v3410_v40, %v3227_v1 }
 0x541   : > { %v1412_v26 = vpop.xlane.xlu1 %1411  ;;  %1446 = vmin.xlane.f32.xlu0 %v3345_v22  ;;  %v1415_v39 = vpop.xlane.xlu0 %1414  ;;  %v1458_v42 = vshra.s32 %v3348_v13, 16  ;;  %v1473_v6 = vshra.s32 %v3351_v29, 16  ;;  %v983_v47 = vmul.f32 %v3410_v40, %v3233_v61 }
 0x542   : > { %vm1428_vm5 = vcmp.eq.f32.partialorder %v3293_v28, %v1412_v26  ;;  %vm1429_vm6 = vcmp.eq.f32.partialorder %v3296_v16, %v1415_v39  ;;  %v980_v26 = vmul.f32 %v3410_v40, %v3230_v57  ;;  %v993_v39 = vadd.f32 %v3419_v11, %v979_v8 }
 0x543   : > { %v1436_v23 = vsel %vm1428_vm5, %v2689_v27, 64  ;;  %v1437_v60 = vsel %vm1429_vm6, %v2689_v27, 64  ;;  %v3360_v32 = vcvt.s32.f32 %v1458_v42  ;;  %v3362_v30 = vcvt.s32.f32 %v1473_v6 }
 0x544   : > { %v3365_v63 = vsel %vm407_vm4, %v1436_v23, 2147483647  ;;  %v3368_v31 = vsel %vm407_vm4, %v1437_v60, 2147483647  ;;  %v992_v42 = vadd.f32 %v3419_v11, %v978_v37  ;;  %v995_v46 = vadd.f32 %v3419_v11, %v981_v58 }
 0x545   : > { %1461 = vmin.xlane.f32.xlu1 %v3360_v32  ;;  %v1418_v33 = vpop.xlane.xlu1 %1417  ;;  %1476 = vmin.xlane.f32.xlu0 %v3362_v30  ;;  %v1421_v17 = vpop.xlane.xlu0 %1420  ;;  %v1488_v50 = vshra.s32 %v3365_v63, 16  ;;  %v1503_v38 = vshra.s32 %v3368_v31, 16  ;;  %v994_v6 = vadd.f32 %v3419_v11, %v980_v26  ;;  %v982_v23 = vmul.f32 %v3410_v40, %v3236_v48 }
 0x546   : > { %vm1430_vm0 = vcmp.eq.f32.partialorder %v3311_v41, %v1418_v33  ;;  %vm1431_vm7 = vcmp.eq.f32.partialorder %v3314_v53, %v1421_v17  ;;  %vm1001_vm9 = vcmp.ge.f32.partialorder %v993_v39, 0.0  ;;  %v1009_v60 = vmul.f32 0.2, %v993_v39 }
 0x547   : > { %v1438_v52 = vsel %vm1430_vm0, %v2689_v27, 64  ;;  %v1439_v55 = vsel %vm1431_vm7, %v2689_v27, 64  ;;  %v3378_v9 = vcvt.s32.f32 %v1488_v50  ;;  %v3380_v59 = vcvt.s32.f32 %v1503_v38 }
 0x548   : > { %v3383_v35 = vsel %vm407_vm4, %v1438_v52, 2147483647  ;;  %v3386_v51 = vsel %vm407_vm4, %v1439_v55, 2147483647  ;;  %v1008_v1 = vmul.f32 0.2, %v992_v42  ;;  %v997_v50 = vadd.f32 %v3419_v11, %v983_v47 }
 0x549   : > { %1491 = vmin.xlane.f32.xlu1 %v3378_v9  ;;  %v1424_v5 = vpop.xlane.xlu1 %1423  ;;  %1506 = vmin.xlane.f32.xlu0 %v3380_v59  ;;  %v1518_v62 = vshra.s32 %v3383_v35, 16  ;;  %v1533_v36 = vshra.s32 %v3386_v51, 16  ;;  %vm1000_vm10 = vcmp.ge.f32.partialorder %v992_v42, 0.0  ;;  %v1011_v33 = vmul.f32 0.2, %v995_v46 }
 0x54a   : > { %vm1432_vm8 = vcmp.eq.f32.partialorder %v3328_v24, %v1424_v5  ;;  %v1010_v57 = vmul.f32 0.2, %v994_v6  ;;  %vm1003_vm11 = vcmp.ge.f32.partialorder %v995_v46, 0.0  ;;  %vm1002_vm12 = vcmp.ge.f32.partialorder %v994_v6, 0.0 }
 0x54b   : > { %v1440_v7 = vsel %vm1432_vm8, %v2689_v27, 64  ;;  %v3394_v19 = vcvt.s32.f32 %v1518_v62  ;;  %v3396_v21 = vcvt.s32.f32 %v1533_v36  ;;  %v996_v55 = vadd.f32 %v3419_v11, %v982_v23 }
 0x54c   : > { %v3399_v4 = vsel %vm407_vm4, %v1440_v7, 2147483647  ;;  %v3437_v5 = vsel %vm1001_vm9, %v993_v39, %v1009_v60  ;;  %v3440_v62 = vsel %vm1000_vm10, %v992_v42, %v1008_v1  ;;  %v3442_v36 = vsel %vm1003_vm11, %v995_v46, %v1011_v33 }
 0x54d   : > { %1521 = vmin.xlane.f32.xlu1 %v3394_v19  ;;  %1536 = vmin.xlane.f32.xlu0 %v3396_v21  ;;  %v1548_v3 = vshra.s32 %v3399_v4, 16  ;;  %v3444_v7 = vsel %vm1002_vm12, %v994_v6, %v1010_v57  ;;  %vm1005_vm13 = vcmp.ge.f32.partialorder %v997_v50, 0.0  ;;  %v1013_v37 = vmul.f32 0.2, %v997_v50 }
 0x54e   : > { %vm1004_vm14 = vcmp.ge.f32.partialorder %v996_v55, 0.0  ;;  %v985_v39 = vmul.f32 %v3410_v40, %v3239_v14  ;;  %v1012_v6 = vmul.f32 0.2, %v996_v55  ;;  %v984_v1 = vmul.f32 %v3410_v40, %v3242_v10 }
 0x54f   : > { %v3404_v49 = vcvt.s32.f32 %v1548_v3 }
 0x551   : > { %1551 = vmin.xlane.f32.xlu1 %v3404_v49 }
 0x582   : > { %v2408_v17 = vpop.f32.mrb[24].mxu1 }
 0x583   : > { %v1312_v38 = vadd.f32 %v2408_v17, %v3128_v34  ;;  %v1306_v52 = vpop.f32.mrb[25].mxu1 }
 0x584   : > { %v1307_v61 = vadd.f32 %v1306_v52, %v3125_v45 }
 0x585   : > { %v1346_v48 = vmul.f32 %v3410_v40, %v1312_v38  ;;  %v3458_v38 = vsel %vm1005_vm13, %v997_v50, %v1013_v37 }
 0x586   : > { %v1345_v3 = vmul.f32 %v3410_v40, %v1307_v61  ;;  %v2411_v8 = vpop.f32.mrb[26].mxu1 }
 0x587   : > { %v1354_v58 = vadd.f32 %v3419_v11, %v1346_v48  ;;  %v1322_v26 = vadd.f32 %v2411_v8, %v3134_v25  ;;  %v1316_v47 = vpop.f32.mrb[27].mxu1 }
 0x588   : > { %v1353_v42 = vadd.f32 %v3419_v11, %v1345_v3  ;;  %v1317_v46 = vadd.f32 %v1316_v47, %v3131_v54  ;;  %v999_v47 = vadd.f32 %v3419_v11, %v985_v39 }
 0x589   : > { %vm1362_vm15 = vcmp.ge.f32.partialorder %v1354_v58, 0.0  ;;  %v1370_v23 = vmul.f32 0.2, %v1354_v58  ;;  %v1348_v60 = vmul.f32 %v3410_v40, %v1322_v26 }
 0x58a   : > { %vm1361_vm1 = vcmp.ge.f32.partialorder %v1353_v42, 0.0  ;;  %v1369_v33 = vmul.f32 0.2, %v1353_v42  ;;  %v1347_v57 = vmul.f32 %v3410_v40, %v1317_v46  ;;  %v2414_v17 = vpop.f32.mrb[28].mxu1  ;;  %vm1007_vm0 = vcmp.ge.f32.partialorder %v999_v47, 0.0 }
 0x58b   : > { %v3460_v14 = vsel %vm1362_vm15, %v1354_v58, %v1370_v23  ;;  %v1356_v52 = vadd.f32 %v3419_v11, %v1348_v60  ;;  %v1332_v61 = vadd.f32 %v2414_v17, %v3137_v2  ;;  %v1326_v48 = vpop.f32.mrb[29].mxu1 }
 0x58c   : > { %v3466_v8 = vsel %vm1361_vm1, %v1353_v42, %v1369_v33  ;;  %v1355_v10 = vadd.f32 %v3419_v11, %v1347_v57  ;;  %v1327_v26 = vadd.f32 %v1326_v48, %v3140_v0  ;;  %v998_v42 = vadd.f32 %v3419_v11, %v984_v1 }
 0x58d   : > { %vm1364_vm2 = vcmp.ge.f32.partialorder %v1356_v52, 0.0  ;;  %v1372_v37 = vmul.f32 0.2, %v1356_v52  ;;  %v1350_v58 = vmul.f32 %v3410_v40, %v1332_v61 }
 0x58e   : > { %vm1363_vm3 = vcmp.ge.f32.partialorder %v1355_v10, 0.0  ;;  %v1371_v46 = vmul.f32 0.2, %v1355_v10  ;;  %v1349_v23 = vmul.f32 %v3410_v40, %v1327_v26  ;;  %v2417_v60 = vpop.f32.mrb[30].mxu1  ;;  %vm1006_vm7 = vcmp.ge.f32.partialorder %v998_v42, 0.0 }
 0x58f   : > { %v3476_v33 = vsel %vm1364_vm2, %v1356_v52, %v1372_v37  ;;  %v1358_v57 = vadd.f32 %v3419_v11, %v1350_v58  ;;  %v1342_v17 = vadd.f32 %v2417_v60, %v3143_v43  ;;  %v1336_v48 = vpop.f32.mrb[31].mxu1  ;;  %v3490_v37 = vsel %vm1004_vm14, %v996_v55, %v1012_v6 }
 0x590   : > { %v3482_v61 = vsel %vm1363_vm3, %v1355_v10, %v1371_v46  ;;  %v1357_v39 = vadd.f32 %v3419_v11, %v1349_v23  ;;  %v1337_v3 = vadd.f32 %v1336_v48, %v3146_v18  ;;  %v1015_v10 = vmul.f32 0.2, %v999_v47 }
 0x591   : > { %vm1366_vm5 = vcmp.ge.f32.partialorder %v1358_v57, 0.0  ;;  %v1374_v1 = vmul.f32 0.2, %v1358_v57  ;;  %v1352_v52 = vmul.f32 %v3410_v40, %v1342_v17  ;;  %v1014_v48 = vmul.f32 0.2, %v998_v42 }
 0x592   : > { %vm1365_vm6 = vcmp.ge.f32.partialorder %v1357_v39, 0.0  ;;  %v1373_v58 = vmul.f32 0.2, %v1357_v39  ;;  %v1351_v60 = vmul.f32 %v3410_v40, %v1337_v3  ;;  %v1442_v55 = vand.u32 65535, %v3338_v20 }
 0x593   : > { %v3493_v46 = vsel %vm1366_vm5, %v1358_v57, %v1374_v1  ;;  %v1360_v23 = vadd.f32 %v3419_v11, %v1352_v52  ;;  %v3503_v57 = vsel %vm1007_vm0, %v999_v47, %v1015_v10  ;;  %v3507_v52 = vsel %vm1006_vm7, %v998_v42, %v1014_v48 }
 0x594   : > { %v3498_v50 = vsel %vm1365_vm6, %v1357_v39, %v1373_v58  ;;  %v1359_v17 = vadd.f32 %v3419_v11, %v1351_v60  ;;  %v1444_v15 = vcvt.s32.f32 %v1442_v55  ;;  %v1472_v47 = vand.u32 65535, %v3351_v29 }
 0x595   : > { %3823 = vst [vmem:[#allocation2_spill] sm:$0xff] %v3498_v50  ;;  %vm1368_vm8 = vcmp.ge.f32.partialorder %v1360_v23, 0.0  ;;  %v1376_v6 = vmul.f32 0.2, %v1360_v23  ;;  %v1457_v50 = vand.u32 65535, %v3348_v13 }
 0x596   : > { %vm1367_vm9 = vcmp.ge.f32.partialorder %v1359_v17, 0.0  ;;  %v1375_v3 = vmul.f32 0.2, %v1359_v17 }
 0x597   : > { %v3505_v1 = vsel %vm1368_vm8, %v1360_v23, %v1376_v6  ;;  %v1459_v48 = vcvt.s32.f32 %v1457_v50  ;;  %v1487_v6 = vand.u32 65535, %v3365_v63  ;;  %v1532_v50 = vand.u32 65535, %v3386_v51 }
 0x598   : > { %v1392_v39 = vmax.f32 %v3503_v57, %v3505_v1  ;;  %v3511_v58 = vsel %vm1367_vm9, %v1359_v17, %v1375_v3  ;;  %v1474_v17 = vcvt.s32.f32 %v1472_v47  ;;  %v1502_v3 = vand.u32 65535, %v3368_v31 }
 0x599   : > { %v1391_v60 = vmax.f32 %v3507_v52, %v3511_v58 }
 0x59a   : > { %v1504_v55 = vcvt.s32.f32 %v1502_v3 }
 0x5ce   : > { %v1447_v26 = vpop.xlane.xlu0 %1446 }
 0x5cf   : > { %vm1448_vm10 = vcmp.eq.f32.partialorder %v3345_v22, %v1447_v26  ;;  %v1453_v3 = vcvt.f32.s32 %v1447_v26 }
 0x5d0   : > { %v1449_v42 = vsel %vm1448_vm10, %v1444_v15, inf  ;;  %v1489_v15 = vcvt.s32.f32 %v1487_v6 }
 0x5d1   : > { %1450 = vmin.xlane.f32.xlu0 %v1449_v42  ;;  %v1517_v42 = vand.u32 65535, %v3383_v35 }
 0x5d2   : > { %v1462_v10 = vpop.xlane.xlu1 %1461  ;;  %v1477_v23 = vpop.xlane.xlu0 %1476 }
 0x5d3   : > { %vm1463_vm11 = vcmp.eq.f32.partialorder %v3360_v32, %v1462_v10  ;;  %vm1478_vm12 = vcmp.eq.f32.partialorder %v3362_v30, %v1477_v23  ;;  %v1519_v47 = vcvt.s32.f32 %v1517_v42 }
 0x5d4   : > { %v1464_v20 = vsel %vm1463_vm11, %v1459_v48, inf  ;;  %v1479_v13 = vsel %vm1478_vm12, %v1474_v17, inf  ;;  %v1534_v48 = vcvt.s32.f32 %v1532_v50  ;;  %v1547_v17 = vand.u32 65535, %v3399_v4 }
 0x5d5   : > { %1465 = vmin.xlane.f32.xlu1 %v1464_v20  ;;  %1480 = vmin.xlane.f32.xlu0 %v1479_v13  ;;  %v1468_v20 = vcvt.f32.s32 %v1462_v10  ;;  %v1454_v4 = vshll.u32 %v1453_v3, 16 }
 0x5d6   : > { %v1492_v29 = vpop.xlane.xlu1 %1491  ;;  %v1507_v22 = vpop.xlane.xlu0 %1506 }
 0x5d7   : > { %vm1493_vm13 = vcmp.eq.f32.partialorder %v3378_v9, %v1492_v29  ;;  %vm1508_vm14 = vcmp.eq.f32.partialorder %v3380_v59, %v1507_v22  ;;  %v1549_v59 = vcvt.s32.f32 %v1547_v17  ;;  %v1498_v42 = vcvt.f32.s32 %v1492_v29 }
 0x5d8   : > { %v1494_v63 = vsel %vm1493_vm13, %v1489_v15, inf  ;;  %v1509_v32 = vsel %vm1508_vm14, %v1504_v55, inf  ;;  %v1483_v15 = vcvt.f32.s32 %v1477_v23  ;;  %v1513_v50 = vcvt.f32.s32 %v1507_v22 }
 0x5d9   : > { %1495 = vmin.xlane.f32.xlu1 %v1494_v63  ;;  %1510 = vmin.xlane.f32.xlu0 %v1509_v32  ;;  %v1499_v29 = vshll.u32 %v1498_v42, 16 }
 0x5da   : > { %v1522_v30 = vpop.xlane.xlu1 %1521  ;;  %v1537_v31 = vpop.xlane.xlu0 %1536  ;;  %v1514_v22 = vshll.u32 %v1513_v50, 16 }
 0x5db   : > { %vm1523_vm15 = vcmp.eq.f32.partialorder %v3394_v19, %v1522_v30  ;;  %vm1538_vm1 = vcmp.eq.f32.partialorder %v3396_v21, %v1537_v31  ;;  %v1469_v21 = vshll.u32 %v1468_v20, 16 }
 0x5dc   : > { %v1524_v35 = vsel %vm1523_vm15, %v1519_v47, inf  ;;  %v1539_v51 = vsel %vm1538_vm1, %v1534_v48, inf  ;;  %v1484_v47 = vshll.u32 %v1483_v15, 16 }
 0x5dd   : > { %1525 = vmin.xlane.f32.xlu1 %v1524_v35  ;;  %1540 = vmin.xlane.f32.xlu0 %v1539_v51 }
 0x5de   : > { %v3530_v9 = vpop.xlane.xlu1 %1551 }
 0x5df   : > { %vm1553_vm2 = vcmp.eq.f32.partialorder %v3404_v49, %v3530_v9  ;;  %v3824_v49 = vmov 0.0  }
 0x5e0   : > { %v1554_v6 = vsel %vm1553_vm2, %v1549_v59, inf  ;;  %v1528_v59 = vcvt.f32.s32 %v1522_v30 }
 0x5e1   : > { %1555 = vmin.xlane.f32.xlu1 %v1554_v6  ;;  %v1543_v6 = vcvt.f32.s32 %v1537_v31 }
 0x5e2   : > { %v1529_v50 = vshll.u32 %v1528_v59, 16 }
 0x65e   : > { %v1451_v13 = vpop.xlane.xlu0 %1450 }
 0x65f   : > { %v1452_v19 = vcvt.f32.s32 %v1451_v13 }
 0x661   : > { %v1455_v55 = vadd.s32 %v1454_v4, %v1452_v19 }
 0x662   : > { %v1466_v63 = vpop.xlane.xlu1 %1465  ;;  %v1481_v32 = vpop.xlane.xlu0 %1480 }
 0x663   : > { %v1467_v48 = vcvt.f32.s32 %v1466_v63  ;;  %v1482_v17 = vcvt.f32.s32 %v1481_v32  ;;  %vm1561_vm3 = vcmp.eq.s32.totalorder %v2689_v27, %v1455_v55  ;;  %v1544_v63 = vshll.u32 %v1543_v6, 16 }
 0x664   : > { %v2262_v35 = vsel %vm1561_vm3, 1.0, %v3824_v49  ;;  %v3537_v26 = vsel %vm1561_vm3, -inf, %v3266_v12 }
 0x665   : > { %v1470_v10 = vadd.s32 %v1469_v21, %v1467_v48  ;;  %v1485_v51 = vadd.s32 %v1484_v47, %v1482_v17  ;;  %2434 = vmatprep.mubr.msk.f32.mxu0 %vm407_vm4, %v2262_v35  ;;  %v1770_v23 = vsel %vm407_vm4, %v3537_v26, -inf }
 0x666   : > { %v1496_v3 = vpop.xlane.xlu1 %1495  ;;  %1771 = vmax.xlane.f32.xlu0 %v1770_v23  ;;  %v1511_v20 = vpop.xlane.xlu0 %1510 }
 0x667   : > { %vm1562_vm5 = vcmp.eq.s32.totalorder %v2689_v27, %v1470_v10  ;;  %v1497_v13 = vcvt.f32.s32 %v1496_v3  ;;  %v1512_v4 = vcvt.f32.s32 %v1511_v20  ;;  %vm1563_vm6 = vcmp.eq.s32.totalorder %v2689_v27, %v1485_v51 }
 0x668   : > { %v2263_v12 = vsel %vm1562_vm5, 1.0, %v3824_v49  ;;  %v3546_v15 = vsel %vm1562_vm5, -inf, %v3275_v56  ;;  %v3549_v19 = vsel %vm1563_vm6, -inf, %v3278_v44  ;;  %v2264_v30 = vsel %vm1563_vm6, 1.0, %v3824_v49 }
 0x669   : > { %v1500_v31 = vadd.s32 %v1499_v29, %v1497_v13  ;;  %v1515_v55 = vadd.s32 %v1514_v22, %v1512_v4  ;;  %2435 = vmatmul.mubr.msk.f32.vlgmr.msra.gmra.mrb[32].mxu0 %vm407_vm4, %v2263_v12  ;;  %v1773_v21 = vsel %vm407_vm4, %v3546_v15, -inf  ;;  %v1776_v42 = vsel %vm407_vm4, %v3549_v19, -inf }
 0x66a   : > { %v1558_v56 = vcvt.f32.s32 %v3530_v9  ;;  %1774 = vmax.xlane.f32.xlu1 %v1773_v21  ;;  %v1526_v32 = vpop.xlane.xlu1 %1525  ;;  %1777 = vmax.xlane.f32.xlu0 %v1776_v42  ;;  %v1541_v44 = vpop.xlane.xlu0 %1540 }
 0x66b   : > { %v1527_v47 = vcvt.f32.s32 %v1526_v32  ;;  %2437 = vmatprep.mubr.msk.f32.mxu0 %vm407_vm4, %v2264_v30  ;;  %v1542_v48 = vcvt.f32.s32 %v1541_v44  ;;  %vm1564_vm0 = vcmp.eq.s32.totalorder %v2689_v27, %v1500_v31  ;;  %vm1565_vm7 = vcmp.eq.s32.totalorder %v2689_v27, %v1515_v55 }
 0x66c   : > { %v2265_v17 = vsel %vm1564_vm0, 1.0, %v3824_v49  ;;  %v1765_v35 = vsel %vm1564_vm0, -inf, %v3293_v28  ;;  %v1766_v10 = vsel %vm1565_vm7, -inf, %v3296_v16  ;;  %v2266_v9 = vsel %vm1565_vm7, 1.0, %v3824_v49 }
 0x66d   : > { %v1530_v51 = vadd.s32 %v1529_v50, %v1527_v47  ;;  %v1545_v23 = vadd.s32 %v1544_v63, %v1542_v48  ;;  %2438 = vmatmul.mubr.msk.f32.gmra.mrb[34].mxu0 %vm407_vm4, %v2265_v17  ;;  %v1779_v29 = vsel %vm407_vm4, %v1765_v35, -inf  ;;  %v1782_v22 = vsel %vm407_vm4, %v1766_v10, -inf }
 0x66e   : > { %1780 = vmax.xlane.f32.xlu1 %v1779_v29  ;;  %v1556_v59 = vpop.xlane.xlu1 %1555  ;;  %1783 = vmax.xlane.f32.xlu0 %v1782_v22  ;;  %v1559_v6 = vshll.u32 %v1558_v56, 16 }
 0x66f   : > { %v1557_v3 = vcvt.f32.s32 %v1556_v59  ;;  %2440 = vmatprep.mubr.msk.f32.mxu0 %vm407_vm4, %v2266_v9  ;;  %vm1566_vm8 = vcmp.eq.s32.totalorder %v2689_v27, %v1530_v51  ;;  %vm1567_vm9 = vcmp.eq.s32.totalorder %v2689_v27, %v1545_v23 }
 0x670   : > { %v2267_v28 = vsel %vm1566_vm8, 1.0, %v3824_v49  ;;  %v1767_v16 = vsel %vm1566_vm8, -inf, %v3311_v41  ;;  %v1768_v20 = vsel %vm1567_vm9, -inf, %v3314_v53  ;;  %v2268_v13 = vsel %vm1567_vm9, 1.0, %v3824_v49 }
 0x671   : > { %v1560_v4 = vadd.s32 %v1559_v6, %v1557_v3  ;;  %2441 = vmatmul.mubr.msk.f32.gmra.mrb[36].mxu0 %vm407_vm4, %v2267_v28  ;;  %v1785_v12 = vsel %vm407_vm4, %v1767_v16, -inf  ;;  %v1788_v30 = vsel %vm407_vm4, %v1768_v20, -inf }
 0x672   : > { %1786 = vmax.xlane.f32.xlu1 %v1785_v12  ;;  %1789 = vmax.xlane.f32.xlu0 %v1788_v30 }
 0x673   : > { %2443 = vmatprep.mubr.msk.f32.mxu0 %vm407_vm4, %v2268_v13  ;;  %vm1568_vm10 = vcmp.eq.s32.totalorder %v2689_v27, %v1560_v4 }
 0x674   : > { %v2269_v31 = vsel %vm1568_vm10, 1.0, %v3824_v49  ;;  %v1769_v41 = vsel %vm1568_vm10, -inf, %v3328_v24 }
 0x675   : > { %2444 = vmatmul.mubr.msk.f32.gmra.mrb[38].mxu0 %vm407_vm4, %v2269_v31  ;;  %v1791_v53 = vsel %vm407_vm4, %v1769_v41, -inf }
 0x676   : > { %1792 = vmax.xlane.f32.xlu1 %v1791_v53 }
 0x6f3   : > { %v1772_v55 = vpop.xlane.xlu0 %1771 }
 0x6f4   : > { %vm1794_vm11 = vcmp.eq.f32.partialorder %v3537_v26, %v1772_v55 }
 0x6f5   : > { %v1802_v21 = vsel %vm1794_vm11, %v2689_v27, 64 }
 0x6f6   : > { %v3587_v42 = vsel %vm407_vm4, %v1802_v21, 2147483647 }
 0x6f7   : > { %v1775_v50 = vpop.xlane.xlu1 %1774  ;;  %v1778_v63 = vpop.xlane.xlu0 %1777  ;;  %v1812_v56 = vshra.s32 %v3587_v42, 16 }
 0x6f8   : > { %vm1795_vm12 = vcmp.eq.f32.partialorder %v3546_v15, %v1775_v50  ;;  %vm1796_vm13 = vcmp.eq.f32.partialorder %v3549_v19, %v1778_v63 }
 0x6f9   : > { %v1803_v24 = vsel %vm1795_vm12, %v2689_v27, 64  ;;  %v1804_v32 = vsel %vm1796_vm13, %v2689_v27, 64  ;;  %v3594_v44 = vcvt.s32.f32 %v1812_v56 }
 0x6fa   : > { %v3597_v26 = vsel %vm407_vm4, %v1803_v24, 2147483647  ;;  %v3600_v47 = vsel %vm407_vm4, %v1804_v32, 2147483647 }
 0x6fb   : > { %v1781_v48 = vpop.xlane.xlu1 %1780  ;;  %1815 = vmin.xlane.f32.xlu0 %v3594_v44  ;;  %v1784_v17 = vpop.xlane.xlu0 %1783  ;;  %v1827_v15 = vshra.s32 %v3597_v26, 16  ;;  %v1842_v19 = vshra.s32 %v3600_v47, 16 }
 0x6fc   : > { %vm1797_vm14 = vcmp.eq.f32.partialorder %v1765_v35, %v1781_v48  ;;  %vm1798_vm15 = vcmp.eq.f32.partialorder %v1766_v10, %v1784_v17 }
 0x6fd   : > { %v1805_v9 = vsel %vm1797_vm14, %v2689_v27, 64  ;;  %v1806_v51 = vsel %vm1798_vm15, %v2689_v27, 64  ;;  %v3607_v23 = vcvt.s32.f32 %v1827_v15  ;;  %v3609_v29 = vcvt.s32.f32 %v1842_v19 }
 0x6fe   : > { %v3612_v22 = vsel %vm407_vm4, %v1805_v9, 2147483647  ;;  %v3615_v59 = vsel %vm407_vm4, %v1806_v51, 2147483647 }
 0x6ff   : > { %1830 = vmin.xlane.f32.xlu1 %v3607_v23  ;;  %v1787_v6 = vpop.xlane.xlu1 %1786  ;;  %1845 = vmin.xlane.f32.xlu0 %v3609_v29  ;;  %v1790_v35 = vpop.xlane.xlu0 %1789  ;;  %v1857_v10 = vshra.s32 %v3612_v22, 16  ;;  %v1872_v3 = vshra.s32 %v3615_v59, 16  ;;  %v1856_v52 = vand.u32 65535, %v3612_v22  ;;  %v1871_v58 = vand.u32 65535, %v3615_v59 }
 0x700   : > { %vm1799_vm1 = vcmp.eq.f32.partialorder %v1767_v16, %v1787_v6  ;;  %vm1800_vm2 = vcmp.eq.f32.partialorder %v1768_v20, %v1790_v35 }
 0x701   : > { %v1807_v28 = vsel %vm1799_vm1, %v2689_v27, 64  ;;  %v1808_v13 = vsel %vm1800_vm2, %v2689_v27, 64  ;;  %v3623_v4 = vcvt.s32.f32 %v1857_v10  ;;  %v3625_v12 = vcvt.s32.f32 %v1872_v3 }
 0x702   : > { %v3628_v30 = vsel %vm407_vm4, %v1807_v28, 2147483647  ;;  %v3631_v31 = vsel %vm407_vm4, %v1808_v13, 2147483647 }
 0x703   : > { %1860 = vmin.xlane.f32.xlu1 %v3623_v4  ;;  %v1793_v53 = vpop.xlane.xlu1 %1792  ;;  %1875 = vmin.xlane.f32.xlu0 %v3625_v12  ;;  %v1887_v16 = vshra.s32 %v3628_v30, 16  ;;  %v1902_v20 = vshra.s32 %v3631_v31, 16 }
 0x704   : > { %vm1801_vm3 = vcmp.eq.f32.partialorder %v1769_v41, %v1793_v53 }
 0x705   : > { %v1809_v55 = vsel %vm1801_vm3, %v2689_v27, 64  ;;  %v3638_v21 = vcvt.s32.f32 %v1887_v16  ;;  %v3640_v50 = vcvt.s32.f32 %v1902_v20 }
 0x706   : > { %v3643_v63 = vsel %vm407_vm4, %v1809_v55, 2147483647 }
 0x707   : > { %1890 = vmin.xlane.f32.xlu1 %v3638_v21  ;;  %1905 = vmin.xlane.f32.xlu0 %v3640_v50  ;;  %v1917_v56 = vshra.s32 %v3643_v63, 16 }
 0x709   : > { %v3648_v24 = vcvt.s32.f32 %v1917_v56 }
 0x70b   : > { %1920 = vmin.xlane.f32.xlu1 %v3648_v24 }
 0x73c   : > { %v2436_v41 = vpop.f32.mrb[32].mxu0 }
 0x73d   : > { %v1681_v32 = vadd.f32 %v2436_v41, %v3128_v34  ;;  %v1675_v48 = vpop.f32.mrb[33].mxu0 }
 0x73e   : > { %v1676_v17 = vadd.f32 %v1675_v48, %v3125_v45  ;;  %v3825_v48 = vmax.f32 %v3437_v5, %v3460_v14 }
 0x73f   : > { %v1715_v15 = vmul.f32 %v3410_v40, %v1681_v32 }
 0x740   : > { %v1714_v19 = vmul.f32 %v3410_v40, %v1676_v17  ;;  %v2439_v9 = vpop.f32.mrb[34].mxu0 }
 0x741   : > { %v1723_v51 = vadd.f32 %v3419_v11, %v1715_v15  ;;  %v1691_v6 = vadd.f32 %v2439_v9, %v3134_v25  ;;  %v1685_v35 = vpop.f32.mrb[35].mxu0 }
 0x742   : > { %v1722_v10 = vadd.f32 %v3419_v11, %v1714_v19  ;;  %v1686_v3 = vadd.f32 %v1685_v35, %v3131_v54 }
 0x743   : > { %vm1731_vm5 = vcmp.ge.f32.partialorder %v1723_v51, 0.0  ;;  %v1739_v28 = vmul.f32 0.2, %v1723_v51  ;;  %v1717_v13 = vmul.f32 %v3410_v40, %v1691_v6  ;;  %v3826_v6 = vmax.f32 %v3440_v62, %v3466_v8 }
 0x744   : > { %vm1730_vm6 = vcmp.ge.f32.partialorder %v1722_v10, 0.0  ;;  %v1738_v53 = vmul.f32 0.2, %v1722_v10  ;;  %v1716_v16 = vmul.f32 %v3410_v40, %v1686_v3  ;;  %v2442_v20 = vpop.f32.mrb[36].mxu0  ;;  %v3827_v62 = vmax.f32 %v3442_v36, %v3476_v33 }
 0x745   : > { %v1747_v55 = vsel %vm1731_vm5, %v1723_v51, %v1739_v28  ;;  %v1725_v56 = vadd.f32 %v3419_v11, %v1717_v13  ;;  %v1701_v41 = vadd.f32 %v2442_v20, %v3137_v2  ;;  %v1695_v32 = vpop.f32.mrb[37].mxu0 }
 0x746   : > { %v3666_v17 = vmax.f32 %v3825_v48, %v1747_v55  ;;  %v1746_v15 = vsel %vm1730_vm6, %v1722_v10, %v1738_v53  ;;  %v1724_v19 = vadd.f32 %v3419_v11, %v1716_v16  ;;  %v1696_v9 = vadd.f32 %v1695_v32, %v3140_v0 }
 0x747   : > { %v3673_v35 = vmax.f32 %v3826_v6, %v1746_v15  ;;  %vm1733_vm0 = vcmp.ge.f32.partialorder %v1725_v56, 0.0  ;;  %v1741_v51 = vmul.f32 0.2, %v1725_v56  ;;  %v1719_v3 = vmul.f32 %v3410_v40, %v1701_v41 }
 0x748   : > { %vm1732_vm7 = vcmp.ge.f32.partialorder %v1724_v19, 0.0  ;;  %v1740_v28 = vmul.f32 0.2, %v1724_v19  ;;  %v1718_v5 = vmul.f32 %v3410_v40, %v1696_v9  ;;  %v2445_v14 = vpop.f32.mrb[38].mxu0  ;;  %v3828_v32 = vmax.f32 %v3444_v7, %v3482_v61  ;;  %v3830_v61 = vld [vmem:[#allocation2_spill] sm:$0xff] }
 0x749   : > { %v1749_v13 = vsel %vm1733_vm0, %v1725_v56, %v1741_v51  ;;  %v1727_v10 = vadd.f32 %v3419_v11, %v1719_v3  ;;  %v1711_v53 = vadd.f32 %v2445_v14, %v3143_v43  ;;  %v1705_v16 = vpop.f32.mrb[39].mxu0  ;;  %v3829_v6 = vmax.f32 %v3458_v38, %v3493_v46 }
 0x74a   : > { %v3682_v8 = vmax.f32 %v3827_v62, %v1749_v13  ;;  %v1748_v20 = vsel %vm1732_vm7, %v1724_v19, %v1740_v28  ;;  %v1726_v55 = vadd.f32 %v3419_v11, %v1718_v5  ;;  %v1706_v41 = vadd.f32 %v1705_v16, %v3146_v18 }
 0x74b   : > { %v3689_v48 = vmax.f32 %v3828_v32, %v1748_v20  ;;  %vm1735_vm8 = vcmp.ge.f32.partialorder %v1727_v10, 0.0  ;;  %v1743_v56 = vmul.f32 0.2, %v1727_v10  ;;  %v1721_v15 = vmul.f32 %v3410_v40, %v1711_v53 }
 0x74c   : > { %vm1734_vm9 = vcmp.ge.f32.partialorder %v1726_v55, 0.0  ;;  %v1742_v9 = vmul.f32 0.2, %v1726_v55  ;;  %v1720_v36 = vmul.f32 %v3410_v40, %v1706_v41  ;;  %v3831_v28 = vmax.f32 %v3490_v37, %v3830_v61 }
 0x74d   : > { %v1751_v33 = vsel %vm1735_vm8, %v1727_v10, %v1743_v56  ;;  %v1729_v19 = vadd.f32 %v3419_v11, %v1721_v15  ;;  %v1811_v37 = vand.u32 65535, %v3587_v42  ;;  %v1826_v20 = vand.u32 65535, %v3597_v26 }
 0x74e   : > { %v3697_v51 = vmax.f32 %v3829_v6, %v1751_v33  ;;  %v1750_v3 = vsel %vm1734_vm9, %v1726_v55, %v1742_v9  ;;  %v1728_v7 = vadd.f32 %v3419_v11, %v1720_v36  ;;  %v1841_v55 = vand.u32 65535, %v3600_v47 }
 0x74f   : > { %v3703_v5 = vmax.f32 %v3831_v28, %v1750_v3  ;;  %vm1737_vm10 = vcmp.ge.f32.partialorder %v1729_v19, 0.0  ;;  %v1745_v14 = vmul.f32 0.2, %v1729_v19  ;;  %v1813_v62 = vcvt.s32.f32 %v1811_v37 }
 0x750   : > { %vm1736_vm11 = vcmp.ge.f32.partialorder %v1728_v7, 0.0  ;;  %v1744_v13 = vmul.f32 0.2, %v1728_v7  ;;  %v1843_v32 = vcvt.s32.f32 %v1841_v55  ;;  %v1858_v47 = vcvt.s32.f32 %v1856_v52 }
 0x751   : > { %v1753_v10 = vsel %vm1737_vm10, %v1729_v19, %v1745_v14  ;;  %v1873_v56 = vcvt.s32.f32 %v1871_v58  ;;  %v1886_v15 = vand.u32 65535, %v3628_v30  ;;  %v1901_v9 = vand.u32 65535, %v3631_v31 }
 0x752   : > { %v3708_v53 = vmax.f32 %v1392_v39, %v1753_v10  ;;  %v1752_v38 = vsel %vm1736_vm11, %v1728_v7, %v1744_v13  ;;  %v1828_v39 = vcvt.s32.f32 %v1826_v20  ;;  %v1916_v19 = vand.u32 65535, %v3643_v63 }
 0x753   : > { %v3713_v46 = vmax.f32 %v1391_v60, %v1752_v38  ;;  %v1888_v36 = vcvt.s32.f32 %v1886_v15  ;;  %v1903_v33 = vcvt.s32.f32 %v1901_v9 }
 0x788   : > { %v1816_v16 = vpop.xlane.xlu0 %1815 }
 0x789   : > { %vm1817_vm12 = vcmp.eq.f32.partialorder %v3594_v44, %v1816_v16  ;;  %v1822_v3 = vcvt.f32.s32 %v1816_v16 }
 0x78a   : > { %v1818_v41 = vsel %vm1817_vm12, %v1813_v62, inf }
 0x78b   : > { %1819 = vmin.xlane.f32.xlu0 %v1818_v41  ;;  %v1823_v28 = vshll.u32 %v1822_v3, 16 }
 0x78c   : > { %v1831_v57 = vpop.xlane.xlu1 %1830  ;;  %v1846_v1 = vpop.xlane.xlu0 %1845 }
 0x78d   : > { %vm1832_vm13 = vcmp.eq.f32.partialorder %v3607_v23, %v1831_v57  ;;  %vm1847_vm14 = vcmp.eq.f32.partialorder %v3609_v29, %v1846_v1  ;;  %v1837_v7 = vcvt.f32.s32 %v1831_v57  ;;  %v1852_v14 = vcvt.f32.s32 %v1846_v1 }
 0x78e   : > { %v1833_v60 = vsel %vm1832_vm13, %v1828_v39, inf  ;;  %v1848_v42 = vsel %vm1847_vm14, %v1843_v32, inf  ;;  %vm2131_vm14 = vcmask 261120  }
 0x78f   : > { %1834 = vmin.xlane.f32.xlu1 %v1833_v60  ;;  %1849 = vmin.xlane.f32.xlu0 %v1848_v42  ;;  %v1853_v62 = vshll.u32 %v1852_v14, 16 }
 0x790   : > { %v1861_v26 = vpop.xlane.xlu1 %1860  ;;  %v1876_v44 = vpop.xlane.xlu0 %1875 }
 0x791   : > { %vm1862_vm15 = vcmp.eq.f32.partialorder %v3623_v4, %v1861_v26  ;;  %vm1877_vm1 = vcmp.eq.f32.partialorder %v3625_v12, %v1876_v44  ;;  %v1918_v12 = vcvt.s32.f32 %v1916_v19  ;;  %v1867_v10 = vcvt.f32.s32 %v1861_v26 }
 0x792   : > { %v1863_v22 = vsel %vm1862_vm15, %v1858_v47, inf  ;;  %v1878_v23 = vsel %vm1877_vm1, %v1873_v56, inf }
 0x793   : > { %1864 = vmin.xlane.f32.xlu1 %v1863_v22  ;;  %1879 = vmin.xlane.f32.xlu0 %v1878_v23  ;;  %v1868_v57 = vshll.u32 %v1867_v10, 16 }
 0x794   : > { %v1891_v29 = vpop.xlane.xlu1 %1890  ;;  %v1906_v59 = vpop.xlane.xlu0 %1905 }
 0x795   : > { %vm1892_vm2 = vcmp.eq.f32.partialorder %v3638_v21, %v1891_v29  ;;  %vm1907_vm3 = vcmp.eq.f32.partialorder %v3640_v50, %v1906_v59  ;;  %v1838_v21 = vshll.u32 %v1837_v7, 16  ;;  %v1882_v50 = vcvt.f32.s32 %v1876_v44 }
 0x796   : > { %v1893_v30 = vsel %vm1892_vm2, %v1888_v36, inf  ;;  %v1908_v31 = vsel %vm1907_vm3, %v1903_v33, inf  ;;  %v1897_v39 = vcvt.f32.s32 %v1891_v29  ;;  %v1912_v32 = vcvt.f32.s32 %v1906_v59 }
 0x797   : > { %1894 = vmin.xlane.f32.xlu1 %v1893_v30  ;;  %1909 = vmin.xlane.f32.xlu0 %v1908_v31  ;;  %v1883_v1 = vshll.u32 %v1882_v50, 16 }
 0x798   : > { %v1921_v4 = vpop.xlane.xlu1 %1920  ;;  %v1898_v15 = vshll.u32 %v1897_v39, 16  ;;  %v1913_v9 = vshll.u32 %v1912_v32, 16 }
 0x799   : > { %vm1922_vm5 = vcmp.eq.f32.partialorder %v3648_v24, %v1921_v4  ;;  %v1927_v22 = vcvt.f32.s32 %v1921_v4 }
 0x79a   : > { %v1923_v6 = vsel %vm1922_vm5, %v1918_v12, inf }
 0x79b   : > { %1924 = vmin.xlane.f32.xlu1 %v1923_v6  ;;  %v1928_v4 = vshll.u32 %v1927_v22, 16 }
 0x818   : > { %v1820_v61 = vpop.xlane.xlu0 %1819 }
 0x819   : > { %v1821_v63 = vcvt.f32.s32 %v1820_v61 }
 0x81b   : > { %v1824_v13 = vadd.s32 %v1823_v28, %v1821_v63 }
 0x81c   : > { %v1835_v38 = vpop.xlane.xlu1 %1834  ;;  %v1850_v37 = vpop.xlane.xlu0 %1849 }
 0x81d   : > { %v1836_v20 = vcvt.f32.s32 %v1835_v38  ;;  %v1851_v55 = vcvt.f32.s32 %v1850_v37  ;;  %vm1930_vm6 = vcmp.eq.s32.totalorder %v2689_v27, %v1824_v13 }
 0x81e   : > { %v2278_v24 = vsel %vm1930_vm6, 1.0, %v3824_v49 }
 0x81f   : > { %v1839_v41 = vadd.s32 %v1838_v21, %v1836_v20  ;;  %v1854_v16 = vadd.s32 %v1853_v62, %v1851_v55  ;;  %2462 = vmatprep.mubr.msk.f32.mxu1 %vm407_vm4, %v2278_v24 }
 0x820   : > { %v1865_v52 = vpop.xlane.xlu1 %1864  ;;  %v1880_v58 = vpop.xlane.xlu0 %1879 }
 0x821   : > { %vm1931_vm0 = vcmp.eq.s32.totalorder %v2689_v27, %v1839_v41  ;;  %v1866_v60 = vcvt.f32.s32 %v1865_v52  ;;  %v1881_v42 = vcvt.f32.s32 %v1880_v58  ;;  %vm1932_vm7 = vcmp.eq.s32.totalorder %v2689_v27, %v1854_v16 }
 0x822   : > { %v2279_v26 = vsel %vm1931_vm0, 1.0, %v3824_v49  ;;  %v2280_v44 = vsel %vm1932_vm7, 1.0, %v3824_v49 }
 0x823   : > { %v1869_v47 = vadd.s32 %v1868_v57, %v1866_v60  ;;  %v1884_v56 = vadd.s32 %v1883_v1, %v1881_v42  ;;  %2463 = vmatmul.mubr.msk.f32.vlgmr.msra.gmra.mrb[32].mxu1 %vm407_vm4, %v2279_v26 }
 0x824   : > { %v1895_v23 = vpop.xlane.xlu1 %1894  ;;  %2465 = vmatprep.mubr.msk.f32.mxu1 %vm407_vm4, %v2280_v44  ;;  %v1910_v29 = vpop.xlane.xlu0 %1909 }
 0x825   : > { %v1896_v59 = vcvt.f32.s32 %v1895_v23  ;;  %v1911_v36 = vcvt.f32.s32 %v1910_v29  ;;  %vm1933_vm8 = vcmp.eq.s32.totalorder %v2689_v27, %v1869_v47  ;;  %vm1934_vm9 = vcmp.eq.s32.totalorder %v2689_v27, %v1884_v56  ;;  %v2570_v29 = vld [vmem:[%s3815_s3] ss:$0 sm:$0xff] }
 0x826   : > { %v2281_v33 = vsel %vm1933_vm8, 1.0, %v3824_v49  ;;  %v2282_v19 = vsel %vm1934_vm9, 1.0, %v3824_v49 }
 0x827   : > { %v1899_v30 = vadd.s32 %v1898_v15, %v1896_v59  ;;  %v1914_v31 = vadd.s32 %v1913_v9, %v1911_v36  ;;  %2466 = vmatmul.mubr.msk.f32.gmra.mrb[34].mxu1 %vm407_vm4, %v2281_v33 }
 0x828   : > { %v1925_v12 = vpop.xlane.xlu1 %1924  ;;  %2468 = vmatprep.mubr.msk.f32.mxu1 %vm407_vm4, %v2282_v19 }
 0x829   : > { %vm1936_vm10 = vcmp.eq.s32.totalorder %v2689_v27, %v1914_v31  ;;  %v1926_v6 = vcvt.f32.s32 %v1925_v12  ;;  %vm1935_vm11 = vcmp.eq.s32.totalorder %v2689_v27, %v1899_v30 }
 0x82a   : > { %v2283_v3 = vsel %vm1935_vm11, 1.0, %v3824_v49  ;;  %v2284_v7 = vsel %vm1936_vm10, 1.0, %v3824_v49 }
 0x82b   : > { %v1929_v61 = vadd.s32 %v1928_v4, %v1926_v6  ;;  %2469 = vmatmul.mubr.msk.f32.gmra.mrb[36].mxu1 %vm407_vm4, %v2283_v3 }
 0x82c   : > { %2471 = vmatprep.mubr.msk.f32.mxu1 %vm407_vm4, %v2284_v7 }
 0x82d   : > { %vm1937_vm12 = vcmp.eq.s32.totalorder %v2689_v27, %v1929_v61 }
 0x82e   : > { %v2285_v28 = vsel %vm1937_vm12, 1.0, %v3824_v49 }
 0x82f   : > { %2472 = vmatmul.mubr.msk.f32.gmra.mrb[38].mxu1 %vm407_vm4, %v2285_v28 }
 0x8f6   : > { %v2464_v14 = vpop.f32.mrb[32].mxu1 }
 0x8f7   : > { %v2050_v63 = vadd.f32 %v2464_v14, %v3128_v34  ;;  %v2044_v13 = vpop.f32.mrb[33].mxu1 }
 0x8f8   : > { %v2045_v21 = vadd.f32 %v2044_v13, %v3125_v45 }
 0x8f9   : > { %v2084_v10 = vmul.f32 %v3410_v40, %v2050_v63 }
 0x8fa   : > { %v2083_v50 = vmul.f32 %v3410_v40, %v2045_v21  ;;  %v2467_v38 = vpop.f32.mrb[34].mxu1 }
 0x8fb   : > { %v2092_v37 = vadd.f32 %v3419_v11, %v2084_v10  ;;  %v2060_v62 = vadd.f32 %v2467_v38, %v3134_v25  ;;  %v2054_v27 = vpop.f32.mrb[35].mxu1 }
 0x8fc   : > { %v2091_v49 = vadd.f32 %v3419_v11, %v2083_v50  ;;  %v2055_v20 = vadd.f32 %v2054_v27, %v3131_v54 }
 0x8fd   : > { %vm2100_vm4 = vcmp.ge.f32.partialorder %v2092_v37, 0.0  ;;  %v2108_v34 = vmul.f32 0.2, %v2092_v37  ;;  %v2086_v55 = vmul.f32 %v3410_v40, %v2060_v62 }
 0x8fe   : > { %vm2099_vm13 = vcmp.ge.f32.partialorder %v2091_v49, 0.0  ;;  %v2107_v45 = vmul.f32 0.2, %v2091_v49  ;;  %v2085_v24 = vmul.f32 %v3410_v40, %v2055_v20  ;;  %v2470_v41 = vpop.f32.mrb[36].mxu1 }
 0x8ff   : > { %v2116_v25 = vsel %vm2100_vm4, %v2092_v37, %v2108_v34  ;;  %v2094_v16 = vadd.f32 %v3419_v11, %v2086_v55  ;;  %v2070_v54 = vadd.f32 %v2470_v41, %v3137_v2  ;;  %v2064_v57 = vpop.f32.mrb[37].mxu1 }
 0x900   : > { %v2124_v1 = vmax.f32 %v3666_v17, %v2116_v25  ;;  %v2115_v39 = vsel %vm2099_vm13, %v2091_v49, %v2107_v45  ;;  %v2093_v32 = vadd.f32 %v3419_v11, %v2085_v24  ;;  %v2065_v52 = vadd.f32 %v2064_v57, %v3140_v0  ;;  %v2569_v0 = vld [vmem:[%s3816_s4] ss:$0 sm:$0xff] }
 0x901   : > { %v2123_v58 = vmax.f32 %v3673_v35, %v2115_v39  ;;  %vm2102_vm15 = vcmp.ge.f32.partialorder %v2094_v16, 0.0  ;;  %v2110_v60 = vmul.f32 0.2, %v2094_v16  ;;  %v2088_v42 = vmul.f32 %v3410_v40, %v2070_v54 }
 0x902   : > { %2133 = vst.msk [vmem:[%s3769_s30 + $0x8] sm:$0xff] %vm2131_vm14, %v2124_v1  ;;  %vm2101_vm1 = vcmp.ge.f32.partialorder %v2093_v32, 0.0  ;;  %v2109_v26 = vmul.f32 0.2, %v2093_v32  ;;  %v2087_v2 = vmul.f32 %v3410_v40, %v2065_v52  ;;  %v2473_v44 = vpop.f32.mrb[38].mxu1 }
 0x903   : > { %2132 = vst.msk [vmem:[%s3769_s30] sm:$0xff] %vm2131_vm14, %v2123_v58  ;;  %v2118_v17 = vsel %vm2102_vm15, %v2094_v16, %v2110_v60  ;;  %v2096_v11 = vadd.f32 %v2569_v0, %v2088_v42  ;;  %v2080_v35 = vadd.f32 %v2473_v44, %v3143_v43  ;;  %v2074_v47 = vpop.f32.mrb[39].mxu1 }
 0x904   : > { %v2126_v56 = vmax.f32 %v3682_v8, %v2118_v17  ;;  %v2117_v15 = vsel %vm2101_vm1, %v2093_v32, %v2109_v26  ;;  %v2095_v9 = vadd.f32 %v2569_v0, %v2087_v2  ;;  %v2075_v40 = vadd.f32 %v2074_v47, %v3146_v18 }
 0x905   : > { %v2125_v22 = vmax.f32 %v3689_v48, %v2117_v15  ;;  %vm2104_vm2 = vcmp.ge.f32.partialorder %v2096_v11, 0.0  ;;  %v2112_v23 = vmul.f32 0.2, %v2096_v11  ;;  %v2090_v59 = vmul.f32 %v2570_v29, %v2080_v35 }
 0x906   : > { %2135 = vst.msk [vmem:[%s3769_s30 + $0x18] sm:$0xff] %vm2131_vm14, %v2126_v56  ;;  %vm2103_vm3 = vcmp.ge.f32.partialorder %v2095_v9, 0.0  ;;  %v2111_v43 = vmul.f32 0.2, %v2095_v9  ;;  %v2089_v8 = vmul.f32 %v2570_v29, %v2075_v40 }
 0x907   : > { %2134 = vst.msk [vmem:[%s3769_s30 + $0x10] sm:$0xff] %vm2131_vm14, %v2125_v22  ;;  %v2120_v36 = vsel %vm2104_vm2, %v2096_v11, %v2112_v23  ;;  %v2098_v18 = vadd.f32 %v2569_v0, %v2090_v59 }
 0x908   : > { %v2128_v48 = vmax.f32 %v3697_v51, %v2120_v36  ;;  %v2119_v33 = vsel %vm2103_vm3, %v2095_v9, %v2111_v43  ;;  %v2097_v19 = vadd.f32 %v2569_v0, %v2089_v8 }
 0x909   : > { %v2127_v30 = vmax.f32 %v3703_v5, %v2119_v33  ;;  %vm2106_vm5 = vcmp.ge.f32.partialorder %v2098_v18, 0.0  ;;  %v2114_v31 = vmul.f32 0.2, %v2098_v18 }
 0x90a   : > { %2137 = vst.msk [vmem:[%s3769_s30 + $0x28] sm:$0xff] %vm2131_vm14, %v2128_v48  ;;  %vm2105_vm6 = vcmp.ge.f32.partialorder %v2097_v19, 0.0  ;;  %v2113_v12 = vmul.f32 0.2, %v2097_v19 }
 0x90b   : > { %2136 = vst.msk [vmem:[%s3769_s30 + $0x20] sm:$0xff] %vm2131_vm14, %v2127_v30  ;;  %v2122_v4 = vsel %vm2106_vm5, %v2098_v18, %v2114_v31 }
 0x90c   : > { %v2130_v6 = vmax.f32 %v3708_v53, %v2122_v4  ;;  %v2121_v3 = vsel %vm2105_vm6, %v2097_v19, %v2113_v12 }
 0x90d   : > { %v2129_v7 = vmax.f32 %v3713_v46, %v2121_v3 }
 0x90e   : > { %2139 = vst.msk [vmem:[%s3769_s30 + $0x38] sm:$0xff] %vm2131_vm14, %v2130_v6 }
 0x90f   : > { %2138 = vst.msk [vmem:[%s3769_s30 + $0x30] sm:$0xff] %vm2131_vm14, %v2129_v7 }
 0x910 PF: > { %s15_s18 = sadd.s32 1, %s2577_s18  }
 0x911   : > { %p12_p4 = scmp.ge.s32.totalorder %s15_s18, 4  }
 0x913   :  { %14 = sbr.rel (!%p12_p4) target bundleno = 1 (0x1), region = 70 }

// kernel: edgeconv_res_feat.5
= control target key start
LH: loop header
LB: loop body
LE: loop exit
PB: predicated region body
PF: predicated region fallthrough
CT: control target
= control target key end

     0   :  { %s2762_s21 = smov 0   ;;  %s3868_s0 = inlined_call_operand.vmem [shape: f32[2,64,32], index: 0, kind: input, shape index: {}]   ;;  %s3869_s1 = inlined_call_operand.vmem [shape: f32[32,32], index: 1, kind: input, shape index: {}]   ;;  %s3870_s2 = inlined_call_operand.vmem [shape: f32[32,32], index: 2, kind: input, shape index: {}]   ;;  %s3871_s3 = inlined_call_operand.vmem [shape: f32[1,32], index: 3, kind: input, shape index: {}]   ;;  %s3872_s4 = inlined_call_operand.vmem [shape: f32[1,32], index: 4, kind: input, shape index: {}]   ;;  %s3873_s5 = inlined_call_operand.vmem [shape: f32[32,32], index: 5, kind: input, shape index: {}]   ;;  %s3874_s6 = inlined_call_operand.vmem [shape: f32[2,64,32], index: 6, kind: output, shape index: {}]  }
   0x1 LB: > { %s2238_s22 = sadd.s32 4294967295, %s2724_s21   ;;  %p2242_p0 = scmp.ge.s32.totalorder %s2724_s21, 1  ;;  %s2724_s21 = sphi %s2762_s21, %s16_s21  }
   0x2   : > { %p212_p1 = scmp.lt.s32.totalorder %s2724_s21, 3 }
   0x4   : > { %p213_p2 = pnand %p2242_p0, %p212_p1 }
   0x6   : > { %216 = sbr.rel (%p213_p2) target bundleno = 2309 (0x905), region = 44 }
   0xd   : > { %p242_p3 = scmp.lt.s32.totalorder %s2238_s22, 1  ;;  %vm265_vm0 = vcmask 261120   ;;  %v395_v13 = vlaneseq  ;;  %vm422_vm3 = vcmask 523264  }
   0xe   : > { %vm2780_vm1 = vmpackc.low %vm265_vm0, %vm265_vm0 }
   0xf   : > { %s3902_s22 = smov (!%p242_p3, %s2238_s22), 1  ;;  %v396_v14 = vshrl.u32 %v395_v13, 7  ;;  %v2826_v16 = vand.u32 127, %v395_v13 }
  0x10   : > { %s2343_s23 = sshll.u32 %s3902_s22, 6 }
  0x11   : > { %s246_s26 = scalar_lea.vmem %s3868_s0, %s2343_s23  ;;  %v397_v15 = vadd.s32 8, %v396_v14  ;;  %vm406_vm4 = vcmp.eq.s32.totalorder %v396_v14, %v2826_v16  ;;  %v399_v17 = vadd.s32 24, %v396_v14  ;;  %v398_v18 = vadd.s32 16, %v396_v14  ;;  %s3833_s16 = scalar_lea.vmem %s3874_s6, %s2343_s23 }
  0x12   : > { %v253_v1 = vld [vmem:[%s246_s26] sm:$0xff]  ;;  %v254_v2 = vld [vmem:[%s246_s26 + $0x8] sm:$0xff]  ;;  %v255_v3 = vld [vmem:[%s246_s26 + $0x10] sm:$0xff]  ;;  %v401_v24 = vadd.s32 40, %v396_v14  ;;  %v400_v26 = vadd.s32 32, %v396_v14  ;;  %v403_v33 = vadd.s32 56, %v396_v14 }
  0x13   : > { %v2784_v4 = vpack.c.bf16 %v254_v2, %v253_v1  ;;  %v256_v5 = vld [vmem:[%s246_s26 + $0x18] sm:$0xff]  ;;  %2459 = vmatprep.mubr.msk.f32.mxu0 %vm265_vm0, %v253_v1  ;;  %v257_v7 = vld [vmem:[%s246_s26 + $0x20] sm:$0xff]  ;;  %v258_v8 = vld [vmem:[%s246_s26 + $0x28] sm:$0xff]  ;;  %vm407_vm2 = vcmp.eq.s32.totalorder %v397_v15, %v2826_v16  ;;  %vm409_vm5 = vcmp.eq.s32.totalorder %v399_v17, %v2826_v16  ;;  %vm408_vm6 = vcmp.eq.s32.totalorder %v398_v18, %v2826_v16 }
  0x14   : > { %v2787_v6 = vpack.c.bf16 %v256_v5, %v255_v3  ;;  %v2800_v9 = vpack.c.bf16 %v258_v8, %v257_v7  ;;  %v259_v10 = vld [vmem:[%s246_s26 + $0x30] sm:$0xff]  ;;  %v260_v11 = vld [vmem:[%s246_s26 + $0x38] sm:$0xff]  ;;  %vm411_vm7 = vcmp.eq.s32.totalorder %v401_v24, %v2826_v16  ;;  %vm410_vm8 = vcmp.eq.s32.totalorder %v400_v26, %v2826_v16  ;;  %v461_v26 = vld [vmem:[%s3869_s1 + $0x8] sm:$0xff] }
  0x15   : > { %2621 = vmatprep.subr.msk.bf16.mxu0 %vm2780_vm1, %v2784_v4  ;;  %2475 = vmatprep.mubr.msk.bf16.mxu1 %vm265_vm0, %v2784_v4  ;;  %v2808_v12 = vpack.c.bf16 %v260_v11, %v259_v10  ;;  %v402_v34 = vadd.s32 48, %v396_v14  ;;  %vm413_vm9 = vcmp.eq.s32.totalorder %v403_v33, %v2826_v16 }
  0x16   : > { %3884 = vst [vmem:[#allocation2_spill] sm:$0xff] %v2787_v6  ;;  %2624 = vmatpush3.bf16.xpose.msk.msra.mxu0 %vm2780_vm1, %v2784_v4  ;;  %3885 = vst [vmem:[#allocation3_spill] sm:$0xff] %v2800_v9 }
  0x17   : > { %2627 = vmatprep.subr.msk.bf16.mxu0 %vm2780_vm1, %v2787_v6  ;;  %3886 = vst [vmem:[#allocation4_spill] sm:$0xff] %v2808_v12  ;;  %vm412_vm10 = vcmp.eq.s32.totalorder %v402_v34, %v2826_v16 }
  0x1e   : > { %2630 = vmatpush3.bf16.xpose.msk.msra.mxu0 %vm2780_vm1, %v2787_v6 }
  0x1f   : > { %2633 = vmatprep.subr.msk.bf16.mxu0 %vm2780_vm1, %v2800_v9 }
  0x26   : > { %2636 = vmatpush3.bf16.xpose.msk.msra.mxu0 %vm2780_vm1, %v2800_v9 }
  0x27   : > { %2639 = vmatprep.subr.msk.bf16.mxu0 %vm2780_vm1, %v2808_v12 }
  0x2e   : > { %2642 = vmatpush3.bf16.xpose.msk.msra.mxu0 %vm2780_vm1, %v2808_v12 }
  0x35   : > { %2460 = vmatmul.mubr.msk.f32.vlgmr.msra.gmra.mrb[0].mxu0 %vm265_vm0, %v254_v2 }
  0x36   : > { %2462 = vmatprep.mubr.msk.f32.mxu0 %vm265_vm0, %v255_v3 }
  0x39   : > { %2463 = vmatmul.mubr.msk.f32.gmra.mrb[2].mxu0 %vm265_vm0, %v256_v5 }
  0x3a   : > { %2465 = vmatprep.mubr.msk.f32.mxu0 %vm265_vm0, %v257_v7 }
  0x3d   : > { %2466 = vmatmul.mubr.msk.f32.gmra.mrb[4].mxu0 %vm265_vm0, %v258_v8 }
  0x3e   : > { %2468 = vmatprep.mubr.msk.f32.mxu0 %vm265_vm0, %v259_v10 }
  0x41   : > { %2469 = vmatmul.mubr.msk.f32.gmra.mrb[6].mxu0 %vm265_vm0, %v260_v11 }
 0x108   : > { %v2461_v19 = vpop.f32.mrb[0].mxu0 }
 0x109   : > { %v415_v20 = vsel %vm407_vm2, %v2461_v19, 0.0  ;;  %v356_v21 = vpop.f32.mrb[1].mxu0  ;;  %v445_v0 = vmul.f32 2.0, %v2461_v19 }
 0x10a   : > { %v424_v22 = vsel %vm422_vm3, %v415_v20, 0.0  ;;  %v414_v23 = vsel %vm406_vm4, %v356_v21, 0.0  ;;  %v444_v59 = vmul.f32 2.0, %v356_v21 }
 0x10b   : > { %v423_v25 = vsel %vm422_vm3, %v414_v23, 0.0 }
 0x10c   : > { %v425_v27 = vadd.f32 %v424_v22, %v423_v25  ;;  %v2464_v28 = vpop.f32.mrb[2].mxu0  ;;  %v460_v25 = vld [vmem:[%s3869_s1] sm:$0xff] }
 0x10d   : > { %v366_v29 = vpop.f32.mrb[3].mxu0  ;;  %v417_v30 = vsel %vm409_vm5, %v2464_v28, 0.0  ;;  %v447_v60 = vmul.f32 2.0, %v2464_v28  ;;  %v464_v28 = vpack.c.bf16 %v461_v26, %v460_v25 }
 0x10e   : > { %v416_v31 = vsel %vm408_vm6, %v366_v29, 0.0  ;;  %v428_v37 = vsel %vm422_vm3, %v417_v30, 0.0  ;;  %v446_v61 = vmul.f32 2.0, %v366_v29  ;;  %v463_v29 = vld [vmem:[%s3869_s1 + $0x18] sm:$0xff] }
 0x10f   : > { %v426_v32 = vsel %vm422_vm3, %v416_v31, 0.0  ;;  %2471 = vmatprep.subr.bf16.mxu1 %v464_v28 }
 0x110   : > { %v427_v35 = vadd.f32 %v426_v32, %v425_v27  ;;  %v2467_v36 = vpop.f32.mrb[4].mxu0  ;;  %v462_v27 = vld [vmem:[%s3869_s1 + $0x10] sm:$0xff]  ;;  %2472 = vmatpush3.bf16.msra.mxu1 %v464_v28 }
 0x111   : > { %v376_v38 = vpop.f32.mrb[5].mxu0  ;;  %v419_v39 = vsel %vm411_vm7, %v2467_v36, 0.0  ;;  %v449_v1 = vmul.f32 2.0, %v2467_v36  ;;  %v465_v30 = vpack.c.bf16 %v463_v29, %v462_v27 }
 0x112   : > { %v418_v40 = vsel %vm410_vm8, %v376_v38, 0.0  ;;  %v429_v41 = vadd.f32 %v428_v37, %v427_v35  ;;  %v432_v45 = vsel %vm422_vm3, %v419_v39, 0.0  ;;  %v448_v2 = vmul.f32 2.0, %v376_v38 }
 0x113   : > { %v430_v42 = vsel %vm422_vm3, %v418_v40, 0.0  ;;  %2473 = vmatprep.subr.bf16.mxu1 %v465_v30 }
 0x114   : > { %v431_v43 = vadd.f32 %v430_v42, %v429_v41  ;;  %v2470_v44 = vpop.f32.mrb[6].mxu0  ;;  %2474 = vmatpush3.bf16.msra.mxu1 %v465_v30 }
 0x115   : > { %v386_v46 = vpop.f32.mrb[7].mxu0  ;;  %v421_v47 = vsel %vm413_vm9, %v2470_v44, 0.0  ;;  %v451_v3 = vmul.f32 2.0, %v2470_v44 }
 0x116   : > { %v420_v48 = vsel %vm412_vm10, %v386_v46, 0.0  ;;  %v433_v49 = vadd.f32 %v432_v45, %v431_v43  ;;  %v436_v52 = vsel %vm422_vm3, %v421_v47, 0.0  ;;  %v450_v63 = vmul.f32 2.0, %v386_v46 }
 0x117   : > { %v434_v50 = vsel %vm422_vm3, %v420_v48, 0.0  ;;  %2476 = vmatmul.mubr.msk.bf16.vlgmr.msra.gmra.mrb[0].mxu1 %vm265_vm0, %v2787_v6 }
 0x118   : > { %v435_v51 = vadd.f32 %v434_v50, %v433_v49  ;;  %2479 = vmatprep.mubr.msk.bf16.mxu1 %vm265_vm0, %v2800_v9 }
 0x11a   : > { %v437_v53 = vadd.f32 %v436_v52, %v435_v51 }
 0x11c   : > { %v438_v54 = vrot.slane %v437_v53, 4 }
 0x11e   : > { %v439_v55 = vadd.f32 %v438_v54, %v437_v53 }
 0x11f   : > { %2480 = vmatmul.mubr.msk.bf16.gmra.mrb[4].mxu1 %vm265_vm0, %v2808_v12 }
 0x120   : > { %v440_v56 = vrot.slane %v439_v55, 2  ;;  %2487 = vmatprep.mubr.msk.bf16.mxu1 %vm265_vm0, %v2784_v4 }
 0x122   : > { %v441_v57 = vadd.f32 %v440_v56, %v439_v55 }
 0x124   : > { %v442_v58 = vrot.slane %v441_v57, 1 }
 0x126   : > { %v443_v62 = vadd.f32 %v442_v58, %v441_v57 }
 0x128   : > { %v2844_v5 = vsub.f32 %v450_v63, %v443_v62  ;;  %v2846_v7 = vsub.f32 %v446_v61, %v443_v62  ;;  %v2848_v8 = vsub.f32 %v444_v59, %v443_v62  ;;  %v2850_v10 = vsub.f32 %v447_v60, %v443_v62 }
 0x129   : > { %v2852_v11 = vsub.f32 %v445_v0, %v443_v62  ;;  %v2854_v13 = vsub.f32 %v449_v1, %v443_v62  ;;  %v2856_v14 = vsub.f32 %v448_v2, %v443_v62  ;;  %v2858_v15 = vsub.f32 %v451_v3, %v443_v62 }
 0x12a   : > { %v630_v17 = vsel %vm422_vm3, %v2846_v7, -inf  ;;  %v624_v18 = vsel %vm422_vm3, %v2848_v8, -inf  ;;  %v633_v19 = vsel %vm422_vm3, %v2850_v10, -inf  ;;  %v642_v24 = vsel %vm422_vm3, %v2844_v5, -inf }
 0x12b   : > { %631 = vmax.xlane.f32.xlu1 %v630_v17  ;;  %625 = vmax.xlane.f32.xlu0 %v624_v18  ;;  %v627_v20 = vsel %vm422_vm3, %v2852_v11, -inf  ;;  %v639_v21 = vsel %vm422_vm3, %v2854_v13, -inf  ;;  %v636_v22 = vsel %vm422_vm3, %v2856_v14, -inf  ;;  %v645_v23 = vsel %vm422_vm3, %v2858_v15, -inf }
 0x12f   : > { %634 = vmax.xlane.f32.xlu1 %v633_v19  ;;  %628 = vmax.xlane.f32.xlu0 %v627_v20  ;;  %v466_v20 = vld [vmem:[%s3870_s2] sm:$0xff] }
 0x133   : > { %640 = vmax.xlane.f32.xlu1 %v639_v21  ;;  %637 = vmax.xlane.f32.xlu0 %v636_v22  ;;  %v467_v21 = vld [vmem:[%s3870_s2 + $0x8] sm:$0xff]  ;;  %v468_v22 = vld [vmem:[%s3870_s2 + $0x10] sm:$0xff] }
 0x137   : > { %646 = vmax.xlane.f32.xlu1 %v645_v23  ;;  %643 = vmax.xlane.f32.xlu0 %v642_v24  ;;  %v470_v23 = vpack.c.bf16 %v467_v21, %v466_v20  ;;  %v469_v24 = vld [vmem:[%s3870_s2 + $0x18] sm:$0xff] }
 0x138   : > { %v471_v25 = vpack.c.bf16 %v469_v24, %v468_v22 }
 0x139   : > { %2483 = vmatprep.subr.bf16.mxu1 %v470_v23 }
 0x13a   : > { %2484 = vmatpush3.bf16.msra.mxu1 %v470_v23 }
 0x13b   : > { %2485 = vmatprep.subr.bf16.mxu1 %v471_v25 }
 0x13e   : > { %2486 = vmatpush3.bf16.msra.mxu1 %v471_v25 }
 0x141   : > { %2488 = vmatmul.mubr.msk.bf16.vlgmr.msra.gmra.mrb[8].mxu1 %vm265_vm0, %v2787_v6 }
 0x142   : > { %2491 = vmatprep.mubr.msk.bf16.mxu1 %vm265_vm0, %v2800_v9 }
 0x149   : > { %2492 = vmatmul.mubr.msk.bf16.gmra.mrb[12].mxu1 %vm265_vm0, %v2808_v12 }
 0x1b8   : > { %v632_v31 = vpop.xlane.xlu1 %631  ;;  %v626_v32 = vpop.xlane.xlu0 %625 }
 0x1b9   : > { %vm650_vm11 = vcmp.eq.f32.partialorder %v2846_v7, %v632_v31  ;;  %vm648_vm12 = vcmp.eq.f32.partialorder %v2848_v8, %v626_v32 }
 0x1ba   : > { %v658_v33 = vsel %vm650_vm11, %v2826_v16, 64  ;;  %v656_v34 = vsel %vm648_vm12, %v2826_v16, 64 }
 0x1bb   : > { %v2901_v35 = vsel %vm422_vm3, %v658_v33, 2147483647  ;;  %v2904_v36 = vsel %vm422_vm3, %v656_v34, 2147483647 }
 0x1bc   : > { %v635_v37 = vpop.xlane.xlu1 %634  ;;  %v629_v38 = vpop.xlane.xlu0 %628  ;;  %v666_v39 = vshra.s32 %v2904_v36, 16  ;;  %v696_v43 = vshra.s32 %v2901_v35, 16 }
 0x1bd   : > { %vm651_vm13 = vcmp.eq.f32.partialorder %v2850_v10, %v635_v37  ;;  %vm649_vm14 = vcmp.eq.f32.partialorder %v2852_v11, %v629_v38 }
 0x1be   : > { %v659_v40 = vsel %vm651_vm13, %v2826_v16, 64  ;;  %v657_v41 = vsel %vm649_vm14, %v2826_v16, 64  ;;  %v2911_v42 = vcvt.s32.f32 %v666_v39  ;;  %v2927_v52 = vcvt.s32.f32 %v696_v43 }
 0x1bf   : > { %v2915_v44 = vsel %vm422_vm3, %v659_v40, 2147483647  ;;  %v2918_v45 = vsel %vm422_vm3, %v657_v41, 2147483647  ;;  %v665_v40 = vand.u32 65535, %v2904_v36 }
 0x1c0   : > { %v641_v46 = vpop.xlane.xlu1 %640  ;;  %669 = vmin.xlane.f32.xlu0 %v2911_v42  ;;  %v638_v47 = vpop.xlane.xlu0 %637  ;;  %v681_v48 = vshra.s32 %v2918_v45, 16  ;;  %v711_v49 = vshra.s32 %v2915_v44, 16 }
 0x1c1   : > { %vm653_vm15 = vcmp.eq.f32.partialorder %v2854_v13, %v641_v46  ;;  %vm652_vm1 = vcmp.eq.f32.partialorder %v2856_v14, %v638_v47  ;;  %v667_v43 = vcvt.s32.f32 %v665_v40  ;;  %v680_v46 = vand.u32 65535, %v2918_v45 }
 0x1c2   : > { %v661_v50 = vsel %vm653_vm15, %v2826_v16, 64  ;;  %v660_v51 = vsel %vm652_vm1, %v2826_v16, 64  ;;  %v2929_v53 = vcvt.s32.f32 %v681_v48  ;;  %v2942_v59 = vcvt.s32.f32 %v711_v49 }
 0x1c3   : > { %v2932_v54 = vsel %vm422_vm3, %v661_v50, 2147483647  ;;  %v2935_v55 = vsel %vm422_vm3, %v660_v51, 2147483647  ;;  %v695_v47 = vand.u32 65535, %v2901_v35  ;;  %v682_v51 = vcvt.s32.f32 %v680_v46 }
 0x1c4   : > { %v647_v56 = vpop.xlane.xlu1 %646  ;;  %699 = vmin.xlane.f32.xlu0 %v2927_v52  ;;  %684 = vmin.xlane.f32.xlu1 %v2929_v53  ;;  %v644_v57 = vpop.xlane.xlu0 %643  ;;  %v726_v58 = vshra.s32 %v2935_v55, 16  ;;  %v741_v63 = vshra.s32 %v2932_v54, 16 }
 0x1c5   : > { %vm655_vm2 = vcmp.eq.f32.partialorder %v2858_v15, %v647_v56  ;;  %vm654_vm4 = vcmp.eq.f32.partialorder %v2844_v5, %v644_v57  ;;  %v697_v56 = vcvt.s32.f32 %v695_v47  ;;  %v710_v57 = vand.u32 65535, %v2915_v44 }
 0x1c6   : > { %v663_v60 = vsel %vm655_vm2, %v2826_v16, 64  ;;  %v662_v61 = vsel %vm654_vm4, %v2826_v16, 64  ;;  %v2946_v62 = vcvt.s32.f32 %v726_v58  ;;  %v2958_v3 = vcvt.s32.f32 %v741_v63 }
 0x1c7   : > { %v2950_v0 = vsel %vm422_vm3, %v663_v60, 2147483647  ;;  %v2953_v1 = vsel %vm422_vm3, %v662_v61, 2147483647  ;;  %v725_v58 = vand.u32 65535, %v2935_v55  ;;  %v712_v60 = vcvt.s32.f32 %v710_v57 }
 0x1c8   : > { %714 = vmin.xlane.f32.xlu1 %v2942_v59  ;;  %729 = vmin.xlane.f32.xlu0 %v2946_v62  ;;  %v756_v2 = vshra.s32 %v2953_v1, 16  ;;  %v771_v18 = vshra.s32 %v2950_v0, 16  ;;  %v740_v63 = vand.u32 65535, %v2932_v54  ;;  %v770_v21 = vand.u32 65535, %v2950_v0 }
 0x1c9   : > { %v727_v61 = vcvt.s32.f32 %v725_v58 }
 0x1ca   : > { %v2960_v17 = vcvt.s32.f32 %v756_v2  ;;  %v2965_v19 = vcvt.s32.f32 %v771_v18  ;;  %v755_v2 = vand.u32 65535, %v2953_v1  ;;  %v742_v18 = vcvt.s32.f32 %v740_v63 }
 0x1cc   : > { %744 = vmin.xlane.f32.xlu1 %v2958_v3  ;;  %759 = vmin.xlane.f32.xlu0 %v2960_v17  ;;  %v757_v20 = vcvt.s32.f32 %v755_v2 }
 0x1d0   : > { %774 = vmin.xlane.f32.xlu1 %v2965_v19 }
 0x1ea   : > { %v2986_v26 = vpop.f32.mrb[0].mxu1 }
 0x1eb   : > { %v2988_v27 = vpop.f32.mrb[1].mxu1 }
 0x1ec   : > { %v2990_v28 = vpop.f32.mrb[2].mxu1 }
 0x1ed   : > { %v2994_v29 = vpack.c.bf16 %v2990_v28, %v2986_v26  ;;  %v2996_v30 = vpop.f32.mrb[3].mxu1 }
 0x1ee   : > { %v3000_v31 = vpack.c.bf16 %v2996_v30, %v2988_v27 }
 0x1f0   : > { %2644 = vmatprep.subr.bf16.mxu1 %v3000_v31  ;;  %2660 = vmatprep.subr.bf16.mxu0 %v3000_v31 }
 0x1f1   : > { %2646 = vmatpush3.bf16.msra.mxu1 %v3000_v31  ;;  %2662 = vmatpush3.bf16.msra.mxu0 %v3000_v31 }
 0x1f2   : > { %v3006_v32 = vpop.f32.mrb[4].mxu1  ;;  %2648 = vmatprep.subr.bf16.mxu1 %v2994_v29  ;;  %2664 = vmatprep.subr.bf16.mxu0 %v2994_v29 }
 0x1f3   : > { %v3010_v33 = vpop.f32.mrb[5].mxu1 }
 0x1f4   : > { %v3012_v34 = vpop.f32.mrb[6].mxu1 }
 0x1f5   : > { %v3016_v37 = vpack.c.bf16 %v3012_v34, %v3006_v32  ;;  %v3018_v38 = vpop.f32.mrb[7].mxu1  ;;  %2650 = vmatpush3.bf16.msra.mxu1 %v2994_v29  ;;  %2666 = vmatpush3.bf16.msra.mxu0 %v2994_v29 }
 0x1f6   : > { %v3024_v39 = vpack.c.bf16 %v3018_v38, %v3010_v33 }
 0x1f8   : > { %2652 = vmatprep.subr.bf16.mxu1 %v3024_v39  ;;  %2668 = vmatprep.subr.bf16.mxu0 %v3024_v39 }
 0x1f9   : > { %2654 = vmatpush3.bf16.msra.mxu1 %v3024_v39  ;;  %2670 = vmatpush3.bf16.msra.mxu0 %v3024_v39 }
 0x1fa   : > { %2656 = vmatprep.subr.bf16.mxu1 %v3016_v37  ;;  %2672 = vmatprep.subr.bf16.mxu0 %v3016_v37 }
 0x1fd   : > { %2658 = vmatpush3.bf16.msra.mxu1 %v3016_v37  ;;  %2674 = vmatpush3.bf16.msra.mxu0 %v3016_v37 }
 0x1fe   : > { %2676 = vmatprep.subr.bf16.mxu1 %v3000_v31  ;;  %2692 = vmatprep.subr.bf16.mxu0 %v3000_v31 }
 0x24d   : > { %v670_v41 = vpop.xlane.xlu0 %669 }
 0x24e   : > { %vm671_vm5 = vcmp.eq.f32.partialorder %v2911_v42, %v670_v41  ;;  %v676_v23 = vcvt.f32.s32 %v670_v41 }
 0x24f   : > { %v672_v48 = vsel %vm671_vm5, %v667_v43, inf }
 0x250   : > { %673 = vmin.xlane.f32.xlu0 %v672_v48  ;;  %v677_v0 = vshll.u32 %v676_v23, 16 }
 0x251   : > { %v685_v49 = vpop.xlane.xlu1 %684  ;;  %v700_v50 = vpop.xlane.xlu0 %699 }
 0x252   : > { %vm686_vm6 = vcmp.eq.f32.partialorder %v2929_v53, %v685_v49  ;;  %vm701_vm7 = vcmp.eq.f32.partialorder %v2927_v52, %v700_v50  ;;  %v691_v24 = vcvt.f32.s32 %v685_v49  ;;  %v706_v40 = vcvt.f32.s32 %v700_v50 }
 0x253   : > { %v687_v36 = vsel %vm686_vm6, %v682_v51, inf  ;;  %v702_v45 = vsel %vm701_vm7, %v697_v56, inf }
 0x254   : > { %688 = vmin.xlane.f32.xlu1 %v687_v36  ;;  %703 = vmin.xlane.f32.xlu0 %v702_v45  ;;  %v707_v56 = vshll.u32 %v706_v40, 16 }
 0x255   : > { %v715_v35 = vpop.xlane.xlu1 %714  ;;  %v730_v42 = vpop.xlane.xlu0 %729 }
 0x256   : > { %vm716_vm8 = vcmp.eq.f32.partialorder %v2942_v59, %v715_v35  ;;  %vm731_vm9 = vcmp.eq.f32.partialorder %v2946_v62, %v730_v42  ;;  %v772_v62 = vcvt.s32.f32 %v770_v21  ;;  %v721_v46 = vcvt.f32.s32 %v715_v35 }
 0x257   : > { %v717_v44 = vsel %vm716_vm8, %v712_v60, inf  ;;  %v732_v53 = vsel %vm731_vm9, %v727_v61, inf  ;;  %v736_v47 = vcvt.f32.s32 %v730_v42 }
 0x258   : > { %718 = vmin.xlane.f32.xlu1 %v717_v44  ;;  %733 = vmin.xlane.f32.xlu0 %v732_v53  ;;  %v722_v35 = vshll.u32 %v721_v46, 16 }
 0x259   : > { %v745_v52 = vpop.xlane.xlu1 %744  ;;  %v760_v55 = vpop.xlane.xlu0 %759  ;;  %v737_v42 = vshll.u32 %v736_v47, 16 }
 0x25a   : > { %vm746_vm10 = vcmp.eq.f32.partialorder %v2958_v3, %v745_v52  ;;  %vm761_vm11 = vcmp.eq.f32.partialorder %v2960_v17, %v760_v55  ;;  %v692_v17 = vshll.u32 %v691_v24, 16  ;;  %v751_v60 = vcvt.f32.s32 %v745_v52 }
 0x25b   : > { %v747_v54 = vsel %vm746_vm10, %v742_v18, inf  ;;  %v762_v1 = vsel %vm761_vm11, %v757_v20, inf  ;;  %v766_v61 = vcvt.f32.s32 %v760_v55 }
 0x25c   : > { %748 = vmin.xlane.f32.xlu1 %v747_v54  ;;  %763 = vmin.xlane.f32.xlu0 %v762_v1 }
 0x25d   : > { %v3051_v59 = vpop.xlane.xlu1 %774 }
 0x25e   : > { %vm776_vm12 = vcmp.eq.f32.partialorder %v2965_v19, %v3051_v59  ;;  %v3875_v19 = vmov 0.0  }
 0x25f   : > { %v777_v22 = vsel %vm776_vm12, %v772_v62, inf  ;;  %v752_v62 = vshll.u32 %v751_v60, 16 }
 0x260   : > { %778 = vmin.xlane.f32.xlu1 %v777_v22  ;;  %v767_v22 = vshll.u32 %v766_v61, 16 }
 0x2dd   : > { %v674_v25 = vpop.xlane.xlu0 %673 }
 0x2de   : > { %v675_v3 = vcvt.f32.s32 %v674_v25 }
 0x2e0   : > { %v678_v43 = vadd.s32 %v677_v0, %v675_v3 }
 0x2e1   : > { %v689_v48 = vpop.xlane.xlu1 %688  ;;  %v704_v51 = vpop.xlane.xlu0 %703 }
 0x2e2   : > { %v690_v57 = vcvt.f32.s32 %v689_v48  ;;  %v705_v58 = vcvt.f32.s32 %v704_v51  ;;  %vm784_vm13 = vcmp.eq.s32.totalorder %v2826_v16, %v678_v43 }
 0x2e3   : > { %v2271_v36 = vsel %vm784_vm13, 1.0, %v3875_v19  ;;  %v3058_v41 = vsel %vm784_vm13, -inf, %v2848_v8 }
 0x2e4   : > { %v693_v49 = vadd.s32 %v692_v17, %v690_v57  ;;  %v708_v50 = vadd.s32 %v707_v56, %v705_v58  ;;  %2511 = vmatprep.mubr.msk.f32.mxu1 %vm422_vm3, %v2271_v36  ;;  %v997_v45 = vsel %vm422_vm3, %v3058_v41, -inf }
 0x2e5   : > { %v719_v63 = vpop.xlane.xlu1 %718  ;;  %998 = vmax.xlane.f32.xlu0 %v997_v45  ;;  %v734_v2 = vpop.xlane.xlu0 %733 }
 0x2e6   : > { %vm785_vm14 = vcmp.eq.s32.totalorder %v2826_v16, %v693_v49  ;;  %v720_v44 = vcvt.f32.s32 %v719_v63  ;;  %v735_v53 = vcvt.f32.s32 %v734_v2  ;;  %vm786_vm15 = vcmp.eq.s32.totalorder %v2826_v16, %v708_v50 }
 0x2e7   : > { %v2272_v8 = vsel %vm785_vm14, 1.0, %v3875_v19  ;;  %v3067_v18 = vsel %vm785_vm14, -inf, %v2852_v11  ;;  %v3070_v20 = vsel %vm786_vm15, -inf, %v2846_v7  ;;  %v2273_v52 = vsel %vm786_vm15, 1.0, %v3875_v19 }
 0x2e8   : > { %v723_v55 = vadd.s32 %v722_v35, %v720_v44  ;;  %v738_v21 = vadd.s32 %v737_v42, %v735_v53  ;;  %2512 = vmatmul.mubr.msk.f32.vlgmr.msra.gmra.mrb[16].mxu1 %vm422_vm3, %v2272_v8  ;;  %v1000_v54 = vsel %vm422_vm3, %v3067_v18, -inf  ;;  %v1003_v1 = vsel %vm422_vm3, %v3070_v20, -inf  ;;  %v2489_v35 = vpop.f32.mrb[8].mxu1 }
 0x2e9   : > { %v781_v11 = vcvt.f32.s32 %v3051_v59  ;;  %1001 = vmax.xlane.f32.xlu1 %v1000_v54  ;;  %v749_v23 = vpop.xlane.xlu1 %748  ;;  %1004 = vmax.xlane.f32.xlu0 %v1003_v1  ;;  %v764_v7 = vpop.xlane.xlu0 %763  ;;  %v3128_v42 = vsub.f32 %v2489_v35, %v2986_v26 }
 0x2ea   : > { %v750_v24 = vcvt.f32.s32 %v749_v23  ;;  %2514 = vmatprep.mubr.msk.f32.mxu1 %vm422_vm3, %v2273_v52  ;;  %v765_v25 = vcvt.f32.s32 %v764_v7  ;;  %vm787_vm1 = vcmp.eq.s32.totalorder %v2826_v16, %v723_v55  ;;  %vm788_vm2 = vcmp.eq.s32.totalorder %v2826_v16, %v738_v21  ;;  %2678 = vmatpush3.bf16.msra.mxu1 %v3000_v31  ;;  %v583_v60 = vpop.f32.mrb[9].mxu1 }
 0x2eb   : > { %v2274_v0 = vsel %vm787_vm1, 1.0, %v3875_v19  ;;  %v3085_v40 = vsel %vm787_vm1, -inf, %v2850_v10  ;;  %v3088_v59 = vsel %vm788_vm2, -inf, %v2856_v14  ;;  %v2275_v3 = vsel %vm788_vm2, 1.0, %v3875_v19  ;;  %2680 = vmatprep.subr.bf16.mxu1 %v2994_v29 }
 0x2ec   : > { %v753_v43 = vadd.s32 %v752_v62, %v750_v24  ;;  %v768_v17 = vadd.s32 %v767_v22, %v765_v25  ;;  %2515 = vmatmul.mubr.msk.f32.gmra.mrb[18].mxu1 %vm422_vm3, %v2274_v0  ;;  %v1006_v46 = vsel %vm422_vm3, %v3085_v40, -inf  ;;  %v1009_v47 = vsel %vm422_vm3, %v3088_v59, -inf }
 0x2ed   : > { %1007 = vmax.xlane.f32.xlu1 %v1006_v46  ;;  %v779_v10 = vpop.xlane.xlu1 %778  ;;  %1010 = vmax.xlane.f32.xlu0 %v1009_v47  ;;  %v782_v48 = vshll.u32 %v781_v11, 16  ;;  %v3131_v61 = vsub.f32 %v583_v60, %v2988_v27 }
 0x2ee   : > { %v780_v14 = vcvt.f32.s32 %v779_v10  ;;  %2517 = vmatprep.mubr.msk.f32.mxu1 %vm422_vm3, %v2275_v3  ;;  %vm789_vm4 = vcmp.eq.s32.totalorder %v2826_v16, %v753_v43  ;;  %vm790_vm5 = vcmp.eq.s32.totalorder %v2826_v16, %v768_v17  ;;  %2682 = vmatpush3.bf16.msra.mxu1 %v2994_v29 }
 0x2ef   : > { %v2276_v51 = vsel %vm789_vm4, 1.0, %v3875_v19  ;;  %v3103_v56 = vsel %vm789_vm4, -inf, %v2854_v13  ;;  %v3106_v57 = vsel %vm790_vm5, -inf, %v2844_v5  ;;  %v2277_v58 = vsel %vm790_vm5, 1.0, %v3875_v19  ;;  %2684 = vmatprep.subr.bf16.mxu1 %v3024_v39 }
 0x2f0   : > { %v783_v36 = vadd.s32 %v782_v48, %v780_v14  ;;  %2518 = vmatmul.mubr.msk.f32.gmra.mrb[20].mxu1 %vm422_vm3, %v2276_v51  ;;  %v1012_v49 = vsel %vm422_vm3, %v3103_v56, -inf  ;;  %v1015_v50 = vsel %vm422_vm3, %v3106_v57, -inf }
 0x2f1   : > { %1013 = vmax.xlane.f32.xlu1 %v1012_v49  ;;  %1016 = vmax.xlane.f32.xlu0 %v1015_v50 }
 0x2f2   : > { %2520 = vmatprep.mubr.msk.f32.mxu1 %vm422_vm3, %v2277_v58  ;;  %vm791_vm6 = vcmp.eq.s32.totalorder %v2826_v16, %v783_v36  ;;  %2686 = vmatpush3.bf16.msra.mxu1 %v3024_v39 }
 0x2f3   : > { %v2278_v5 = vsel %vm791_vm6, 1.0, %v3875_v19  ;;  %v3120_v13 = vsel %vm791_vm6, -inf, %v2858_v15  ;;  %2688 = vmatprep.subr.bf16.mxu1 %v3016_v37  ;;  %v2490_v15 = vpop.f32.mrb[10].mxu1 }
 0x2f4   : > { %2521 = vmatmul.mubr.msk.f32.gmra.mrb[22].mxu1 %vm422_vm3, %v2278_v5  ;;  %v1018_v45 = vsel %vm422_vm3, %v3120_v13, -inf  ;;  %v3134_v63 = vsub.f32 %v2490_v15, %v2990_v28  ;;  %v586_v2 = vpop.f32.mrb[11].mxu1 }
 0x2f5   : > { %1019 = vmax.xlane.f32.xlu1 %v1018_v45  ;;  %v3137_v44 = vsub.f32 %v586_v2, %v2996_v30  ;;  %v2493_v53 = vpop.f32.mrb[12].mxu1 }
 0x2f6   : > { %2690 = vmatpush3.bf16.msra.mxu1 %v3016_v37  ;;  %v3140_v8 = vsub.f32 %v2493_v53, %v3006_v32  ;;  %v599_v52 = vpop.f32.mrb[13].mxu1 }
 0x2f7   : > { %v3143_v26 = vsub.f32 %v599_v52, %v3010_v33  ;;  %v2494_v55 = vpop.f32.mrb[14].mxu1 }
 0x2f8   : > { %v3146_v27 = vsub.f32 %v2494_v55, %v3012_v34  ;;  %v602_v21 = vpop.f32.mrb[15].mxu1 }
 0x2f9   : > { %v3149_v28 = vsub.f32 %v602_v21, %v3018_v38 }
 0x372   : > { %v999_v54 = vpop.xlane.xlu0 %998 }
 0x373   : > { %vm1021_vm7 = vcmp.eq.f32.partialorder %v3058_v41, %v999_v54 }
 0x374   : > { %v1029_v30 = vsel %vm1021_vm7, %v2826_v16, 64 }
 0x375   : > { %v3154_v32 = vsel %vm422_vm3, %v1029_v30, 2147483647 }
 0x376   : > { %v1002_v1 = vpop.xlane.xlu1 %1001  ;;  %v1005_v62 = vpop.xlane.xlu0 %1004  ;;  %v1039_v33 = vshra.s32 %v3154_v32, 16 }
 0x377   : > { %vm1022_vm8 = vcmp.eq.f32.partialorder %v3067_v18, %v1002_v1  ;;  %vm1023_vm9 = vcmp.eq.f32.partialorder %v3070_v20, %v1005_v62 }
 0x378   : > { %v1030_v34 = vsel %vm1022_vm8, %v2826_v16, 64  ;;  %v1031_v38 = vsel %vm1023_vm9, %v2826_v16, 64  ;;  %v3161_v22 = vcvt.s32.f32 %v1039_v33 }
 0x379   : > { %v3164_v11 = vsel %vm422_vm3, %v1030_v34, 2147483647  ;;  %v3167_v23 = vsel %vm422_vm3, %v1031_v38, 2147483647 }
 0x37a   : > { %v1008_v7 = vpop.xlane.xlu1 %1007  ;;  %1042 = vmin.xlane.f32.xlu0 %v3161_v22  ;;  %v1011_v24 = vpop.xlane.xlu0 %1010  ;;  %v1054_v25 = vshra.s32 %v3164_v11, 16  ;;  %v1069_v0 = vshra.s32 %v3167_v23, 16 }
 0x37b   : > { %vm1024_vm10 = vcmp.eq.f32.partialorder %v3085_v40, %v1008_v7  ;;  %vm1025_vm11 = vcmp.eq.f32.partialorder %v3088_v59, %v1011_v24 }
 0x37c   : > { %v1032_v3 = vsel %vm1024_vm10, %v2826_v16, 64  ;;  %v1033_v43 = vsel %vm1025_vm11, %v2826_v16, 64  ;;  %v3176_v17 = vcvt.s32.f32 %v1054_v25  ;;  %v3178_v46 = vcvt.s32.f32 %v1069_v0 }
 0x37d   : > { %v3181_v47 = vsel %vm422_vm3, %v1032_v3, 2147483647  ;;  %v3184_v10 = vsel %vm422_vm3, %v1033_v43, 2147483647 }
 0x37e   : > { %1057 = vmin.xlane.f32.xlu1 %v3176_v17  ;;  %v1014_v48 = vpop.xlane.xlu1 %1013  ;;  %1072 = vmin.xlane.f32.xlu0 %v3178_v46  ;;  %v1017_v14 = vpop.xlane.xlu0 %1016  ;;  %v1084_v51 = vshra.s32 %v3181_v47, 16  ;;  %v1099_v58 = vshra.s32 %v3184_v10, 16 }
 0x37f   : > { %vm1026_vm12 = vcmp.eq.f32.partialorder %v3103_v56, %v1014_v48  ;;  %vm1027_vm13 = vcmp.eq.f32.partialorder %v3106_v57, %v1017_v14 }
 0x380   : > { %v1034_v36 = vsel %vm1026_vm12, %v2826_v16, 64  ;;  %v1035_v49 = vsel %vm1027_vm13, %v2826_v16, 64  ;;  %v3194_v50 = vcvt.s32.f32 %v1084_v51  ;;  %v3196_v5 = vcvt.s32.f32 %v1099_v58 }
 0x381   : > { %v3199_v45 = vsel %vm422_vm3, %v1034_v36, 2147483647  ;;  %v3202_v35 = vsel %vm422_vm3, %v1035_v49, 2147483647  ;;  %v1038_v49 = vand.u32 65535, %v3154_v32 }
 0x382   : > { %1087 = vmin.xlane.f32.xlu1 %v3194_v50  ;;  %v1020_v60 = vpop.xlane.xlu1 %1019  ;;  %1102 = vmin.xlane.f32.xlu0 %v3196_v5  ;;  %v1114_v15 = vshra.s32 %v3199_v45, 16  ;;  %v1129_v2 = vshra.s32 %v3202_v35, 16 }
 0x383   : > { %vm1028_vm14 = vcmp.eq.f32.partialorder %v3120_v13, %v1020_v60 }
 0x384   : > { %v1036_v53 = vsel %vm1028_vm14, %v2826_v16, 64  ;;  %v3210_v52 = vcvt.s32.f32 %v1114_v15  ;;  %v3212_v55 = vcvt.s32.f32 %v1129_v2  ;;  %v1040_v15 = vcvt.s32.f32 %v1038_v49 }
 0x385   : > { %v3215_v21 = vsel %vm422_vm3, %v1036_v53, 2147483647  ;;  %v1053_v2 = vand.u32 65535, %v3164_v11  ;;  %v1068_v53 = vand.u32 65535, %v3167_v23  ;;  %v1113_v49 = vand.u32 65535, %v3199_v45 }
 0x386   : > { %1117 = vmin.xlane.f32.xlu1 %v3210_v52  ;;  %1132 = vmin.xlane.f32.xlu0 %v3212_v55  ;;  %v1144_v54 = vshra.s32 %v3215_v21, 16 }
 0x388   : > { %v3220_v30 = vcvt.s32.f32 %v1144_v54 }
 0x38a   : > { %1147 = vmin.xlane.f32.xlu1 %v3220_v30 }
 0x3bb   : > { %v2513_v1 = vpop.f32.mrb[16].mxu1 }
 0x3bc   : > { %v3224_v62 = vadd.f32 %v2513_v1, %v3137_v44  ;;  %v898_v33 = vpop.f32.mrb[17].mxu1 }
 0x3bd   : > { %v3227_v34 = vadd.f32 %v898_v33, %v3131_v61 }
 0x3bf   : > { %v2516_v38 = vpop.f32.mrb[18].mxu1 }
 0x3c0   : > { %v3230_v7 = vadd.f32 %v2516_v38, %v3134_v63  ;;  %v908_v24 = vpop.f32.mrb[19].mxu1  ;;  %v1055_v38 = vcvt.s32.f32 %v1053_v2  ;;  %v1115_v2 = vcvt.s32.f32 %v1113_v49 }
 0x3c1   : > { %v3233_v25 = vadd.f32 %v908_v24, %v3128_v42  ;;  %v1070_v24 = vcvt.s32.f32 %v1068_v53 }
 0x3c3   : > { %v2519_v0 = vpop.f32.mrb[20].mxu1 }
 0x3c4   : > { %v3236_v3 = vadd.f32 %v2519_v0, %v3149_v28  ;;  %v918_v43 = vpop.f32.mrb[21].mxu1  ;;  %v1083_v0 = vand.u32 65535, %v3181_v47 }
 0x3c5   : > { %v3239_v48 = vadd.f32 %v918_v43, %v3143_v26  ;;  %v1098_v43 = vand.u32 65535, %v3184_v10 }
 0x3c7   : > { %v2522_v14 = vpop.f32.mrb[22].mxu1 }
 0x3c8   : > { %v3242_v51 = vadd.f32 %v2522_v14, %v3146_v27  ;;  %v928_v58 = vpop.f32.mrb[23].mxu1  ;;  %v1085_v14 = vcvt.s32.f32 %v1083_v0 }
 0x3c9   : > { %v3245_v36 = vadd.f32 %v928_v58, %v3140_v8  ;;  %v1100_v58 = vcvt.s32.f32 %v1098_v43 }
 0x407   : > { %v1043_v60 = vpop.xlane.xlu0 %1042 }
 0x408   : > { %vm1044_vm15 = vcmp.eq.f32.partialorder %v3161_v22, %v1043_v60 }
 0x409   : > { %v1045_v54 = vsel %vm1044_vm15, %v1040_v15, inf  ;;  %v1128_v15 = vand.u32 65535, %v3202_v35 }
 0x40a   : > { %1046 = vmin.xlane.f32.xlu0 %v1045_v54  ;;  %v1143_v54 = vand.u32 65535, %v3215_v21 }
 0x40b   : > { %v1058_v1 = vpop.xlane.xlu1 %1057  ;;  %v1073_v33 = vpop.xlane.xlu0 %1072  ;;  %v1130_v53 = vcvt.s32.f32 %v1128_v15 }
 0x40c   : > { %vm1059_vm1 = vcmp.eq.f32.partialorder %v3176_v17, %v1058_v1  ;;  %vm1074_vm2 = vcmp.eq.f32.partialorder %v3178_v46, %v1073_v33  ;;  %v1064_v0 = vcvt.f32.s32 %v1058_v1 }
 0x40d   : > { %v1060_v32 = vsel %vm1059_vm1, %v1055_v38, inf  ;;  %v1075_v11 = vsel %vm1074_vm2, %v1070_v24, inf  ;;  %v1049_v24 = vcvt.f32.s32 %v1043_v60 }
 0x40e   : > { %1061 = vmin.xlane.f32.xlu1 %v1060_v32  ;;  %1076 = vmin.xlane.f32.xlu0 %v1075_v11  ;;  %v1079_v32 = vcvt.f32.s32 %v1073_v33 }
 0x40f   : > { %v1088_v23 = vpop.xlane.xlu1 %1087  ;;  %v1103_v22 = vpop.xlane.xlu0 %1102  ;;  %v1050_v21 = vshll.u32 %v1049_v24, 16 }
 0x410   : > { %vm1089_vm4 = vcmp.eq.f32.partialorder %v3194_v50, %v1088_v23  ;;  %vm1104_vm5 = vcmp.eq.f32.partialorder %v3196_v5, %v1103_v22  ;;  %v1145_v5 = vcvt.s32.f32 %v1143_v54 }
 0x411   : > { %v1090_v47 = vsel %vm1089_vm4, %v1085_v14, inf  ;;  %v1105_v17 = vsel %vm1104_vm5, %v1100_v58, inf  ;;  %v1094_v14 = vcvt.f32.s32 %v1088_v23  ;;  %v1109_v58 = vcvt.f32.s32 %v1103_v22 }
 0x412   : > { %1091 = vmin.xlane.f32.xlu1 %v1090_v47  ;;  %1106 = vmin.xlane.f32.xlu0 %v1105_v17  ;;  %v1080_v47 = vshll.u32 %v1079_v32, 16 }
 0x413   : > { %v1118_v46 = vpop.xlane.xlu1 %1117  ;;  %v1133_v10 = vpop.xlane.xlu0 %1132  ;;  %v1095_v23 = vshll.u32 %v1094_v14, 16  ;;  %v1110_v22 = vshll.u32 %v1109_v58, 16 }
 0x414   : > { %vm1119_vm6 = vcmp.eq.f32.partialorder %v3210_v52, %v1118_v46  ;;  %vm1134_vm7 = vcmp.eq.f32.partialorder %v3212_v55, %v1133_v10  ;;  %v1065_v55 = vshll.u32 %v1064_v0, 16  ;;  %v1124_v54 = vcvt.f32.s32 %v1118_v46 }
 0x415   : > { %v1120_v45 = vsel %vm1119_vm6, %v1115_v2, inf  ;;  %v1135_v35 = vsel %vm1134_vm7, %v1130_v53, inf }
 0x416   : > { %1121 = vmin.xlane.f32.xlu1 %v1120_v45  ;;  %1136 = vmin.xlane.f32.xlu0 %v1135_v35  ;;  %v1139_v45 = vcvt.f32.s32 %v1133_v10 }
 0x417   : > { %v3262_v50 = vpop.xlane.xlu1 %1147 }
 0x418   : > { %vm1149_vm8 = vcmp.eq.f32.partialorder %v3220_v30, %v3262_v50 }
 0x419   : > { %v1150_v38 = vsel %vm1149_vm8, %v1145_v5, inf }
 0x41a   : > { %1151 = vmin.xlane.f32.xlu1 %v1150_v38 }
 0x497   : > { %v1047_v43 = vpop.xlane.xlu0 %1046 }
 0x498   : > { %v1048_v52 = vcvt.f32.s32 %v1047_v43 }
 0x49a   : > { %v1051_v11 = vadd.s32 %v1050_v21, %v1048_v52 }
 0x49b   : > { %v1062_v49 = vpop.xlane.xlu1 %1061  ;;  %v1077_v15 = vpop.xlane.xlu0 %1076 }
 0x49c   : > { %v1063_v17 = vcvt.f32.s32 %v1062_v49  ;;  %v1078_v2 = vcvt.f32.s32 %v1077_v15  ;;  %vm1157_vm9 = vcmp.eq.s32.totalorder %v2826_v16, %v1051_v11  ;;  %v1125_v11 = vshll.u32 %v1124_v54, 16 }
 0x49d   : > { %v2289_v30 = vsel %vm1157_vm9, 1.0, %v3875_v19  ;;  %v3269_v60 = vsel %vm1157_vm9, -inf, %v3058_v41 }
 0x49e   : > { %v1066_v1 = vadd.s32 %v1065_v55, %v1063_v17  ;;  %v1081_v53 = vadd.s32 %v1080_v47, %v1078_v2  ;;  %2539 = vmatprep.mubr.msk.f32.mxu0 %vm422_vm3, %v2289_v30  ;;  %v1366_v33 = vsel %vm422_vm3, %v3269_v60, -inf  ;;  %v1140_v55 = vshll.u32 %v1139_v45, 16 }
 0x49f   : > { %v1092_v35 = vpop.xlane.xlu1 %1091  ;;  %1367 = vmax.xlane.f32.xlu0 %v1366_v33  ;;  %v1107_v5 = vpop.xlane.xlu0 %1106 }
 0x4a0   : > { %vm1158_vm10 = vcmp.eq.s32.totalorder %v2826_v16, %v1066_v1  ;;  %v1093_v38 = vcvt.f32.s32 %v1092_v35  ;;  %v1108_v24 = vcvt.f32.s32 %v1107_v5  ;;  %vm1159_vm11 = vcmp.eq.s32.totalorder %v2826_v16, %v1081_v53 }
 0x4a1   : > { %v2290_v41 = vsel %vm1158_vm10, 1.0, %v3875_v19  ;;  %v3278_v0 = vsel %vm1158_vm10, -inf, %v3067_v18  ;;  %v3281_v43 = vsel %vm1159_vm11, -inf, %v3070_v20  ;;  %v2291_v46 = vsel %vm1159_vm11, 1.0, %v3875_v19 }
 0x4a2   : > { %v1096_v10 = vadd.s32 %v1095_v23, %v1093_v38  ;;  %v1111_v21 = vadd.s32 %v1110_v22, %v1108_v24  ;;  %2540 = vmatmul.mubr.msk.f32.vlgmr.msra.gmra.mrb[8].mxu0 %vm422_vm3, %v2290_v41  ;;  %v1369_v32 = vsel %vm422_vm3, %v3278_v0, -inf  ;;  %v1372_v52 = vsel %vm422_vm3, %v3281_v43, -inf }
 0x4a3   : > { %v1154_v18 = vcvt.f32.s32 %v3262_v50  ;;  %1370 = vmax.xlane.f32.xlu1 %v1369_v32  ;;  %v1122_v14 = vpop.xlane.xlu1 %1121  ;;  %1373 = vmax.xlane.f32.xlu0 %v1372_v52  ;;  %v1137_v20 = vpop.xlane.xlu0 %1136 }
 0x4a4   : > { %v1123_v58 = vcvt.f32.s32 %v1122_v14  ;;  %2542 = vmatprep.mubr.msk.f32.mxu0 %vm422_vm3, %v2291_v46  ;;  %v1138_v49 = vcvt.f32.s32 %v1137_v20  ;;  %vm1160_vm12 = vcmp.eq.s32.totalorder %v2826_v16, %v1096_v10  ;;  %vm1161_vm13 = vcmp.eq.s32.totalorder %v2826_v16, %v1111_v21  ;;  %2694 = vmatpush3.bf16.msra.mxu0 %v3000_v31 }
 0x4a5   : > { %v2292_v15 = vsel %vm1160_vm12, 1.0, %v3875_v19  ;;  %v3296_v47 = vsel %vm1160_vm12, -inf, %v3085_v40  ;;  %v3299_v50 = vsel %vm1161_vm13, -inf, %v3088_v59  ;;  %v2293_v17 = vsel %vm1161_vm13, 1.0, %v3875_v19  ;;  %2696 = vmatprep.subr.bf16.mxu0 %v2994_v29 }
 0x4a6   : > { %v1126_v2 = vadd.s32 %v1125_v11, %v1123_v58  ;;  %v1141_v30 = vadd.s32 %v1140_v55, %v1138_v49  ;;  %2543 = vmatmul.mubr.msk.f32.gmra.mrb[10].mxu0 %vm422_vm3, %v2292_v15  ;;  %v1375_v1 = vsel %vm422_vm3, %v3296_v47, -inf  ;;  %v1378_v31 = vsel %vm422_vm3, %v3299_v50, -inf }
 0x4a7   : > { %1376 = vmax.xlane.f32.xlu1 %v1375_v1  ;;  %v1152_v40 = vpop.xlane.xlu1 %1151  ;;  %1379 = vmax.xlane.f32.xlu0 %v1378_v31  ;;  %v1155_v53 = vshll.u32 %v1154_v18, 16 }
 0x4a8   : > { %v1153_v59 = vcvt.f32.s32 %v1152_v40  ;;  %2545 = vmatprep.mubr.msk.f32.mxu0 %vm422_vm3, %v2293_v17  ;;  %vm1162_vm14 = vcmp.eq.s32.totalorder %v2826_v16, %v1126_v2  ;;  %vm1163_vm15 = vcmp.eq.s32.totalorder %v2826_v16, %v1141_v30  ;;  %2698 = vmatpush3.bf16.msra.mxu0 %v2994_v29 }
 0x4a9   : > { %v2294_v33 = vsel %vm1162_vm14, 1.0, %v3875_v19  ;;  %v3314_v23 = vsel %vm1162_vm14, -inf, %v3103_v56  ;;  %v3317_v22 = vsel %vm1163_vm15, -inf, %v3106_v57  ;;  %v2295_v54 = vsel %vm1163_vm15, 1.0, %v3875_v19  ;;  %2700 = vmatprep.subr.bf16.mxu0 %v3024_v39 }
 0x4aa   : > { %v1156_v45 = vadd.s32 %v1155_v53, %v1153_v59  ;;  %2546 = vmatmul.mubr.msk.f32.gmra.mrb[12].mxu0 %vm422_vm3, %v2294_v33  ;;  %v1381_v35 = vsel %vm422_vm3, %v3314_v23, -inf  ;;  %v1384_v29 = vsel %vm422_vm3, %v3317_v22, -inf }
 0x4ab   : > { %1382 = vmax.xlane.f32.xlu1 %v1381_v35  ;;  %1385 = vmax.xlane.f32.xlu0 %v1384_v29 }
 0x4ac   : > { %2548 = vmatprep.mubr.msk.f32.mxu0 %vm422_vm3, %v2295_v54  ;;  %vm1164_vm1 = vcmp.eq.s32.totalorder %v2826_v16, %v1156_v45  ;;  %2702 = vmatpush3.bf16.msra.mxu0 %v3024_v39 }
 0x4ad   : > { %v2296_v56 = vsel %vm1164_vm1, 1.0, %v3875_v19  ;;  %v3331_v57 = vsel %vm1164_vm1, -inf, %v3120_v13  ;;  %2704 = vmatprep.subr.bf16.mxu0 %v3016_v37 }
 0x4ae   : > { %2549 = vmatmul.mubr.msk.f32.gmra.mrb[14].mxu0 %vm422_vm3, %v2296_v56  ;;  %v1387_v5 = vsel %vm422_vm3, %v3331_v57, -inf }
 0x4af   : > { %1388 = vmax.xlane.f32.xlu1 %v1387_v5 }
 0x4b0   : > { %2706 = vmatpush3.bf16.msra.mxu0 %v3016_v37 }
 0x52c   : > { %v1368_v38 = vpop.xlane.xlu0 %1367 }
 0x52d   : > { %vm1390_vm2 = vcmp.eq.f32.partialorder %v3269_v60, %v1368_v38 }
 0x52e   : > { %v1398_v39 = vsel %vm1390_vm2, %v2826_v16, 64 }
 0x52f   : > { %v3341_v24 = vsel %vm422_vm3, %v1398_v39, 2147483647 }
 0x530   : > { %v1371_v13 = vpop.xlane.xlu1 %1370  ;;  %v1374_v41 = vpop.xlane.xlu0 %1373  ;;  %v1408_v46 = vshra.s32 %v3341_v24, 16 }
 0x531   : > { %vm1391_vm4 = vcmp.eq.f32.partialorder %v3278_v0, %v1371_v13  ;;  %vm1392_vm5 = vcmp.eq.f32.partialorder %v3281_v43, %v1374_v41 }
 0x532   : > { %v1399_v10 = vsel %vm1391_vm4, %v2826_v16, 64  ;;  %v1400_v37 = vsel %vm1392_vm5, %v2826_v16, 64  ;;  %v3348_v21 = vcvt.s32.f32 %v1408_v46 }
 0x533   : > { %v3351_v32 = vsel %vm422_vm3, %v1399_v10, 2147483647  ;;  %v3354_v52 = vsel %vm422_vm3, %v1400_v37, 2147483647  ;;  %v3413_v37 = vld [vmem:[%s3871_s3] ss:$0 sm:$0xff] }
 0x534   : > { %v1377_v11 = vpop.xlane.xlu1 %1376  ;;  %1411 = vmin.xlane.f32.xlu0 %v3348_v21  ;;  %v1380_v55 = vpop.xlane.xlu0 %1379  ;;  %v1423_v18 = vshra.s32 %v3351_v32, 16  ;;  %v1438_v14 = vshra.s32 %v3354_v52, 16 }
 0x535   : > { %vm1393_vm6 = vcmp.eq.f32.partialorder %v3296_v47, %v1377_v11  ;;  %vm1394_vm7 = vcmp.eq.f32.partialorder %v3299_v50, %v1380_v55  ;;  %v944_v11 = vmul.f32 %v3413_v37, %v3224_v62  ;;  %v943_v55 = vmul.f32 %v3413_v37, %v3227_v34 }
 0x536   : > { %v1401_v20 = vsel %vm1393_vm6, %v2826_v16, 64  ;;  %v1402_v58 = vsel %vm1394_vm7, %v2826_v16, 64  ;;  %v3363_v49 = vcvt.s32.f32 %v1423_v18  ;;  %v3365_v15 = vcvt.s32.f32 %v1438_v14  ;;  %v3422_v18 = vld [vmem:[%s3872_s4] ss:$0 sm:$0xff] }
 0x537   : > { %v3368_v17 = vsel %vm422_vm3, %v1401_v20, 2147483647  ;;  %v3371_v2 = vsel %vm422_vm3, %v1402_v58, 2147483647  ;;  %v946_v14 = vmul.f32 %v3413_v37, %v3230_v7  ;;  %v945_v20 = vmul.f32 %v3413_v37, %v3233_v25 }
 0x538   : > { %1426 = vmin.xlane.f32.xlu1 %v3363_v49  ;;  %v1383_v30 = vpop.xlane.xlu1 %1382  ;;  %1441 = vmin.xlane.f32.xlu0 %v3365_v15  ;;  %v1386_v1 = vpop.xlane.xlu0 %1385  ;;  %v1453_v31 = vshra.s32 %v3368_v17, 16  ;;  %v1468_v40 = vshra.s32 %v3371_v2, 16  ;;  %v958_v58 = vadd.f32 %v3422_v18, %v944_v11  ;;  %v948_v34 = vmul.f32 %v3413_v37, %v3236_v3 }
 0x539   : > { %vm1395_vm8 = vcmp.eq.f32.partialorder %v3314_v23, %v1383_v30  ;;  %vm1396_vm9 = vcmp.eq.f32.partialorder %v3317_v22, %v1386_v1  ;;  %v957_v30 = vadd.f32 %v3422_v18, %v943_v55  ;;  %v960_v62 = vadd.f32 %v3422_v18, %v946_v14 }
 0x53a   : > { %v1403_v53 = vsel %vm1395_vm8, %v2826_v16, 64  ;;  %v1404_v59 = vsel %vm1396_vm9, %v2826_v16, 64  ;;  %v3381_v33 = vcvt.s32.f32 %v1453_v31  ;;  %v3383_v54 = vcvt.s32.f32 %v1468_v40 }
 0x53b   : > { %v3386_v45 = vsel %vm422_vm3, %v1403_v53, 2147483647  ;;  %v3389_v35 = vsel %vm422_vm3, %v1404_v59, 2147483647  ;;  %v959_v1 = vadd.f32 %v3422_v18, %v945_v20  ;;  %v947_v31 = vmul.f32 %v3413_v37, %v3239_v48 }
 0x53c   : > { %1456 = vmin.xlane.f32.xlu1 %v3381_v33  ;;  %v1389_v29 = vpop.xlane.xlu1 %1388  ;;  %1471 = vmin.xlane.f32.xlu0 %v3383_v54  ;;  %v1483_v56 = vshra.s32 %v3386_v45, 16  ;;  %v1498_v5 = vshra.s32 %v3389_v35, 16  ;;  %vm966_vm11 = vcmp.ge.f32.partialorder %v958_v58, 0.0  ;;  %v974_v40 = vmul.f32 0.2, %v958_v58 }
 0x53d   : > { %vm1397_vm10 = vcmp.eq.f32.partialorder %v3331_v57, %v1389_v29  ;;  %v973_v7 = vmul.f32 0.2, %v957_v30  ;;  %vm965_vm12 = vcmp.ge.f32.partialorder %v957_v30, 0.0  ;;  %v976_v53 = vmul.f32 0.2, %v960_v62 }
 0x53e   : > { %v1405_v38 = vsel %vm1397_vm10, %v2826_v16, 64  ;;  %v3397_v39 = vcvt.s32.f32 %v1483_v56  ;;  %v3399_v13 = vcvt.s32.f32 %v1498_v5  ;;  %v975_v25 = vmul.f32 0.2, %v959_v1 }
 0x53f   : > { %v3402_v41 = vsel %vm422_vm3, %v1405_v38, 2147483647  ;;  %vm968_vm13 = vcmp.ge.f32.partialorder %v960_v62, 0.0  ;;  %vm967_vm14 = vcmp.ge.f32.partialorder %v959_v1, 0.0  ;;  %v962_v29 = vadd.f32 %v3422_v18, %v948_v34 }
 0x540   : > { %1486 = vmin.xlane.f32.xlu1 %v3397_v39  ;;  %1501 = vmin.xlane.f32.xlu0 %v3399_v13  ;;  %v1513_v46 = vshra.s32 %v3402_v41, 16  ;;  %v961_v38 = vadd.f32 %v3422_v18, %v947_v31  ;;  %v3444_v14 = vsel %vm967_vm14, %v959_v1, %v975_v25  ;;  %v3447_v20 = vsel %vm965_vm12, %v957_v30, %v973_v7 }
 0x541   : > { %v3449_v34 = vsel %vm968_vm13, %v960_v62, %v976_v53  ;;  %vm970_vm15 = vcmp.ge.f32.partialorder %v962_v29, 0.0  ;;  %v950_v31 = vmul.f32 %v3413_v37, %v3242_v51  ;;  %v949_v7 = vmul.f32 %v3413_v37, %v3245_v36 }
 0x542   : > { %v3407_v10 = vcvt.s32.f32 %v1513_v46  ;;  %v3441_v46 = vsel %vm966_vm11, %v958_v58, %v974_v40  ;;  %v978_v40 = vmul.f32 0.2, %v962_v29  ;;  %vm969_vm1 = vcmp.ge.f32.partialorder %v961_v38, 0.0 }
 0x543   : > { %v977_v25 = vmul.f32 0.2, %v961_v38 }
 0x544   : > { %1516 = vmin.xlane.f32.xlu1 %v3407_v10 }
 0x575   : > { %v2541_v59 = vpop.f32.mrb[8].mxu0 }
 0x576   : > { %v1277_v56 = vadd.f32 %v2541_v59, %v3137_v44  ;;  %v1271_v5 = vpop.f32.mrb[9].mxu0 }
 0x577   : > { %v1272_v3 = vadd.f32 %v1271_v5, %v3131_v61 }
 0x578   : > { %v1311_v48 = vmul.f32 %v3413_v37, %v1277_v56 }
 0x579   : > { %v1310_v11 = vmul.f32 %v3413_v37, %v1272_v3  ;;  %v2544_v55 = vpop.f32.mrb[10].mxu0 }
 0x57a   : > { %v1319_v59 = vadd.f32 %v3422_v18, %v1311_v48  ;;  %v1287_v56 = vadd.f32 %v2544_v55, %v3134_v63  ;;  %v1281_v58 = vpop.f32.mrb[11].mxu0  ;;  %v964_v48 = vadd.f32 %v3422_v18, %v950_v31 }
 0x57b   : > { %v1318_v5 = vadd.f32 %v3422_v18, %v1310_v11  ;;  %v1282_v1 = vadd.f32 %v1281_v58, %v3128_v42 }
 0x57c   : > { %vm1327_vm2 = vcmp.ge.f32.partialorder %v1319_v59, 0.0  ;;  %v1335_v30 = vmul.f32 0.2, %v1319_v59  ;;  %v1313_v62 = vmul.f32 %v3413_v37, %v1287_v56  ;;  %vm972_vm9 = vcmp.ge.f32.partialorder %v964_v48, 0.0 }
 0x57d   : > { %vm1326_vm4 = vcmp.ge.f32.partialorder %v1318_v5, 0.0  ;;  %v1334_v51 = vmul.f32 0.2, %v1318_v5  ;;  %v1312_v53 = vmul.f32 %v3413_v37, %v1282_v1  ;;  %v2547_v3 = vpop.f32.mrb[12].mxu0 }
 0x57e   : > { %v1321_v55 = vadd.f32 %v3422_v18, %v1313_v62  ;;  %v1297_v11 = vadd.f32 %v2547_v3, %v3149_v28  ;;  %v1291_v58 = vpop.f32.mrb[13].mxu0  ;;  %v3464_v19 = vsel %vm1327_vm2, %v1319_v59, %v1335_v30 }
 0x57f   : > { %v1320_v12 = vadd.f32 %v3422_v18, %v1312_v53  ;;  %v1292_v56 = vadd.f32 %v1291_v58, %v3143_v26  ;;  %v3468_v9 = vsel %vm1326_vm4, %v1318_v5, %v1334_v51  ;;  %v3477_v53 = vsel %vm970_vm15, %v962_v29, %v978_v40 }
 0x580   : > { %3887 = vst [vmem:[#allocation5_spill] sm:$0xff] %v3468_v9  ;;  %vm1329_vm5 = vcmp.ge.f32.partialorder %v1321_v55, 0.0  ;;  %v1337_v1 = vmul.f32 0.2, %v1321_v55  ;;  %v1315_v31 = vmul.f32 %v3413_v37, %v1297_v11  ;;  %v963_v5 = vadd.f32 %v3422_v18, %v949_v7 }
 0x581   : > { %vm1328_vm6 = vcmp.ge.f32.partialorder %v1320_v12, 0.0  ;;  %v1336_v3 = vmul.f32 0.2, %v1320_v12  ;;  %v1314_v59 = vmul.f32 %v3413_v37, %v1292_v56  ;;  %v2550_v30 = vpop.f32.mrb[14].mxu0 }
 0x582   : > { %v1323_v51 = vadd.f32 %v3422_v18, %v1315_v31  ;;  %v1307_v58 = vadd.f32 %v2550_v30, %v3146_v27  ;;  %v1301_v36 = vpop.f32.mrb[15].mxu0  ;;  %v3482_v6 = vsel %vm1329_vm5, %v1321_v55, %v1337_v1  ;;  %v3495_v1 = vsel %vm969_vm1, %v961_v38, %v977_v25 }
 0x583   : > { %v1322_v11 = vadd.f32 %v3422_v18, %v1314_v59  ;;  %v1302_v62 = vadd.f32 %v1301_v36, %v3140_v8  ;;  %v3486_v9 = vsel %vm1328_vm6, %v1320_v12, %v1336_v3  ;;  %v980_v12 = vmul.f32 0.2, %v964_v48 }
 0x584   : > { %vm1331_vm7 = vcmp.ge.f32.partialorder %v1323_v51, 0.0  ;;  %v1339_v29 = vmul.f32 0.2, %v1323_v51  ;;  %v1317_v40 = vmul.f32 %v3413_v37, %v1307_v58  ;;  %v979_v59 = vmul.f32 0.2, %v963_v5 }
 0x585   : > { %vm1330_vm8 = vcmp.ge.f32.partialorder %v1322_v11, 0.0  ;;  %v1338_v31 = vmul.f32 0.2, %v1322_v11  ;;  %v1316_v55 = vmul.f32 %v3413_v37, %v1302_v62  ;;  %vm971_vm10 = vcmp.ge.f32.partialorder %v963_v5, 0.0 }
 0x586   : > { %v1325_v36 = vadd.f32 %v3422_v18, %v1317_v40  ;;  %v3498_v3 = vsel %vm1331_vm7, %v1323_v51, %v1339_v29  ;;  %v3507_v56 = vsel %vm972_vm9, %v964_v48, %v980_v12  ;;  %v3511_v29 = vsel %vm971_vm10, %v963_v5, %v979_v59 }
 0x587   : > { %v1324_v30 = vadd.f32 %v3422_v18, %v1316_v55  ;;  %v3501_v58 = vsel %vm1330_vm8, %v1322_v11, %v1338_v31  ;;  %v1407_v55 = vand.u32 65535, %v3341_v24  ;;  %v1437_v48 = vand.u32 65535, %v3354_v52 }
 0x588   : > { %3888 = vst [vmem:[#allocation6_spill] sm:$0xff] %v3501_v58  ;;  %vm1333_vm11 = vcmp.ge.f32.partialorder %v1325_v36, 0.0  ;;  %v1341_v62 = vmul.f32 0.2, %v1325_v36  ;;  %v1422_v58 = vand.u32 65535, %v3351_v32 }
 0x589   : > { %vm1332_vm12 = vcmp.ge.f32.partialorder %v1324_v30, 0.0  ;;  %v1340_v25 = vmul.f32 0.2, %v1324_v30  ;;  %v1409_v38 = vcvt.s32.f32 %v1407_v55 }
 0x58a   : > { %v3509_v51 = vsel %vm1333_vm11, %v1325_v36, %v1341_v62  ;;  %v1424_v59 = vcvt.s32.f32 %v1422_v58  ;;  %v1452_v62 = vand.u32 65535, %v3368_v17  ;;  %v1497_v58 = vand.u32 65535, %v3389_v35 }
 0x58b   : > { %v3513_v40 = vsel %vm1332_vm12, %v1324_v30, %v1340_v25  ;;  %v1357_v11 = vmax.f32 %v3507_v56, %v3509_v51  ;;  %v1439_v30 = vcvt.s32.f32 %v1437_v48  ;;  %v1467_v25 = vand.u32 65535, %v3371_v2 }
 0x58c   : > { %v1356_v31 = vmax.f32 %v3511_v29, %v3513_v40 }
 0x58d   : > { %v1469_v55 = vcvt.s32.f32 %v1467_v25 }
 0x5c1   : > { %v1412_v7 = vpop.xlane.xlu0 %1411 }
 0x5c2   : > { %vm1413_vm13 = vcmp.eq.f32.partialorder %v3348_v21, %v1412_v7  ;;  %v1418_v25 = vcvt.f32.s32 %v1412_v7 }
 0x5c3   : > { %v1414_v5 = vsel %vm1413_vm13, %v1409_v38, inf  ;;  %v1454_v38 = vcvt.s32.f32 %v1452_v62 }
 0x5c4   : > { %1415 = vmin.xlane.f32.xlu0 %v1414_v5  ;;  %v1482_v5 = vand.u32 65535, %v3386_v45 }
 0x5c5   : > { %v1427_v12 = vpop.xlane.xlu1 %1426  ;;  %v1442_v36 = vpop.xlane.xlu0 %1441 }
 0x5c6   : > { %vm1428_vm14 = vcmp.eq.f32.partialorder %v3363_v49, %v1427_v12  ;;  %vm1443_vm15 = vcmp.eq.f32.partialorder %v3365_v15, %v1442_v36  ;;  %v1484_v48 = vcvt.s32.f32 %v1482_v5 }
 0x5c7   : > { %v1429_v24 = vsel %vm1428_vm14, %v1424_v59, inf  ;;  %v1444_v32 = vsel %vm1443_vm15, %v1439_v30, inf  ;;  %v1499_v59 = vcvt.s32.f32 %v1497_v58  ;;  %v1512_v30 = vand.u32 65535, %v3402_v41 }
 0x5c8   : > { %1430 = vmin.xlane.f32.xlu1 %v1429_v24  ;;  %1445 = vmin.xlane.f32.xlu0 %v1444_v32  ;;  %v1433_v24 = vcvt.f32.s32 %v1427_v12  ;;  %v1419_v41 = vshll.u32 %v1418_v25, 16 }
 0x5c9   : > { %v1457_v52 = vpop.xlane.xlu1 %1456  ;;  %v1472_v21 = vpop.xlane.xlu0 %1471 }
 0x5ca   : > { %vm1458_vm1 = vcmp.eq.f32.partialorder %v3381_v33, %v1457_v52  ;;  %vm1473_vm2 = vcmp.eq.f32.partialorder %v3383_v54, %v1472_v21  ;;  %v1514_v54 = vcvt.s32.f32 %v1512_v30  ;;  %v1463_v5 = vcvt.f32.s32 %v1457_v52 }
 0x5cb   : > { %v1459_v17 = vsel %vm1458_vm1, %v1454_v38, inf  ;;  %v1474_v49 = vsel %vm1473_vm2, %v1469_v55, inf  ;;  %v1448_v38 = vcvt.f32.s32 %v1442_v36  ;;  %v1478_v58 = vcvt.f32.s32 %v1472_v21 }
 0x5cc   : > { %1460 = vmin.xlane.f32.xlu1 %v1459_v17  ;;  %1475 = vmin.xlane.f32.xlu0 %v1474_v49  ;;  %v1464_v52 = vshll.u32 %v1463_v5, 16 }
 0x5cd   : > { %v1487_v15 = vpop.xlane.xlu1 %1486  ;;  %v1502_v2 = vpop.xlane.xlu0 %1501  ;;  %v1479_v21 = vshll.u32 %v1478_v58, 16 }
 0x5ce   : > { %vm1488_vm4 = vcmp.eq.f32.partialorder %v3397_v39, %v1487_v15  ;;  %vm1503_vm5 = vcmp.eq.f32.partialorder %v3399_v13, %v1502_v2  ;;  %v1434_v13 = vshll.u32 %v1433_v24, 16 }
 0x5cf   : > { %v1489_v45 = vsel %vm1488_vm4, %v1484_v48, inf  ;;  %v1504_v35 = vsel %vm1503_vm5, %v1499_v59, inf  ;;  %v1449_v48 = vshll.u32 %v1448_v38, 16 }
 0x5d0   : > { %1490 = vmin.xlane.f32.xlu1 %v1489_v45  ;;  %1505 = vmin.xlane.f32.xlu0 %v1504_v35 }
 0x5d1   : > { %v3534_v33 = vpop.xlane.xlu1 %1516 }
 0x5d2   : > { %vm1518_vm6 = vcmp.eq.f32.partialorder %v3407_v10, %v3534_v33  ;;  %v3889_v10 = vmov 0.0  }
 0x5d3   : > { %v1519_v62 = vsel %vm1518_vm6, %v1514_v54, inf  ;;  %v1493_v54 = vcvt.f32.s32 %v1487_v15 }
 0x5d4   : > { %1520 = vmin.xlane.f32.xlu1 %v1519_v62  ;;  %v1508_v62 = vcvt.f32.s32 %v1502_v2 }
 0x5d5   : > { %v1494_v58 = vshll.u32 %v1493_v54, 16 }
 0x651   : > { %v1416_v32 = vpop.xlane.xlu0 %1415 }
 0x652   : > { %v1417_v39 = vcvt.f32.s32 %v1416_v32 }
 0x654   : > { %v1420_v55 = vadd.s32 %v1419_v41, %v1417_v39 }
 0x655   : > { %v1431_v17 = vpop.xlane.xlu1 %1430  ;;  %v1446_v49 = vpop.xlane.xlu0 %1445 }
 0x656   : > { %v1432_v59 = vcvt.f32.s32 %v1431_v17  ;;  %v1447_v30 = vcvt.f32.s32 %v1446_v49  ;;  %vm1526_vm7 = vcmp.eq.s32.totalorder %v2826_v16, %v1420_v55  ;;  %v1509_v17 = vshll.u32 %v1508_v62, 16 }
 0x657   : > { %v2305_v45 = vsel %vm1526_vm7, 1.0, %v3889_v10  ;;  %v3541_v7 = vsel %vm1526_vm7, -inf, %v3269_v60 }
 0x658   : > { %v1435_v12 = vadd.s32 %v1434_v13, %v1432_v59  ;;  %v1450_v35 = vadd.s32 %v1449_v48, %v1447_v30  ;;  %2567 = vmatprep.mubr.msk.f32.mxu1 %vm422_vm3, %v2305_v45  ;;  %v1735_v36 = vsel %vm422_vm3, %v3541_v7, -inf }
 0x659   : > { %v1461_v25 = vpop.xlane.xlu1 %1460  ;;  %1736 = vmax.xlane.f32.xlu0 %v1735_v36  ;;  %v1476_v24 = vpop.xlane.xlu0 %1475 }
 0x65a   : > { %vm1527_vm8 = vcmp.eq.s32.totalorder %v2826_v16, %v1435_v12  ;;  %v1462_v32 = vcvt.f32.s32 %v1461_v25  ;;  %v1477_v41 = vcvt.f32.s32 %v1476_v24  ;;  %vm1528_vm9 = vcmp.eq.s32.totalorder %v2826_v16, %v1450_v35 }
 0x65b   : > { %v2306_v60 = vsel %vm1527_vm8, 1.0, %v3889_v10  ;;  %v3550_v38 = vsel %vm1527_vm8, -inf, %v3278_v0  ;;  %v3553_v39 = vsel %vm1528_vm9, -inf, %v3281_v43  ;;  %v2307_v15 = vsel %vm1528_vm9, 1.0, %v3889_v10 }
 0x65c   : > { %v1465_v2 = vadd.s32 %v1464_v52, %v1462_v32  ;;  %v1480_v55 = vadd.s32 %v1479_v21, %v1477_v41  ;;  %2568 = vmatmul.mubr.msk.f32.vlgmr.msra.gmra.mrb[24].mxu1 %vm422_vm3, %v2306_v60  ;;  %v1738_v13 = vsel %vm422_vm3, %v3550_v38, -inf  ;;  %v1741_v5 = vsel %vm422_vm3, %v3553_v39, -inf }
 0x65d   : > { %v1523_v0 = vcvt.f32.s32 %v3534_v33  ;;  %1739 = vmax.xlane.f32.xlu1 %v1738_v13  ;;  %v1491_v49 = vpop.xlane.xlu1 %1490  ;;  %1742 = vmax.xlane.f32.xlu0 %v1741_v5  ;;  %v1506_v43 = vpop.xlane.xlu0 %1505 }
 0x65e   : > { %v1492_v48 = vcvt.f32.s32 %v1491_v49  ;;  %2570 = vmatprep.mubr.msk.f32.mxu1 %vm422_vm3, %v2307_v15  ;;  %v1507_v59 = vcvt.f32.s32 %v1506_v43  ;;  %vm1529_vm10 = vcmp.eq.s32.totalorder %v2826_v16, %v1465_v2  ;;  %vm1530_vm11 = vcmp.eq.s32.totalorder %v2826_v16, %v1480_v55 }
 0x65f   : > { %v2308_v30 = vsel %vm1529_vm10, 1.0, %v3889_v10  ;;  %v1730_v45 = vsel %vm1529_vm10, -inf, %v3296_v47  ;;  %v1731_v12 = vsel %vm1530_vm11, -inf, %v3299_v50  ;;  %v2309_v33 = vsel %vm1530_vm11, 1.0, %v3889_v10 }
 0x660   : > { %v1495_v35 = vadd.s32 %v1494_v58, %v1492_v48  ;;  %v1510_v36 = vadd.s32 %v1509_v17, %v1507_v59  ;;  %2571 = vmatmul.mubr.msk.f32.gmra.mrb[26].mxu1 %vm422_vm3, %v2308_v30  ;;  %v1744_v52 = vsel %vm422_vm3, %v1730_v45, -inf  ;;  %v1747_v21 = vsel %vm422_vm3, %v1731_v12, -inf }
 0x661   : > { %1745 = vmax.xlane.f32.xlu1 %v1744_v52  ;;  %v1521_v54 = vpop.xlane.xlu1 %1520  ;;  %1748 = vmax.xlane.f32.xlu0 %v1747_v21  ;;  %v1524_v62 = vshll.u32 %v1523_v0, 16 }
 0x662   : > { %v1522_v25 = vcvt.f32.s32 %v1521_v54  ;;  %2573 = vmatprep.mubr.msk.f32.mxu1 %vm422_vm3, %v2309_v33  ;;  %vm1531_vm12 = vcmp.eq.s32.totalorder %v2826_v16, %v1495_v35  ;;  %vm1532_vm13 = vcmp.eq.s32.totalorder %v2826_v16, %v1510_v36 }
 0x663   : > { %v2310_v47 = vsel %vm1531_vm12, 1.0, %v3889_v10  ;;  %v1732_v50 = vsel %vm1531_vm12, -inf, %v3314_v23  ;;  %v1733_v24 = vsel %vm1532_vm13, -inf, %v3317_v22  ;;  %v2311_v32 = vsel %vm1532_vm13, 1.0, %v3889_v10 }
 0x664   : > { %v1525_v41 = vadd.s32 %v1524_v62, %v1522_v25  ;;  %2574 = vmatmul.mubr.msk.f32.gmra.mrb[28].mxu1 %vm422_vm3, %v2310_v47  ;;  %v1750_v60 = vsel %vm422_vm3, %v1732_v50, -inf  ;;  %v1753_v15 = vsel %vm422_vm3, %v1733_v24, -inf }
 0x665   : > { %1751 = vmax.xlane.f32.xlu1 %v1750_v60  ;;  %1754 = vmax.xlane.f32.xlu0 %v1753_v15 }
 0x666   : > { %2576 = vmatprep.mubr.msk.f32.mxu1 %vm422_vm3, %v2311_v32  ;;  %vm1533_vm14 = vcmp.eq.s32.totalorder %v2826_v16, %v1525_v41 }
 0x667   : > { %v2312_v2 = vsel %vm1533_vm14, 1.0, %v3889_v10  ;;  %v1734_v23 = vsel %vm1533_vm14, -inf, %v3331_v57 }
 0x668   : > { %2577 = vmatmul.mubr.msk.f32.gmra.mrb[30].mxu1 %vm422_vm3, %v2312_v2  ;;  %v1756_v22 = vsel %vm422_vm3, %v1734_v23, -inf }
 0x669   : > { %1757 = vmax.xlane.f32.xlu1 %v1756_v22  ;;  %2611 = vmatprep.mubr.msk.bf16.mxu1 %vm265_vm0, %v2784_v4 }
 0x6e6   : > { %v1737_v55 = vpop.xlane.xlu0 %1736 }
 0x6e7   : > { %vm1759_vm15 = vcmp.eq.f32.partialorder %v3541_v7, %v1737_v55 }
 0x6e8   : > { %v1767_v13 = vsel %vm1759_vm15, %v2826_v16, 64 }
 0x6e9   : > { %v3593_v5 = vsel %vm422_vm3, %v1767_v13, 2147483647 }
 0x6ea   : > { %v1740_v58 = vpop.xlane.xlu1 %1739  ;;  %v1743_v17 = vpop.xlane.xlu0 %1742  ;;  %v1777_v57 = vshra.s32 %v3593_v5, 16 }
 0x6eb   : > { %vm1760_vm1 = vcmp.eq.f32.partialorder %v3550_v38, %v1740_v58  ;;  %vm1761_vm2 = vcmp.eq.f32.partialorder %v3553_v39, %v1743_v17 }
 0x6ec   : > { %v1768_v0 = vsel %vm1760_vm1, %v2826_v16, 64  ;;  %v1769_v4 = vsel %vm1761_vm2, %v2826_v16, 64  ;;  %v3600_v49 = vcvt.s32.f32 %v1777_v57 }
 0x6ed   : > { %v3603_v7 = vsel %vm422_vm3, %v1768_v0, 2147483647  ;;  %v3606_v43 = vsel %vm422_vm3, %v1769_v4, 2147483647 }
 0x6ee   : > { %v1746_v48 = vpop.xlane.xlu1 %1745  ;;  %1780 = vmin.xlane.f32.xlu0 %v3600_v49  ;;  %v1749_v59 = vpop.xlane.xlu0 %1748  ;;  %v1792_v38 = vshra.s32 %v3603_v7, 16  ;;  %v1807_v39 = vshra.s32 %v3606_v43, 16 }
 0x6ef   : > { %vm1762_vm4 = vcmp.eq.f32.partialorder %v1730_v45, %v1746_v48  ;;  %vm1763_vm5 = vcmp.eq.f32.partialorder %v1731_v12, %v1749_v59 }
 0x6f0   : > { %v1770_v30 = vsel %vm1762_vm4, %v2826_v16, 64  ;;  %v1771_v33 = vsel %vm1763_vm5, %v2826_v16, 64  ;;  %v3613_v35 = vcvt.s32.f32 %v1792_v38  ;;  %v3615_v36 = vcvt.s32.f32 %v1807_v39 }
 0x6f1   : > { %v3618_v52 = vsel %vm422_vm3, %v1770_v30, 2147483647  ;;  %v3621_v21 = vsel %vm422_vm3, %v1771_v33, 2147483647 }
 0x6f2   : > { %1795 = vmin.xlane.f32.xlu1 %v3613_v35  ;;  %v1752_v54 = vpop.xlane.xlu1 %1751  ;;  %1810 = vmin.xlane.f32.xlu0 %v3615_v36  ;;  %v1755_v45 = vpop.xlane.xlu0 %1754  ;;  %v1822_v12 = vshra.s32 %v3618_v52, 16  ;;  %v1837_v62 = vshra.s32 %v3621_v21, 16 }
 0x6f3   : > { %vm1764_vm6 = vcmp.eq.f32.partialorder %v1732_v50, %v1752_v54  ;;  %vm1765_vm7 = vcmp.eq.f32.partialorder %v1733_v24, %v1755_v45 }
 0x6f4   : > { %v1772_v25 = vsel %vm1764_vm6, %v2826_v16, 64  ;;  %v1773_v47 = vsel %vm1765_vm7, %v2826_v16, 64  ;;  %v3629_v32 = vcvt.s32.f32 %v1822_v12  ;;  %v3631_v41 = vcvt.s32.f32 %v1837_v62 }
 0x6f5   : > { %v3634_v60 = vsel %vm422_vm3, %v1772_v25, 2147483647  ;;  %v3637_v15 = vsel %vm422_vm3, %v1773_v47, 2147483647 }
 0x6f6   : > { %1825 = vmin.xlane.f32.xlu1 %v3629_v32  ;;  %v1758_v2 = vpop.xlane.xlu1 %1757  ;;  %1840 = vmin.xlane.f32.xlu0 %v3631_v41  ;;  %v1852_v50 = vshra.s32 %v3634_v60, 16  ;;  %v1867_v24 = vshra.s32 %v3637_v15, 16 }
 0x6f7   : > { %vm1766_vm8 = vcmp.eq.f32.partialorder %v1734_v23, %v1758_v2 }
 0x6f8   : > { %v1774_v22 = vsel %vm1766_vm8, %v2826_v16, 64  ;;  %v3644_v55 = vcvt.s32.f32 %v1852_v50  ;;  %v3646_v13 = vcvt.s32.f32 %v1867_v24 }
 0x6f9   : > { %v3649_v58 = vsel %vm422_vm3, %v1774_v22, 2147483647 }
 0x6fa   : > { %1855 = vmin.xlane.f32.xlu1 %v3644_v55  ;;  %1870 = vmin.xlane.f32.xlu0 %v3646_v13  ;;  %v1882_v17 = vshra.s32 %v3649_v58, 16 }
 0x6fc   : > { %v3654_v57 = vcvt.s32.f32 %v1882_v17 }
 0x6fe   : > { %1885 = vmin.xlane.f32.xlu1 %v3654_v57 }
 0x72f   : > { %v2569_v23 = vpop.f32.mrb[24].mxu1 }
 0x730   : > { %v1646_v0 = vadd.f32 %v2569_v23, %v3137_v44  ;;  %v1640_v4 = vpop.f32.mrb[25].mxu1 }
 0x731   : > { %v1641_v48 = vadd.f32 %v1640_v4, %v3131_v61 }
 0x732   : > { %v1680_v59 = vmul.f32 %v3413_v37, %v1646_v0 }
 0x733   : > { %v1679_v38 = vmul.f32 %v3413_v37, %v1641_v48  ;;  %v2572_v39 = vpop.f32.mrb[26].mxu1 }
 0x734   : > { %v1688_v30 = vadd.f32 %v3422_v18, %v1680_v59  ;;  %v1656_v33 = vadd.f32 %v2572_v39, %v3134_v63  ;;  %v1650_v54 = vpop.f32.mrb[27].mxu1  ;;  %v3890_v59 = vmax.f32 %v3441_v46, %v3464_v19 }
 0x735   : > { %v1687_v45 = vadd.f32 %v3422_v18, %v1679_v38  ;;  %v1651_v12 = vadd.f32 %v1650_v54, %v3128_v42  ;;  %v3891_v54 = vld [vmem:[#allocation5_spill] sm:$0xff] }
 0x736   : > { %v1704_v62 = vmul.f32 0.2, %v1688_v30  ;;  %v1682_v25 = vmul.f32 %v3413_v37, %v1656_v33  ;;  %vm1696_vm9 = vcmp.ge.f32.partialorder %v1688_v30, 0.0 }
 0x737   : > { %v1703_v47 = vmul.f32 0.2, %v1687_v45  ;;  %v1681_v2 = vmul.f32 %v3413_v37, %v1651_v12  ;;  %v2575_v50 = vpop.f32.mrb[28].mxu1  ;;  %vm1695_vm10 = vcmp.ge.f32.partialorder %v1687_v45, 0.0  ;;  %v3892_v12 = vmax.f32 %v3447_v20, %v3891_v54 }
 0x738   : > { %v1690_v24 = vadd.f32 %v3422_v18, %v1682_v25  ;;  %v1666_v22 = vadd.f32 %v2575_v50, %v3149_v28  ;;  %v1660_v17 = vpop.f32.mrb[29].mxu1  ;;  %v1712_v23 = vsel %vm1696_vm9, %v1688_v30, %v1704_v62  ;;  %v3893_v20 = vmax.f32 %v3449_v34, %v3482_v6 }
 0x739   : > { %v1689_v0 = vadd.f32 %v3422_v18, %v1681_v2  ;;  %v1661_v4 = vadd.f32 %v1660_v17, %v3143_v26  ;;  %v1711_v48 = vsel %vm1695_vm10, %v1687_v45, %v1703_v47  ;;  %v3674_v38 = vmax.f32 %v3890_v59, %v1712_v23 }
 0x73a   : > { %v1706_v39 = vmul.f32 0.2, %v1690_v24  ;;  %v1684_v33 = vmul.f32 %v3413_v37, %v1666_v22  ;;  %v3680_v25 = vmax.f32 %v3892_v12, %v1711_v48  ;;  %vm1698_vm11 = vcmp.ge.f32.partialorder %v1690_v24, 0.0 }
 0x73b   : > { %v1705_v30 = vmul.f32 0.2, %v1689_v0  ;;  %v1683_v62 = vmul.f32 %v3413_v37, %v1661_v4  ;;  %v2578_v2 = vpop.f32.mrb[30].mxu1  ;;  %vm1697_vm12 = vcmp.ge.f32.partialorder %v1689_v0, 0.0  ;;  %v3894_v59 = vmax.f32 %v3444_v14, %v3486_v9  ;;  %v3896_v9 = vld [vmem:[#allocation6_spill] sm:$0xff] }
 0x73c   : > { %v1692_v45 = vadd.f32 %v3422_v18, %v1684_v33  ;;  %v1676_v19 = vadd.f32 %v2578_v2, %v3146_v27  ;;  %v1670_v46 = vpop.f32.mrb[31].mxu1  ;;  %v1714_v47 = vsel %vm1698_vm11, %v1690_v24, %v1706_v39  ;;  %v3895_v12 = vmax.f32 %v3477_v53, %v3498_v3 }
 0x73d   : > { %v1691_v50 = vadd.f32 %v3422_v18, %v1683_v62  ;;  %v1671_v22 = vadd.f32 %v1670_v46, %v3140_v8  ;;  %v1713_v17 = vsel %vm1697_vm12, %v1689_v0, %v1705_v30  ;;  %v3690_v23 = vmax.f32 %v3893_v20, %v1714_v47 }
 0x73e   : > { %v1708_v48 = vmul.f32 0.2, %v1692_v45  ;;  %v1686_v4 = vmul.f32 %v3413_v37, %v1676_v19  ;;  %v3696_v33 = vmax.f32 %v3894_v59, %v1713_v17  ;;  %vm1700_vm13 = vcmp.ge.f32.partialorder %v1692_v45, 0.0 }
 0x73f   : > { %v1707_v24 = vmul.f32 0.2, %v1691_v50  ;;  %v1685_v39 = vmul.f32 %v3413_v37, %v1671_v22  ;;  %vm1699_vm14 = vcmp.ge.f32.partialorder %v1691_v50, 0.0  ;;  %v3897_v14 = vmax.f32 %v3495_v1, %v3896_v9  ;;  %v3899_v9 = vld [vmem:[#allocation3_spill] sm:$0xff] }
 0x740   : > { %v1694_v0 = vadd.f32 %v3422_v18, %v1686_v4  ;;  %v1716_v54 = vsel %vm1700_vm13, %v1692_v45, %v1708_v48  ;;  %v1776_v3 = vand.u32 65535, %v3593_v5  ;;  %v1791_v22 = vand.u32 65535, %v3603_v7 }
 0x741   : > { %v1693_v6 = vadd.f32 %v3422_v18, %v1685_v39  ;;  %v1715_v34 = vsel %vm1699_vm14, %v1691_v50, %v1707_v24  ;;  %v3704_v30 = vmax.f32 %v3895_v12, %v1716_v54  ;;  %v1806_v17 = vand.u32 65535, %v3606_v43 }
 0x742   : > { %v1710_v62 = vmul.f32 0.2, %v1694_v0  ;;  %v3709_v2 = vmax.f32 %v3897_v14, %v1715_v34  ;;  %vm1702_vm15 = vcmp.ge.f32.partialorder %v1694_v0, 0.0  ;;  %v1778_v50 = vcvt.s32.f32 %v1776_v3  ;;  %v2098_v34 = vld [vmem:[%s3873_s5 + $0x10] sm:$0xff] }
 0x743   : > { %v1709_v19 = vmul.f32 0.2, %v1693_v6  ;;  %vm1701_vm1 = vcmp.ge.f32.partialorder %v1693_v6, 0.0  ;;  %v1793_v29 = vcvt.s32.f32 %v1791_v22  ;;  %v1808_v40 = vcvt.s32.f32 %v1806_v17  ;;  %v3900_v14 = vld [vmem:[#allocation4_spill] sm:$0xff] }
 0x744   : > { %v1718_v46 = vsel %vm1702_vm15, %v1694_v0, %v1710_v62  ;;  %v1836_v5 = vand.u32 65535, %v3621_v21  ;;  %v1851_v59 = vand.u32 65535, %v3634_v60  ;;  %v1866_v24 = vand.u32 65535, %v3637_v15  ;;  %v3898_v62 = vld [vmem:[#allocation2_spill] sm:$0xff] }
 0x745   : > { %v1717_v47 = vsel %vm1701_vm1, %v1693_v6, %v1709_v19  ;;  %v3714_v45 = vmax.f32 %v1357_v11, %v1718_v46  ;;  %v1881_v54 = vand.u32 65535, %v3649_v58  ;;  %v2096_v58 = vld [vmem:[%s3873_s5] sm:$0xff] }
 0x746   : > { %v3719_v53 = vmax.f32 %v1356_v31, %v1717_v47  ;;  %v1821_v31 = vand.u32 65535, %v3618_v52  ;;  %v1838_v4 = vcvt.s32.f32 %v1836_v5  ;;  %v1853_v39 = vcvt.s32.f32 %v1851_v59 }
 0x747   : > { %v1868_v0 = vcvt.s32.f32 %v1866_v24  ;;  %v1883_v15 = vcvt.s32.f32 %v1881_v54 }
 0x748   : > { %v1823_v48 = vcvt.s32.f32 %v1821_v31 }
 0x77b   : > { %v3722_v1 = vpop.xlane.xlu0 %1780 }
 0x77c   : > { %vm1782_vm2 = vcmp.eq.f32.partialorder %v3600_v49, %v3722_v1  ;;  %v1787_v19 = vcvt.f32.s32 %v3722_v1 }
 0x77d   : > { %v1783_v56 = vsel %vm1782_vm2, %v1778_v50, inf }
 0x77e   : > { %1784 = vmin.xlane.f32.xlu0 %v1783_v56  ;;  %v1788_v3 = vshll.u32 %v1787_v19, 16 }
 0x77f   : > { %v1796_v51 = vpop.xlane.xlu1 %1795  ;;  %v3728_v11 = vpop.xlane.xlu0 %1810 }
 0x780   : > { %vm1797_vm4 = vcmp.eq.f32.partialorder %v3613_v35, %v1796_v51  ;;  %vm1812_vm5 = vcmp.eq.f32.partialorder %v3615_v36, %v3728_v11  ;;  %v1802_v46 = vcvt.f32.s32 %v1796_v51  ;;  %v1817_v50 = vcvt.f32.s32 %v3728_v11 }
 0x781   : > { %v1798_v7 = vsel %vm1797_vm4, %v1793_v29, inf  ;;  %v1813_v43 = vsel %vm1812_vm5, %v1808_v40, inf }
 0x782   : > { %1799 = vmin.xlane.f32.xlu1 %v1798_v7  ;;  %1814 = vmin.xlane.f32.xlu0 %v1813_v43  ;;  %v1803_v56 = vshll.u32 %v1802_v46, 16  ;;  %v1818_v7 = vshll.u32 %v1817_v50, 16 }
 0x783   : > { %v1826_v49 = vpop.xlane.xlu1 %1825  ;;  %v1841_v20 = vpop.xlane.xlu0 %1840 }
 0x784   : > { %vm1827_vm6 = vcmp.eq.f32.partialorder %v3629_v32, %v1826_v49  ;;  %vm1842_vm7 = vcmp.eq.f32.partialorder %v3631_v41, %v1841_v20  ;;  %v1832_v29 = vcvt.f32.s32 %v1826_v49  ;;  %v1847_v40 = vcvt.f32.s32 %v1841_v20 }
 0x785   : > { %v1828_v35 = vsel %vm1827_vm6, %v1823_v48, inf  ;;  %v1843_v52 = vsel %vm1842_vm7, %v1838_v4, inf }
 0x786   : > { %1829 = vmin.xlane.f32.xlu1 %v1828_v35  ;;  %1844 = vmin.xlane.f32.xlu0 %v1843_v52  ;;  %v1833_v59 = vshll.u32 %v1832_v29, 16  ;;  %v1848_v11 = vshll.u32 %v1847_v40, 16 }
 0x787   : > { %v3739_v36 = vpop.xlane.xlu1 %1855  ;;  %v3741_v21 = vpop.xlane.xlu0 %1870 }
 0x788   : > { %vm1857_vm8 = vcmp.eq.f32.partialorder %v3644_v55, %v3739_v36  ;;  %vm1872_vm9 = vcmp.eq.f32.partialorder %v3646_v13, %v3741_v21  ;;  %v2097_v55 = vld [vmem:[%s3873_s5 + $0x8] sm:$0xff]  ;;  %v1862_v24 = vcvt.f32.s32 %v3739_v36  ;;  %v1877_v49 = vcvt.f32.s32 %v3741_v21 }
 0x789   : > { %v1858_v32 = vsel %vm1857_vm8, %v1853_v39, inf  ;;  %v1873_v41 = vsel %vm1872_vm9, %v1868_v0, inf  ;;  %v2100_v13 = vpack.c.bf16 %v2097_v55, %v2096_v58 }
 0x78a   : > { %1859 = vmin.xlane.f32.xlu1 %v1858_v32  ;;  %1874 = vmin.xlane.f32.xlu0 %v1873_v41  ;;  %v1878_v36 = vshll.u32 %v1877_v49, 16 }
 0x78b   : > { %v3748_v60 = vpop.xlane.xlu1 %1885  ;;  %2607 = vmatprep.subr.bf16.mxu1 %v2100_v13 }
 0x78c   : > { %vm1887_vm10 = vcmp.eq.f32.partialorder %v3654_v57, %v3748_v60  ;;  %2608 = vmatpush3.bf16.msra.mxu1 %v2100_v13  ;;  %v2099_v57 = vld [vmem:[%s3873_s5 + $0x18] sm:$0xff]  ;;  %v1892_v21 = vcvt.f32.s32 %v3748_v60 }
 0x78d   : > { %v1888_v6 = vsel %vm1887_vm10, %v1883_v15, inf  ;;  %v2101_v12 = vpack.c.bf16 %v2099_v57, %v2098_v34  ;;  %v1863_v15 = vshll.u32 %v1862_v24, 16 }
 0x78e   : > { %1889 = vmin.xlane.f32.xlu1 %v1888_v6  ;;  %v1893_v60 = vshll.u32 %v1892_v21, 16 }
 0x78f   : > { %2609 = vmatprep.subr.bf16.mxu1 %v2101_v12 }
 0x790   : > { %2610 = vmatpush3.bf16.msra.mxu1 %v2101_v12 }
 0x793   : > { %2612 = vmatmul.mubr.msk.bf16.vlgmr.msra.gmra.mrb[32].mxu1 %vm265_vm0, %v3898_v62 }
 0x794   : > { %2615 = vmatprep.mubr.msk.bf16.mxu1 %vm265_vm0, %v3899_v9 }
 0x79b   : > { %2616 = vmatmul.mubr.msk.bf16.gmra.mrb[36].mxu1 %vm265_vm0, %v3900_v14 }
 0x80b   : > { %v1785_v47 = vpop.xlane.xlu0 %1784 }
 0x80c   : > { %v1786_v22 = vcvt.f32.s32 %v1785_v47 }
 0x80e   : > { %v1789_v17 = vadd.s32 %v1788_v3, %v1786_v22 }
 0x80f   : > { %v1800_v31 = vpop.xlane.xlu1 %1799  ;;  %v1815_v5 = vpop.xlane.xlu0 %1814 }
 0x810   : > { %v1801_v43 = vcvt.f32.s32 %v1800_v31  ;;  %v1816_v48 = vcvt.f32.s32 %v1815_v5  ;;  %vm1895_vm11 = vcmp.eq.s32.totalorder %v2826_v16, %v1789_v17 }
 0x811   : > { %v2321_v4 = vsel %vm1895_vm11, 1.0, %v3889_v10 }
 0x812   : > { %v1804_v1 = vadd.s32 %v1803_v56, %v1801_v43  ;;  %v1819_v51 = vadd.s32 %v1818_v7, %v1816_v48  ;;  %2595 = vmatprep.mubr.msk.f32.mxu0 %vm422_vm3, %v2321_v4 }
 0x813   : > { %v1830_v20 = vpop.xlane.xlu1 %1829  ;;  %v1845_v35 = vpop.xlane.xlu0 %1844 }
 0x814   : > { %vm1896_vm12 = vcmp.eq.s32.totalorder %v2826_v16, %v1804_v1  ;;  %v1831_v52 = vcvt.f32.s32 %v1830_v20  ;;  %v1846_v39 = vcvt.f32.s32 %v1845_v35  ;;  %vm1897_vm13 = vcmp.eq.s32.totalorder %v2826_v16, %v1819_v51 }
 0x815   : > { %v2322_v0 = vsel %vm1896_vm12, 1.0, %v3889_v10  ;;  %v2323_v54 = vsel %vm1897_vm13, 1.0, %v3889_v10 }
 0x816   : > { %v1834_v32 = vadd.s32 %v1833_v59, %v1831_v52  ;;  %v1849_v41 = vadd.s32 %v1848_v11, %v1846_v39  ;;  %2596 = vmatmul.mubr.msk.f32.vlgmr.msra.gmra.mrb[16].mxu0 %vm422_vm3, %v2322_v0  ;;  %v2716_v39 = vld [vmem:[%s3872_s4] ss:$0 sm:$0xff] }
 0x817   : > { %v1860_v6 = vpop.xlane.xlu1 %1859  ;;  %2598 = vmatprep.mubr.msk.f32.mxu0 %vm422_vm3, %v2323_v54  ;;  %v1875_v58 = vpop.xlane.xlu0 %1874 }
 0x818   : > { %v1861_v55 = vcvt.f32.s32 %v1860_v6  ;;  %v1876_v13 = vcvt.f32.s32 %v1875_v58  ;;  %vm1898_vm14 = vcmp.eq.s32.totalorder %v2826_v16, %v1834_v32  ;;  %vm1899_vm15 = vcmp.eq.s32.totalorder %v2826_v16, %v1849_v41 }
 0x819   : > { %v2324_v34 = vsel %vm1898_vm14, 1.0, %v3889_v10  ;;  %v2325_v57 = vsel %vm1899_vm15, 1.0, %v3889_v10 }
 0x81a   : > { %v1864_v12 = vadd.s32 %v1863_v15, %v1861_v55  ;;  %v1879_v62 = vadd.s32 %v1878_v36, %v1876_v13  ;;  %2599 = vmatmul.mubr.msk.f32.gmra.mrb[18].mxu0 %vm422_vm3, %v2324_v34 }
 0x81b   : > { %v1890_v9 = vpop.xlane.xlu1 %1889  ;;  %2601 = vmatprep.mubr.msk.f32.mxu0 %vm422_vm3, %v2325_v57 }
 0x81c   : > { %vm1901_vm1 = vcmp.eq.s32.totalorder %v2826_v16, %v1879_v62  ;;  %v1891_v14 = vcvt.f32.s32 %v1890_v9  ;;  %vm1900_vm2 = vcmp.eq.s32.totalorder %v2826_v16, %v1864_v12 }
 0x81d   : > { %v2326_v19 = vsel %vm1900_vm2, 1.0, %v3889_v10  ;;  %v2327_v46 = vsel %vm1901_vm1, 1.0, %v3889_v10 }
 0x81e   : > { %v1894_v47 = vadd.s32 %v1893_v60, %v1891_v14  ;;  %2602 = vmatmul.mubr.msk.f32.gmra.mrb[20].mxu0 %vm422_vm3, %v2326_v19 }
 0x81f   : > { %2604 = vmatprep.mubr.msk.f32.mxu0 %vm422_vm3, %v2327_v46 }
 0x820   : > { %vm1902_vm4 = vcmp.eq.s32.totalorder %v2826_v16, %v1894_v47 }
 0x821   : > { %v2328_v3 = vsel %vm1902_vm4, 1.0, %v3889_v10 }
 0x822   : > { %2605 = vmatmul.mubr.msk.f32.gmra.mrb[22].mxu0 %vm422_vm3, %v2328_v3 }
 0x866   : > { %v3799_v50 = vpop.f32.mrb[32].mxu1 }
 0x867   : > { %v2136_v22 = vpop.f32.mrb[33].mxu1 }
 0x868   : > { %v2614_v17 = vpop.f32.mrb[34].mxu1 }
 0x869   : > { %v2139_v56 = vpop.f32.mrb[35].mxu1 }
 0x86e   : > { %v3801_v29 = vpop.f32.mrb[36].mxu1 }
 0x86f   : > { %v3803_v40 = vpop.f32.mrb[37].mxu1 }
 0x870   : > { %v3805_v31 = vpop.f32.mrb[38].mxu1 }
 0x871   : > { %v3807_v5 = vpop.f32.mrb[39].mxu1 }
 0x8e9   : > { %v2597_v7 = vpop.f32.mrb[16].mxu0 }
 0x8ea   : > { %v2015_v16 = vadd.f32 %v2597_v7, %v3137_v44  ;;  %v2009_v43 = vpop.f32.mrb[17].mxu0 }
 0x8eb   : > { %v2010_v10 = vadd.f32 %v2009_v43, %v3131_v61 }
 0x8ec   : > { %v2049_v48 = vmul.f32 %v3413_v37, %v2015_v16 }
 0x8ed   : > { %v2048_v4 = vmul.f32 %v3413_v37, %v2010_v10  ;;  %v2600_v1 = vpop.f32.mrb[18].mxu0 }
 0x8ee   : > { %v2057_v51 = vadd.f32 %v3422_v18, %v2049_v48  ;;  %v2025_v59 = vadd.f32 %v2600_v1, %v3134_v63  ;;  %v2019_v11 = vpop.f32.mrb[19].mxu0 }
 0x8ef   : > { %v2056_v24 = vadd.f32 %v3422_v18, %v2048_v4  ;;  %v2020_v49 = vadd.f32 %v2019_v11, %v3128_v42 }
 0x8f0   : > { %v2051_v20 = vmul.f32 %v3413_v37, %v2025_v59  ;;  %vm2065_vm3 = vcmp.ge.f32.partialorder %v2057_v51, 0.0  ;;  %v2073_v44 = vmul.f32 0.2, %v2057_v51 }
 0x8f1   : > { %v2050_v61 = vmul.f32 %v3413_v37, %v2020_v49  ;;  %v2603_v35 = vpop.f32.mrb[20].mxu0  ;;  %vm2064_vm5 = vcmp.ge.f32.partialorder %v2056_v24, 0.0  ;;  %v2072_v52 = vmul.f32 0.2, %v2056_v24  ;;  %v2717_v37 = vld [vmem:[%s3871_s3] ss:$0 sm:$0xff] }
 0x8f2   : > { %v2059_v63 = vadd.f32 %v2716_v39, %v2051_v20  ;;  %v2035_v0 = vadd.f32 %v2603_v35, %v3149_v28  ;;  %v2029_v18 = vpop.f32.mrb[21].mxu0  ;;  %v2081_v54 = vsel %vm2065_vm3, %v2057_v51, %v2073_v44 }
 0x8f3   : > { %v2058_v42 = vadd.f32 %v2716_v39, %v2050_v61  ;;  %v2030_v32 = vadd.f32 %v2029_v18, %v3143_v26  ;;  %v2080_v41 = vsel %vm2064_vm5, %v2056_v24, %v2072_v52  ;;  %v2089_v15 = vmax.f32 %v3674_v38, %v2081_v54 }
 0x8f4   : > { %v2053_v36 = vmul.f32 %v2717_v37, %v2035_v0  ;;  %v2088_v28 = vmax.f32 %v3680_v25, %v2080_v41  ;;  %vm2067_vm6 = vcmp.ge.f32.partialorder %v2059_v63, 0.0  ;;  %v2075_v21 = vmul.f32 0.2, %v2059_v63 }
 0x8f5   : > { %vm2066_vm7 = vcmp.ge.f32.partialorder %v2058_v42, 0.0  ;;  %v2074_v26 = vmul.f32 0.2, %v2058_v42  ;;  %v2052_v38 = vmul.f32 %v2717_v37, %v2030_v32  ;;  %v2168_v6 = vadd.f32 %v2139_v56, %v2089_v15  ;;  %v2606_v58 = vpop.f32.mrb[22].mxu0 }
 0x8f6   : > { %v2061_v55 = vadd.f32 %v2716_v39, %v2053_v36  ;;  %v2167_v13 = vadd.f32 %v2136_v22, %v2088_v28  ;;  %v2083_v34 = vsel %vm2067_vm6, %v2059_v63, %v2075_v21  ;;  %v2045_v57 = vadd.f32 %v2606_v58, %v3146_v27  ;;  %v2039_v12 = vpop.f32.mrb[23].mxu0 }
 0x8f7   : > { %v2082_v62 = vsel %vm2066_vm7, %v2058_v42, %v2074_v26  ;;  %v2060_v9 = vadd.f32 %v2716_v39, %v2052_v38  ;;  %v2091_v25 = vmax.f32 %v3690_v23, %v2083_v34  ;;  %2176 = vst.msk [vmem:[%s3833_s16 + $0x8] sm:$0xff] %vm265_vm0, %v2168_v6  ;;  %v2040_v60 = vadd.f32 %v2039_v12, %v3140_v8 }
 0x8f8   : > { %v2090_v14 = vmax.f32 %v3696_v33, %v2082_v62  ;;  %2175 = vst.msk [vmem:[%s3833_s16] sm:$0xff] %vm265_vm0, %v2167_v13  ;;  %v2055_v19 = vmul.f32 %v2717_v37, %v2045_v57  ;;  %vm2069_vm8 = vcmp.ge.f32.partialorder %v2061_v55, 0.0  ;;  %v2077_v46 = vmul.f32 0.2, %v2061_v55 }
 0x8f9   : > { %v2170_v47 = vadd.f32 %v2614_v17, %v2091_v25  ;;  %v2054_v27 = vmul.f32 %v2717_v37, %v2040_v60  ;;  %vm2068_vm9 = vcmp.ge.f32.partialorder %v2060_v9, 0.0  ;;  %v2076_v3 = vmul.f32 0.2, %v2060_v9 }
 0x8fa   : > { %v2169_v22 = vadd.f32 %v3799_v50, %v2090_v14  ;;  %v2063_v56 = vadd.f32 %v2716_v39, %v2055_v19  ;;  %v2085_v23 = vsel %vm2069_vm8, %v2061_v55, %v2077_v46 }
 0x8fb   : > { %2178 = vst.msk [vmem:[%s3833_s16 + $0x18] sm:$0xff] %vm265_vm0, %v2170_v47  ;;  %v2062_v8 = vadd.f32 %v2716_v39, %v2054_v27  ;;  %v2084_v33 = vsel %vm2068_vm9, %v2060_v9, %v2076_v3  ;;  %v2093_v7 = vmax.f32 %v3704_v30, %v2085_v23 }
 0x8fc   : > { %2177 = vst.msk [vmem:[%s3833_s16 + $0x10] sm:$0xff] %vm265_vm0, %v2169_v22  ;;  %v2092_v17 = vmax.f32 %v3709_v2, %v2084_v33  ;;  %vm2071_vm10 = vcmp.ge.f32.partialorder %v2063_v56, 0.0  ;;  %v2079_v16 = vmul.f32 0.2, %v2063_v56 }
 0x8fd   : > { %vm2070_vm11 = vcmp.ge.f32.partialorder %v2062_v8, 0.0  ;;  %v2078_v50 = vmul.f32 0.2, %v2062_v8  ;;  %v2172_v43 = vadd.f32 %v3807_v5, %v2093_v7 }
 0x8fe   : > { %v2171_v10 = vadd.f32 %v3803_v40, %v2092_v17  ;;  %v2087_v48 = vsel %vm2071_vm10, %v2063_v56, %v2079_v16 }
 0x8ff   : > { %v2086_v4 = vsel %vm2070_vm11, %v2062_v8, %v2078_v50  ;;  %v2095_v1 = vmax.f32 %v3714_v45, %v2087_v48  ;;  %2180 = vst.msk [vmem:[%s3833_s16 + $0x28] sm:$0xff] %vm265_vm0, %v2172_v43 }
 0x900   : > { %v2094_v30 = vmax.f32 %v3719_v53, %v2086_v4  ;;  %2179 = vst.msk [vmem:[%s3833_s16 + $0x20] sm:$0xff] %vm265_vm0, %v2171_v10 }
 0x901   : > { %v2174_v2 = vadd.f32 %v3805_v31, %v2095_v1 }
 0x902   : > { %v2173_v51 = vadd.f32 %v3801_v29, %v2094_v30 }
 0x903   : > { %2182 = vst.msk [vmem:[%s3833_s16 + $0x38] sm:$0xff] %vm265_vm0, %v2174_v2 }
 0x904   : > { %2181 = vst.msk [vmem:[%s3833_s16 + $0x30] sm:$0xff] %vm265_vm0, %v2173_v51 }
 0x905 PF: > { %s16_s21 = sadd.s32 1, %s2724_s21  }
 0x906   : > { %p13_p4 = scmp.ge.s32.totalorder %s16_s21, 4  }
 0x908   :  { %15 = sbr.rel (!%p13_p4) target bundleno = 1 (0x1), region = 74 }

// kernel: edgeconv_res_feat.6
= control target key start
LH: loop header
LB: loop body
LE: loop exit
PB: predicated region body
PF: predicated region fallthrough
CT: control target
= control target key end

     0   :  { %s2762_s21 = smov 0   ;;  %s3868_s0 = inlined_call_operand.vmem [shape: f32[2,64,32], index: 0, kind: input, shape index: {}]   ;;  %s3869_s1 = inlined_call_operand.vmem [shape: f32[32,64], index: 1, kind: input, shape index: {}]   ;;  %s3870_s2 = inlined_call_operand.vmem [shape: f32[32,64], index: 2, kind: input, shape index: {}]   ;;  %s3871_s3 = inlined_call_operand.vmem [shape: f32[1,64], index: 3, kind: input, shape index: {}]   ;;  %s3872_s4 = inlined_call_operand.vmem [shape: f32[1,64], index: 4, kind: input, shape index: {}]   ;;  %s3873_s5 = inlined_call_operand.vmem [shape: f32[32,64], index: 5, kind: input, shape index: {}]   ;;  %s3874_s6 = inlined_call_operand.vmem [shape: f32[2,64,64], index: 6, kind: output, shape index: {}]  }
   0x1 LB: > { %s2238_s22 = sadd.s32 4294967295, %s2724_s21   ;;  %p2242_p0 = scmp.ge.s32.totalorder %s2724_s21, 1  ;;  %s2724_s21 = sphi %s2762_s21, %s16_s21  }
   0x2   : > { %p212_p1 = scmp.lt.s32.totalorder %s2724_s21, 3 }
   0x4   : > { %p213_p2 = pnand %p2242_p0, %p212_p1 }
   0x6   : > { %216 = sbr.rel (%p213_p2) target bundleno = 2309 (0x905), region = 44 }
   0xd   : > { %p242_p3 = scmp.lt.s32.totalorder %s2238_s22, 1  ;;  %vm265_vm0 = vcmask 261120   ;;  %v395_v13 = vlaneseq  ;;  %vm422_vm3 = vcmask 523264  }
   0xe   : > { %vm2780_vm1 = vmpackc.low %vm265_vm0, %vm265_vm0 }
   0xf   : > { %s3902_s22 = smov (!%p242_p3, %s2238_s22), 1  ;;  %v396_v14 = vshrl.u32 %v395_v13, 7  ;;  %v2826_v16 = vand.u32 127, %v395_v13 }
  0x10   : > { %s2343_s23 = sshll.u32 %s3902_s22, 6 }
  0x11   : > { %s246_s26 = scalar_lea.vmem %s3868_s0, %s2343_s23  ;;  %v397_v15 = vadd.s32 8, %v396_v14  ;;  %vm406_vm4 = vcmp.eq.s32.totalorder %v396_v14, %v2826_v16  ;;  %v399_v17 = vadd.s32 24, %v396_v14  ;;  %v398_v18 = vadd.s32 16, %v396_v14  ;;  %s3833_s16 = scalar_lea.vmem %s3874_s6, %s2343_s23 }
  0x12   : > { %v253_v1 = vld [vmem:[%s246_s26] sm:$0xff]  ;;  %v254_v2 = vld [vmem:[%s246_s26 + $0x8] sm:$0xff]  ;;  %v255_v3 = vld [vmem:[%s246_s26 + $0x10] sm:$0xff]  ;;  %v401_v24 = vadd.s32 40, %v396_v14  ;;  %v400_v26 = vadd.s32 32, %v396_v14  ;;  %v403_v33 = vadd.s32 56, %v396_v14 }
  0x13   : > { %v2784_v4 = vpack.c.bf16 %v254_v2, %v253_v1  ;;  %v256_v5 = vld [vmem:[%s246_s26 + $0x18] sm:$0xff]  ;;  %2459 = vmatprep.mubr.msk.f32.mxu0 %vm265_vm0, %v253_v1  ;;  %v257_v7 = vld [vmem:[%s246_s26 + $0x20] sm:$0xff]  ;;  %v258_v8 = vld [vmem:[%s246_s26 + $0x28] sm:$0xff]  ;;  %vm407_vm2 = vcmp.eq.s32.totalorder %v397_v15, %v2826_v16  ;;  %vm409_vm5 = vcmp.eq.s32.totalorder %v399_v17, %v2826_v16  ;;  %vm408_vm6 = vcmp.eq.s32.totalorder %v398_v18, %v2826_v16 }
  0x14   : > { %v2787_v6 = vpack.c.bf16 %v256_v5, %v255_v3  ;;  %v2800_v9 = vpack.c.bf16 %v258_v8, %v257_v7  ;;  %v259_v10 = vld [vmem:[%s246_s26 + $0x30] sm:$0xff]  ;;  %v260_v11 = vld [vmem:[%s246_s26 + $0x38] sm:$0xff]  ;;  %vm411_vm7 = vcmp.eq.s32.totalorder %v401_v24, %v2826_v16  ;;  %vm410_vm8 = vcmp.eq.s32.totalorder %v400_v26, %v2826_v16  ;;  %v461_v26 = vld [vmem:[%s3869_s1 + $0x8] sm:$0xff] }
  0x15   : > { %2621 = vmatprep.subr.msk.bf16.mxu0 %vm2780_vm1, %v2784_v4  ;;  %2475 = vmatprep.mubr.msk.bf16.mxu1 %vm265_vm0, %v2784_v4  ;;  %v2808_v12 = vpack.c.bf16 %v260_v11, %v259_v10  ;;  %v402_v34 = vadd.s32 48, %v396_v14  ;;  %vm413_vm9 = vcmp.eq.s32.totalorder %v403_v33, %v2826_v16 }
  0x16   : > { %3884 = vst [vmem:[#allocation2_spill] sm:$0xff] %v2787_v6  ;;  %2624 = vmatpush3.bf16.xpose.msk.msra.mxu0 %vm2780_vm1, %v2784_v4  ;;  %3885 = vst [vmem:[#allocation3_spill] sm:$0xff] %v2800_v9 }
  0x17   : > { %2627 = vmatprep.subr.msk.bf16.mxu0 %vm2780_vm1, %v2787_v6  ;;  %3886 = vst [vmem:[#allocation4_spill] sm:$0xff] %v2808_v12  ;;  %vm412_vm10 = vcmp.eq.s32.totalorder %v402_v34, %v2826_v16 }
  0x1e   : > { %2630 = vmatpush3.bf16.xpose.msk.msra.mxu0 %vm2780_vm1, %v2787_v6 }
  0x1f   : > { %2633 = vmatprep.subr.msk.bf16.mxu0 %vm2780_vm1, %v2800_v9 }
  0x26   : > { %2636 = vmatpush3.bf16.xpose.msk.msra.mxu0 %vm2780_vm1, %v2800_v9 }
  0x27   : > { %2639 = vmatprep.subr.msk.bf16.mxu0 %vm2780_vm1, %v2808_v12 }
  0x2e   : > { %2642 = vmatpush3.bf16.xpose.msk.msra.mxu0 %vm2780_vm1, %v2808_v12 }
  0x35   : > { %2460 = vmatmul.mubr.msk.f32.vlgmr.msra.gmra.mrb[0].mxu0 %vm265_vm0, %v254_v2 }
  0x36   : > { %2462 = vmatprep.mubr.msk.f32.mxu0 %vm265_vm0, %v255_v3 }
  0x39   : > { %2463 = vmatmul.mubr.msk.f32.gmra.mrb[2].mxu0 %vm265_vm0, %v256_v5 }
  0x3a   : > { %2465 = vmatprep.mubr.msk.f32.mxu0 %vm265_vm0, %v257_v7 }
  0x3d   : > { %2466 = vmatmul.mubr.msk.f32.gmra.mrb[4].mxu0 %vm265_vm0, %v258_v8 }
  0x3e   : > { %2468 = vmatprep.mubr.msk.f32.mxu0 %vm265_vm0, %v259_v10 }
  0x41   : > { %2469 = vmatmul.mubr.msk.f32.gmra.mrb[6].mxu0 %vm265_vm0, %v260_v11 }
 0x108   : > { %v2461_v19 = vpop.f32.mrb[0].mxu0 }
 0x109   : > { %v415_v20 = vsel %vm407_vm2, %v2461_v19, 0.0  ;;  %v356_v21 = vpop.f32.mrb[1].mxu0  ;;  %v445_v0 = vmul.f32 2.0, %v2461_v19 }
 0x10a   : > { %v424_v22 = vsel %vm422_vm3, %v415_v20, 0.0  ;;  %v414_v23 = vsel %vm406_vm4, %v356_v21, 0.0  ;;  %v444_v59 = vmul.f32 2.0, %v356_v21 }
 0x10b   : > { %v423_v25 = vsel %vm422_vm3, %v414_v23, 0.0 }
 0x10c   : > { %v425_v27 = vadd.f32 %v424_v22, %v423_v25  ;;  %v2464_v28 = vpop.f32.mrb[2].mxu0  ;;  %v460_v25 = vld [vmem:[%s3869_s1] sm:$0xff] }
 0x10d   : > { %v366_v29 = vpop.f32.mrb[3].mxu0  ;;  %v417_v30 = vsel %vm409_vm5, %v2464_v28, 0.0  ;;  %v447_v60 = vmul.f32 2.0, %v2464_v28  ;;  %v464_v28 = vpack.c.bf16 %v461_v26, %v460_v25 }
 0x10e   : > { %v416_v31 = vsel %vm408_vm6, %v366_v29, 0.0  ;;  %v428_v37 = vsel %vm422_vm3, %v417_v30, 0.0  ;;  %v446_v61 = vmul.f32 2.0, %v366_v29  ;;  %v463_v29 = vld [vmem:[%s3869_s1 + $0x18] sm:$0xff] }
 0x10f   : > { %v426_v32 = vsel %vm422_vm3, %v416_v31, 0.0  ;;  %2471 = vmatprep.subr.bf16.mxu1 %v464_v28 }
 0x110   : > { %v427_v35 = vadd.f32 %v426_v32, %v425_v27  ;;  %v2467_v36 = vpop.f32.mrb[4].mxu0  ;;  %v462_v27 = vld [vmem:[%s3869_s1 + $0x10] sm:$0xff]  ;;  %2472 = vmatpush3.bf16.msra.mxu1 %v464_v28 }
 0x111   : > { %v376_v38 = vpop.f32.mrb[5].mxu0  ;;  %v419_v39 = vsel %vm411_vm7, %v2467_v36, 0.0  ;;  %v449_v1 = vmul.f32 2.0, %v2467_v36  ;;  %v465_v30 = vpack.c.bf16 %v463_v29, %v462_v27 }
 0x112   : > { %v418_v40 = vsel %vm410_vm8, %v376_v38, 0.0  ;;  %v429_v41 = vadd.f32 %v428_v37, %v427_v35  ;;  %v432_v45 = vsel %vm422_vm3, %v419_v39, 0.0  ;;  %v448_v2 = vmul.f32 2.0, %v376_v38 }
 0x113   : > { %v430_v42 = vsel %vm422_vm3, %v418_v40, 0.0  ;;  %2473 = vmatprep.subr.bf16.mxu1 %v465_v30 }
 0x114   : > { %v431_v43 = vadd.f32 %v430_v42, %v429_v41  ;;  %v2470_v44 = vpop.f32.mrb[6].mxu0  ;;  %2474 = vmatpush3.bf16.msra.mxu1 %v465_v30 }
 0x115   : > { %v386_v46 = vpop.f32.mrb[7].mxu0  ;;  %v421_v47 = vsel %vm413_vm9, %v2470_v44, 0.0  ;;  %v451_v3 = vmul.f32 2.0, %v2470_v44 }
 0x116   : > { %v420_v48 = vsel %vm412_vm10, %v386_v46, 0.0  ;;  %v433_v49 = vadd.f32 %v432_v45, %v431_v43  ;;  %v436_v52 = vsel %vm422_vm3, %v421_v47, 0.0  ;;  %v450_v63 = vmul.f32 2.0, %v386_v46 }
 0x117   : > { %v434_v50 = vsel %vm422_vm3, %v420_v48, 0.0  ;;  %2476 = vmatmul.mubr.msk.bf16.vlgmr.msra.gmra.mrb[0].mxu1 %vm265_vm0, %v2787_v6 }
 0x118   : > { %v435_v51 = vadd.f32 %v434_v50, %v433_v49  ;;  %2479 = vmatprep.mubr.msk.bf16.mxu1 %vm265_vm0, %v2800_v9 }
 0x11a   : > { %v437_v53 = vadd.f32 %v436_v52, %v435_v51 }
 0x11c   : > { %v438_v54 = vrot.slane %v437_v53, 4 }
 0x11e   : > { %v439_v55 = vadd.f32 %v438_v54, %v437_v53 }
 0x11f   : > { %2480 = vmatmul.mubr.msk.bf16.gmra.mrb[4].mxu1 %vm265_vm0, %v2808_v12 }
 0x120   : > { %v440_v56 = vrot.slane %v439_v55, 2  ;;  %2487 = vmatprep.mubr.msk.bf16.mxu1 %vm265_vm0, %v2784_v4 }
 0x122   : > { %v441_v57 = vadd.f32 %v440_v56, %v439_v55 }
 0x124   : > { %v442_v58 = vrot.slane %v441_v57, 1 }
 0x126   : > { %v443_v62 = vadd.f32 %v442_v58, %v441_v57 }
 0x128   : > { %v2844_v5 = vsub.f32 %v450_v63, %v443_v62  ;;  %v2846_v7 = vsub.f32 %v446_v61, %v443_v62  ;;  %v2848_v8 = vsub.f32 %v444_v59, %v443_v62  ;;  %v2850_v10 = vsub.f32 %v447_v60, %v443_v62 }
 0x129   : > { %v2852_v11 = vsub.f32 %v445_v0, %v443_v62  ;;  %v2854_v13 = vsub.f32 %v449_v1, %v443_v62  ;;  %v2856_v14 = vsub.f32 %v448_v2, %v443_v62  ;;  %v2858_v15 = vsub.f32 %v451_v3, %v443_v62 }
 0x12a   : > { %v630_v17 = vsel %vm422_vm3, %v2846_v7, -inf  ;;  %v624_v18 = vsel %vm422_vm3, %v2848_v8, -inf  ;;  %v633_v19 = vsel %vm422_vm3, %v2850_v10, -inf  ;;  %v642_v24 = vsel %vm422_vm3, %v2844_v5, -inf }
 0x12b   : > { %631 = vmax.xlane.f32.xlu1 %v630_v17  ;;  %625 = vmax.xlane.f32.xlu0 %v624_v18  ;;  %v627_v20 = vsel %vm422_vm3, %v2852_v11, -inf  ;;  %v639_v21 = vsel %vm422_vm3, %v2854_v13, -inf  ;;  %v636_v22 = vsel %vm422_vm3, %v2856_v14, -inf  ;;  %v645_v23 = vsel %vm422_vm3, %v2858_v15, -inf }
 0x12f   : > { %634 = vmax.xlane.f32.xlu1 %v633_v19  ;;  %628 = vmax.xlane.f32.xlu0 %v627_v20  ;;  %v466_v20 = vld [vmem:[%s3870_s2] sm:$0xff] }
 0x133   : > { %640 = vmax.xlane.f32.xlu1 %v639_v21  ;;  %637 = vmax.xlane.f32.xlu0 %v636_v22  ;;  %v467_v21 = vld [vmem:[%s3870_s2 + $0x8] sm:$0xff]  ;;  %v468_v22 = vld [vmem:[%s3870_s2 + $0x10] sm:$0xff] }
 0x137   : > { %646 = vmax.xlane.f32.xlu1 %v645_v23  ;;  %643 = vmax.xlane.f32.xlu0 %v642_v24  ;;  %v470_v23 = vpack.c.bf16 %v467_v21, %v466_v20  ;;  %v469_v24 = vld [vmem:[%s3870_s2 + $0x18] sm:$0xff] }
 0x138   : > { %v471_v25 = vpack.c.bf16 %v469_v24, %v468_v22 }
 0x139   : > { %2483 = vmatprep.subr.bf16.mxu1 %v470_v23 }
 0x13a   : > { %2484 = vmatpush3.bf16.msra.mxu1 %v470_v23 }
 0x13b   : > { %2485 = vmatprep.subr.bf16.mxu1 %v471_v25 }
 0x13e   : > { %2486 = vmatpush3.bf16.msra.mxu1 %v471_v25 }
 0x141   : > { %2488 = vmatmul.mubr.msk.bf16.vlgmr.msra.gmra.mrb[8].mxu1 %vm265_vm0, %v2787_v6 }
 0x142   : > { %2491 = vmatprep.mubr.msk.bf16.mxu1 %vm265_vm0, %v2800_v9 }
 0x149   : > { %2492 = vmatmul.mubr.msk.bf16.gmra.mrb[12].mxu1 %vm265_vm0, %v2808_v12 }
 0x1b8   : > { %v632_v31 = vpop.xlane.xlu1 %631  ;;  %v626_v32 = vpop.xlane.xlu0 %625 }
 0x1b9   : > { %vm650_vm11 = vcmp.eq.f32.partialorder %v2846_v7, %v632_v31  ;;  %vm648_vm12 = vcmp.eq.f32.partialorder %v2848_v8, %v626_v32 }
 0x1ba   : > { %v658_v33 = vsel %vm650_vm11, %v2826_v16, 64  ;;  %v656_v34 = vsel %vm648_vm12, %v2826_v16, 64 }
 0x1bb   : > { %v2901_v35 = vsel %vm422_vm3, %v658_v33, 2147483647  ;;  %v2904_v36 = vsel %vm422_vm3, %v656_v34, 2147483647 }
 0x1bc   : > { %v635_v37 = vpop.xlane.xlu1 %634  ;;  %v629_v38 = vpop.xlane.xlu0 %628  ;;  %v666_v39 = vshra.s32 %v2904_v36, 16  ;;  %v696_v43 = vshra.s32 %v2901_v35, 16 }
 0x1bd   : > { %vm651_vm13 = vcmp.eq.f32.partialorder %v2850_v10, %v635_v37  ;;  %vm649_vm14 = vcmp.eq.f32.partialorder %v2852_v11, %v629_v38 }
 0x1be   : > { %v659_v40 = vsel %vm651_vm13, %v2826_v16, 64  ;;  %v657_v41 = vsel %vm649_vm14, %v2826_v16, 64  ;;  %v2911_v42 = vcvt.s32.f32 %v666_v39  ;;  %v2927_v52 = vcvt.s32.f32 %v696_v43 }
 0x1bf   : > { %v2915_v44 = vsel %vm422_vm3, %v659_v40, 2147483647  ;;  %v2918_v45 = vsel %vm422_vm3, %v657_v41, 2147483647  ;;  %v665_v40 = vand.u32 65535, %v2904_v36 }
 0x1c0   : > { %v641_v46 = vpop.xlane.xlu1 %640  ;;  %669 = vmin.xlane.f32.xlu0 %v2911_v42  ;;  %v638_v47 = vpop.xlane.xlu0 %637  ;;  %v681_v48 = vshra.s32 %v2918_v45, 16  ;;  %v711_v49 = vshra.s32 %v2915_v44, 16 }
 0x1c1   : > { %vm653_vm15 = vcmp.eq.f32.partialorder %v2854_v13, %v641_v46  ;;  %vm652_vm1 = vcmp.eq.f32.partialorder %v2856_v14, %v638_v47  ;;  %v667_v43 = vcvt.s32.f32 %v665_v40  ;;  %v680_v46 = vand.u32 65535, %v2918_v45 }
 0x1c2   : > { %v661_v50 = vsel %vm653_vm15, %v2826_v16, 64  ;;  %v660_v51 = vsel %vm652_vm1, %v2826_v16, 64  ;;  %v2929_v53 = vcvt.s32.f32 %v681_v48  ;;  %v2942_v59 = vcvt.s32.f32 %v711_v49 }
 0x1c3   : > { %v2932_v54 = vsel %vm422_vm3, %v661_v50, 2147483647  ;;  %v2935_v55 = vsel %vm422_vm3, %v660_v51, 2147483647  ;;  %v695_v47 = vand.u32 65535, %v2901_v35  ;;  %v682_v51 = vcvt.s32.f32 %v680_v46 }
 0x1c4   : > { %v647_v56 = vpop.xlane.xlu1 %646  ;;  %699 = vmin.xlane.f32.xlu0 %v2927_v52  ;;  %684 = vmin.xlane.f32.xlu1 %v2929_v53  ;;  %v644_v57 = vpop.xlane.xlu0 %643  ;;  %v726_v58 = vshra.s32 %v2935_v55, 16  ;;  %v741_v63 = vshra.s32 %v2932_v54, 16 }
 0x1c5   : > { %vm655_vm2 = vcmp.eq.f32.partialorder %v2858_v15, %v647_v56  ;;  %vm654_vm4 = vcmp.eq.f32.partialorder %v2844_v5, %v644_v57  ;;  %v697_v56 = vcvt.s32.f32 %v695_v47  ;;  %v710_v57 = vand.u32 65535, %v2915_v44 }
 0x1c6   : > { %v663_v60 = vsel %vm655_vm2, %v2826_v16, 64  ;;  %v662_v61 = vsel %vm654_vm4, %v2826_v16, 64  ;;  %v2946_v62 = vcvt.s32.f32 %v726_v58  ;;  %v2958_v3 = vcvt.s32.f32 %v741_v63 }
 0x1c7   : > { %v2950_v0 = vsel %vm422_vm3, %v663_v60, 2147483647  ;;  %v2953_v1 = vsel %vm422_vm3, %v662_v61, 2147483647  ;;  %v725_v58 = vand.u32 65535, %v2935_v55  ;;  %v712_v60 = vcvt.s32.f32 %v710_v57 }
 0x1c8   : > { %714 = vmin.xlane.f32.xlu1 %v2942_v59  ;;  %729 = vmin.xlane.f32.xlu0 %v2946_v62  ;;  %v756_v2 = vshra.s32 %v2953_v1, 16  ;;  %v771_v18 = vshra.s32 %v2950_v0, 16  ;;  %v740_v63 = vand.u32 65535, %v2932_v54  ;;  %v770_v21 = vand.u32 65535, %v2950_v0 }
 0x1c9   : > { %v727_v61 = vcvt.s32.f32 %v725_v58 }
 0x1ca   : > { %v2960_v17 = vcvt.s32.f32 %v756_v2  ;;  %v2965_v19 = vcvt.s32.f32 %v771_v18  ;;  %v755_v2 = vand.u32 65535, %v2953_v1  ;;  %v742_v18 = vcvt.s32.f32 %v740_v63 }
 0x1cc   : > { %744 = vmin.xlane.f32.xlu1 %v2958_v3  ;;  %759 = vmin.xlane.f32.xlu0 %v2960_v17  ;;  %v757_v20 = vcvt.s32.f32 %v755_v2 }
 0x1d0   : > { %774 = vmin.xlane.f32.xlu1 %v2965_v19 }
 0x1ea   : > { %v2986_v26 = vpop.f32.mrb[0].mxu1 }
 0x1eb   : > { %v2988_v27 = vpop.f32.mrb[1].mxu1 }
 0x1ec   : > { %v2990_v28 = vpop.f32.mrb[2].mxu1 }
 0x1ed   : > { %v2994_v29 = vpack.c.bf16 %v2990_v28, %v2986_v26  ;;  %v2996_v30 = vpop.f32.mrb[3].mxu1 }
 0x1ee   : > { %v3000_v31 = vpack.c.bf16 %v2996_v30, %v2988_v27 }
 0x1f0   : > { %2644 = vmatprep.subr.bf16.mxu1 %v3000_v31  ;;  %2660 = vmatprep.subr.bf16.mxu0 %v3000_v31 }
 0x1f1   : > { %2646 = vmatpush3.bf16.msra.mxu1 %v3000_v31  ;;  %2662 = vmatpush3.bf16.msra.mxu0 %v3000_v31 }
 0x1f2   : > { %v3006_v32 = vpop.f32.mrb[4].mxu1  ;;  %2648 = vmatprep.subr.bf16.mxu1 %v2994_v29  ;;  %2664 = vmatprep.subr.bf16.mxu0 %v2994_v29 }
 0x1f3   : > { %v3010_v33 = vpop.f32.mrb[5].mxu1 }
 0x1f4   : > { %v3012_v34 = vpop.f32.mrb[6].mxu1 }
 0x1f5   : > { %v3016_v37 = vpack.c.bf16 %v3012_v34, %v3006_v32  ;;  %v3018_v38 = vpop.f32.mrb[7].mxu1  ;;  %2650 = vmatpush3.bf16.msra.mxu1 %v2994_v29  ;;  %2666 = vmatpush3.bf16.msra.mxu0 %v2994_v29 }
 0x1f6   : > { %v3024_v39 = vpack.c.bf16 %v3018_v38, %v3010_v33 }
 0x1f8   : > { %2652 = vmatprep.subr.bf16.mxu1 %v3024_v39  ;;  %2668 = vmatprep.subr.bf16.mxu0 %v3024_v39 }
 0x1f9   : > { %2654 = vmatpush3.bf16.msra.mxu1 %v3024_v39  ;;  %2670 = vmatpush3.bf16.msra.mxu0 %v3024_v39 }
 0x1fa   : > { %2656 = vmatprep.subr.bf16.mxu1 %v3016_v37  ;;  %2672 = vmatprep.subr.bf16.mxu0 %v3016_v37 }
 0x1fd   : > { %2658 = vmatpush3.bf16.msra.mxu1 %v3016_v37  ;;  %2674 = vmatpush3.bf16.msra.mxu0 %v3016_v37 }
 0x1fe   : > { %2676 = vmatprep.subr.bf16.mxu1 %v3000_v31  ;;  %2692 = vmatprep.subr.bf16.mxu0 %v3000_v31 }
 0x24d   : > { %v670_v41 = vpop.xlane.xlu0 %669 }
 0x24e   : > { %vm671_vm5 = vcmp.eq.f32.partialorder %v2911_v42, %v670_v41  ;;  %v676_v23 = vcvt.f32.s32 %v670_v41 }
 0x24f   : > { %v672_v48 = vsel %vm671_vm5, %v667_v43, inf }
 0x250   : > { %673 = vmin.xlane.f32.xlu0 %v672_v48  ;;  %v677_v0 = vshll.u32 %v676_v23, 16 }
 0x251   : > { %v685_v49 = vpop.xlane.xlu1 %684  ;;  %v700_v50 = vpop.xlane.xlu0 %699 }
 0x252   : > { %vm686_vm6 = vcmp.eq.f32.partialorder %v2929_v53, %v685_v49  ;;  %vm701_vm7 = vcmp.eq.f32.partialorder %v2927_v52, %v700_v50  ;;  %v691_v24 = vcvt.f32.s32 %v685_v49  ;;  %v706_v40 = vcvt.f32.s32 %v700_v50 }
 0x253   : > { %v687_v36 = vsel %vm686_vm6, %v682_v51, inf  ;;  %v702_v45 = vsel %vm701_vm7, %v697_v56, inf }
 0x254   : > { %688 = vmin.xlane.f32.xlu1 %v687_v36  ;;  %703 = vmin.xlane.f32.xlu0 %v702_v45  ;;  %v707_v56 = vshll.u32 %v706_v40, 16 }
 0x255   : > { %v715_v35 = vpop.xlane.xlu1 %714  ;;  %v730_v42 = vpop.xlane.xlu0 %729 }
 0x256   : > { %vm716_vm8 = vcmp.eq.f32.partialorder %v2942_v59, %v715_v35  ;;  %vm731_vm9 = vcmp.eq.f32.partialorder %v2946_v62, %v730_v42  ;;  %v772_v62 = vcvt.s32.f32 %v770_v21  ;;  %v721_v46 = vcvt.f32.s32 %v715_v35 }
 0x257   : > { %v717_v44 = vsel %vm716_vm8, %v712_v60, inf  ;;  %v732_v53 = vsel %vm731_vm9, %v727_v61, inf  ;;  %v736_v47 = vcvt.f32.s32 %v730_v42 }
 0x258   : > { %718 = vmin.xlane.f32.xlu1 %v717_v44  ;;  %733 = vmin.xlane.f32.xlu0 %v732_v53  ;;  %v722_v35 = vshll.u32 %v721_v46, 16 }
 0x259   : > { %v745_v52 = vpop.xlane.xlu1 %744  ;;  %v760_v55 = vpop.xlane.xlu0 %759  ;;  %v737_v42 = vshll.u32 %v736_v47, 16 }
 0x25a   : > { %vm746_vm10 = vcmp.eq.f32.partialorder %v2958_v3, %v745_v52  ;;  %vm761_vm11 = vcmp.eq.f32.partialorder %v2960_v17, %v760_v55  ;;  %v692_v17 = vshll.u32 %v691_v24, 16  ;;  %v751_v60 = vcvt.f32.s32 %v745_v52 }
 0x25b   : > { %v747_v54 = vsel %vm746_vm10, %v742_v18, inf  ;;  %v762_v1 = vsel %vm761_vm11, %v757_v20, inf  ;;  %v766_v61 = vcvt.f32.s32 %v760_v55 }
 0x25c   : > { %748 = vmin.xlane.f32.xlu1 %v747_v54  ;;  %763 = vmin.xlane.f32.xlu0 %v762_v1 }
 0x25d   : > { %v3051_v59 = vpop.xlane.xlu1 %774 }
 0x25e   : > { %vm776_vm12 = vcmp.eq.f32.partialorder %v2965_v19, %v3051_v59  ;;  %v3875_v19 = vmov 0.0  }
 0x25f   : > { %v777_v22 = vsel %vm776_vm12, %v772_v62, inf  ;;  %v752_v62 = vshll.u32 %v751_v60, 16 }
 0x260   : > { %778 = vmin.xlane.f32.xlu1 %v777_v22  ;;  %v767_v22 = vshll.u32 %v766_v61, 16 }
 0x2dd   : > { %v674_v25 = vpop.xlane.xlu0 %673 }
 0x2de   : > { %v675_v3 = vcvt.f32.s32 %v674_v25 }
 0x2e0   : > { %v678_v43 = vadd.s32 %v677_v0, %v675_v3 }
 0x2e1   : > { %v689_v48 = vpop.xlane.xlu1 %688  ;;  %v704_v51 = vpop.xlane.xlu0 %703 }
 0x2e2   : > { %v690_v57 = vcvt.f32.s32 %v689_v48  ;;  %v705_v58 = vcvt.f32.s32 %v704_v51  ;;  %vm784_vm13 = vcmp.eq.s32.totalorder %v2826_v16, %v678_v43 }
 0x2e3   : > { %v2271_v36 = vsel %vm784_vm13, 1.0, %v3875_v19  ;;  %v3058_v41 = vsel %vm784_vm13, -inf, %v2848_v8 }
 0x2e4   : > { %v693_v49 = vadd.s32 %v692_v17, %v690_v57  ;;  %v708_v50 = vadd.s32 %v707_v56, %v705_v58  ;;  %2511 = vmatprep.mubr.msk.f32.mxu1 %vm422_vm3, %v2271_v36  ;;  %v997_v45 = vsel %vm422_vm3, %v3058_v41, -inf }
 0x2e5   : > { %v719_v63 = vpop.xlane.xlu1 %718  ;;  %998 = vmax.xlane.f32.xlu0 %v997_v45  ;;  %v734_v2 = vpop.xlane.xlu0 %733 }
 0x2e6   : > { %vm785_vm14 = vcmp.eq.s32.totalorder %v2826_v16, %v693_v49  ;;  %v720_v44 = vcvt.f32.s32 %v719_v63  ;;  %v735_v53 = vcvt.f32.s32 %v734_v2  ;;  %vm786_vm15 = vcmp.eq.s32.totalorder %v2826_v16, %v708_v50 }
 0x2e7   : > { %v2272_v8 = vsel %vm785_vm14, 1.0, %v3875_v19  ;;  %v3067_v18 = vsel %vm785_vm14, -inf, %v2852_v11  ;;  %v3070_v20 = vsel %vm786_vm15, -inf, %v2846_v7  ;;  %v2273_v52 = vsel %vm786_vm15, 1.0, %v3875_v19 }
 0x2e8   : > { %v723_v55 = vadd.s32 %v722_v35, %v720_v44  ;;  %v738_v21 = vadd.s32 %v737_v42, %v735_v53  ;;  %2512 = vmatmul.mubr.msk.f32.vlgmr.msra.gmra.mrb[16].mxu1 %vm422_vm3, %v2272_v8  ;;  %v1000_v54 = vsel %vm422_vm3, %v3067_v18, -inf  ;;  %v1003_v1 = vsel %vm422_vm3, %v3070_v20, -inf  ;;  %v2489_v35 = vpop.f32.mrb[8].mxu1 }
 0x2e9   : > { %v781_v11 = vcvt.f32.s32 %v3051_v59  ;;  %1001 = vmax.xlane.f32.xlu1 %v1000_v54  ;;  %v749_v23 = vpop.xlane.xlu1 %748  ;;  %1004 = vmax.xlane.f32.xlu0 %v1003_v1  ;;  %v764_v7 = vpop.xlane.xlu0 %763  ;;  %v3128_v42 = vsub.f32 %v2489_v35, %v2986_v26 }
 0x2ea   : > { %v750_v24 = vcvt.f32.s32 %v749_v23  ;;  %2514 = vmatprep.mubr.msk.f32.mxu1 %vm422_vm3, %v2273_v52  ;;  %v765_v25 = vcvt.f32.s32 %v764_v7  ;;  %vm787_vm1 = vcmp.eq.s32.totalorder %v2826_v16, %v723_v55  ;;  %vm788_vm2 = vcmp.eq.s32.totalorder %v2826_v16, %v738_v21  ;;  %2678 = vmatpush3.bf16.msra.mxu1 %v3000_v31  ;;  %v583_v60 = vpop.f32.mrb[9].mxu1 }
 0x2eb   : > { %v2274_v0 = vsel %vm787_vm1, 1.0, %v3875_v19  ;;  %v3085_v40 = vsel %vm787_vm1, -inf, %v2850_v10  ;;  %v3088_v59 = vsel %vm788_vm2, -inf, %v2856_v14  ;;  %v2275_v3 = vsel %vm788_vm2, 1.0, %v3875_v19  ;;  %2680 = vmatprep.subr.bf16.mxu1 %v2994_v29 }
 0x2ec   : > { %v753_v43 = vadd.s32 %v752_v62, %v750_v24  ;;  %v768_v17 = vadd.s32 %v767_v22, %v765_v25  ;;  %2515 = vmatmul.mubr.msk.f32.gmra.mrb[18].mxu1 %vm422_vm3, %v2274_v0  ;;  %v1006_v46 = vsel %vm422_vm3, %v3085_v40, -inf  ;;  %v1009_v47 = vsel %vm422_vm3, %v3088_v59, -inf }
 0x2ed   : > { %1007 = vmax.xlane.f32.xlu1 %v1006_v46  ;;  %v779_v10 = vpop.xlane.xlu1 %778  ;;  %1010 = vmax.xlane.f32.xlu0 %v1009_v47  ;;  %v782_v48 = vshll.u32 %v781_v11, 16  ;;  %v3131_v61 = vsub.f32 %v583_v60, %v2988_v27 }
 0x2ee   : > { %v780_v14 = vcvt.f32.s32 %v779_v10  ;;  %2517 = vmatprep.mubr.msk.f32.mxu1 %vm422_vm3, %v2275_v3  ;;  %vm789_vm4 = vcmp.eq.s32.totalorder %v2826_v16, %v753_v43  ;;  %vm790_vm5 = vcmp.eq.s32.totalorder %v2826_v16, %v768_v17  ;;  %2682 = vmatpush3.bf16.msra.mxu1 %v2994_v29 }
 0x2ef   : > { %v2276_v51 = vsel %vm789_vm4, 1.0, %v3875_v19  ;;  %v3103_v56 = vsel %vm789_vm4, -inf, %v2854_v13  ;;  %v3106_v57 = vsel %vm790_vm5, -inf, %v2844_v5  ;;  %v2277_v58 = vsel %vm790_vm5, 1.0, %v3875_v19  ;;  %2684 = vmatprep.subr.bf16.mxu1 %v3024_v39 }
 0x2f0   : > { %v783_v36 = vadd.s32 %v782_v48, %v780_v14  ;;  %2518 = vmatmul.mubr.msk.f32.gmra.mrb[20].mxu1 %vm422_vm3, %v2276_v51  ;;  %v1012_v49 = vsel %vm422_vm3, %v3103_v56, -inf  ;;  %v1015_v50 = vsel %vm422_vm3, %v3106_v57, -inf }
 0x2f1   : > { %1013 = vmax.xlane.f32.xlu1 %v1012_v49  ;;  %1016 = vmax.xlane.f32.xlu0 %v1015_v50 }
 0x2f2   : > { %2520 = vmatprep.mubr.msk.f32.mxu1 %vm422_vm3, %v2277_v58  ;;  %vm791_vm6 = vcmp.eq.s32.totalorder %v2826_v16, %v783_v36  ;;  %2686 = vmatpush3.bf16.msra.mxu1 %v3024_v39 }
 0x2f3   : > { %v2278_v5 = vsel %vm791_vm6, 1.0, %v3875_v19  ;;  %v3120_v13 = vsel %vm791_vm6, -inf, %v2858_v15  ;;  %2688 = vmatprep.subr.bf16.mxu1 %v3016_v37  ;;  %v2490_v15 = vpop.f32.mrb[10].mxu1 }
 0x2f4   : > { %2521 = vmatmul.mubr.msk.f32.gmra.mrb[22].mxu1 %vm422_vm3, %v2278_v5  ;;  %v1018_v45 = vsel %vm422_vm3, %v3120_v13, -inf  ;;  %v3134_v63 = vsub.f32 %v2490_v15, %v2990_v28  ;;  %v586_v2 = vpop.f32.mrb[11].mxu1 }
 0x2f5   : > { %1019 = vmax.xlane.f32.xlu1 %v1018_v45  ;;  %v3137_v44 = vsub.f32 %v586_v2, %v2996_v30  ;;  %v2493_v53 = vpop.f32.mrb[12].mxu1 }
 0x2f6   : > { %2690 = vmatpush3.bf16.msra.mxu1 %v3016_v37  ;;  %v3140_v8 = vsub.f32 %v2493_v53, %v3006_v32  ;;  %v599_v52 = vpop.f32.mrb[13].mxu1 }
 0x2f7   : > { %v3143_v26 = vsub.f32 %v599_v52, %v3010_v33  ;;  %v2494_v55 = vpop.f32.mrb[14].mxu1 }
 0x2f8   : > { %v3146_v27 = vsub.f32 %v2494_v55, %v3012_v34  ;;  %v602_v21 = vpop.f32.mrb[15].mxu1 }
 0x2f9   : > { %v3149_v28 = vsub.f32 %v602_v21, %v3018_v38 }
 0x372   : > { %v999_v54 = vpop.xlane.xlu0 %998 }
 0x373   : > { %vm1021_vm7 = vcmp.eq.f32.partialorder %v3058_v41, %v999_v54 }
 0x374   : > { %v1029_v30 = vsel %vm1021_vm7, %v2826_v16, 64 }
 0x375   : > { %v3154_v32 = vsel %vm422_vm3, %v1029_v30, 2147483647 }
 0x376   : > { %v1002_v1 = vpop.xlane.xlu1 %1001  ;;  %v1005_v62 = vpop.xlane.xlu0 %1004  ;;  %v1039_v33 = vshra.s32 %v3154_v32, 16 }
 0x377   : > { %vm1022_vm8 = vcmp.eq.f32.partialorder %v3067_v18, %v1002_v1  ;;  %vm1023_vm9 = vcmp.eq.f32.partialorder %v3070_v20, %v1005_v62 }
 0x378   : > { %v1030_v34 = vsel %vm1022_vm8, %v2826_v16, 64  ;;  %v1031_v38 = vsel %vm1023_vm9, %v2826_v16, 64  ;;  %v3161_v22 = vcvt.s32.f32 %v1039_v33 }
 0x379   : > { %v3164_v11 = vsel %vm422_vm3, %v1030_v34, 2147483647  ;;  %v3167_v23 = vsel %vm422_vm3, %v1031_v38, 2147483647 }
 0x37a   : > { %v1008_v7 = vpop.xlane.xlu1 %1007  ;;  %1042 = vmin.xlane.f32.xlu0 %v3161_v22  ;;  %v1011_v24 = vpop.xlane.xlu0 %1010  ;;  %v1054_v25 = vshra.s32 %v3164_v11, 16  ;;  %v1069_v0 = vshra.s32 %v3167_v23, 16 }
 0x37b   : > { %vm1024_vm10 = vcmp.eq.f32.partialorder %v3085_v40, %v1008_v7  ;;  %vm1025_vm11 = vcmp.eq.f32.partialorder %v3088_v59, %v1011_v24 }
 0x37c   : > { %v1032_v3 = vsel %vm1024_vm10, %v2826_v16, 64  ;;  %v1033_v43 = vsel %vm1025_vm11, %v2826_v16, 64  ;;  %v3176_v17 = vcvt.s32.f32 %v1054_v25  ;;  %v3178_v46 = vcvt.s32.f32 %v1069_v0 }
 0x37d   : > { %v3181_v47 = vsel %vm422_vm3, %v1032_v3, 2147483647  ;;  %v3184_v10 = vsel %vm422_vm3, %v1033_v43, 2147483647 }
 0x37e   : > { %1057 = vmin.xlane.f32.xlu1 %v3176_v17  ;;  %v1014_v48 = vpop.xlane.xlu1 %1013  ;;  %1072 = vmin.xlane.f32.xlu0 %v3178_v46  ;;  %v1017_v14 = vpop.xlane.xlu0 %1016  ;;  %v1084_v51 = vshra.s32 %v3181_v47, 16  ;;  %v1099_v58 = vshra.s32 %v3184_v10, 16 }
 0x37f   : > { %vm1026_vm12 = vcmp.eq.f32.partialorder %v3103_v56, %v1014_v48  ;;  %vm1027_vm13 = vcmp.eq.f32.partialorder %v3106_v57, %v1017_v14 }
 0x380   : > { %v1034_v36 = vsel %vm1026_vm12, %v2826_v16, 64  ;;  %v1035_v49 = vsel %vm1027_vm13, %v2826_v16, 64  ;;  %v3194_v50 = vcvt.s32.f32 %v1084_v51  ;;  %v3196_v5 = vcvt.s32.f32 %v1099_v58 }
 0x381   : > { %v3199_v45 = vsel %vm422_vm3, %v1034_v36, 2147483647  ;;  %v3202_v35 = vsel %vm422_vm3, %v1035_v49, 2147483647  ;;  %v1038_v49 = vand.u32 65535, %v3154_v32 }
 0x382   : > { %1087 = vmin.xlane.f32.xlu1 %v3194_v50  ;;  %v1020_v60 = vpop.xlane.xlu1 %1019  ;;  %1102 = vmin.xlane.f32.xlu0 %v3196_v5  ;;  %v1114_v15 = vshra.s32 %v3199_v45, 16  ;;  %v1129_v2 = vshra.s32 %v3202_v35, 16 }
 0x383   : > { %vm1028_vm14 = vcmp.eq.f32.partialorder %v3120_v13, %v1020_v60 }
 0x384   : > { %v1036_v53 = vsel %vm1028_vm14, %v2826_v16, 64  ;;  %v3210_v52 = vcvt.s32.f32 %v1114_v15  ;;  %v3212_v55 = vcvt.s32.f32 %v1129_v2  ;;  %v1040_v15 = vcvt.s32.f32 %v1038_v49 }
 0x385   : > { %v3215_v21 = vsel %vm422_vm3, %v1036_v53, 2147483647  ;;  %v1053_v2 = vand.u32 65535, %v3164_v11  ;;  %v1068_v53 = vand.u32 65535, %v3167_v23  ;;  %v1113_v49 = vand.u32 65535, %v3199_v45 }
 0x386   : > { %1117 = vmin.xlane.f32.xlu1 %v3210_v52  ;;  %1132 = vmin.xlane.f32.xlu0 %v3212_v55  ;;  %v1144_v54 = vshra.s32 %v3215_v21, 16 }
 0x388   : > { %v3220_v30 = vcvt.s32.f32 %v1144_v54 }
 0x38a   : > { %1147 = vmin.xlane.f32.xlu1 %v3220_v30 }
 0x3bb   : > { %v2513_v1 = vpop.f32.mrb[16].mxu1 }
 0x3bc   : > { %v3224_v62 = vadd.f32 %v2513_v1, %v3137_v44  ;;  %v898_v33 = vpop.f32.mrb[17].mxu1 }
 0x3bd   : > { %v3227_v34 = vadd.f32 %v898_v33, %v3131_v61 }
 0x3bf   : > { %v2516_v38 = vpop.f32.mrb[18].mxu1 }
 0x3c0   : > { %v3230_v7 = vadd.f32 %v2516_v38, %v3134_v63  ;;  %v908_v24 = vpop.f32.mrb[19].mxu1  ;;  %v1055_v38 = vcvt.s32.f32 %v1053_v2  ;;  %v1115_v2 = vcvt.s32.f32 %v1113_v49 }
 0x3c1   : > { %v3233_v25 = vadd.f32 %v908_v24, %v3128_v42  ;;  %v1070_v24 = vcvt.s32.f32 %v1068_v53 }
 0x3c3   : > { %v2519_v0 = vpop.f32.mrb[20].mxu1 }
 0x3c4   : > { %v3236_v3 = vadd.f32 %v2519_v0, %v3149_v28  ;;  %v918_v43 = vpop.f32.mrb[21].mxu1  ;;  %v1083_v0 = vand.u32 65535, %v3181_v47 }
 0x3c5   : > { %v3239_v48 = vadd.f32 %v918_v43, %v3143_v26  ;;  %v1098_v43 = vand.u32 65535, %v3184_v10 }
 0x3c7   : > { %v2522_v14 = vpop.f32.mrb[22].mxu1 }
 0x3c8   : > { %v3242_v51 = vadd.f32 %v2522_v14, %v3146_v27  ;;  %v928_v58 = vpop.f32.mrb[23].mxu1  ;;  %v1085_v14 = vcvt.s32.f32 %v1083_v0 }
 0x3c9   : > { %v3245_v36 = vadd.f32 %v928_v58, %v3140_v8  ;;  %v1100_v58 = vcvt.s32.f32 %v1098_v43 }
 0x407   : > { %v1043_v60 = vpop.xlane.xlu0 %1042 }
 0x408   : > { %vm1044_vm15 = vcmp.eq.f32.partialorder %v3161_v22, %v1043_v60 }
 0x409   : > { %v1045_v54 = vsel %vm1044_vm15, %v1040_v15, inf  ;;  %v1128_v15 = vand.u32 65535, %v3202_v35 }
 0x40a   : > { %1046 = vmin.xlane.f32.xlu0 %v1045_v54  ;;  %v1143_v54 = vand.u32 65535, %v3215_v21 }
 0x40b   : > { %v1058_v1 = vpop.xlane.xlu1 %1057  ;;  %v1073_v33 = vpop.xlane.xlu0 %1072  ;;  %v1130_v53 = vcvt.s32.f32 %v1128_v15 }
 0x40c   : > { %vm1059_vm1 = vcmp.eq.f32.partialorder %v3176_v17, %v1058_v1  ;;  %vm1074_vm2 = vcmp.eq.f32.partialorder %v3178_v46, %v1073_v33  ;;  %v1064_v0 = vcvt.f32.s32 %v1058_v1 }
 0x40d   : > { %v1060_v32 = vsel %vm1059_vm1, %v1055_v38, inf  ;;  %v1075_v11 = vsel %vm1074_vm2, %v1070_v24, inf  ;;  %v1049_v24 = vcvt.f32.s32 %v1043_v60 }
 0x40e   : > { %1061 = vmin.xlane.f32.xlu1 %v1060_v32  ;;  %1076 = vmin.xlane.f32.xlu0 %v1075_v11  ;;  %v1079_v32 = vcvt.f32.s32 %v1073_v33 }
 0x40f   : > { %v1088_v23 = vpop.xlane.xlu1 %1087  ;;  %v1103_v22 = vpop.xlane.xlu0 %1102  ;;  %v1050_v21 = vshll.u32 %v1049_v24, 16 }
 0x410   : > { %vm1089_vm4 = vcmp.eq.f32.partialorder %v3194_v50, %v1088_v23  ;;  %vm1104_vm5 = vcmp.eq.f32.partialorder %v3196_v5, %v1103_v22  ;;  %v1145_v5 = vcvt.s32.f32 %v1143_v54 }
 0x411   : > { %v1090_v47 = vsel %vm1089_vm4, %v1085_v14, inf  ;;  %v1105_v17 = vsel %vm1104_vm5, %v1100_v58, inf  ;;  %v1094_v14 = vcvt.f32.s32 %v1088_v23  ;;  %v1109_v58 = vcvt.f32.s32 %v1103_v22 }
 0x412   : > { %1091 = vmin.xlane.f32.xlu1 %v1090_v47  ;;  %1106 = vmin.xlane.f32.xlu0 %v1105_v17  ;;  %v1080_v47 = vshll.u32 %v1079_v32, 16 }
 0x413   : > { %v1118_v46 = vpop.xlane.xlu1 %1117  ;;  %v1133_v10 = vpop.xlane.xlu0 %1132  ;;  %v1095_v23 = vshll.u32 %v1094_v14, 16  ;;  %v1110_v22 = vshll.u32 %v1109_v58, 16 }
 0x414   : > { %vm1119_vm6 = vcmp.eq.f32.partialorder %v3210_v52, %v1118_v46  ;;  %vm1134_vm7 = vcmp.eq.f32.partialorder %v3212_v55, %v1133_v10  ;;  %v1065_v55 = vshll.u32 %v1064_v0, 16  ;;  %v1124_v54 = vcvt.f32.s32 %v1118_v46 }
 0x415   : > { %v1120_v45 = vsel %vm1119_vm6, %v1115_v2, inf  ;;  %v1135_v35 = vsel %vm1134_vm7, %v1130_v53, inf }
 0x416   : > { %1121 = vmin.xlane.f32.xlu1 %v1120_v45  ;;  %1136 = vmin.xlane.f32.xlu0 %v1135_v35  ;;  %v1139_v45 = vcvt.f32.s32 %v1133_v10 }
 0x417   : > { %v3262_v50 = vpop.xlane.xlu1 %1147 }
 0x418   : > { %vm1149_vm8 = vcmp.eq.f32.partialorder %v3220_v30, %v3262_v50 }
 0x419   : > { %v1150_v38 = vsel %vm1149_vm8, %v1145_v5, inf }
 0x41a   : > { %1151 = vmin.xlane.f32.xlu1 %v1150_v38 }
 0x497   : > { %v1047_v43 = vpop.xlane.xlu0 %1046 }
 0x498   : > { %v1048_v52 = vcvt.f32.s32 %v1047_v43 }
 0x49a   : > { %v1051_v11 = vadd.s32 %v1050_v21, %v1048_v52 }
 0x49b   : > { %v1062_v49 = vpop.xlane.xlu1 %1061  ;;  %v1077_v15 = vpop.xlane.xlu0 %1076 }
 0x49c   : > { %v1063_v17 = vcvt.f32.s32 %v1062_v49  ;;  %v1078_v2 = vcvt.f32.s32 %v1077_v15  ;;  %vm1157_vm9 = vcmp.eq.s32.totalorder %v2826_v16, %v1051_v11  ;;  %v1125_v11 = vshll.u32 %v1124_v54, 16 }
 0x49d   : > { %v2289_v30 = vsel %vm1157_vm9, 1.0, %v3875_v19  ;;  %v3269_v60 = vsel %vm1157_vm9, -inf, %v3058_v41 }
 0x49e   : > { %v1066_v1 = vadd.s32 %v1065_v55, %v1063_v17  ;;  %v1081_v53 = vadd.s32 %v1080_v47, %v1078_v2  ;;  %2539 = vmatprep.mubr.msk.f32.mxu0 %vm422_vm3, %v2289_v30  ;;  %v1366_v33 = vsel %vm422_vm3, %v3269_v60, -inf  ;;  %v1140_v55 = vshll.u32 %v1139_v45, 16 }
 0x49f   : > { %v1092_v35 = vpop.xlane.xlu1 %1091  ;;  %1367 = vmax.xlane.f32.xlu0 %v1366_v33  ;;  %v1107_v5 = vpop.xlane.xlu0 %1106 }
 0x4a0   : > { %vm1158_vm10 = vcmp.eq.s32.totalorder %v2826_v16, %v1066_v1  ;;  %v1093_v38 = vcvt.f32.s32 %v1092_v35  ;;  %v1108_v24 = vcvt.f32.s32 %v1107_v5  ;;  %vm1159_vm11 = vcmp.eq.s32.totalorder %v2826_v16, %v1081_v53 }
 0x4a1   : > { %v2290_v41 = vsel %vm1158_vm10, 1.0, %v3875_v19  ;;  %v3278_v0 = vsel %vm1158_vm10, -inf, %v3067_v18  ;;  %v3281_v43 = vsel %vm1159_vm11, -inf, %v3070_v20  ;;  %v2291_v46 = vsel %vm1159_vm11, 1.0, %v3875_v19 }
 0x4a2   : > { %v1096_v10 = vadd.s32 %v1095_v23, %v1093_v38  ;;  %v1111_v21 = vadd.s32 %v1110_v22, %v1108_v24  ;;  %2540 = vmatmul.mubr.msk.f32.vlgmr.msra.gmra.mrb[8].mxu0 %vm422_vm3, %v2290_v41  ;;  %v1369_v32 = vsel %vm422_vm3, %v3278_v0, -inf  ;;  %v1372_v52 = vsel %vm422_vm3, %v3281_v43, -inf }
 0x4a3   : > { %v1154_v18 = vcvt.f32.s32 %v3262_v50  ;;  %1370 = vmax.xlane.f32.xlu1 %v1369_v32  ;;  %v1122_v14 = vpop.xlane.xlu1 %1121  ;;  %1373 = vmax.xlane.f32.xlu0 %v1372_v52  ;;  %v1137_v20 = vpop.xlane.xlu0 %1136 }
 0x4a4   : > { %v1123_v58 = vcvt.f32.s32 %v1122_v14  ;;  %2542 = vmatprep.mubr.msk.f32.mxu0 %vm422_vm3, %v2291_v46  ;;  %v1138_v49 = vcvt.f32.s32 %v1137_v20  ;;  %vm1160_vm12 = vcmp.eq.s32.totalorder %v2826_v16, %v1096_v10  ;;  %vm1161_vm13 = vcmp.eq.s32.totalorder %v2826_v16, %v1111_v21  ;;  %2694 = vmatpush3.bf16.msra.mxu0 %v3000_v31 }
 0x4a5   : > { %v2292_v15 = vsel %vm1160_vm12, 1.0, %v3875_v19  ;;  %v3296_v47 = vsel %vm1160_vm12, -inf, %v3085_v40  ;;  %v3299_v50 = vsel %vm1161_vm13, -inf, %v3088_v59  ;;  %v2293_v17 = vsel %vm1161_vm13, 1.0, %v3875_v19  ;;  %2696 = vmatprep.subr.bf16.mxu0 %v2994_v29 }
 0x4a6   : > { %v1126_v2 = vadd.s32 %v1125_v11, %v1123_v58  ;;  %v1141_v30 = vadd.s32 %v1140_v55, %v1138_v49  ;;  %2543 = vmatmul.mubr.msk.f32.gmra.mrb[10].mxu0 %vm422_vm3, %v2292_v15  ;;  %v1375_v1 = vsel %vm422_vm3, %v3296_v47, -inf  ;;  %v1378_v31 = vsel %vm422_vm3, %v3299_v50, -inf }
 0x4a7   : > { %1376 = vmax.xlane.f32.xlu1 %v1375_v1  ;;  %v1152_v40 = vpop.xlane.xlu1 %1151  ;;  %1379 = vmax.xlane.f32.xlu0 %v1378_v31  ;;  %v1155_v53 = vshll.u32 %v1154_v18, 16 }
 0x4a8   : > { %v1153_v59 = vcvt.f32.s32 %v1152_v40  ;;  %2545 = vmatprep.mubr.msk.f32.mxu0 %vm422_vm3, %v2293_v17  ;;  %vm1162_vm14 = vcmp.eq.s32.totalorder %v2826_v16, %v1126_v2  ;;  %vm1163_vm15 = vcmp.eq.s32.totalorder %v2826_v16, %v1141_v30  ;;  %2698 = vmatpush3.bf16.msra.mxu0 %v2994_v29 }
 0x4a9   : > { %v2294_v33 = vsel %vm1162_vm14, 1.0, %v3875_v19  ;;  %v3314_v23 = vsel %vm1162_vm14, -inf, %v3103_v56  ;;  %v3317_v22 = vsel %vm1163_vm15, -inf, %v3106_v57  ;;  %v2295_v54 = vsel %vm1163_vm15, 1.0, %v3875_v19  ;;  %2700 = vmatprep.subr.bf16.mxu0 %v3024_v39 }
 0x4aa   : > { %v1156_v45 = vadd.s32 %v1155_v53, %v1153_v59  ;;  %2546 = vmatmul.mubr.msk.f32.gmra.mrb[12].mxu0 %vm422_vm3, %v2294_v33  ;;  %v1381_v35 = vsel %vm422_vm3, %v3314_v23, -inf  ;;  %v1384_v29 = vsel %vm422_vm3, %v3317_v22, -inf }
 0x4ab   : > { %1382 = vmax.xlane.f32.xlu1 %v1381_v35  ;;  %1385 = vmax.xlane.f32.xlu0 %v1384_v29 }
 0x4ac   : > { %2548 = vmatprep.mubr.msk.f32.mxu0 %vm422_vm3, %v2295_v54  ;;  %vm1164_vm1 = vcmp.eq.s32.totalorder %v2826_v16, %v1156_v45  ;;  %2702 = vmatpush3.bf16.msra.mxu0 %v3024_v39 }
 0x4ad   : > { %v2296_v56 = vsel %vm1164_vm1, 1.0, %v3875_v19  ;;  %v3331_v57 = vsel %vm1164_vm1, -inf, %v3120_v13  ;;  %2704 = vmatprep.subr.bf16.mxu0 %v3016_v37 }
 0x4ae   : > { %2549 = vmatmul.mubr.msk.f32.gmra.mrb[14].mxu0 %vm422_vm3, %v2296_v56  ;;  %v1387_v5 = vsel %vm422_vm3, %v3331_v57, -inf }
 0x4af   : > { %1388 = vmax.xlane.f32.xlu1 %v1387_v5 }
 0x4b0   : > { %2706 = vmatpush3.bf16.msra.mxu0 %v3016_v37 }
 0x52c   : > { %v1368_v38 = vpop.xlane.xlu0 %1367 }
 0x52d   : > { %vm1390_vm2 = vcmp.eq.f32.partialorder %v3269_v60, %v1368_v38 }
 0x52e   : > { %v1398_v39 = vsel %vm1390_vm2, %v2826_v16, 64 }
 0x52f   : > { %v3341_v24 = vsel %vm422_vm3, %v1398_v39, 2147483647 }
 0x530   : > { %v1371_v13 = vpop.xlane.xlu1 %1370  ;;  %v1374_v41 = vpop.xlane.xlu0 %1373  ;;  %v1408_v46 = vshra.s32 %v3341_v24, 16 }
 0x531   : > { %vm1391_vm4 = vcmp.eq.f32.partialorder %v3278_v0, %v1371_v13  ;;  %vm1392_vm5 = vcmp.eq.f32.partialorder %v3281_v43, %v1374_v41 }
 0x532   : > { %v1399_v10 = vsel %vm1391_vm4, %v2826_v16, 64  ;;  %v1400_v37 = vsel %vm1392_vm5, %v2826_v16, 64  ;;  %v3348_v21 = vcvt.s32.f32 %v1408_v46 }
 0x533   : > { %v3351_v32 = vsel %vm422_vm3, %v1399_v10, 2147483647  ;;  %v3354_v52 = vsel %vm422_vm3, %v1400_v37, 2147483647  ;;  %v3413_v37 = vld [vmem:[%s3871_s3] ss:$0 sm:$0xff] }
 0x534   : > { %v1377_v11 = vpop.xlane.xlu1 %1376  ;;  %1411 = vmin.xlane.f32.xlu0 %v3348_v21  ;;  %v1380_v55 = vpop.xlane.xlu0 %1379  ;;  %v1423_v18 = vshra.s32 %v3351_v32, 16  ;;  %v1438_v14 = vshra.s32 %v3354_v52, 16 }
 0x535   : > { %vm1393_vm6 = vcmp.eq.f32.partialorder %v3296_v47, %v1377_v11  ;;  %vm1394_vm7 = vcmp.eq.f32.partialorder %v3299_v50, %v1380_v55  ;;  %v944_v11 = vmul.f32 %v3413_v37, %v3224_v62  ;;  %v943_v55 = vmul.f32 %v3413_v37, %v3227_v34 }
 0x536   : > { %v1401_v20 = vsel %vm1393_vm6, %v2826_v16, 64  ;;  %v1402_v58 = vsel %vm1394_vm7, %v2826_v16, 64  ;;  %v3363_v49 = vcvt.s32.f32 %v1423_v18  ;;  %v3365_v15 = vcvt.s32.f32 %v1438_v14  ;;  %v3422_v18 = vld [vmem:[%s3872_s4] ss:$0 sm:$0xff] }
 0x537   : > { %v3368_v17 = vsel %vm422_vm3, %v1401_v20, 2147483647  ;;  %v3371_v2 = vsel %vm422_vm3, %v1402_v58, 2147483647  ;;  %v946_v14 = vmul.f32 %v3413_v37, %v3230_v7  ;;  %v945_v20 = vmul.f32 %v3413_v37, %v3233_v25 }
 0x538   : > { %1426 = vmin.xlane.f32.xlu1 %v3363_v49  ;;  %v1383_v30 = vpop.xlane.xlu1 %1382  ;;  %1441 = vmin.xlane.f32.xlu0 %v3365_v15  ;;  %v1386_v1 = vpop.xlane.xlu0 %1385  ;;  %v1453_v31 = vshra.s32 %v3368_v17, 16  ;;  %v1468_v40 = vshra.s32 %v3371_v2, 16  ;;  %v958_v58 = vadd.f32 %v3422_v18, %v944_v11  ;;  %v948_v34 = vmul.f32 %v3413_v37, %v3236_v3 }
 0x539   : > { %vm1395_vm8 = vcmp.eq.f32.partialorder %v3314_v23, %v1383_v30  ;;  %vm1396_vm9 = vcmp.eq.f32.partialorder %v3317_v22, %v1386_v1  ;;  %v957_v30 = vadd.f32 %v3422_v18, %v943_v55  ;;  %v960_v62 = vadd.f32 %v3422_v18, %v946_v14 }
 0x53a   : > { %v1403_v53 = vsel %vm1395_vm8, %v2826_v16, 64  ;;  %v1404_v59 = vsel %vm1396_vm9, %v2826_v16, 64  ;;  %v3381_v33 = vcvt.s32.f32 %v1453_v31  ;;  %v3383_v54 = vcvt.s32.f32 %v1468_v40 }
 0x53b   : > { %v3386_v45 = vsel %vm422_vm3, %v1403_v53, 2147483647  ;;  %v3389_v35 = vsel %vm422_vm3, %v1404_v59, 2147483647  ;;  %v959_v1 = vadd.f32 %v3422_v18, %v945_v20  ;;  %v947_v31 = vmul.f32 %v3413_v37, %v3239_v48 }
 0x53c   : > { %1456 = vmin.xlane.f32.xlu1 %v3381_v33  ;;  %v1389_v29 = vpop.xlane.xlu1 %1388  ;;  %1471 = vmin.xlane.f32.xlu0 %v3383_v54  ;;  %v1483_v56 = vshra.s32 %v3386_v45, 16  ;;  %v1498_v5 = vshra.s32 %v3389_v35, 16  ;;  %vm966_vm11 = vcmp.ge.f32.partialorder %v958_v58, 0.0  ;;  %v974_v40 = vmul.f32 0.2, %v958_v58 }
 0x53d   : > { %vm1397_vm10 = vcmp.eq.f32.partialorder %v3331_v57, %v1389_v29  ;;  %v973_v7 = vmul.f32 0.2, %v957_v30  ;;  %vm965_vm12 = vcmp.ge.f32.partialorder %v957_v30, 0.0  ;;  %v976_v53 = vmul.f32 0.2, %v960_v62 }
 0x53e   : > { %v1405_v38 = vsel %vm1397_vm10, %v2826_v16, 64  ;;  %v3397_v39 = vcvt.s32.f32 %v1483_v56  ;;  %v3399_v13 = vcvt.s32.f32 %v1498_v5  ;;  %v975_v25 = vmul.f32 0.2, %v959_v1 }
 0x53f   : > { %v3402_v41 = vsel %vm422_vm3, %v1405_v38, 2147483647  ;;  %vm968_vm13 = vcmp.ge.f32.partialorder %v960_v62, 0.0  ;;  %vm967_vm14 = vcmp.ge.f32.partialorder %v959_v1, 0.0  ;;  %v962_v29 = vadd.f32 %v3422_v18, %v948_v34 }
 0x540   : > { %1486 = vmin.xlane.f32.xlu1 %v3397_v39  ;;  %1501 = vmin.xlane.f32.xlu0 %v3399_v13  ;;  %v1513_v46 = vshra.s32 %v3402_v41, 16  ;;  %v961_v38 = vadd.f32 %v3422_v18, %v947_v31  ;;  %v3444_v14 = vsel %vm967_vm14, %v959_v1, %v975_v25  ;;  %v3447_v20 = vsel %vm965_vm12, %v957_v30, %v973_v7 }
 0x541   : > { %v3449_v34 = vsel %vm968_vm13, %v960_v62, %v976_v53  ;;  %vm970_vm15 = vcmp.ge.f32.partialorder %v962_v29, 0.0  ;;  %v950_v31 = vmul.f32 %v3413_v37, %v3242_v51  ;;  %v949_v7 = vmul.f32 %v3413_v37, %v3245_v36 }
 0x542   : > { %v3407_v10 = vcvt.s32.f32 %v1513_v46  ;;  %v3441_v46 = vsel %vm966_vm11, %v958_v58, %v974_v40  ;;  %v978_v40 = vmul.f32 0.2, %v962_v29  ;;  %vm969_vm1 = vcmp.ge.f32.partialorder %v961_v38, 0.0 }
 0x543   : > { %v977_v25 = vmul.f32 0.2, %v961_v38 }
 0x544   : > { %1516 = vmin.xlane.f32.xlu1 %v3407_v10 }
 0x575   : > { %v2541_v59 = vpop.f32.mrb[8].mxu0 }
 0x576   : > { %v1277_v56 = vadd.f32 %v2541_v59, %v3137_v44  ;;  %v1271_v5 = vpop.f32.mrb[9].mxu0 }
 0x577   : > { %v1272_v3 = vadd.f32 %v1271_v5, %v3131_v61 }
 0x578   : > { %v1311_v48 = vmul.f32 %v3413_v37, %v1277_v56 }
 0x579   : > { %v1310_v11 = vmul.f32 %v3413_v37, %v1272_v3  ;;  %v2544_v55 = vpop.f32.mrb[10].mxu0 }
 0x57a   : > { %v1319_v59 = vadd.f32 %v3422_v18, %v1311_v48  ;;  %v1287_v56 = vadd.f32 %v2544_v55, %v3134_v63  ;;  %v1281_v58 = vpop.f32.mrb[11].mxu0  ;;  %v964_v48 = vadd.f32 %v3422_v18, %v950_v31 }
 0x57b   : > { %v1318_v5 = vadd.f32 %v3422_v18, %v1310_v11  ;;  %v1282_v1 = vadd.f32 %v1281_v58, %v3128_v42 }
 0x57c   : > { %vm1327_vm2 = vcmp.ge.f32.partialorder %v1319_v59, 0.0  ;;  %v1335_v30 = vmul.f32 0.2, %v1319_v59  ;;  %v1313_v62 = vmul.f32 %v3413_v37, %v1287_v56  ;;  %vm972_vm9 = vcmp.ge.f32.partialorder %v964_v48, 0.0 }
 0x57d   : > { %vm1326_vm4 = vcmp.ge.f32.partialorder %v1318_v5, 0.0  ;;  %v1334_v51 = vmul.f32 0.2, %v1318_v5  ;;  %v1312_v53 = vmul.f32 %v3413_v37, %v1282_v1  ;;  %v2547_v3 = vpop.f32.mrb[12].mxu0 }
 0x57e   : > { %v1321_v55 = vadd.f32 %v3422_v18, %v1313_v62  ;;  %v1297_v11 = vadd.f32 %v2547_v3, %v3149_v28  ;;  %v1291_v58 = vpop.f32.mrb[13].mxu0  ;;  %v3464_v19 = vsel %vm1327_vm2, %v1319_v59, %v1335_v30 }
 0x57f   : > { %v1320_v12 = vadd.f32 %v3422_v18, %v1312_v53  ;;  %v1292_v56 = vadd.f32 %v1291_v58, %v3143_v26  ;;  %v3468_v9 = vsel %vm1326_vm4, %v1318_v5, %v1334_v51  ;;  %v3477_v53 = vsel %vm970_vm15, %v962_v29, %v978_v40 }
 0x580   : > { %3887 = vst [vmem:[#allocation5_spill] sm:$0xff] %v3468_v9  ;;  %vm1329_vm5 = vcmp.ge.f32.partialorder %v1321_v55, 0.0  ;;  %v1337_v1 = vmul.f32 0.2, %v1321_v55  ;;  %v1315_v31 = vmul.f32 %v3413_v37, %v1297_v11  ;;  %v963_v5 = vadd.f32 %v3422_v18, %v949_v7 }
 0x581   : > { %vm1328_vm6 = vcmp.ge.f32.partialorder %v1320_v12, 0.0  ;;  %v1336_v3 = vmul.f32 0.2, %v1320_v12  ;;  %v1314_v59 = vmul.f32 %v3413_v37, %v1292_v56  ;;  %v2550_v30 = vpop.f32.mrb[14].mxu0 }
 0x582   : > { %v1323_v51 = vadd.f32 %v3422_v18, %v1315_v31  ;;  %v1307_v58 = vadd.f32 %v2550_v30, %v3146_v27  ;;  %v1301_v36 = vpop.f32.mrb[15].mxu0  ;;  %v3482_v6 = vsel %vm1329_vm5, %v1321_v55, %v1337_v1  ;;  %v3495_v1 = vsel %vm969_vm1, %v961_v38, %v977_v25 }
 0x583   : > { %v1322_v11 = vadd.f32 %v3422_v18, %v1314_v59  ;;  %v1302_v62 = vadd.f32 %v1301_v36, %v3140_v8  ;;  %v3486_v9 = vsel %vm1328_vm6, %v1320_v12, %v1336_v3  ;;  %v980_v12 = vmul.f32 0.2, %v964_v48 }
 0x584   : > { %vm1331_vm7 = vcmp.ge.f32.partialorder %v1323_v51, 0.0  ;;  %v1339_v29 = vmul.f32 0.2, %v1323_v51  ;;  %v1317_v40 = vmul.f32 %v3413_v37, %v1307_v58  ;;  %v979_v59 = vmul.f32 0.2, %v963_v5 }
 0x585   : > { %vm1330_vm8 = vcmp.ge.f32.partialorder %v1322_v11, 0.0  ;;  %v1338_v31 = vmul.f32 0.2, %v1322_v11  ;;  %v1316_v55 = vmul.f32 %v3413_v37, %v1302_v62  ;;  %vm971_vm10 = vcmp.ge.f32.partialorder %v963_v5, 0.0 }
 0x586   : > { %v1325_v36 = vadd.f32 %v3422_v18, %v1317_v40  ;;  %v3498_v3 = vsel %vm1331_vm7, %v1323_v51, %v1339_v29  ;;  %v3507_v56 = vsel %vm972_vm9, %v964_v48, %v980_v12  ;;  %v3511_v29 = vsel %vm971_vm10, %v963_v5, %v979_v59 }
 0x587   : > { %v1324_v30 = vadd.f32 %v3422_v18, %v1316_v55  ;;  %v3501_v58 = vsel %vm1330_vm8, %v1322_v11, %v1338_v31  ;;  %v1407_v55 = vand.u32 65535, %v3341_v24  ;;  %v1437_v48 = vand.u32 65535, %v3354_v52 }
 0x588   : > { %3888 = vst [vmem:[#allocation6_spill] sm:$0xff] %v3501_v58  ;;  %vm1333_vm11 = vcmp.ge.f32.partialorder %v1325_v36, 0.0  ;;  %v1341_v62 = vmul.f32 0.2, %v1325_v36  ;;  %v1422_v58 = vand.u32 65535, %v3351_v32 }
 0x589   : > { %vm1332_vm12 = vcmp.ge.f32.partialorder %v1324_v30, 0.0  ;;  %v1340_v25 = vmul.f32 0.2, %v1324_v30  ;;  %v1409_v38 = vcvt.s32.f32 %v1407_v55 }
 0x58a   : > { %v3509_v51 = vsel %vm1333_vm11, %v1325_v36, %v1341_v62  ;;  %v1424_v59 = vcvt.s32.f32 %v1422_v58  ;;  %v1452_v62 = vand.u32 65535, %v3368_v17  ;;  %v1497_v58 = vand.u32 65535, %v3389_v35 }
 0x58b   : > { %v3513_v40 = vsel %vm1332_vm12, %v1324_v30, %v1340_v25  ;;  %v1357_v11 = vmax.f32 %v3507_v56, %v3509_v51  ;;  %v1439_v30 = vcvt.s32.f32 %v1437_v48  ;;  %v1467_v25 = vand.u32 65535, %v3371_v2 }
 0x58c   : > { %v1356_v31 = vmax.f32 %v3511_v29, %v3513_v40 }
 0x58d   : > { %v1469_v55 = vcvt.s32.f32 %v1467_v25 }
 0x5c1   : > { %v1412_v7 = vpop.xlane.xlu0 %1411 }
 0x5c2   : > { %vm1413_vm13 = vcmp.eq.f32.partialorder %v3348_v21, %v1412_v7  ;;  %v1418_v25 = vcvt.f32.s32 %v1412_v7 }
 0x5c3   : > { %v1414_v5 = vsel %vm1413_vm13, %v1409_v38, inf  ;;  %v1454_v38 = vcvt.s32.f32 %v1452_v62 }
 0x5c4   : > { %1415 = vmin.xlane.f32.xlu0 %v1414_v5  ;;  %v1482_v5 = vand.u32 65535, %v3386_v45 }
 0x5c5   : > { %v1427_v12 = vpop.xlane.xlu1 %1426  ;;  %v1442_v36 = vpop.xlane.xlu0 %1441 }
 0x5c6   : > { %vm1428_vm14 = vcmp.eq.f32.partialorder %v3363_v49, %v1427_v12  ;;  %vm1443_vm15 = vcmp.eq.f32.partialorder %v3365_v15, %v1442_v36  ;;  %v1484_v48 = vcvt.s32.f32 %v1482_v5 }
 0x5c7   : > { %v1429_v24 = vsel %vm1428_vm14, %v1424_v59, inf  ;;  %v1444_v32 = vsel %vm1443_vm15, %v1439_v30, inf  ;;  %v1499_v59 = vcvt.s32.f32 %v1497_v58  ;;  %v1512_v30 = vand.u32 65535, %v3402_v41 }
 0x5c8   : > { %1430 = vmin.xlane.f32.xlu1 %v1429_v24  ;;  %1445 = vmin.xlane.f32.xlu0 %v1444_v32  ;;  %v1433_v24 = vcvt.f32.s32 %v1427_v12  ;;  %v1419_v41 = vshll.u32 %v1418_v25, 16 }
 0x5c9   : > { %v1457_v52 = vpop.xlane.xlu1 %1456  ;;  %v1472_v21 = vpop.xlane.xlu0 %1471 }
 0x5ca   : > { %vm1458_vm1 = vcmp.eq.f32.partialorder %v3381_v33, %v1457_v52  ;;  %vm1473_vm2 = vcmp.eq.f32.partialorder %v3383_v54, %v1472_v21  ;;  %v1514_v54 = vcvt.s32.f32 %v1512_v30  ;;  %v1463_v5 = vcvt.f32.s32 %v1457_v52 }
 0x5cb   : > { %v1459_v17 = vsel %vm1458_vm1, %v1454_v38, inf  ;;  %v1474_v49 = vsel %vm1473_vm2, %v1469_v55, inf  ;;  %v1448_v38 = vcvt.f32.s32 %v1442_v36  ;;  %v1478_v58 = vcvt.f32.s32 %v1472_v21 }
 0x5cc   : > { %1460 = vmin.xlane.f32.xlu1 %v1459_v17  ;;  %1475 = vmin.xlane.f32.xlu0 %v1474_v49  ;;  %v1464_v52 = vshll.u32 %v1463_v5, 16 }
 0x5cd   : > { %v1487_v15 = vpop.xlane.xlu1 %1486  ;;  %v1502_v2 = vpop.xlane.xlu0 %1501  ;;  %v1479_v21 = vshll.u32 %v1478_v58, 16 }
 0x5ce   : > { %vm1488_vm4 = vcmp.eq.f32.partialorder %v3397_v39, %v1487_v15  ;;  %vm1503_vm5 = vcmp.eq.f32.partialorder %v3399_v13, %v1502_v2  ;;  %v1434_v13 = vshll.u32 %v1433_v24, 16 }
 0x5cf   : > { %v1489_v45 = vsel %vm1488_vm4, %v1484_v48, inf  ;;  %v1504_v35 = vsel %vm1503_vm5, %v1499_v59, inf  ;;  %v1449_v48 = vshll.u32 %v1448_v38, 16 }
 0x5d0   : > { %1490 = vmin.xlane.f32.xlu1 %v1489_v45  ;;  %1505 = vmin.xlane.f32.xlu0 %v1504_v35 }
 0x5d1   : > { %v3534_v33 = vpop.xlane.xlu1 %1516 }
 0x5d2   : > { %vm1518_vm6 = vcmp.eq.f32.partialorder %v3407_v10, %v3534_v33  ;;  %v3889_v10 = vmov 0.0  }
 0x5d3   : > { %v1519_v62 = vsel %vm1518_vm6, %v1514_v54, inf  ;;  %v1493_v54 = vcvt.f32.s32 %v1487_v15 }
 0x5d4   : > { %1520 = vmin.xlane.f32.xlu1 %v1519_v62  ;;  %v1508_v62 = vcvt.f32.s32 %v1502_v2 }
 0x5d5   : > { %v1494_v58 = vshll.u32 %v1493_v54, 16 }
 0x651   : > { %v1416_v32 = vpop.xlane.xlu0 %1415 }
 0x652   : > { %v1417_v39 = vcvt.f32.s32 %v1416_v32 }
 0x654   : > { %v1420_v55 = vadd.s32 %v1419_v41, %v1417_v39 }
 0x655   : > { %v1431_v17 = vpop.xlane.xlu1 %1430  ;;  %v1446_v49 = vpop.xlane.xlu0 %1445 }
 0x656   : > { %v1432_v59 = vcvt.f32.s32 %v1431_v17  ;;  %v1447_v30 = vcvt.f32.s32 %v1446_v49  ;;  %vm1526_vm7 = vcmp.eq.s32.totalorder %v2826_v16, %v1420_v55  ;;  %v1509_v17 = vshll.u32 %v1508_v62, 16 }
 0x657   : > { %v2305_v45 = vsel %vm1526_vm7, 1.0, %v3889_v10  ;;  %v3541_v7 = vsel %vm1526_vm7, -inf, %v3269_v60 }
 0x658   : > { %v1435_v12 = vadd.s32 %v1434_v13, %v1432_v59  ;;  %v1450_v35 = vadd.s32 %v1449_v48, %v1447_v30  ;;  %2567 = vmatprep.mubr.msk.f32.mxu1 %vm422_vm3, %v2305_v45  ;;  %v1735_v36 = vsel %vm422_vm3, %v3541_v7, -inf }
 0x659   : > { %v1461_v25 = vpop.xlane.xlu1 %1460  ;;  %1736 = vmax.xlane.f32.xlu0 %v1735_v36  ;;  %v1476_v24 = vpop.xlane.xlu0 %1475 }
 0x65a   : > { %vm1527_vm8 = vcmp.eq.s32.totalorder %v2826_v16, %v1435_v12  ;;  %v1462_v32 = vcvt.f32.s32 %v1461_v25  ;;  %v1477_v41 = vcvt.f32.s32 %v1476_v24  ;;  %vm1528_vm9 = vcmp.eq.s32.totalorder %v2826_v16, %v1450_v35 }
 0x65b   : > { %v2306_v60 = vsel %vm1527_vm8, 1.0, %v3889_v10  ;;  %v3550_v38 = vsel %vm1527_vm8, -inf, %v3278_v0  ;;  %v3553_v39 = vsel %vm1528_vm9, -inf, %v3281_v43  ;;  %v2307_v15 = vsel %vm1528_vm9, 1.0, %v3889_v10 }
 0x65c   : > { %v1465_v2 = vadd.s32 %v1464_v52, %v1462_v32  ;;  %v1480_v55 = vadd.s32 %v1479_v21, %v1477_v41  ;;  %2568 = vmatmul.mubr.msk.f32.vlgmr.msra.gmra.mrb[24].mxu1 %vm422_vm3, %v2306_v60  ;;  %v1738_v13 = vsel %vm422_vm3, %v3550_v38, -inf  ;;  %v1741_v5 = vsel %vm422_vm3, %v3553_v39, -inf }
 0x65d   : > { %v1523_v0 = vcvt.f32.s32 %v3534_v33  ;;  %1739 = vmax.xlane.f32.xlu1 %v1738_v13  ;;  %v1491_v49 = vpop.xlane.xlu1 %1490  ;;  %1742 = vmax.xlane.f32.xlu0 %v1741_v5  ;;  %v1506_v43 = vpop.xlane.xlu0 %1505 }
 0x65e   : > { %v1492_v48 = vcvt.f32.s32 %v1491_v49  ;;  %2570 = vmatprep.mubr.msk.f32.mxu1 %vm422_vm3, %v2307_v15  ;;  %v1507_v59 = vcvt.f32.s32 %v1506_v43  ;;  %vm1529_vm10 = vcmp.eq.s32.totalorder %v2826_v16, %v1465_v2  ;;  %vm1530_vm11 = vcmp.eq.s32.totalorder %v2826_v16, %v1480_v55 }
 0x65f   : > { %v2308_v30 = vsel %vm1529_vm10, 1.0, %v3889_v10  ;;  %v1730_v45 = vsel %vm1529_vm10, -inf, %v3296_v47  ;;  %v1731_v12 = vsel %vm1530_vm11, -inf, %v3299_v50  ;;  %v2309_v33 = vsel %vm1530_vm11, 1.0, %v3889_v10 }
 0x660   : > { %v1495_v35 = vadd.s32 %v1494_v58, %v1492_v48  ;;  %v1510_v36 = vadd.s32 %v1509_v17, %v1507_v59  ;;  %2571 = vmatmul.mubr.msk.f32.gmra.mrb[26].mxu1 %vm422_vm3, %v2308_v30  ;;  %v1744_v52 = vsel %vm422_vm3, %v1730_v45, -inf  ;;  %v1747_v21 = vsel %vm422_vm3, %v1731_v12, -inf }
 0x661   : > { %1745 = vmax.xlane.f32.xlu1 %v1744_v52  ;;  %v1521_v54 = vpop.xlane.xlu1 %1520  ;;  %1748 = vmax.xlane.f32.xlu0 %v1747_v21  ;;  %v1524_v62 = vshll.u32 %v1523_v0, 16 }
 0x662   : > { %v1522_v25 = vcvt.f32.s32 %v1521_v54  ;;  %2573 = vmatprep.mubr.msk.f32.mxu1 %vm422_vm3, %v2309_v33  ;;  %vm1531_vm12 = vcmp.eq.s32.totalorder %v2826_v16, %v1495_v35  ;;  %vm1532_vm13 = vcmp.eq.s32.totalorder %v2826_v16, %v1510_v36 }
 0x663   : > { %v2310_v47 = vsel %vm1531_vm12, 1.0, %v3889_v10  ;;  %v1732_v50 = vsel %vm1531_vm12, -inf, %v3314_v23  ;;  %v1733_v24 = vsel %vm1532_vm13, -inf, %v3317_v22  ;;  %v2311_v32 = vsel %vm1532_vm13, 1.0, %v3889_v10 }
 0x664   : > { %v1525_v41 = vadd.s32 %v1524_v62, %v1522_v25  ;;  %2574 = vmatmul.mubr.msk.f32.gmra.mrb[28].mxu1 %vm422_vm3, %v2310_v47  ;;  %v1750_v60 = vsel %vm422_vm3, %v1732_v50, -inf  ;;  %v1753_v15 = vsel %vm422_vm3, %v1733_v24, -inf }
 0x665   : > { %1751 = vmax.xlane.f32.xlu1 %v1750_v60  ;;  %1754 = vmax.xlane.f32.xlu0 %v1753_v15 }
 0x666   : > { %2576 = vmatprep.mubr.msk.f32.mxu1 %vm422_vm3, %v2311_v32  ;;  %vm1533_vm14 = vcmp.eq.s32.totalorder %v2826_v16, %v1525_v41 }
 0x667   : > { %v2312_v2 = vsel %vm1533_vm14, 1.0, %v3889_v10  ;;  %v1734_v23 = vsel %vm1533_vm14, -inf, %v3331_v57 }
 0x668   : > { %2577 = vmatmul.mubr.msk.f32.gmra.mrb[30].mxu1 %vm422_vm3, %v2312_v2  ;;  %v1756_v22 = vsel %vm422_vm3, %v1734_v23, -inf }
 0x669   : > { %1757 = vmax.xlane.f32.xlu1 %v1756_v22  ;;  %2611 = vmatprep.mubr.msk.bf16.mxu1 %vm265_vm0, %v2784_v4 }
 0x6e6   : > { %v1737_v55 = vpop.xlane.xlu0 %1736 }
 0x6e7   : > { %vm1759_vm15 = vcmp.eq.f32.partialorder %v3541_v7, %v1737_v55 }
 0x6e8   : > { %v1767_v13 = vsel %vm1759_vm15, %v2826_v16, 64 }
 0x6e9   : > { %v3593_v5 = vsel %vm422_vm3, %v1767_v13, 2147483647 }
 0x6ea   : > { %v1740_v58 = vpop.xlane.xlu1 %1739  ;;  %v1743_v17 = vpop.xlane.xlu0 %1742  ;;  %v1777_v57 = vshra.s32 %v3593_v5, 16 }
 0x6eb   : > { %vm1760_vm1 = vcmp.eq.f32.partialorder %v3550_v38, %v1740_v58  ;;  %vm1761_vm2 = vcmp.eq.f32.partialorder %v3553_v39, %v1743_v17 }
 0x6ec   : > { %v1768_v0 = vsel %vm1760_vm1, %v2826_v16, 64  ;;  %v1769_v4 = vsel %vm1761_vm2, %v2826_v16, 64  ;;  %v3600_v49 = vcvt.s32.f32 %v1777_v57 }
 0x6ed   : > { %v3603_v7 = vsel %vm422_vm3, %v1768_v0, 2147483647  ;;  %v3606_v43 = vsel %vm422_vm3, %v1769_v4, 2147483647 }
 0x6ee   : > { %v1746_v48 = vpop.xlane.xlu1 %1745  ;;  %1780 = vmin.xlane.f32.xlu0 %v3600_v49  ;;  %v1749_v59 = vpop.xlane.xlu0 %1748  ;;  %v1792_v38 = vshra.s32 %v3603_v7, 16  ;;  %v1807_v39 = vshra.s32 %v3606_v43, 16 }
 0x6ef   : > { %vm1762_vm4 = vcmp.eq.f32.partialorder %v1730_v45, %v1746_v48  ;;  %vm1763_vm5 = vcmp.eq.f32.partialorder %v1731_v12, %v1749_v59 }
 0x6f0   : > { %v1770_v30 = vsel %vm1762_vm4, %v2826_v16, 64  ;;  %v1771_v33 = vsel %vm1763_vm5, %v2826_v16, 64  ;;  %v3613_v35 = vcvt.s32.f32 %v1792_v38  ;;  %v3615_v36 = vcvt.s32.f32 %v1807_v39 }
 0x6f1   : > { %v3618_v52 = vsel %vm422_vm3, %v1770_v30, 2147483647  ;;  %v3621_v21 = vsel %vm422_vm3, %v1771_v33, 2147483647 }
 0x6f2   : > { %1795 = vmin.xlane.f32.xlu1 %v3613_v35  ;;  %v1752_v54 = vpop.xlane.xlu1 %1751  ;;  %1810 = vmin.xlane.f32.xlu0 %v3615_v36  ;;  %v1755_v45 = vpop.xlane.xlu0 %1754  ;;  %v1822_v12 = vshra.s32 %v3618_v52, 16  ;;  %v1837_v62 = vshra.s32 %v3621_v21, 16 }
 0x6f3   : > { %vm1764_vm6 = vcmp.eq.f32.partialorder %v1732_v50, %v1752_v54  ;;  %vm1765_vm7 = vcmp.eq.f32.partialorder %v1733_v24, %v1755_v45 }
 0x6f4   : > { %v1772_v25 = vsel %vm1764_vm6, %v2826_v16, 64  ;;  %v1773_v47 = vsel %vm1765_vm7, %v2826_v16, 64  ;;  %v3629_v32 = vcvt.s32.f32 %v1822_v12  ;;  %v3631_v41 = vcvt.s32.f32 %v1837_v62 }
 0x6f5   : > { %v3634_v60 = vsel %vm422_vm3, %v1772_v25, 2147483647  ;;  %v3637_v15 = vsel %vm422_vm3, %v1773_v47, 2147483647 }
 0x6f6   : > { %1825 = vmin.xlane.f32.xlu1 %v3629_v32  ;;  %v1758_v2 = vpop.xlane.xlu1 %1757  ;;  %1840 = vmin.xlane.f32.xlu0 %v3631_v41  ;;  %v1852_v50 = vshra.s32 %v3634_v60, 16  ;;  %v1867_v24 = vshra.s32 %v3637_v15, 16 }
 0x6f7   : > { %vm1766_vm8 = vcmp.eq.f32.partialorder %v1734_v23, %v1758_v2 }
 0x6f8   : > { %v1774_v22 = vsel %vm1766_vm8, %v2826_v16, 64  ;;  %v3644_v55 = vcvt.s32.f32 %v1852_v50  ;;  %v3646_v13 = vcvt.s32.f32 %v1867_v24 }
 0x6f9   : > { %v3649_v58 = vsel %vm422_vm3, %v1774_v22, 2147483647 }
 0x6fa   : > { %1855 = vmin.xlane.f32.xlu1 %v3644_v55  ;;  %1870 = vmin.xlane.f32.xlu0 %v3646_v13  ;;  %v1882_v17 = vshra.s32 %v3649_v58, 16 }
 0x6fc   : > { %v3654_v57 = vcvt.s32.f32 %v1882_v17 }
 0x6fe   : > { %1885 = vmin.xlane.f32.xlu1 %v3654_v57 }
 0x72f   : > { %v2569_v23 = vpop.f32.mrb[24].mxu1 }
 0x730   : > { %v1646_v0 = vadd.f32 %v2569_v23, %v3137_v44  ;;  %v1640_v4 = vpop.f32.mrb[25].mxu1 }
 0x731   : > { %v1641_v48 = vadd.f32 %v1640_v4, %v3131_v61 }
 0x732   : > { %v1680_v59 = vmul.f32 %v3413_v37, %v1646_v0 }
 0x733   : > { %v1679_v38 = vmul.f32 %v3413_v37, %v1641_v48  ;;  %v2572_v39 = vpop.f32.mrb[26].mxu1 }
 0x734   : > { %v1688_v30 = vadd.f32 %v3422_v18, %v1680_v59  ;;  %v1656_v33 = vadd.f32 %v2572_v39, %v3134_v63  ;;  %v1650_v54 = vpop.f32.mrb[27].mxu1  ;;  %v3890_v59 = vmax.f32 %v3441_v46, %v3464_v19 }
 0x735   : > { %v1687_v45 = vadd.f32 %v3422_v18, %v1679_v38  ;;  %v1651_v12 = vadd.f32 %v1650_v54, %v3128_v42  ;;  %v3891_v54 = vld [vmem:[#allocation5_spill] sm:$0xff] }
 0x736   : > { %v1704_v62 = vmul.f32 0.2, %v1688_v30  ;;  %v1682_v25 = vmul.f32 %v3413_v37, %v1656_v33  ;;  %vm1696_vm9 = vcmp.ge.f32.partialorder %v1688_v30, 0.0 }
 0x737   : > { %v1703_v47 = vmul.f32 0.2, %v1687_v45  ;;  %v1681_v2 = vmul.f32 %v3413_v37, %v1651_v12  ;;  %v2575_v50 = vpop.f32.mrb[28].mxu1  ;;  %vm1695_vm10 = vcmp.ge.f32.partialorder %v1687_v45, 0.0  ;;  %v3892_v12 = vmax.f32 %v3447_v20, %v3891_v54 }
 0x738   : > { %v1690_v24 = vadd.f32 %v3422_v18, %v1682_v25  ;;  %v1666_v22 = vadd.f32 %v2575_v50, %v3149_v28  ;;  %v1660_v17 = vpop.f32.mrb[29].mxu1  ;;  %v1712_v23 = vsel %vm1696_vm9, %v1688_v30, %v1704_v62  ;;  %v3893_v20 = vmax.f32 %v3449_v34, %v3482_v6 }
 0x739   : > { %v1689_v0 = vadd.f32 %v3422_v18, %v1681_v2  ;;  %v1661_v4 = vadd.f32 %v1660_v17, %v3143_v26  ;;  %v1711_v48 = vsel %vm1695_vm10, %v1687_v45, %v1703_v47  ;;  %v3674_v38 = vmax.f32 %v3890_v59, %v1712_v23 }
 0x73a   : > { %v1706_v39 = vmul.f32 0.2, %v1690_v24  ;;  %v1684_v33 = vmul.f32 %v3413_v37, %v1666_v22  ;;  %v3680_v25 = vmax.f32 %v3892_v12, %v1711_v48  ;;  %vm1698_vm11 = vcmp.ge.f32.partialorder %v1690_v24, 0.0 }
 0x73b   : > { %v1705_v30 = vmul.f32 0.2, %v1689_v0  ;;  %v1683_v62 = vmul.f32 %v3413_v37, %v1661_v4  ;;  %v2578_v2 = vpop.f32.mrb[30].mxu1  ;;  %vm1697_vm12 = vcmp.ge.f32.partialorder %v1689_v0, 0.0  ;;  %v3894_v59 = vmax.f32 %v3444_v14, %v3486_v9  ;;  %v3896_v9 = vld [vmem:[#allocation6_spill] sm:$0xff] }
 0x73c   : > { %v1692_v45 = vadd.f32 %v3422_v18, %v1684_v33  ;;  %v1676_v19 = vadd.f32 %v2578_v2, %v3146_v27  ;;  %v1670_v46 = vpop.f32.mrb[31].mxu1  ;;  %v1714_v47 = vsel %vm1698_vm11, %v1690_v24, %v1706_v39  ;;  %v3895_v12 = vmax.f32 %v3477_v53, %v3498_v3 }
 0x73d   : > { %v1691_v50 = vadd.f32 %v3422_v18, %v1683_v62  ;;  %v1671_v22 = vadd.f32 %v1670_v46, %v3140_v8  ;;  %v1713_v17 = vsel %vm1697_vm12, %v1689_v0, %v1705_v30  ;;  %v3690_v23 = vmax.f32 %v3893_v20, %v1714_v47 }
 0x73e   : > { %v1708_v48 = vmul.f32 0.2, %v1692_v45  ;;  %v1686_v4 = vmul.f32 %v3413_v37, %v1676_v19  ;;  %v3696_v33 = vmax.f32 %v3894_v59, %v1713_v17  ;;  %vm1700_vm13 = vcmp.ge.f32.partialorder %v1692_v45, 0.0 }
 0x73f   : > { %v1707_v24 = vmul.f32 0.2, %v1691_v50  ;;  %v1685_v39 = vmul.f32 %v3413_v37, %v1671_v22  ;;  %vm1699_vm14 = vcmp.ge.f32.partialorder %v1691_v50, 0.0  ;;  %v3897_v14 = vmax.f32 %v3495_v1, %v3896_v9  ;;  %v3899_v9 = vld [vmem:[#allocation3_spill] sm:$0xff] }
 0x740   : > { %v1694_v0 = vadd.f32 %v3422_v18, %v1686_v4  ;;  %v1716_v54 = vsel %vm1700_vm13, %v1692_v45, %v1708_v48  ;;  %v1776_v3 = vand.u32 65535, %v3593_v5  ;;  %v1791_v22 = vand.u32 65535, %v3603_v7 }
 0x741   : > { %v1693_v6 = vadd.f32 %v3422_v18, %v1685_v39  ;;  %v1715_v34 = vsel %vm1699_vm14, %v1691_v50, %v1707_v24  ;;  %v3704_v30 = vmax.f32 %v3895_v12, %v1716_v54  ;;  %v1806_v17 = vand.u32 65535, %v3606_v43 }
 0x742   : > { %v1710_v62 = vmul.f32 0.2, %v1694_v0  ;;  %v3709_v2 = vmax.f32 %v3897_v14, %v1715_v34  ;;  %vm1702_vm15 = vcmp.ge.f32.partialorder %v1694_v0, 0.0  ;;  %v1778_v50 = vcvt.s32.f32 %v1776_v3  ;;  %v2098_v34 = vld [vmem:[%s3873_s5 + $0x10] sm:$0xff] }
 0x743   : > { %v1709_v19 = vmul.f32 0.2, %v1693_v6  ;;  %vm1701_vm1 = vcmp.ge.f32.partialorder %v1693_v6, 0.0  ;;  %v1793_v29 = vcvt.s32.f32 %v1791_v22  ;;  %v1808_v40 = vcvt.s32.f32 %v1806_v17  ;;  %v3900_v14 = vld [vmem:[#allocation4_spill] sm:$0xff] }
 0x744   : > { %v1718_v46 = vsel %vm1702_vm15, %v1694_v0, %v1710_v62  ;;  %v1836_v5 = vand.u32 65535, %v3621_v21  ;;  %v1851_v59 = vand.u32 65535, %v3634_v60  ;;  %v1866_v24 = vand.u32 65535, %v3637_v15  ;;  %v3898_v62 = vld [vmem:[#allocation2_spill] sm:$0xff] }
 0x745   : > { %v1717_v47 = vsel %vm1701_vm1, %v1693_v6, %v1709_v19  ;;  %v3714_v45 = vmax.f32 %v1357_v11, %v1718_v46  ;;  %v1881_v54 = vand.u32 65535, %v3649_v58  ;;  %v2096_v58 = vld [vmem:[%s3873_s5] sm:$0xff] }
 0x746   : > { %v3719_v53 = vmax.f32 %v1356_v31, %v1717_v47  ;;  %v1821_v31 = vand.u32 65535, %v3618_v52  ;;  %v1838_v4 = vcvt.s32.f32 %v1836_v5  ;;  %v1853_v39 = vcvt.s32.f32 %v1851_v59 }
 0x747   : > { %v1868_v0 = vcvt.s32.f32 %v1866_v24  ;;  %v1883_v15 = vcvt.s32.f32 %v1881_v54 }
 0x748   : > { %v1823_v48 = vcvt.s32.f32 %v1821_v31 }
 0x77b   : > { %v3722_v1 = vpop.xlane.xlu0 %1780 }
 0x77c   : > { %vm1782_vm2 = vcmp.eq.f32.partialorder %v3600_v49, %v3722_v1  ;;  %v1787_v19 = vcvt.f32.s32 %v3722_v1 }
 0x77d   : > { %v1783_v56 = vsel %vm1782_vm2, %v1778_v50, inf }
 0x77e   : > { %1784 = vmin.xlane.f32.xlu0 %v1783_v56  ;;  %v1788_v3 = vshll.u32 %v1787_v19, 16 }
 0x77f   : > { %v1796_v51 = vpop.xlane.xlu1 %1795  ;;  %v3728_v11 = vpop.xlane.xlu0 %1810 }
 0x780   : > { %vm1797_vm4 = vcmp.eq.f32.partialorder %v3613_v35, %v1796_v51  ;;  %vm1812_vm5 = vcmp.eq.f32.partialorder %v3615_v36, %v3728_v11  ;;  %v1802_v46 = vcvt.f32.s32 %v1796_v51  ;;  %v1817_v50 = vcvt.f32.s32 %v3728_v11 }
 0x781   : > { %v1798_v7 = vsel %vm1797_vm4, %v1793_v29, inf  ;;  %v1813_v43 = vsel %vm1812_vm5, %v1808_v40, inf }
 0x782   : > { %1799 = vmin.xlane.f32.xlu1 %v1798_v7  ;;  %1814 = vmin.xlane.f32.xlu0 %v1813_v43  ;;  %v1803_v56 = vshll.u32 %v1802_v46, 16  ;;  %v1818_v7 = vshll.u32 %v1817_v50, 16 }
 0x783   : > { %v1826_v49 = vpop.xlane.xlu1 %1825  ;;  %v1841_v20 = vpop.xlane.xlu0 %1840 }
 0x784   : > { %vm1827_vm6 = vcmp.eq.f32.partialorder %v3629_v32, %v1826_v49  ;;  %vm1842_vm7 = vcmp.eq.f32.partialorder %v3631_v41, %v1841_v20  ;;  %v1832_v29 = vcvt.f32.s32 %v1826_v49  ;;  %v1847_v40 = vcvt.f32.s32 %v1841_v20 }
 0x785   : > { %v1828_v35 = vsel %vm1827_vm6, %v1823_v48, inf  ;;  %v1843_v52 = vsel %vm1842_vm7, %v1838_v4, inf }
 0x786   : > { %1829 = vmin.xlane.f32.xlu1 %v1828_v35  ;;  %1844 = vmin.xlane.f32.xlu0 %v1843_v52  ;;  %v1833_v59 = vshll.u32 %v1832_v29, 16  ;;  %v1848_v11 = vshll.u32 %v1847_v40, 16 }
 0x787   : > { %v3739_v36 = vpop.xlane.xlu1 %1855  ;;  %v3741_v21 = vpop.xlane.xlu0 %1870 }
 0x788   : > { %vm1857_vm8 = vcmp.eq.f32.partialorder %v3644_v55, %v3739_v36  ;;  %vm1872_vm9 = vcmp.eq.f32.partialorder %v3646_v13, %v3741_v21  ;;  %v2097_v55 = vld [vmem:[%s3873_s5 + $0x8] sm:$0xff]  ;;  %v1862_v24 = vcvt.f32.s32 %v3739_v36  ;;  %v1877_v49 = vcvt.f32.s32 %v3741_v21 }
 0x789   : > { %v1858_v32 = vsel %vm1857_vm8, %v1853_v39, inf  ;;  %v1873_v41 = vsel %vm1872_vm9, %v1868_v0, inf  ;;  %v2100_v13 = vpack.c.bf16 %v2097_v55, %v2096_v58 }
 0x78a   : > { %1859 = vmin.xlane.f32.xlu1 %v1858_v32  ;;  %1874 = vmin.xlane.f32.xlu0 %v1873_v41  ;;  %v1878_v36 = vshll.u32 %v1877_v49, 16 }
 0x78b   : > { %v3748_v60 = vpop.xlane.xlu1 %1885  ;;  %2607 = vmatprep.subr.bf16.mxu1 %v2100_v13 }
 0x78c   : > { %vm1887_vm10 = vcmp.eq.f32.partialorder %v3654_v57, %v3748_v60  ;;  %2608 = vmatpush3.bf16.msra.mxu1 %v2100_v13  ;;  %v2099_v57 = vld [vmem:[%s3873_s5 + $0x18] sm:$0xff]  ;;  %v1892_v21 = vcvt.f32.s32 %v3748_v60 }
 0x78d   : > { %v1888_v6 = vsel %vm1887_vm10, %v1883_v15, inf  ;;  %v2101_v12 = vpack.c.bf16 %v2099_v57, %v2098_v34  ;;  %v1863_v15 = vshll.u32 %v1862_v24, 16 }
 0x78e   : > { %1889 = vmin.xlane.f32.xlu1 %v1888_v6  ;;  %v1893_v60 = vshll.u32 %v1892_v21, 16 }
 0x78f   : > { %2609 = vmatprep.subr.bf16.mxu1 %v2101_v12 }
 0x790   : > { %2610 = vmatpush3.bf16.msra.mxu1 %v2101_v12 }
 0x793   : > { %2612 = vmatmul.mubr.msk.bf16.vlgmr.msra.gmra.mrb[32].mxu1 %vm265_vm0, %v3898_v62 }
 0x794   : > { %2615 = vmatprep.mubr.msk.bf16.mxu1 %vm265_vm0, %v3899_v9 }
 0x79b   : > { %2616 = vmatmul.mubr.msk.bf16.gmra.mrb[36].mxu1 %vm265_vm0, %v3900_v14 }
 0x80b   : > { %v1785_v47 = vpop.xlane.xlu0 %1784 }
 0x80c   : > { %v1786_v22 = vcvt.f32.s32 %v1785_v47 }
 0x80e   : > { %v1789_v17 = vadd.s32 %v1788_v3, %v1786_v22 }
 0x80f   : > { %v1800_v31 = vpop.xlane.xlu1 %1799  ;;  %v1815_v5 = vpop.xlane.xlu0 %1814 }
 0x810   : > { %v1801_v43 = vcvt.f32.s32 %v1800_v31  ;;  %v1816_v48 = vcvt.f32.s32 %v1815_v5  ;;  %vm1895_vm11 = vcmp.eq.s32.totalorder %v2826_v16, %v1789_v17 }
 0x811   : > { %v2321_v4 = vsel %vm1895_vm11, 1.0, %v3889_v10 }
 0x812   : > { %v1804_v1 = vadd.s32 %v1803_v56, %v1801_v43  ;;  %v1819_v51 = vadd.s32 %v1818_v7, %v1816_v48  ;;  %2595 = vmatprep.mubr.msk.f32.mxu0 %vm422_vm3, %v2321_v4 }
 0x813   : > { %v1830_v20 = vpop.xlane.xlu1 %1829  ;;  %v1845_v35 = vpop.xlane.xlu0 %1844 }
 0x814   : > { %vm1896_vm0 = vcmp.eq.s32.totalorder %v2826_v16, %v1804_v1  ;;  %v1831_v52 = vcvt.f32.s32 %v1830_v20  ;;  %v1846_v39 = vcvt.f32.s32 %v1845_v35  ;;  %vm1897_vm12 = vcmp.eq.s32.totalorder %v2826_v16, %v1819_v51 }
 0x815   : > { %v2322_v0 = vsel %vm1896_vm0, 1.0, %v3889_v10  ;;  %v2323_v54 = vsel %vm1897_vm12, 1.0, %v3889_v10 }
 0x816   : > { %v1834_v32 = vadd.s32 %v1833_v59, %v1831_v52  ;;  %v1849_v41 = vadd.s32 %v1848_v11, %v1846_v39  ;;  %2596 = vmatmul.mubr.msk.f32.vlgmr.msra.gmra.mrb[16].mxu0 %vm422_vm3, %v2322_v0  ;;  %v2716_v39 = vld [vmem:[%s3872_s4] ss:$0 sm:$0xff] }
 0x817   : > { %v1860_v6 = vpop.xlane.xlu1 %1859  ;;  %2598 = vmatprep.mubr.msk.f32.mxu0 %vm422_vm3, %v2323_v54  ;;  %v1875_v58 = vpop.xlane.xlu0 %1874 }
 0x818   : > { %v1861_v55 = vcvt.f32.s32 %v1860_v6  ;;  %v1876_v13 = vcvt.f32.s32 %v1875_v58  ;;  %vm1898_vm13 = vcmp.eq.s32.totalorder %v2826_v16, %v1834_v32  ;;  %vm1899_vm14 = vcmp.eq.s32.totalorder %v2826_v16, %v1849_v41 }
 0x819   : > { %v2324_v34 = vsel %vm1898_vm13, 1.0, %v3889_v10  ;;  %v2325_v57 = vsel %vm1899_vm14, 1.0, %v3889_v10 }
 0x81a   : > { %v1864_v12 = vadd.s32 %v1863_v15, %v1861_v55  ;;  %v1879_v62 = vadd.s32 %v1878_v36, %v1876_v13  ;;  %2599 = vmatmul.mubr.msk.f32.gmra.mrb[18].mxu0 %vm422_vm3, %v2324_v34 }
 0x81b   : > { %v1890_v9 = vpop.xlane.xlu1 %1889  ;;  %2601 = vmatprep.mubr.msk.f32.mxu0 %vm422_vm3, %v2325_v57 }
 0x81c   : > { %vm1901_vm15 = vcmp.eq.s32.totalorder %v2826_v16, %v1879_v62  ;;  %v1891_v14 = vcvt.f32.s32 %v1890_v9  ;;  %vm1900_vm1 = vcmp.eq.s32.totalorder %v2826_v16, %v1864_v12 }
 0x81d   : > { %v2326_v19 = vsel %vm1900_vm1, 1.0, %v3889_v10  ;;  %v2327_v46 = vsel %vm1901_vm15, 1.0, %v3889_v10 }
 0x81e   : > { %v1894_v47 = vadd.s32 %v1893_v60, %v1891_v14  ;;  %2602 = vmatmul.mubr.msk.f32.gmra.mrb[20].mxu0 %vm422_vm3, %v2326_v19 }
 0x81f   : > { %2604 = vmatprep.mubr.msk.f32.mxu0 %vm422_vm3, %v2327_v46 }
 0x820   : > { %vm1902_vm2 = vcmp.eq.s32.totalorder %v2826_v16, %v1894_v47 }
 0x821   : > { %v2328_v3 = vsel %vm1902_vm2, 1.0, %v3889_v10 }
 0x822   : > { %2605 = vmatmul.mubr.msk.f32.gmra.mrb[22].mxu0 %vm422_vm3, %v2328_v3 }
 0x866   : > { %v3799_v50 = vpop.f32.mrb[32].mxu1 }
 0x867   : > { %v2136_v22 = vpop.f32.mrb[33].mxu1 }
 0x868   : > { %v2614_v17 = vpop.f32.mrb[34].mxu1 }
 0x869   : > { %v2139_v56 = vpop.f32.mrb[35].mxu1 }
 0x86e   : > { %v3801_v29 = vpop.f32.mrb[36].mxu1 }
 0x86f   : > { %v3803_v40 = vpop.f32.mrb[37].mxu1 }
 0x870   : > { %v3805_v31 = vpop.f32.mrb[38].mxu1 }
 0x871   : > { %v3807_v5 = vpop.f32.mrb[39].mxu1 }
 0x8e9   : > { %v2597_v7 = vpop.f32.mrb[16].mxu0 }
 0x8ea   : > { %v2015_v16 = vadd.f32 %v2597_v7, %v3137_v44  ;;  %v2009_v43 = vpop.f32.mrb[17].mxu0 }
 0x8eb   : > { %v2010_v10 = vadd.f32 %v2009_v43, %v3131_v61 }
 0x8ec   : > { %v2049_v48 = vmul.f32 %v3413_v37, %v2015_v16 }
 0x8ed   : > { %v2048_v4 = vmul.f32 %v3413_v37, %v2010_v10  ;;  %v2600_v1 = vpop.f32.mrb[18].mxu0 }
 0x8ee   : > { %v2057_v51 = vadd.f32 %v3422_v18, %v2049_v48  ;;  %v2025_v59 = vadd.f32 %v2600_v1, %v3134_v63  ;;  %v2019_v11 = vpop.f32.mrb[19].mxu0 }
 0x8ef   : > { %v2056_v24 = vadd.f32 %v3422_v18, %v2048_v4  ;;  %v2020_v49 = vadd.f32 %v2019_v11, %v3128_v42 }
 0x8f0   : > { %v2051_v20 = vmul.f32 %v3413_v37, %v2025_v59  ;;  %vm2065_vm4 = vcmp.ge.f32.partialorder %v2057_v51, 0.0  ;;  %v2073_v44 = vmul.f32 0.2, %v2057_v51 }
 0x8f1   : > { %v2050_v61 = vmul.f32 %v3413_v37, %v2020_v49  ;;  %v2603_v35 = vpop.f32.mrb[20].mxu0  ;;  %vm2064_vm5 = vcmp.ge.f32.partialorder %v2056_v24, 0.0  ;;  %v2072_v52 = vmul.f32 0.2, %v2056_v24  ;;  %v2717_v37 = vld [vmem:[%s3871_s3] ss:$0 sm:$0xff] }
 0x8f2   : > { %v2059_v63 = vadd.f32 %v2716_v39, %v2051_v20  ;;  %v2035_v0 = vadd.f32 %v2603_v35, %v3149_v28  ;;  %v2029_v18 = vpop.f32.mrb[21].mxu0  ;;  %v2081_v54 = vsel %vm2065_vm4, %v2057_v51, %v2073_v44 }
 0x8f3   : > { %v2058_v42 = vadd.f32 %v2716_v39, %v2050_v61  ;;  %v2030_v32 = vadd.f32 %v2029_v18, %v3143_v26  ;;  %v2080_v41 = vsel %vm2064_vm5, %v2056_v24, %v2072_v52  ;;  %v2089_v15 = vmax.f32 %v3674_v38, %v2081_v54 }
 0x8f4   : > { %v2053_v36 = vmul.f32 %v2717_v37, %v2035_v0  ;;  %v2088_v28 = vmax.f32 %v3680_v25, %v2080_v41  ;;  %vm2067_vm6 = vcmp.ge.f32.partialorder %v2059_v63, 0.0  ;;  %v2075_v21 = vmul.f32 0.2, %v2059_v63 }
 0x8f5   : > { %vm2066_vm7 = vcmp.ge.f32.partialorder %v2058_v42, 0.0  ;;  %v2074_v26 = vmul.f32 0.2, %v2058_v42  ;;  %v2052_v38 = vmul.f32 %v2717_v37, %v2030_v32  ;;  %v2168_v6 = vadd.f32 %v2139_v56, %v2089_v15  ;;  %v2606_v58 = vpop.f32.mrb[22].mxu0 }
 0x8f6   : > { %v2061_v55 = vadd.f32 %v2716_v39, %v2053_v36  ;;  %v2167_v13 = vadd.f32 %v2136_v22, %v2088_v28  ;;  %v2083_v34 = vsel %vm2067_vm6, %v2059_v63, %v2075_v21  ;;  %v2045_v57 = vadd.f32 %v2606_v58, %v3146_v27  ;;  %v2039_v12 = vpop.f32.mrb[23].mxu0 }
 0x8f7   : > { %v2082_v62 = vsel %vm2066_vm7, %v2058_v42, %v2074_v26  ;;  %v2060_v9 = vadd.f32 %v2716_v39, %v2052_v38  ;;  %v2091_v25 = vmax.f32 %v3690_v23, %v2083_v34  ;;  %2176 = vst.msk [vmem:[%s3833_s16 + $0x8] sm:$0xff] %vm422_vm3, %v2168_v6  ;;  %v2040_v60 = vadd.f32 %v2039_v12, %v3140_v8 }
 0x8f8   : > { %v2090_v14 = vmax.f32 %v3696_v33, %v2082_v62  ;;  %2175 = vst.msk [vmem:[%s3833_s16] sm:$0xff] %vm422_vm3, %v2167_v13  ;;  %v2055_v19 = vmul.f32 %v2717_v37, %v2045_v57  ;;  %vm2069_vm8 = vcmp.ge.f32.partialorder %v2061_v55, 0.0  ;;  %v2077_v46 = vmul.f32 0.2, %v2061_v55 }
 0x8f9   : > { %v2170_v47 = vadd.f32 %v2614_v17, %v2091_v25  ;;  %v2054_v27 = vmul.f32 %v2717_v37, %v2040_v60  ;;  %vm2068_vm9 = vcmp.ge.f32.partialorder %v2060_v9, 0.0  ;;  %v2076_v3 = vmul.f32 0.2, %v2060_v9 }
 0x8fa   : > { %v2169_v22 = vadd.f32 %v3799_v50, %v2090_v14  ;;  %v2063_v56 = vadd.f32 %v2716_v39, %v2055_v19  ;;  %v2085_v23 = vsel %vm2069_vm8, %v2061_v55, %v2077_v46 }
 0x8fb   : > { %2178 = vst.msk [vmem:[%s3833_s16 + $0x18] sm:$0xff] %vm422_vm3, %v2170_v47  ;;  %v2062_v8 = vadd.f32 %v2716_v39, %v2054_v27  ;;  %v2084_v33 = vsel %vm2068_vm9, %v2060_v9, %v2076_v3  ;;  %v2093_v7 = vmax.f32 %v3704_v30, %v2085_v23 }
 0x8fc   : > { %2177 = vst.msk [vmem:[%s3833_s16 + $0x10] sm:$0xff] %vm422_vm3, %v2169_v22  ;;  %v2092_v17 = vmax.f32 %v3709_v2, %v2084_v33  ;;  %vm2071_vm10 = vcmp.ge.f32.partialorder %v2063_v56, 0.0  ;;  %v2079_v16 = vmul.f32 0.2, %v2063_v56 }
 0x8fd   : > { %vm2070_vm11 = vcmp.ge.f32.partialorder %v2062_v8, 0.0  ;;  %v2078_v50 = vmul.f32 0.2, %v2062_v8  ;;  %v2172_v43 = vadd.f32 %v3807_v5, %v2093_v7 }
 0x8fe   : > { %v2171_v10 = vadd.f32 %v3803_v40, %v2092_v17  ;;  %v2087_v48 = vsel %vm2071_vm10, %v2063_v56, %v2079_v16 }
 0x8ff   : > { %v2086_v4 = vsel %vm2070_vm11, %v2062_v8, %v2078_v50  ;;  %v2095_v1 = vmax.f32 %v3714_v45, %v2087_v48  ;;  %2180 = vst.msk [vmem:[%s3833_s16 + $0x28] sm:$0xff] %vm422_vm3, %v2172_v43 }
 0x900   : > { %v2094_v30 = vmax.f32 %v3719_v53, %v2086_v4  ;;  %2179 = vst.msk [vmem:[%s3833_s16 + $0x20] sm:$0xff] %vm422_vm3, %v2171_v10 }
 0x901   : > { %v2174_v2 = vadd.f32 %v3805_v31, %v2095_v1 }
 0x902   : > { %v2173_v51 = vadd.f32 %v3801_v29, %v2094_v30 }
 0x903   : > { %2182 = vst.msk [vmem:[%s3833_s16 + $0x38] sm:$0xff] %vm422_vm3, %v2174_v2 }
 0x904   : > { %2181 = vst.msk [vmem:[%s3833_s16 + $0x30] sm:$0xff] %vm422_vm3, %v2173_v51 }
 0x905 PF: > { %s16_s21 = sadd.s32 1, %s2724_s21  }
 0x906   : > { %p13_p4 = scmp.ge.s32.totalorder %s16_s21, 4  }
 0x908   :  { %15 = sbr.rel (!%p13_p4) target bundleno = 1 (0x1), region = 74 }

// kernel: edgeconv_res_feat.7
= control target key start
LH: loop header
LB: loop body
LE: loop exit
PB: predicated region body
PF: predicated region fallthrough
CT: control target
= control target key end

     0   :  { %s987_s27 = smov 0   ;;  %s1115_s0 = inlined_call_operand.vmem [shape: f32[2,64,32], index: 0, kind: input, shape index: {}]   ;;  %s1116_s1 = inlined_call_operand.vmem [shape: f32[2,64,32], index: 1, kind: input, shape index: {}]   ;;  %s1117_s2 = inlined_call_operand.vmem [shape: f32[2,64,64], index: 2, kind: input, shape index: {}]   ;;  %s1118_s3 = inlined_call_operand.vmem [shape: f32[32,128], index: 3, kind: input, shape index: {}]   ;;  %s1119_s4 = inlined_call_operand.vmem [shape: f32[32,128], index: 4, kind: input, shape index: {}]   ;;  %s1120_s5 = inlined_call_operand.vmem [shape: f32[64,128], index: 5, kind: input, shape index: {}]   ;;  %s1121_s6 = inlined_call_operand.vmem [shape: f32[1,128], index: 6, kind: input, shape index: {}]   ;;  %s1122_s7 = inlined_call_operand.vmem [shape: f32[1,128], index: 7, kind: input, shape index: {}]   ;;  %s1123_s8 = inlined_call_operand.vmem [shape: f32[2,1,256], index: 8, kind: output, shape index: {}]  }
   0x1 LB: > { %s811_s28 = sadd.s32 4294967295, %s940_s27   ;;  %p815_p0 = scmp.ge.s32.totalorder %s940_s27, 1  ;;  %s940_s27 = sphi %s987_s27, %s18_s27  }
   0x2   : > { %p282_p1 = scmp.lt.s32.totalorder %s940_s27, 3 }
   0x4   : > { %p283_p2 = pnand %p815_p0, %p282_p1 }
   0x5   : > { %v375_v0 = vld [vmem:[%s1119_s4] sm:$0xff] (!%p283_p2)  ;;  %v376_v1 = vld [vmem:[%s1119_s4 + $0x8] sm:$0xff] (!%p283_p2)  ;;  %p325_p3 = scmp.lt.s32.totalorder (!%p283_p2), %s811_s28, 1  ;;  %v377_v5 = vld [vmem:[%s1119_s4 + $0x10] sm:$0xff] (!%p283_p2)  ;;  %vm381_vm0 = vcmask (!%p283_p2), 261120   ;;  %vm560_vm1 = vcmask (!%p283_p2), 523264  }
   0x6   : > { %286 = sbr.rel (%p283_p2) target bundleno = 295 (0x127), region = 52  ;;  %v357_v2 = vld [vmem:[%s1118_s3] sm:$0xff] (!%p283_p2)  ;;  %v379_v3 = vpack.c.bf16 (!%p283_p2), %v376_v1, %v375_v0  ;;  %v358_v4 = vld [vmem:[%s1118_s3 + $0x8] sm:$0xff] (!%p283_p2)  ;;  %v378_v6 = vld [vmem:[%s1119_s4 + $0x18] sm:$0xff] (!%p283_p2) }
   0x7   : > { %v361_v7 = vpack.c.bf16 (!%p283_p2), %v358_v4, %v357_v2  ;;  %v380_v8 = vpack.c.bf16 (!%p283_p2), %v378_v6, %v377_v5  ;;  %v359_v9 = vld [vmem:[%s1118_s3 + $0x10] sm:$0xff] (!%p283_p2)  ;;  %v360_v10 = vld [vmem:[%s1118_s3 + $0x18] sm:$0xff] (!%p283_p2)  ;;  %v548_v12 = vld [vmem:[%s1120_s5] sm:$0xff] (!%p283_p2) }
   0x8   : > { %862 = vmatprep.subr.bf16.mxu1 (!%p283_p2), %v379_v3  ;;  %v362_v11 = vpack.c.bf16 (!%p283_p2), %v360_v10, %v359_v9  ;;  %v549_v13 = vld [vmem:[%s1120_s5 + $0x8] sm:$0xff] (!%p283_p2)  ;;  %v550_v14 = vld [vmem:[%s1120_s5 + $0x10] sm:$0xff] (!%p283_p2)  ;;  %v551_v15 = vld [vmem:[%s1120_s5 + $0x18] sm:$0xff] (!%p283_p2) }
   0x9   : > { %874 = vmatprep.subr.bf16.mxu0 (!%p283_p2), %v361_v7  ;;  %863 = vmatpush3.bf16.msra.mxu1 (!%p283_p2), %v379_v3  ;;  %v556_v19 = vpack.c.bf16 (!%p283_p2), %v549_v13, %v548_v12  ;;  %v557_v30 = vpack.c.bf16 (!%p283_p2), %v551_v15, %v550_v14  ;;  %v552_v35 = vld [vmem:[%s1120_s5 + $0x20] sm:$0xff] (!%p283_p2)  ;;  %v553_v36 = vld [vmem:[%s1120_s5 + $0x28] sm:$0xff] (!%p283_p2)  ;;  %v554_v43 = vld [vmem:[%s1120_s5 + $0x30] sm:$0xff] (!%p283_p2) }
   0xa   : > { %875 = vmatpush3.bf16.msra.mxu0 (!%p283_p2), %v361_v7  ;;  %864 = vmatprep.subr.bf16.mxu1 (!%p283_p2), %v380_v8  ;;  %v558_v42 = vpack.c.bf16 (!%p283_p2), %v553_v36, %v552_v35  ;;  %v555_v44 = vld [vmem:[%s1120_s5 + $0x38] sm:$0xff] (!%p283_p2)  ;;  %v835_v12 = vld [vmem:[%s1121_s6] ss:$0 sm:$0xff] (!%p283_p2) }
   0xb   : > { %876 = vmatprep.subr.bf16.mxu0 (!%p283_p2), %v362_v11  ;;  %v559_v51 = vpack.c.bf16 (!%p283_p2), %v555_v44, %v554_v43 }
   0xd   : > { %s1125_s28 = smov (!%p325_p3, %s811_s28), 1  ;;  %865 = vmatpush3.bf16.msra.mxu1 %v380_v8 }
   0xe   : > { %s1028_s29 = sshll.u32 %s1125_s28, 6  ;;  %877 = vmatpush3.bf16.msra.mxu0 %v362_v11  ;;  %902 = vmatprep.subr.bf16.mxu1 %v556_v19  ;;  %s822_s13 = sshll.u32 %s1125_s28, 1 }
   0xf   : > { %s1034_s10 = scalar_lea.vmem %s1116_s1, %s1028_s29  ;;  %s1048_s17 = scalar_lea.vmem %s1115_s0, %s1028_s29  ;;  %886 = vmatprep.subr.bf16.mxu0 %v556_v19 }
  0x10   : > { %v363_v16 = vld [vmem:[%s1034_s10] sm:$0xff]  ;;  %v364_v17 = vld [vmem:[%s1034_s10 + $0x8] sm:$0xff]  ;;  %v365_v18 = vld [vmem:[%s1034_s10 + $0x10] sm:$0xff]  ;;  %s1073_s24 = scalar_lea.vmem %s1117_s2, %s1028_s29  ;;  %s343_s16 = scalar_lea.vmem %s1123_s8, %s822_s13 }
  0x11   : > { %v371_v20 = vpack.c.bf16 %v364_v17, %v363_v16  ;;  %v345_v21 = vld [vmem:[%s1048_s17] sm:$0xff]  ;;  %v346_v22 = vld [vmem:[%s1048_s17 + $0x8] sm:$0xff]  ;;  %v366_v23 = vld [vmem:[%s1034_s10 + $0x18] sm:$0xff] }
  0x12   : > { %v353_v24 = vpack.c.bf16 %v346_v22, %v345_v21  ;;  %v372_v25 = vpack.c.bf16 %v366_v23, %v365_v18  ;;  %v347_v26 = vld [vmem:[%s1048_s17 + $0x10] sm:$0xff]  ;;  %v348_v27 = vld [vmem:[%s1048_s17 + $0x18] sm:$0xff]  ;;  %v367_v28 = vld [vmem:[%s1034_s10 + $0x20] sm:$0xff] }
  0x13   : > { %866 = vmatprep.mubr.msk.bf16.mxu1 %vm381_vm0, %v371_v20  ;;  %v354_v29 = vpack.c.bf16 %v348_v27, %v347_v26  ;;  %v368_v31 = vld [vmem:[%s1034_s10 + $0x28] sm:$0xff]  ;;  %v349_v32 = vld [vmem:[%s1048_s17 + $0x20] sm:$0xff]  ;;  %v369_v38 = vld [vmem:[%s1034_s10 + $0x30] sm:$0xff] }
  0x14   : > { %v350_v33 = vld [vmem:[%s1048_s17 + $0x28] sm:$0xff]  ;;  %878 = vmatprep.mubr.msk.bf16.mxu0 %vm381_vm0, %v353_v24  ;;  %v373_v34 = vpack.c.bf16 %v368_v31, %v367_v28  ;;  %867 = vmatmul.mubr.msk.bf16.vlgmr.msra.gmra.mrb[0].mxu1 %vm381_vm0, %v372_v25  ;;  %v370_v39 = vld [vmem:[%s1034_s10 + $0x38] sm:$0xff]  ;;  %v351_v40 = vld [vmem:[%s1048_s17 + $0x30] sm:$0xff] }
  0x15   : > { %v355_v37 = vpack.c.bf16 %v350_v33, %v349_v32  ;;  %879 = vmatmul.mubr.msk.bf16.vlgmr.msra.gmra.mrb[0].mxu0 %vm381_vm0, %v354_v29  ;;  %906 = vmatpush3.bf16.msra.mxu1 %v556_v19  ;;  %v352_v41 = vld [vmem:[%s1048_s17 + $0x38] sm:$0xff]  ;;  %v374_v45 = vpack.c.bf16 %v370_v39, %v369_v38  ;;  %v536_v46 = vld [vmem:[%s1073_s24] sm:$0xff]  ;;  %v537_v47 = vld [vmem:[%s1073_s24 + $0x8] sm:$0xff] }
  0x16   : > { %887 = vmatpush3.bf16.msra.mxu0 %v556_v19  ;;  %903 = vmatprep.subr.bf16.mxu1 %v557_v30  ;;  %v356_v48 = vpack.c.bf16 %v352_v41, %v351_v40  ;;  %v540_v49 = vld [vmem:[%s1073_s24 + $0x20] sm:$0xff]  ;;  %v541_v50 = vld [vmem:[%s1073_s24 + $0x28] sm:$0xff]  ;;  %v544_v52 = vpack.c.bf16 %v537_v47, %v536_v46  ;;  %v542_v54 = vld [vmem:[%s1073_s24 + $0x30] sm:$0xff] }
  0x17   : > { %888 = vmatprep.subr.bf16.mxu0 %v557_v30  ;;  %870 = vmatprep.mubr.msk.bf16.mxu1 %vm381_vm0, %v373_v34  ;;  %v546_v53 = vpack.c.bf16 %v541_v50, %v540_v49  ;;  %v543_v55 = vld [vmem:[%s1073_s24 + $0x38] sm:$0xff]  ;;  %v538_v56 = vld [vmem:[%s1073_s24 + $0x10] sm:$0xff]  ;;  %v836_v18 = vld [vmem:[%s1122_s7] ss:$0 sm:$0xff] }
  0x18   : > { %882 = vmatprep.mubr.msk.bf16.mxu0 %vm381_vm0, %v355_v37  ;;  %v539_v57 = vld [vmem:[%s1073_s24 + $0x18] sm:$0xff]  ;;  %v547_v58 = vpack.c.bf16 %v543_v55, %v542_v54 }
  0x19   : > { %907 = vmatpush3.bf16.msra.mxu1 %v557_v30  ;;  %v545_v59 = vpack.c.bf16 %v539_v57, %v538_v56 }
  0x1a   : > { %889 = vmatpush3.bf16.msra.mxu0 %v557_v30  ;;  %904 = vmatprep.subr.bf16.mxu1 %v558_v42 }
  0x1b   : > { %890 = vmatprep.subr.bf16.mxu0 %v558_v42 }
  0x1c   : > { %871 = vmatmul.mubr.msk.bf16.gmra.mrb[4].mxu1 %vm381_vm0, %v374_v45 }
  0x1d   : > { %883 = vmatmul.mubr.msk.bf16.gmra.mrb[4].mxu0 %vm381_vm0, %v356_v48  ;;  %908 = vmatpush3.bf16.msra.mxu1 %v558_v42 }
  0x1e   : > { %891 = vmatpush3.bf16.msra.mxu0 %v558_v42  ;;  %905 = vmatprep.subr.bf16.mxu1 %v559_v51 }
  0x1f   : > { %892 = vmatprep.subr.bf16.mxu0 %v559_v51  ;;  %894 = vmatprep.mubr.msk.bf16.mxu0 %vm560_vm1, %v544_v52 }
  0x20   : > { %898 = vmatprep.mubr.msk.bf16.mxu1 %vm560_vm1, %v546_v53 }
  0x21   : > { %909 = vmatpush3.bf16.msra.mxu1 %v559_v51 }
  0x22   : > { %893 = vmatpush3.bf16.msra.mxu0 %v559_v51 }
  0x24   : > { %899 = vmatmul.mubr.msk.bf16.vlgmr.msra.gmra.mrb[8].mxu1 %vm560_vm1, %v547_v58 }
  0x25   : > { %895 = vmatmul.mubr.msk.bf16.vlgmr.msra.gmra.mrb[0].mxu0 %vm560_vm1, %v545_v59 }
  0xe7   : > { %v868_v60 = vpop.f32.mrb[0].mxu1 }
  0xe8   : > { %v428_v61 = vpop.f32.mrb[1].mxu1 }
  0xe9   : > { %v869_v62 = vpop.f32.mrb[2].mxu1 }
  0xea   : > { %v431_v63 = vpop.f32.mrb[3].mxu1 }
  0xef   : > { %v872_v0 = vpop.f32.mrb[4].mxu1 }
  0xf0   : > { %v884_v1 = vpop.f32.mrb[4].mxu0  ;;  %v444_v2 = vpop.f32.mrb[5].mxu1 }
  0xf1   : > { %v530_v3 = vadd.f32 %v884_v1, %v872_v0  ;;  %v521_v4 = vpop.f32.mrb[5].mxu0  ;;  %v873_v5 = vpop.f32.mrb[6].mxu1 }
  0xf2   : > { %v522_v6 = vadd.f32 %v521_v4, %v444_v2  ;;  %v885_v7 = vpop.f32.mrb[6].mxu0  ;;  %v447_v8 = vpop.f32.mrb[7].mxu1 }
  0xf3   : > { %v533_v9 = vadd.f32 %v885_v7, %v873_v5  ;;  %v524_v10 = vpop.f32.mrb[7].mxu0 }
  0xf4   : > { %v525_v11 = vadd.f32 %v524_v10, %v447_v8 }
  0xf7   : > { %v900_v13 = vpop.f32.mrb[8].mxu1 }
  0xf8   : > { %v896_v14 = vpop.f32.mrb[0].mxu0  ;;  %v644_v15 = vadd.f32 %v900_v13, %v530_v3  ;;  %v623_v16 = vpop.f32.mrb[9].mxu1 }
  0xf9   : > { %v910_v17 = vadd.f32 %v896_v14, %v868_v60  ;;  %v607_v19 = vpop.f32.mrb[1].mxu0  ;;  %v642_v20 = vadd.f32 %v623_v16, %v522_v6  ;;  %v901_v21 = vpop.f32.mrb[10].mxu1  ;;  %v713_v14 = vlaneseq }
  0xfa   : > { %v659_v22 = vmul.f32 %v835_v12, %v644_v15  ;;  %v911_v23 = vadd.f32 %v607_v19, %v428_v61  ;;  %v897_v24 = vpop.f32.mrb[2].mxu0  ;;  %v645_v25 = vadd.f32 %v901_v21, %v533_v9  ;;  %v626_v26 = vpop.f32.mrb[11].mxu1 }
  0xfb   : > { %v655_v27 = vmul.f32 %v910_v17, %v835_v12  ;;  %v657_v28 = vmul.f32 %v835_v12, %v642_v20  ;;  %v912_v29 = vadd.f32 %v897_v24, %v869_v62  ;;  %v610_v30 = vpop.f32.mrb[3].mxu0  ;;  %v643_v31 = vadd.f32 %v626_v26, %v525_v11 }
  0xfc   : > { %v674_v32 = vadd.f32 %v836_v18, %v659_v22  ;;  %v653_v33 = vmul.f32 %v911_v23, %v835_v12  ;;  %v660_v34 = vmul.f32 %v835_v12, %v645_v25  ;;  %v913_v35 = vadd.f32 %v610_v30, %v431_v63 }
  0xfd   : > { %v670_v36 = vadd.f32 %v836_v18, %v655_v27  ;;  %v672_v37 = vadd.f32 %v836_v18, %v657_v28  ;;  %v656_v38 = vmul.f32 %v912_v29, %v835_v12  ;;  %v658_v39 = vmul.f32 %v835_v12, %v643_v31 }
  0xfe   : > { %vm682_vm2 = vcmp.ge.f32.partialorder %v674_v32, 0.0  ;;  %v690_v40 = vmul.f32 0.2, %v674_v32  ;;  %v668_v41 = vadd.f32 %v836_v18, %v653_v33  ;;  %v675_v42 = vadd.f32 %v836_v18, %v660_v34 }
  0xff   : > { %vm678_vm3 = vcmp.ge.f32.partialorder %v670_v36, 0.0  ;;  %v686_v43 = vmul.f32 0.2, %v670_v36  ;;  %vm680_vm4 = vcmp.ge.f32.partialorder %v672_v37, 0.0  ;;  %v688_v44 = vmul.f32 0.2, %v672_v37 }
 0x100   : > { %v698_v45 = vsel %vm682_vm2, %v674_v32, %v690_v40  ;;  %vm676_vm5 = vcmp.ge.f32.partialorder %v668_v41, 0.0  ;;  %v684_v46 = vmul.f32 0.2, %v668_v41  ;;  %v671_v47 = vadd.f32 %v836_v18, %v656_v38 }
 0x101   : > { %v694_v48 = vsel %vm678_vm3, %v670_v36, %v686_v43  ;;  %v696_v49 = vsel %vm680_vm4, %v672_v37, %v688_v44  ;;  %vm683_vm6 = vcmp.ge.f32.partialorder %v675_v42, 0.0  ;;  %v691_v50 = vmul.f32 0.2, %v675_v42 }
 0x102   : > { %v702_v51 = vmax.f32 %v694_v48, %v698_v45  ;;  %v692_v52 = vsel %vm676_vm5, %v668_v41, %v684_v46  ;;  %vm679_vm7 = vcmp.ge.f32.partialorder %v671_v47, 0.0  ;;  %v687_v53 = vmul.f32 0.2, %v671_v47 }
 0x103   : > { %v700_v54 = vmax.f32 %v692_v52, %v696_v49  ;;  %v699_v55 = vsel %vm683_vm6, %v675_v42, %v691_v50  ;;  %v654_v56 = vmul.f32 %v913_v35, %v835_v12  ;;  %v673_v57 = vadd.f32 %v836_v18, %v658_v39 }
 0x104   : > { %v695_v58 = vsel %vm679_vm7, %v671_v47, %v687_v53  ;;  %vm715_vm10 = vcmp.lt.s32.totalorder %v713_v14, 128 }
 0x105   : > { %v703_v59 = vmax.f32 %v695_v58, %v699_v55  ;;  %v669_v60 = vadd.f32 %v836_v18, %v654_v56  ;;  %vm681_vm8 = vcmp.ge.f32.partialorder %v673_v57, 0.0  ;;  %v689_v61 = vmul.f32 0.2, %v673_v57 }
 0x107   : > { %v705_v62 = vmax.f32 %v702_v51, %v703_v59  ;;  %vm677_vm9 = vcmp.ge.f32.partialorder %v669_v60, 0.0  ;;  %v685_v63 = vmul.f32 0.2, %v669_v60  ;;  %v697_v0 = vsel %vm681_vm8, %v673_v57, %v689_v61 }
 0x109   : > { %v693_v1 = vsel %vm677_vm9, %v669_v60, %v685_v63 }
 0x10a   : > { %v718_v2 = vadd.f32 %v693_v1, %v692_v52  ;;  %v701_v3 = vmax.f32 %v693_v1, %v697_v0 }
 0x10c   : > { %v719_v4 = vadd.f32 %v718_v2, %v694_v48  ;;  %v704_v5 = vmax.f32 %v700_v54, %v701_v3 }
 0x10e   : > { %v706_v6 = vmax.f32 %v704_v5, %v705_v62  ;;  %v720_v7 = vadd.f32 %v719_v4, %v695_v58 }
 0x110   : > { %v707_v8 = vrot.slane %v706_v6, 4  ;;  %v721_v9 = vadd.f32 %v720_v7, %v696_v49 }
 0x112   : > { %v708_v10 = vmax.f32 %v706_v6, %v707_v8  ;;  %v722_v11 = vadd.f32 %v721_v9, %v697_v0 }
 0x114   : > { %v709_v12 = vrot.slane %v708_v10, 2  ;;  %v723_v13 = vadd.f32 %v722_v11, %v698_v45 }
 0x116   : > { %v710_v15 = vmax.f32 %v708_v10, %v709_v12  ;;  %v724_v16 = vadd.f32 %v723_v13, %v699_v55 }
 0x118   : > { %v711_v17 = vrot.slane %v710_v15, 1  ;;  %v725_v18 = vrot.slane %v724_v16, 4 }
 0x11a   : > { %v712_v19 = vmax.f32 %v710_v15, %v711_v17  ;;  %v726_v20 = vadd.f32 %v725_v18, %v724_v16 }
 0x11c   : > { %717 = vst.msk [vmem:[%s343_s16] sm:$0x1] %vm715_vm10, %v712_v19  ;;  %v727_v21 = vrot.slane %v726_v20, 2 }
 0x11e   : > { %v728_v22 = vadd.f32 %v727_v21, %v726_v20 }
 0x120   : > { %v729_v23 = vrot.slane %v728_v22, 1 }
 0x122   : > { %v730_v24 = vadd.f32 %v729_v23, %v728_v22 }
 0x124   : > { %v732_v25 = vmul.f32 0.015625, %v730_v24 }
 0x126   : > { %733 = vst.msk [vmem:[%s343_s16 + $0x1] sm:$0x1] %vm715_vm10, %v732_v25 }
 0x127 PF: > { %s18_s27 = sadd.s32 1, %s940_s27  }
 0x128   : > { %p15_p4 = scmp.ge.s32.totalorder %s18_s27, 4  }
 0x12a   :  { %17 = sbr.rel (!%p15_p4) target bundleno = 1 (0x1), region = 88 }

</bundles_post_ra>
